<compile_context>
chip_gen: v5e
topology: v5e:2x2
jax: 0.10.0
libtpu: 0.0.40
codegen_flags: <defaults>
</compile_context>

<pallas_src>
import jax
import jax.numpy as jnp
from jax import lax
from jax.experimental import pallas as pl
from jax.experimental.pallas import tpu as pltpu

# ----------------------------- configuration -----------------------------
SRC_VOCAB = 20
TRG_VOCAB = 24          # decoder.trg_vocab_size
VOCAB_PAD = 128         # vocab lane dim padded to one full 128-lane vreg width
EMBED = 16
HIDDEN = 32
N_LAYERS = 1            # TODO(synk): stacked (n_layers > 1) LSTMs not implemented; n_layers=1 only.
T_SRC = 8
T_TRG = 8               # max_length = trg.size(0)
BATCH = 2
SOS_TOKEN = 1
EOS_TOKEN = 2
NEG_INF = -1e9          # bias baked into the padded vocab lanes


def _vmem_spec():
    return pl.BlockSpec(memory_space=pltpu.MemorySpace.VMEM)


# ---------------- fused bidirectional encoder LSTM kernel -----------------
def _bidir_encoder_kernel(xp_ref, whh_ref, enc_ref, h0_ref, c0_ref, of_scr, ob_scr):
    """Both LSTM directions fused; the whole time recurrence in one invocation.

    xp_ref : (T, B, 8H) precomputed input projections, gate-interleaved lanes
             [i_f i_b f_f f_b g_f g_b o_f o_b]; the backward half is already
             time-reversed in the wrapper (so step t consumes src pos T-1-t).
    whh_ref: (2H, 8H) block-diagonal recurrent weight with the same layout.
    """
    T, B, H = enc_ref.shape
    H2 = 2 * H
    whh = whh_ref[...]                                     # hoisted, loaded once

    def step(t, carry):
        h, c = carry                                       # (B, 2H): [fwd | bwd]
        gates = xp_ref[t] + jnp.dot(h, whh, preferred_element_type=jnp.float32)  # (B, 8H)
        i = jax.nn.sigmoid(gates[:, 0 * H2:1 * H2])        # [i_f | i_b]
        f = jax.nn.sigmoid(gates[:, 1 * H2:2 * H2])        # [f_f | f_b]
        g = jnp.tanh(gates[:, 2 * H2:3 * H2])              # [g_f | g_b]
        o = jax.nn.sigmoid(gates[:, 3 * H2:4 * H2])        # [o_f | o_b]
        c_new = f * c + i * g
        h_new = o * jnp.tanh(c_new)
        of_scr[t] = h_new[:, :H]                           # fwd output @ source pos t
        ob_scr[T - 1 - t] = h_new[:, H:]                   # bwd output @ source pos T-1-t
        return h_new, c_new

    zero = jnp.zeros((B, H2), jnp.float32)
    h_fin, c_fin = lax.fori_loop(0, T, step, (zero, zero), unroll=True)

    enc_ref[...] = of_scr[...] + ob_scr[...]               # direction-summed, one write
    h0_ref[...] = h_fin[:, :H]                             # decoder init = forward finals
    c0_ref[...] = c_fin[:, :H]


def bidir_encoder(xp_cat, whh_cat, hidden):
    """xp_cat: (T, B, 8H) interleaved input projections.  Returns
    (enc_out (T,B,H), h_fwd_final (B,H), c_fwd_final (B,H))."""
    T, B, _ = xp_cat.shape
    H = hidden
    return pl.pallas_call(
        _bidir_encoder_kernel,
        out_shape=(jax.ShapeDtypeStruct((T, B, H), jnp.float32),
                   jax.ShapeDtypeStruct((B, H), jnp.float32),
                   jax.ShapeDtypeStruct((B, H), jnp.float32)),
        in_specs=[_vmem_spec(), _vmem_spec()],
        out_specs=(_vmem_spec(), _vmem_spec(), _vmem_spec()),
        scratch_shapes=[pltpu.VMEM((T, B, H), jnp.float32),
                        pltpu.VMEM((T, B, H), jnp.float32)],
    )(xp_cat, whh_cat)


# ----------------------- fused attention-decoder kernel --------------------
def _fused_decoder_kernel(mask_ref, temb_ref, enc_ref, eproj_ref, h0_ref, c0_ref,
                          etbl_ref, wa_h_ref, v_ref, wg_ref, bg_ref, wo_ref, bo_ref,
                          out_ref):
    """Whole teacher-forced decode loop in one invocation (no grid).

    Loop step s produces decoder time step t = s + 1 (row 0 of the output stays
    zero, matching the PyTorch reference).  The vocab lane dim is padded to 128
    (zero weight columns, -1e9 bias) so the max / log-softmax / argmax over the
    full lane width remain correct and the per-step store is lane-dense."""
    L, B, Vp = out_ref.shape
    H = h0_ref.shape[-1]

    # hoisted resident loads (constants for the whole unrolled loop)
    enc = enc_ref[...]                                   # (Ts, B, H)
    eproj = eproj_ref[...]                               # (Ts, B, H) = enc@Wa_e + ba
    etbl = etbl_ref[...]                                 # (Vp, E), padded rows zero
    wa_h = wa_h_ref[...]                                 # (H, H)
    v = v_ref[...]                                       # (1, H)
    wg = wg_ref[...]                                     # (E+2H, 4H) = [wih_e; wih_c; whh]
    bg = bg_ref[...]                                     # (1, 4H)
    wo = wo_ref[...]                                     # (2H, Vp) = [wout_h; wout_c]
    bo = bo_ref[...]                                     # (1, Vp), padded lanes = -1e9
    lane_idx = lax.broadcasted_iota(jnp.int32, (B, Vp), 1)

    out_ref[...] = jnp.zeros((L, B, Vp), jnp.float32)    # row 0 stays zero

    def step(s, carry):
        h, c, emb = carry                                # (B,H), (B,H), (B,E)
        t = s + 1

        # ---- additive attention (softmax over source positions) ----
        h_proj = jnp.dot(h, wa_h, preferred_element_type=jnp.float32)      # (B,H)
        energy = jax.nn.relu(h_proj[None, :, :] + eproj)                   # (Ts,B,H)
        scores = jnp.sum(energy * v[None, :, :], axis=-1, keepdims=True)   # (Ts,B,1)
        m_s = jnp.max(scores, axis=0, keepdims=True)
        expw = jnp.exp(scores - m_s)
        inv = pl.reciprocal(jnp.sum(expw, axis=0, keepdims=True), approx=True)
        attn = expw * inv                                                  # (Ts,B,1)
        context = jnp.sum(attn * enc, axis=0)                              # (B,H)

        # ---- fused LSTM gates: ONE matmul on [embedded | context | h] ----
        xcat = jnp.concatenate([emb, context, h], axis=-1)                 # (B, E+2H)
        gates = jnp.dot(xcat, wg, preferred_element_type=jnp.float32) + bg  # (B, 4H)
        i = jax.nn.sigmoid(gates[:, 0 * H:1 * H])
        f = jax.nn.sigmoid(gates[:, 1 * H:2 * H])
        g = jnp.tanh(gates[:, 2 * H:3 * H])
        o = jax.nn.sigmoid(gates[:, 3 * H:4 * H])
        c_new = f * c + i * g
        h_new = o * jnp.tanh(c_new)

        # ---- fused output projection of [h_new | context] + log-softmax ----
        ocat = jnp.concatenate([h_new, context], axis=-1)                  # (B, 2H)
        logits = jnp.dot(ocat, wo, preferred_element_type=jnp.float32) + bo  # (B, Vp)
        m_l = jnp.max(logits, axis=-1, keepdims=True)
        lse = m_l + jnp.log(jnp.sum(jnp.exp(logits - m_l), axis=-1, keepdims=True))
        out_ref[t] = logits - lse                                          # lane-dense store

        # ---- next input: teacher-forcing blend vs. in-kernel argmax embed ----
        top1 = jnp.min(jnp.where(logits == m_l, lane_idx, Vp), axis=1, keepdims=True)
        greedy_emb = jnp.dot((lane_idx == top1).astype(jnp.float32), etbl,
                             preferred_element_type=jnp.float32)           # (B, E)
        m = mask_ref[t]                                                    # (1,) f32
        nxt_emb = m * temb_ref[t] + (1.0 - m) * greedy_emb
        return h_new, c_new, nxt_emb

    lax.fori_loop(0, L - 1, step,
                  (h0_ref[...], c0_ref[...], temb_ref[0]),                 # input 0 = trg[0]
                  unroll=True)


def fused_decoder(tf_mask, teacher_emb, enc, eproj, h0, c0,
                  etbl_pad, wa_h, v, wg, bg, wo_pad, bo_pad):
    L, B, _ = teacher_emb.shape
    Vp = wo_pad.shape[-1]
    return pl.pallas_call(
        _fused_decoder_kernel,
        out_shape=jax.ShapeDtypeStruct((L, B, Vp), jnp.float32),
        in_specs=[_vmem_spec() for _ in range(13)],
        out_specs=_vmem_spec(),
    )(tf_mask, teacher_emb, enc, eproj, h0, c0,
      etbl_pad, wa_h, v, wg, bg, wo_pad, bo_pad)


# ------------------------------- parameters -------------------------------
def init_params(key):
    ks = iter(jax.random.split(key, 32))
    s = 0.1

    def rnd(shape):
        return s * jax.random.normal(next(ks), shape, dtype=jnp.float32)

    params = {
        # encoder
        'src_embed': rnd((SRC_VOCAB, EMBED)),
        'enc_wih_f': rnd((EMBED, 4 * HIDDEN)),
        'enc_whh_f': rnd((HIDDEN, 4 * HIDDEN)),
        'enc_b_f':   rnd((1, 4 * HIDDEN)),
        'enc_wih_b': rnd((EMBED, 4 * HIDDEN)),
        'enc_whh_b': rnd((HIDDEN, 4 * HIDDEN)),
        'enc_b_b':   rnd((1, 4 * HIDDEN)),
        # decoder
        'trg_embed': rnd((TRG_VOCAB, EMBED)),
        'wa_h':   rnd((HIDDEN, HIDDEN)),     # attention Linear(2H->H), hidden half
        'wa_e':   rnd((HIDDEN, HIDDEN)),     # attention Linear(2H->H), encoder half
        'ba':     rnd((1, HIDDEN)),
        'v':      rnd((1, HIDDEN)),          # attention score vector
        'wih_e':  rnd((EMBED, 4 * HIDDEN)),  # decoder LSTM input (embedded half)
        'wih_c':  rnd((HIDDEN, 4 * HIDDEN)), # decoder LSTM input (context half)
        'whh':    rnd((HIDDEN, 4 * HIDDEN)),
        'bl':     rnd((1, 4 * HIDDEN)),
        'wout_h': rnd((HIDDEN, TRG_VOCAB)),  # out Linear(2H->V), hidden half
        'wout_c': rnd((HIDDEN, TRG_VOCAB)),  # out Linear(2H->V), context half
        'bout':   rnd((1, TRG_VOCAB)),
    }
    return params


# ------------------------------ full forward ------------------------------
def seq2seq_forward(params, src, trg, teacher_mask):
    """src: (T_src, B) int32, trg: (T_trg, B) int32.
    teacher_mask: (T_trg,) bool, the per-step `random.random() < ratio` draws
    (precomputed for determinism).  Returns log-softmax outputs (T_trg, B, V);
    outputs[0] is all zeros, matching the PyTorch reference."""
    T, B = src.shape
    L = trg.shape[0]
    H, E, V, Vp = HIDDEN, EMBED, TRG_VOCAB, VOCAB_PAD

    # ---- encoder input projections: ONE matmul per direction for all steps ----
    x = params['src_embed'][src]                                   # (T,B,E) gather glue
    x_flat = x.reshape(T * B, E)
    xpf = (x_flat @ params['enc_wih_f'] + params['enc_b_f']).reshape(T, B, 4, H)
    xpb = (x_flat @ params['enc_wih_b'] + params['enc_b_b']).reshape(T, B, 4, H)
    # backward direction consumes the source reversed in time; interleave per gate
    # -> (T, B, 8H) lane layout [i_f i_b f_f f_b g_f g_b o_f o_b]
    xp_cat = jnp.stack([xpf, xpb[::-1]], axis=3).reshape(T, B, 8 * H)

    # gate-interleaved block-diagonal recurrent weight (2H, 8H): h_f rows feed
    # only forward gates, h_b rows only backward gates
    f4 = params['enc_whh_f'].reshape(H, 4, 1, H)
    b4 = params['enc_whh_b'].reshape(H, 4, 1, H)
    z4 = jnp.zeros_like(f4)
    whh_cat = jnp.concatenate(
        [jnp.concatenate([f4, z4], axis=2).reshape(H, 8 * H),
         jnp.concatenate([z4, b4], axis=2).reshape(H, 8 * H)], axis=0)

    # fused bidirectional encoder (single invocation, directions fused per step)
    enc_out, h0, c0 = bidir_encoder(xp_cat, whh_cat, H)

    # loop-invariant attention projection, hoisted out of the decode loop
    eproj = (enc_out.reshape(T * B, H) @ params['wa_e'] + params['ba']).reshape(T, B, H)

    # ---- decoder prep: fused weights, padded vocab lanes, teacher embeddings ----
    teacher_emb = params['trg_embed'][trg]                         # (L,B,E) gather glue
    tf_mask = teacher_mask.astype(jnp.float32).reshape(L, 1)

    wg = jnp.concatenate([params['wih_e'], params['wih_c'], params['whh']],
                         axis=0)                                   # (E+2H, 4H)
    wo_pad = jnp.zeros((2 * H, Vp), jnp.float32).at[:, :V].set(
        jnp.concatenate([params['wout_h'], params['wout_c']], axis=0))
    bo_pad = jnp.full((1, Vp), NEG_INF, jnp.float32).at[:, :V].set(params['bout'])
    etbl_pad = jnp.zeros((Vp, E), jnp.float32).at[:V].set(params['trg_embed'])

    # fused decoder: whole teacher-forced decode loop in one kernel invocation
    out_pad = fused_decoder(tf_mask, teacher_emb, enc_out, eproj, h0, c0,
                            etbl_pad, params['wa_h'], params['v'],
                            wg, params['bl'], wo_pad, bo_pad)
    return out_pad[:, :, :V]


# ---------------------------------- main ----------------------------------
if __name__ == "__main__":
    key = jax.random.PRNGKey(0)
    k_src, k_trg, k_tf, k_par = jax.random.split(key, 4)

    src = jax.random.randint(k_src, (T_SRC, BATCH), 0, SRC_VOCAB, dtype=jnp.int32)
    trg = jax.random.randint(k_trg, (T_TRG, BATCH), 0, TRG_VOCAB, dtype=jnp.int32)
    trg = trg.at[0].set(SOS_TOKEN)
    # emulate per-step `random.random() < teacher_forcing_ratio` deterministically
    teacher_mask = jax.random.bernoulli(k_tf, 0.5, (T_TRG,))

    params = init_params(k_par)

    fwd = jax.jit(seq2seq_forward)
    outputs = fwd(params, src, trg, teacher_mask)
    jax.block_until_ready(outputs)

    assert outputs.shape == (T_TRG, BATCH, TRG_VOCAB)
    assert bool(jnp.all(outputs[0] == 0.0))
    # rows (t >= 1) are log-softmax: each sums to ~1 after exp
    row_sums = jnp.sum(jnp.exp(outputs[1:]), axis=-1)
    assert bool(jnp.all(jnp.abs(row_sums - 1.0) < 1e-3))
    print("KERNEL_OK")
</pallas_src>

<mosaic_0001>
module attributes {stable_mosaic.version = 11 : i64} {
  func.func @_bidir_encoder_kernel(%arg0: memref<8x2x256xf32, #tpu.memory_space<vmem>>, %arg1: memref<64x256xf32, #tpu.memory_space<vmem>>, %arg2: memref<8x2x32xf32, #tpu.memory_space<vmem>>, %arg3: memref<2x32xf32, #tpu.memory_space<vmem>>, %arg4: memref<2x32xf32, #tpu.memory_space<vmem>>, %arg5: memref<8x2x32xf32, #tpu.memory_space<vmem>>, %arg6: memref<8x2x32xf32, #tpu.memory_space<vmem>>) attributes {dimension_semantics = [], scalar_prefetch = 0 : i64, scratch_operands = 2 : i64, tpu.core_type = #tpu.core_type<tc>} {
    %c0 = arith.constant 0 : index
    %c0_0 = arith.constant 0 : index
    %0 = vector.load %arg1[%c0, %c0_0] : memref<64x256xf32, #tpu.memory_space<vmem>>, vector<64x256xf32>
    %cst = arith.constant 0.000000e+00 : f32
    %1 = vector.broadcast %cst : f32 to vector<2x64xf32>
    %c0_i32 = arith.constant 0 : i32
    %2 = arith.index_cast %c0_i32 : i32 to index
    %c0_1 = arith.constant 0 : index
    %c0_2 = arith.constant 0 : index
    %3 = vector.load %arg0[%2, %c0_1, %c0_2] : memref<8x2x256xf32, #tpu.memory_space<vmem>>, vector<1x2x256xf32>
    %4 = vector.shape_cast %3 : vector<1x2x256xf32> to vector<2x256xf32>
    %cst_3 = arith.constant dense<0.000000e+00> : vector<2x256xf32>
    %5 = tpu.matmul %1, %0, %cst_3 {dimension_numbers = #tpu.dot_dimension_numbers<[1], [0], [0], [1], [0, 0, 1, 1], [], []>} : vector<2x64xf32>, vector<64x256xf32>, vector<2x256xf32> -> vector<2x256xf32>
    %6 = arith.addf %4, %5 : vector<2x256xf32>
    %7 = vector.extract_strided_slice %6 {offsets = [0, 0], sizes = [2, 64], strides = [1, 1]} : vector<2x256xf32> to vector<2x64xf32>
    %8 = arith.negf %7 : vector<2x64xf32>
    %9 = math.exp %8 : vector<2x64xf32>
    %cst_4 = arith.constant 1.000000e+00 : f32
    %10 = vector.broadcast %cst_4 : f32 to vector<2x64xf32>
    %11 = arith.addf %10, %9 : vector<2x64xf32>
    %12 = arith.divf %10, %11 : vector<2x64xf32>
    %13 = vector.extract_strided_slice %6 {offsets = [0, 64], sizes = [2, 64], strides = [1, 1]} : vector<2x256xf32> to vector<2x64xf32>
    %14 = arith.negf %13 : vector<2x64xf32>
    %15 = math.exp %14 : vector<2x64xf32>
    %cst_5 = arith.constant 1.000000e+00 : f32
    %16 = vector.broadcast %cst_5 : f32 to vector<2x64xf32>
    %17 = arith.addf %16, %15 : vector<2x64xf32>
    %18 = arith.divf %16, %17 : vector<2x64xf32>
    %19 = vector.extract_strided_slice %6 {offsets = [0, 128], sizes = [2, 64], strides = [1, 1]} : vector<2x256xf32> to vector<2x64xf32>
    %20 = math.tanh %19 : vector<2x64xf32>
    %21 = vector.extract_strided_slice %6 {offsets = [0, 192], sizes = [2, 64], strides = [1, 1]} : vector<2x256xf32> to vector<2x64xf32>
    %22 = arith.negf %21 : vector<2x64xf32>
    %23 = math.exp %22 : vector<2x64xf32>
    %cst_6 = arith.constant 1.000000e+00 : f32
    %24 = vector.broadcast %cst_6 : f32 to vector<2x64xf32>
    %25 = arith.addf %24, %23 : vector<2x64xf32>
    %26 = arith.divf %24, %25 : vector<2x64xf32>
    %27 = arith.mulf %18, %1 : vector<2x64xf32>
    %28 = arith.mulf %12, %20 : vector<2x64xf32>
    %29 = arith.addf %27, %28 : vector<2x64xf32>
    %30 = math.tanh %29 : vector<2x64xf32>
    %31 = arith.mulf %26, %30 : vector<2x64xf32>
    %32 = vector.extract_strided_slice %31 {offsets = [0, 0], sizes = [2, 32], strides = [1, 1]} : vector<2x64xf32> to vector<2x32xf32>
    %33 = arith.index_cast %c0_i32 : i32 to index
    %c0_7 = arith.constant 0 : index
    %c0_8 = arith.constant 0 : index
    %34 = vector.load %arg5[%33, %c0_7, %c0_8] : memref<8x2x32xf32, #tpu.memory_space<vmem>>, vector<1x2x32xf32>
    %35 = vector.shape_cast %34 : vector<1x2x32xf32> to vector<2x32xf32>
    %36 = vector.shape_cast %32 : vector<2x32xf32> to vector<1x2x32xf32>
    tpu.vector_store %arg5[%33, %c0_7, %c0_8], %36 {strides = array<i32>} : memref<8x2x32xf32, #tpu.memory_space<vmem>>, vector<1x2x32xf32>,
    %37 = vector.extract_strided_slice %31 {offsets = [0, 32], sizes = [2, 32], strides = [1, 1]} : vector<2x64xf32> to vector<2x32xf32>
    %c7_i32 = arith.constant 7 : i32
    %38 = arith.subi %c7_i32, %c0_i32 : i32
    %39 = arith.index_cast %38 : i32 to index
    %c0_9 = arith.constant 0 : index
    %c0_10 = arith.constant 0 : index
    %40 = vector.load %arg6[%39, %c0_9, %c0_10] : memref<8x2x32xf32, #tpu.memory_space<vmem>>, vector<1x2x32xf32>
    %41 = vector.shape_cast %40 : vector<1x2x32xf32> to vector<2x32xf32>
    %42 = vector.shape_cast %37 : vector<2x32xf32> to vector<1x2x32xf32>
    tpu.vector_store %arg6[%39, %c0_9, %c0_10], %42 {strides = array<i32>} : memref<8x2x32xf32, #tpu.memory_space<vmem>>, vector<1x2x32xf32>,
    %c1_i32 = arith.constant 1 : i32
    %43 = arith.index_cast %c1_i32 : i32 to index
    %c0_11 = arith.constant 0 : index
    %c0_12 = arith.constant 0 : index
    %44 = vector.load %arg0[%43, %c0_11, %c0_12] : memref<8x2x256xf32, #tpu.memory_space<vmem>>, vector<1x2x256xf32>
    %45 = vector.shape_cast %44 : vector<1x2x256xf32> to vector<2x256xf32>
    %cst_13 = arith.constant dense<0.000000e+00> : vector<2x256xf32>
    %46 = tpu.matmul %31, %0, %cst_13 {dimension_numbers = #tpu.dot_dimension_numbers<[1], [0], [0], [1], [0, 0, 1, 1], [], []>} : vector<2x64xf32>, vector<64x256xf32>, vector<2x256xf32> -> vector<2x256xf32>
    %47 = arith.addf %45, %46 : vector<2x256xf32>
    %48 = vector.extract_strided_slice %47 {offsets = [0, 0], sizes = [2, 64], strides = [1, 1]} : vector<2x256xf32> to vector<2x64xf32>
    %49 = arith.negf %48 : vector<2x64xf32>
    %50 = math.exp %49 : vector<2x64xf32>
    %cst_14 = arith.constant 1.000000e+00 : f32
    %51 = vector.broadcast %cst_14 : f32 to vector<2x64xf32>
    %52 = arith.addf %51, %50 : vector<2x64xf32>
    %53 = arith.divf %51, %52 : vector<2x64xf32>
    %54 = vector.extract_strided_slice %47 {offsets = [0, 64], sizes = [2, 64], strides = [1, 1]} : vector<2x256xf32> to vector<2x64xf32>
    %55 = arith.negf %54 : vector<2x64xf32>
    %56 = math.exp %55 : vector<2x64xf32>
    %cst_15 = arith.constant 1.000000e+00 : f32
    %57 = vector.broadcast %cst_15 : f32 to vector<2x64xf32>
    %58 = arith.addf %57, %56 : vector<2x64xf32>
    %59 = arith.divf %57, %58 : vector<2x64xf32>
    %60 = vector.extract_strided_slice %47 {offsets = [0, 128], sizes = [2, 64], strides = [1, 1]} : vector<2x256xf32> to vector<2x64xf32>
    %61 = math.tanh %60 : vector<2x64xf32>
    %62 = vector.extract_strided_slice %47 {offsets = [0, 192], sizes = [2, 64], strides = [1, 1]} : vector<2x256xf32> to vector<2x64xf32>
    %63 = arith.negf %62 : vector<2x64xf32>
    %64 = math.exp %63 : vector<2x64xf32>
    %cst_16 = arith.constant 1.000000e+00 : f32
    %65 = vector.broadcast %cst_16 : f32 to vector<2x64xf32>
    %66 = arith.addf %65, %64 : vector<2x64xf32>
    %67 = arith.divf %65, %66 : vector<2x64xf32>
    %68 = arith.mulf %59, %29 : vector<2x64xf32>
    %69 = arith.mulf %53, %61 : vector<2x64xf32>
    %70 = arith.addf %68, %69 : vector<2x64xf32>
    %71 = math.tanh %70 : vector<2x64xf32>
    %72 = arith.mulf %67, %71 : vector<2x64xf32>
    %73 = vector.extract_strided_slice %72 {offsets = [0, 0], sizes = [2, 32], strides = [1, 1]} : vector<2x64xf32> to vector<2x32xf32>
    %74 = arith.index_cast %c1_i32 : i32 to index
    %c0_17 = arith.constant 0 : index
    %c0_18 = arith.constant 0 : index
    %75 = vector.load %arg5[%74, %c0_17, %c0_18] : memref<8x2x32xf32, #tpu.memory_space<vmem>>, vector<1x2x32xf32>
    %76 = vector.shape_cast %75 : vector<1x2x32xf32> to vector<2x32xf32>
    %77 = vector.shape_cast %73 : vector<2x32xf32> to vector<1x2x32xf32>
    tpu.vector_store %arg5[%74, %c0_17, %c0_18], %77 {strides = array<i32>} : memref<8x2x32xf32, #tpu.memory_space<vmem>>, vector<1x2x32xf32>,
    %78 = vector.extract_strided_slice %72 {offsets = [0, 32], sizes = [2, 32], strides = [1, 1]} : vector<2x64xf32> to vector<2x32xf32>
    %c7_i32_19 = arith.constant 7 : i32
    %79 = arith.subi %c7_i32_19, %c1_i32 : i32
    %80 = arith.index_cast %79 : i32 to index
    %c0_20 = arith.constant 0 : index
    %c0_21 = arith.constant 0 : index
    %81 = vector.load %arg6[%80, %c0_20, %c0_21] : memref<8x2x32xf32, #tpu.memory_space<vmem>>, vector<1x2x32xf32>
    %82 = vector.shape_cast %81 : vector<1x2x32xf32> to vector<2x32xf32>
    %83 = vector.shape_cast %78 : vector<2x32xf32> to vector<1x2x32xf32>
    tpu.vector_store %arg6[%80, %c0_20, %c0_21], %83 {strides = array<i32>} : memref<8x2x32xf32, #tpu.memory_space<vmem>>, vector<1x2x32xf32>,
    %c2_i32 = arith.constant 2 : i32
    %84 = arith.index_cast %c2_i32 : i32 to index
    %c0_22 = arith.constant 0 : index
    %c0_23 = arith.constant 0 : index
    %85 = vector.load %arg0[%84, %c0_22, %c0_23] : memref<8x2x256xf32, #tpu.memory_space<vmem>>, vector<1x2x256xf32>
    %86 = vector.shape_cast %85 : vector<1x2x256xf32> to vector<2x256xf32>
    %cst_24 = arith.constant dense<0.000000e+00> : vector<2x256xf32>
    %87 = tpu.matmul %72, %0, %cst_24 {dimension_numbers = #tpu.dot_dimension_numbers<[1], [0], [0], [1], [0, 0, 1, 1], [], []>} : vector<2x64xf32>, vector<64x256xf32>, vector<2x256xf32> -> vector<2x256xf32>
    %88 = arith.addf %86, %87 : vector<2x256xf32>
    %89 = vector.extract_strided_slice %88 {offsets = [0, 0], sizes = [2, 64], strides = [1, 1]} : vector<2x256xf32> to vector<2x64xf32>
    %90 = arith.negf %89 : vector<2x64xf32>
    %91 = math.exp %90 : vector<2x64xf32>
    %cst_25 = arith.constant 1.000000e+00 : f32
    %92 = vector.broadcast %cst_25 : f32 to vector<2x64xf32>
    %93 = arith.addf %92, %91 : vector<2x64xf32>
    %94 = arith.divf %92, %93 : vector<2x64xf32>
    %95 = vector.extract_strided_slice %88 {offsets = [0, 64], sizes = [2, 64], strides = [1, 1]} : vector<2x256xf32> to vector<2x64xf32>
    %96 = arith.negf %95 : vector<2x64xf32>
    %97 = math.exp %96 : vector<2x64xf32>
    %cst_26 = arith.constant 1.000000e+00 : f32
    %98 = vector.broadcast %cst_26 : f32 to vector<2x64xf32>
    %99 = arith.addf %98, %97 : vector<2x64xf32>
    %100 = arith.divf %98, %99 : vector<2x64xf32>
    %101 = vector.extract_strided_slice %88 {offsets = [0, 128], sizes = [2, 64], strides = [1, 1]} : vector<2x256xf32> to vector<2x64xf32>
    %102 = math.tanh %101 : vector<2x64xf32>
    %103 = vector.extract_strided_slice %88 {offsets = [0, 192], sizes = [2, 64], strides = [1, 1]} : vector<2x256xf32> to vector<2x64xf32>
    %104 = arith.negf %103 : vector<2x64xf32>
    %105 = math.exp %104 : vector<2x64xf32>
    %cst_27 = arith.constant 1.000000e+00 : f32
    %106 = vector.broadcast %cst_27 : f32 to vector<2x64xf32>
    %107 = arith.addf %106, %105 : vector<2x64xf32>
    %108 = arith.divf %106, %107 : vector<2x64xf32>
    %109 = arith.mulf %100, %70 : vector<2x64xf32>
    %110 = arith.mulf %94, %102 : vector<2x64xf32>
    %111 = arith.addf %109, %110 : vector<2x64xf32>
    %112 = math.tanh %111 : vector<2x64xf32>
    %113 = arith.mulf %108, %112 : vector<2x64xf32>
    %114 = vector.extract_strided_slice %113 {offsets = [0, 0], sizes = [2, 32], strides = [1, 1]} : vector<2x64xf32> to vector<2x32xf32>
    %115 = arith.index_cast %c2_i32 : i32 to index
    %c0_28 = arith.constant 0 : index
    %c0_29 = arith.constant 0 : index
    %116 = vector.load %arg5[%115, %c0_28, %c0_29] : memref<8x2x32xf32, #tpu.memory_space<vmem>>, vector<1x2x32xf32>
    %117 = vector.shape_cast %116 : vector<1x2x32xf32> to vector<2x32xf32>
    %118 = vector.shape_cast %114 : vector<2x32xf32> to vector<1x2x32xf32>
    tpu.vector_store %arg5[%115, %c0_28, %c0_29], %118 {strides = array<i32>} : memref<8x2x32xf32, #tpu.memory_space<vmem>>, vector<1x2x32xf32>,
    %119 = vector.extract_strided_slice %113 {offsets = [0, 32], sizes = [2, 32], strides = [1, 1]} : vector<2x64xf32> to vector<2x32xf32>
    %c7_i32_30 = arith.constant 7 : i32
    %120 = arith.subi %c7_i32_30, %c2_i32 : i32
    %121 = arith.index_cast %120 : i32 to index
    %c0_31 = arith.constant 0 : index
    %c0_32 = arith.constant 0 : index
    %122 = vector.load %arg6[%121, %c0_31, %c0_32] : memref<8x2x32xf32, #tpu.memory_space<vmem>>, vector<1x2x32xf32>
    %123 = vector.shape_cast %122 : vector<1x2x32xf32> to vector<2x32xf32>
    %124 = vector.shape_cast %119 : vector<2x32xf32> to vector<1x2x32xf32>
    tpu.vector_store %arg6[%121, %c0_31, %c0_32], %124 {strides = array<i32>} : memref<8x2x32xf32, #tpu.memory_space<vmem>>, vector<1x2x32xf32>,
    %c3_i32 = arith.constant 3 : i32
    %125 = arith.index_cast %c3_i32 : i32 to index
    %c0_33 = arith.constant 0 : index
    %c0_34 = arith.constant 0 : index
    %126 = vector.load %arg0[%125, %c0_33, %c0_34] : memref<8x2x256xf32, #tpu.memory_space<vmem>>, vector<1x2x256xf32>
    %127 = vector.shape_cast %126 : vector<1x2x256xf32> to vector<2x256xf32>
    %cst_35 = arith.constant dense<0.000000e+00> : vector<2x256xf32>
    %128 = tpu.matmul %113, %0, %cst_35 {dimension_numbers = #tpu.dot_dimension_numbers<[1], [0], [0], [1], [0, 0, 1, 1], [], []>} : vector<2x64xf32>, vector<64x256xf32>, vector<2x256xf32> -> vector<2x256xf32>
    %129 = arith.addf %127, %128 : vector<2x256xf32>
    %130 = vector.extract_strided_slice %129 {offsets = [0, 0], sizes = [2, 64], strides = [1, 1]} : vector<2x256xf32> to vector<2x64xf32>
    %131 = arith.negf %130 : vector<2x64xf32>
    %132 = math.exp %131 : vector<2x64xf32>
    %cst_36 = arith.constant 1.000000e+00 : f32
    %133 = vector.broadcast %cst_36 : f32 to vector<2x64xf32>
    %134 = arith.addf %133, %132 : vector<2x64xf32>
    %135 = arith.divf %133, %134 : vector<2x64xf32>
    %136 = vector.extract_strided_slice %129 {offsets = [0, 64], sizes = [2, 64], strides = [1, 1]} : vector<2x256xf32> to vector<2x64xf32>
    %137 = arith.negf %136 : vector<2x64xf32>
    %138 = math.exp %137 : vector<2x64xf32>
    %cst_37 = arith.constant 1.000000e+00 : f32
    %139 = vector.broadcast %cst_37 : f32 to vector<2x64xf32>
    %140 = arith.addf %139, %138 : vector<2x64xf32>
    %141 = arith.divf %139, %140 : vector<2x64xf32>
    %142 = vector.extract_strided_slice %129 {offsets = [0, 128], sizes = [2, 64], strides = [1, 1]} : vector<2x256xf32> to vector<2x64xf32>
    %143 = math.tanh %142 : vector<2x64xf32>
    %144 = vector.extract_strided_slice %129 {offsets = [0, 192], sizes = [2, 64], strides = [1, 1]} : vector<2x256xf32> to vector<2x64xf32>
    %145 = arith.negf %144 : vector<2x64xf32>
    %146 = math.exp %145 : vector<2x64xf32>
    %cst_38 = arith.constant 1.000000e+00 : f32
    %147 = vector.broadcast %cst_38 : f32 to vector<2x64xf32>
    %148 = arith.addf %147, %146 : vector<2x64xf32>
    %149 = arith.divf %147, %148 : vector<2x64xf32>
    %150 = arith.mulf %141, %111 : vector<2x64xf32>
    %151 = arith.mulf %135, %143 : vector<2x64xf32>
    %152 = arith.addf %150, %151 : vector<2x64xf32>
    %153 = math.tanh %152 : vector<2x64xf32>
    %154 = arith.mulf %149, %153 : vector<2x64xf32>
    %155 = vector.extract_strided_slice %154 {offsets = [0, 0], sizes = [2, 32], strides = [1, 1]} : vector<2x64xf32> to vector<2x32xf32>
    %156 = arith.index_cast %c3_i32 : i32 to index
    %c0_39 = arith.constant 0 : index
    %c0_40 = arith.constant 0 : index
    %157 = vector.load %arg5[%156, %c0_39, %c0_40] : memref<8x2x32xf32, #tpu.memory_space<vmem>>, vector<1x2x32xf32>
    %158 = vector.shape_cast %157 : vector<1x2x32xf32> to vector<2x32xf32>
    %159 = vector.shape_cast %155 : vector<2x32xf32> to vector<1x2x32xf32>
    tpu.vector_store %arg5[%156, %c0_39, %c0_40], %159 {strides = array<i32>} : memref<8x2x32xf32, #tpu.memory_space<vmem>>, vector<1x2x32xf32>,
    %160 = vector.extract_strided_slice %154 {offsets = [0, 32], sizes = [2, 32], strides = [1, 1]} : vector<2x64xf32> to vector<2x32xf32>
    %c7_i32_41 = arith.constant 7 : i32
    %161 = arith.subi %c7_i32_41, %c3_i32 : i32
    %162 = arith.index_cast %161 : i32 to index
    %c0_42 = arith.constant 0 : index
    %c0_43 = arith.constant 0 : index
    %163 = vector.load %arg6[%162, %c0_42, %c0_43] : memref<8x2x32xf32, #tpu.memory_space<vmem>>, vector<1x2x32xf32>
    %164 = vector.shape_cast %163 : vector<1x2x32xf32> to vector<2x32xf32>
    %165 = vector.shape_cast %160 : vector<2x32xf32> to vector<1x2x32xf32>
    tpu.vector_store %arg6[%162, %c0_42, %c0_43], %165 {strides = array<i32>} : memref<8x2x32xf32, #tpu.memory_space<vmem>>, vector<1x2x32xf32>,
    %c4_i32 = arith.constant 4 : i32
    %166 = arith.index_cast %c4_i32 : i32 to index
    %c0_44 = arith.constant 0 : index
    %c0_45 = arith.constant 0 : index
    %167 = vector.load %arg0[%166, %c0_44, %c0_45] : memref<8x2x256xf32, #tpu.memory_space<vmem>>, vector<1x2x256xf32>
    %168 = vector.shape_cast %167 : vector<1x2x256xf32> to vector<2x256xf32>
    %cst_46 = arith.constant dense<0.000000e+00> : vector<2x256xf32>
    %169 = tpu.matmul %154, %0, %cst_46 {dimension_numbers = #tpu.dot_dimension_numbers<[1], [0], [0], [1], [0, 0, 1, 1], [], []>} : vector<2x64xf32>, vector<64x256xf32>, vector<2x256xf32> -> vector<2x256xf32>
    %170 = arith.addf %168, %169 : vector<2x256xf32>
    %171 = vector.extract_strided_slice %170 {offsets = [0, 0], sizes = [2, 64], strides = [1, 1]} : vector<2x256xf32> to vector<2x64xf32>
    %172 = arith.negf %171 : vector<2x64xf32>
    %173 = math.exp %172 : vector<2x64xf32>
    %cst_47 = arith.constant 1.000000e+00 : f32
    %174 = vector.broadcast %cst_47 : f32 to vector<2x64xf32>
    %175 = arith.addf %174, %173 : vector<2x64xf32>
    %176 = arith.divf %174, %175 : vector<2x64xf32>
    %177 = vector.extract_strided_slice %170 {offsets = [0, 64], sizes = [2, 64], strides = [1, 1]} : vector<2x256xf32> to vector<2x64xf32>
    %178 = arith.negf %177 : vector<2x64xf32>
    %179 = math.exp %178 : vector<2x64xf32>
    %cst_48 = arith.constant 1.000000e+00 : f32
    %180 = vector.broadcast %cst_48 : f32 to vector<2x64xf32>
    %181 = arith.addf %180, %179 : vector<2x64xf32>
    %182 = arith.divf %180, %181 : vector<2x64xf32>
    %183 = vector.extract_strided_slice %170 {offsets = [0, 128], sizes = [2, 64], strides = [1, 1]} : vector<2x256xf32> to vector<2x64xf32>
    %184 = math.tanh %183 : vector<2x64xf32>
    %185 = vector.extract_strided_slice %170 {offsets = [0, 192], sizes = [2, 64], strides = [1, 1]} : vector<2x256xf32> to vector<2x64xf32>
    %186 = arith.negf %185 : vector<2x64xf32>
    %187 = math.exp %186 : vector<2x64xf32>
    %cst_49 = arith.constant 1.000000e+00 : f32
    %188 = vector.broadcast %cst_49 : f32 to vector<2x64xf32>
    %189 = arith.addf %188, %187 : vector<2x64xf32>
    %190 = arith.divf %188, %189 : vector<2x64xf32>
    %191 = arith.mulf %182, %152 : vector<2x64xf32>
    %192 = arith.mulf %176, %184 : vector<2x64xf32>
    %193 = arith.addf %191, %192 : vector<2x64xf32>
    %194 = math.tanh %193 : vector<2x64xf32>
    %195 = arith.mulf %190, %194 : vector<2x64xf32>
    %196 = vector.extract_strided_slice %195 {offsets = [0, 0], sizes = [2, 32], strides = [1, 1]} : vector<2x64xf32> to vector<2x32xf32>
    %197 = arith.index_cast %c4_i32 : i32 to index
    %c0_50 = arith.constant 0 : index
    %c0_51 = arith.constant 0 : index
    %198 = vector.load %arg5[%197, %c0_50, %c0_51] : memref<8x2x32xf32, #tpu.memory_space<vmem>>, vector<1x2x32xf32>
    %199 = vector.shape_cast %198 : vector<1x2x32xf32> to vector<2x32xf32>
    %200 = vector.shape_cast %196 : vector<2x32xf32> to vector<1x2x32xf32>
    tpu.vector_store %arg5[%197, %c0_50, %c0_51], %200 {strides = array<i32>} : memref<8x2x32xf32, #tpu.memory_space<vmem>>, vector<1x2x32xf32>,
    %201 = vector.extract_strided_slice %195 {offsets = [0, 32], sizes = [2, 32], strides = [1, 1]} : vector<2x64xf32> to vector<2x32xf32>
    %c7_i32_52 = arith.constant 7 : i32
    %202 = arith.subi %c7_i32_52, %c4_i32 : i32
    %203 = arith.index_cast %202 : i32 to index
    %c0_53 = arith.constant 0 : index
    %c0_54 = arith.constant 0 : index
    %204 = vector.load %arg6[%203, %c0_53, %c0_54] : memref<8x2x32xf32, #tpu.memory_space<vmem>>, vector<1x2x32xf32>
    %205 = vector.shape_cast %204 : vector<1x2x32xf32> to vector<2x32xf32>
    %206 = vector.shape_cast %201 : vector<2x32xf32> to vector<1x2x32xf32>
    tpu.vector_store %arg6[%203, %c0_53, %c0_54], %206 {strides = array<i32>} : memref<8x2x32xf32, #tpu.memory_space<vmem>>, vector<1x2x32xf32>,
    %c5_i32 = arith.constant 5 : i32
    %207 = arith.index_cast %c5_i32 : i32 to index
    %c0_55 = arith.constant 0 : index
    %c0_56 = arith.constant 0 : index
    %208 = vector.load %arg0[%207, %c0_55, %c0_56] : memref<8x2x256xf32, #tpu.memory_space<vmem>>, vector<1x2x256xf32>
    %209 = vector.shape_cast %208 : vector<1x2x256xf32> to vector<2x256xf32>
    %cst_57 = arith.constant dense<0.000000e+00> : vector<2x256xf32>
    %210 = tpu.matmul %195, %0, %cst_57 {dimension_numbers = #tpu.dot_dimension_numbers<[1], [0], [0], [1], [0, 0, 1, 1], [], []>} : vector<2x64xf32>, vector<64x256xf32>, vector<2x256xf32> -> vector<2x256xf32>
    %211 = arith.addf %209, %210 : vector<2x256xf32>
    %212 = vector.extract_strided_slice %211 {offsets = [0, 0], sizes = [2, 64], strides = [1, 1]} : vector<2x256xf32> to vector<2x64xf32>
    %213 = arith.negf %212 : vector<2x64xf32>
    %214 = math.exp %213 : vector<2x64xf32>
    %cst_58 = arith.constant 1.000000e+00 : f32
    %215 = vector.broadcast %cst_58 : f32 to vector<2x64xf32>
    %216 = arith.addf %215, %214 : vector<2x64xf32>
    %217 = arith.divf %215, %216 : vector<2x64xf32>
    %218 = vector.extract_strided_slice %211 {offsets = [0, 64], sizes = [2, 64], strides = [1, 1]} : vector<2x256xf32> to vector<2x64xf32>
    %219 = arith.negf %218 : vector<2x64xf32>
    %220 = math.exp %219 : vector<2x64xf32>
    %cst_59 = arith.constant 1.000000e+00 : f32
    %221 = vector.broadcast %cst_59 : f32 to vector<2x64xf32>
    %222 = arith.addf %221, %220 : vector<2x64xf32>
    %223 = arith.divf %221, %222 : vector<2x64xf32>
    %224 = vector.extract_strided_slice %211 {offsets = [0, 128], sizes = [2, 64], strides = [1, 1]} : vector<2x256xf32> to vector<2x64xf32>
    %225 = math.tanh %224 : vector<2x64xf32>
    %226 = vector.extract_strided_slice %211 {offsets = [0, 192], sizes = [2, 64], strides = [1, 1]} : vector<2x256xf32> to vector<2x64xf32>
    %227 = arith.negf %226 : vector<2x64xf32>
    %228 = math.exp %227 : vector<2x64xf32>
    %cst_60 = arith.constant 1.000000e+00 : f32
    %229 = vector.broadcast %cst_60 : f32 to vector<2x64xf32>
    %230 = arith.addf %229, %228 : vector<2x64xf32>
    %231 = arith.divf %229, %230 : vector<2x64xf32>
    %232 = arith.mulf %223, %193 : vector<2x64xf32>
    %233 = arith.mulf %217, %225 : vector<2x64xf32>
    %234 = arith.addf %232, %233 : vector<2x64xf32>
    %235 = math.tanh %234 : vector<2x64xf32>
    %236 = arith.mulf %231, %235 : vector<2x64xf32>
    %237 = vector.extract_strided_slice %236 {offsets = [0, 0], sizes = [2, 32], strides = [1, 1]} : vector<2x64xf32> to vector<2x32xf32>
    %238 = arith.index_cast %c5_i32 : i32 to index
    %c0_61 = arith.constant 0 : index
    %c0_62 = arith.constant 0 : index
    %239 = vector.load %arg5[%238, %c0_61, %c0_62] : memref<8x2x32xf32, #tpu.memory_space<vmem>>, vector<1x2x32xf32>
    %240 = vector.shape_cast %239 : vector<1x2x32xf32> to vector<2x32xf32>
    %241 = vector.shape_cast %237 : vector<2x32xf32> to vector<1x2x32xf32>
    tpu.vector_store %arg5[%238, %c0_61, %c0_62], %241 {strides = array<i32>} : memref<8x2x32xf32, #tpu.memory_space<vmem>>, vector<1x2x32xf32>,
    %242 = vector.extract_strided_slice %236 {offsets = [0, 32], sizes = [2, 32], strides = [1, 1]} : vector<2x64xf32> to vector<2x32xf32>
    %c7_i32_63 = arith.constant 7 : i32
    %243 = arith.subi %c7_i32_63, %c5_i32 : i32
    %244 = arith.index_cast %243 : i32 to index
    %c0_64 = arith.constant 0 : index
    %c0_65 = arith.constant 0 : index
    %245 = vector.load %arg6[%244, %c0_64, %c0_65] : memref<8x2x32xf32, #tpu.memory_space<vmem>>, vector<1x2x32xf32>
    %246 = vector.shape_cast %245 : vector<1x2x32xf32> to vector<2x32xf32>
    %247 = vector.shape_cast %242 : vector<2x32xf32> to vector<1x2x32xf32>
    tpu.vector_store %arg6[%244, %c0_64, %c0_65], %247 {strides = array<i32>} : memref<8x2x32xf32, #tpu.memory_space<vmem>>, vector<1x2x32xf32>,
    %c6_i32 = arith.constant 6 : i32
    %248 = arith.index_cast %c6_i32 : i32 to index
    %c0_66 = arith.constant 0 : index
    %c0_67 = arith.constant 0 : index
    %249 = vector.load %arg0[%248, %c0_66, %c0_67] : memref<8x2x256xf32, #tpu.memory_space<vmem>>, vector<1x2x256xf32>
    %250 = vector.shape_cast %249 : vector<1x2x256xf32> to vector<2x256xf32>
    %cst_68 = arith.constant dense<0.000000e+00> : vector<2x256xf32>
    %251 = tpu.matmul %236, %0, %cst_68 {dimension_numbers = #tpu.dot_dimension_numbers<[1], [0], [0], [1], [0, 0, 1, 1], [], []>} : vector<2x64xf32>, vector<64x256xf32>, vector<2x256xf32> -> vector<2x256xf32>
    %252 = arith.addf %250, %251 : vector<2x256xf32>
    %253 = vector.extract_strided_slice %252 {offsets = [0, 0], sizes = [2, 64], strides = [1, 1]} : vector<2x256xf32> to vector<2x64xf32>
    %254 = arith.negf %253 : vector<2x64xf32>
    %255 = math.exp %254 : vector<2x64xf32>
    %cst_69 = arith.constant 1.000000e+00 : f32
    %256 = vector.broadcast %cst_69 : f32 to vector<2x64xf32>
    %257 = arith.addf %256, %255 : vector<2x64xf32>
    %258 = arith.divf %256, %257 : vector<2x64xf32>
    %259 = vector.extract_strided_slice %252 {offsets = [0, 64], sizes = [2, 64], strides = [1, 1]} : vector<2x256xf32> to vector<2x64xf32>
    %260 = arith.negf %259 : vector<2x64xf32>
    %261 = math.exp %260 : vector<2x64xf32>
    %cst_70 = arith.constant 1.000000e+00 : f32
    %262 = vector.broadcast %cst_70 : f32 to vector<2x64xf32>
    %263 = arith.addf %262, %261 : vector<2x64xf32>
    %264 = arith.divf %262, %263 : vector<2x64xf32>
    %265 = vector.extract_strided_slice %252 {offsets = [0, 128], sizes = [2, 64], strides = [1, 1]} : vector<2x256xf32> to vector<2x64xf32>
    %266 = math.tanh %265 : vector<2x64xf32>
    %267 = vector.extract_strided_slice %252 {offsets = [0, 192], sizes = [2, 64], strides = [1, 1]} : vector<2x256xf32> to vector<2x64xf32>
    %268 = arith.negf %267 : vector<2x64xf32>
    %269 = math.exp %268 : vector<2x64xf32>
    %cst_71 = arith.constant 1.000000e+00 : f32
    %270 = vector.broadcast %cst_71 : f32 to vector<2x64xf32>
    %271 = arith.addf %270, %269 : vector<2x64xf32>
    %272 = arith.divf %270, %271 : vector<2x64xf32>
    %273 = arith.mulf %264, %234 : vector<2x64xf32>
    %274 = arith.mulf %258, %266 : vector<2x64xf32>
    %275 = arith.addf %273, %274 : vector<2x64xf32>
    %276 = math.tanh %275 : vector<2x64xf32>
    %277 = arith.mulf %272, %276 : vector<2x64xf32>
    %278 = vector.extract_strided_slice %277 {offsets = [0, 0], sizes = [2, 32], strides = [1, 1]} : vector<2x64xf32> to vector<2x32xf32>
    %279 = arith.index_cast %c6_i32 : i32 to index
    %c0_72 = arith.constant 0 : index
    %c0_73 = arith.constant 0 : index
    %280 = vector.load %arg5[%279, %c0_72, %c0_73] : memref<8x2x32xf32, #tpu.memory_space<vmem>>, vector<1x2x32xf32>
    %281 = vector.shape_cast %280 : vector<1x2x32xf32> to vector<2x32xf32>
    %282 = vector.shape_cast %278 : vector<2x32xf32> to vector<1x2x32xf32>
    tpu.vector_store %arg5[%279, %c0_72, %c0_73], %282 {strides = array<i32>} : memref<8x2x32xf32, #tpu.memory_space<vmem>>, vector<1x2x32xf32>,
    %283 = vector.extract_strided_slice %277 {offsets = [0, 32], sizes = [2, 32], strides = [1, 1]} : vector<2x64xf32> to vector<2x32xf32>
    %c7_i32_74 = arith.constant 7 : i32
    %284 = arith.subi %c7_i32_74, %c6_i32 : i32
    %285 = arith.index_cast %284 : i32 to index
    %c0_75 = arith.constant 0 : index
    %c0_76 = arith.constant 0 : index
    %286 = vector.load %arg6[%285, %c0_75, %c0_76] : memref<8x2x32xf32, #tpu.memory_space<vmem>>, vector<1x2x32xf32>
    %287 = vector.shape_cast %286 : vector<1x2x32xf32> to vector<2x32xf32>
    %288 = vector.shape_cast %283 : vector<2x32xf32> to vector<1x2x32xf32>
    tpu.vector_store %arg6[%285, %c0_75, %c0_76], %288 {strides = array<i32>} : memref<8x2x32xf32, #tpu.memory_space<vmem>>, vector<1x2x32xf32>,
    %c7_i32_77 = arith.constant 7 : i32
    %289 = arith.index_cast %c7_i32_77 : i32 to index
    %c0_78 = arith.constant 0 : index
    %c0_79 = arith.constant 0 : index
    %290 = vector.load %arg0[%289, %c0_78, %c0_79] : memref<8x2x256xf32, #tpu.memory_space<vmem>>, vector<1x2x256xf32>
    %291 = vector.shape_cast %290 : vector<1x2x256xf32> to vector<2x256xf32>
    %cst_80 = arith.constant dense<0.000000e+00> : vector<2x256xf32>
    %292 = tpu.matmul %277, %0, %cst_80 {dimension_numbers = #tpu.dot_dimension_numbers<[1], [0], [0], [1], [0, 0, 1, 1], [], []>} : vector<2x64xf32>, vector<64x256xf32>, vector<2x256xf32> -> vector<2x256xf32>
    %293 = arith.addf %291, %292 : vector<2x256xf32>
    %294 = vector.extract_strided_slice %293 {offsets = [0, 0], sizes = [2, 64], strides = [1, 1]} : vector<2x256xf32> to vector<2x64xf32>
    %295 = arith.negf %294 : vector<2x64xf32>
    %296 = math.exp %295 : vector<2x64xf32>
    %cst_81 = arith.constant 1.000000e+00 : f32
    %297 = vector.broadcast %cst_81 : f32 to vector<2x64xf32>
    %298 = arith.addf %297, %296 : vector<2x64xf32>
    %299 = arith.divf %297, %298 : vector<2x64xf32>
    %300 = vector.extract_strided_slice %293 {offsets = [0, 64], sizes = [2, 64], strides = [1, 1]} : vector<2x256xf32> to vector<2x64xf32>
    %301 = arith.negf %300 : vector<2x64xf32>
    %302 = math.exp %301 : vector<2x64xf32>
    %cst_82 = arith.constant 1.000000e+00 : f32
    %303 = vector.broadcast %cst_82 : f32 to vector<2x64xf32>
    %304 = arith.addf %303, %302 : vector<2x64xf32>
    %305 = arith.divf %303, %304 : vector<2x64xf32>
    %306 = vector.extract_strided_slice %293 {offsets = [0, 128], sizes = [2, 64], strides = [1, 1]} : vector<2x256xf32> to vector<2x64xf32>
    %307 = math.tanh %306 : vector<2x64xf32>
    %308 = vector.extract_strided_slice %293 {offsets = [0, 192], sizes = [2, 64], strides = [1, 1]} : vector<2x256xf32> to vector<2x64xf32>
    %309 = arith.negf %308 : vector<2x64xf32>
    %310 = math.exp %309 : vector<2x64xf32>
    %cst_83 = arith.constant 1.000000e+00 : f32
    %311 = vector.broadcast %cst_83 : f32 to vector<2x64xf32>
    %312 = arith.addf %311, %310 : vector<2x64xf32>
    %313 = arith.divf %311, %312 : vector<2x64xf32>
    %314 = arith.mulf %305, %275 : vector<2x64xf32>
    %315 = arith.mulf %299, %307 : vector<2x64xf32>
    %316 = arith.addf %314, %315 : vector<2x64xf32>
    %317 = math.tanh %316 : vector<2x64xf32>
    %318 = arith.mulf %313, %317 : vector<2x64xf32>
    %319 = vector.extract_strided_slice %318 {offsets = [0, 0], sizes = [2, 32], strides = [1, 1]} : vector<2x64xf32> to vector<2x32xf32>
    %320 = arith.index_cast %c7_i32_77 : i32 to index
    %c0_84 = arith.constant 0 : index
    %c0_85 = arith.constant 0 : index
    %321 = vector.load %arg5[%320, %c0_84, %c0_85] : memref<8x2x32xf32, #tpu.memory_space<vmem>>, vector<1x2x32xf32>
    %322 = vector.shape_cast %321 : vector<1x2x32xf32> to vector<2x32xf32>
    %323 = vector.shape_cast %319 : vector<2x32xf32> to vector<1x2x32xf32>
    tpu.vector_store %arg5[%320, %c0_84, %c0_85], %323 {strides = array<i32>} : memref<8x2x32xf32, #tpu.memory_space<vmem>>, vector<1x2x32xf32>,
    %324 = vector.extract_strided_slice %318 {offsets = [0, 32], sizes = [2, 32], strides = [1, 1]} : vector<2x64xf32> to vector<2x32xf32>
    %c7_i32_86 = arith.constant 7 : i32
    %325 = arith.subi %c7_i32_86, %c7_i32_77 : i32
    %326 = arith.index_cast %325 : i32 to index
    %c0_87 = arith.constant 0 : index
    %c0_88 = arith.constant 0 : index
    %327 = vector.load %arg6[%326, %c0_87, %c0_88] : memref<8x2x32xf32, #tpu.memory_space<vmem>>, vector<1x2x32xf32>
    %328 = vector.shape_cast %327 : vector<1x2x32xf32> to vector<2x32xf32>
    %329 = vector.shape_cast %324 : vector<2x32xf32> to vector<1x2x32xf32>
    tpu.vector_store %arg6[%326, %c0_87, %c0_88], %329 {strides = array<i32>} : memref<8x2x32xf32, #tpu.memory_space<vmem>>, vector<1x2x32xf32>,
    %c8_i32 = arith.constant 8 : i32
    %c0_89 = arith.constant 0 : index
    %c0_90 = arith.constant 0 : index
    %c0_91 = arith.constant 0 : index
    %330 = vector.load %arg5[%c0_89, %c0_90, %c0_91] : memref<8x2x32xf32, #tpu.memory_space<vmem>>, vector<8x2x32xf32>
    %c0_92 = arith.constant 0 : index
    %c0_93 = arith.constant 0 : index
    %c0_94 = arith.constant 0 : index
    %331 = vector.load %arg6[%c0_92, %c0_93, %c0_94] : memref<8x2x32xf32, #tpu.memory_space<vmem>>, vector<8x2x32xf32>
    %332 = arith.addf %330, %331 : vector<8x2x32xf32>
    %c0_95 = arith.constant 0 : index
    %c0_96 = arith.constant 0 : index
    %c0_97 = arith.constant 0 : index
    %333 = vector.load %arg2[%c0_95, %c0_96, %c0_97] : memref<8x2x32xf32, #tpu.memory_space<vmem>>, vector<8x2x32xf32>
    tpu.vector_store %arg2[%c0_95, %c0_96, %c0_97], %332 {strides = array<i32>} : memref<8x2x32xf32, #tpu.memory_space<vmem>>, vector<8x2x32xf32>,
    %334 = vector.extract_strided_slice %318 {offsets = [0, 0], sizes = [2, 32], strides = [1, 1]} : vector<2x64xf32> to vector<2x32xf32>
    %c0_98 = arith.constant 0 : index
    %c0_99 = arith.constant 0 : index
    %335 = vector.load %arg3[%c0_98, %c0_99] : memref<2x32xf32, #tpu.memory_space<vmem>>, vector<2x32xf32>
    tpu.vector_store %arg3[%c0_98, %c0_99], %334 {strides = array<i32>} : memref<2x32xf32, #tpu.memory_space<vmem>>, vector<2x32xf32>,
    %336 = vector.extract_strided_slice %316 {offsets = [0, 0], sizes = [2, 32], strides = [1, 1]} : vector<2x64xf32> to vector<2x32xf32>
    %c0_100 = arith.constant 0 : index
    %c0_101 = arith.constant 0 : index
    %337 = vector.load %arg4[%c0_100, %c0_101] : memref<2x32xf32, #tpu.memory_space<vmem>>, vector<2x32xf32>
    tpu.vector_store %arg4[%c0_100, %c0_101], %336 {strides = array<i32>} : memref<2x32xf32, #tpu.memory_space<vmem>>, vector<2x32xf32>,
    return
  }
}

module attributes {stable_mosaic.version = 11 : i64} {
  func.func @_fused_decoder_kernel(%arg0: memref<8x1xf32, #tpu.memory_space<vmem>>, %arg1: memref<8x2x16xf32, #tpu.memory_space<vmem>>, %arg2: memref<8x2x32xf32, #tpu.memory_space<vmem>>, %arg3: memref<8x2x32xf32, #tpu.memory_space<vmem>>, %arg4: memref<2x32xf32, #tpu.memory_space<vmem>>, %arg5: memref<2x32xf32, #tpu.memory_space<vmem>>, %arg6: memref<128x16xf32, #tpu.memory_space<vmem>>, %arg7: memref<32x32xf32, #tpu.memory_space<vmem>>, %arg8: memref<1x32xf32, #tpu.memory_space<vmem>>, %arg9: memref<80x128xf32, #tpu.memory_space<vmem>>, %arg10: memref<1x128xf32, #tpu.memory_space<vmem>>, %arg11: memref<64x128xf32, #tpu.memory_space<vmem>>, %arg12: memref<1x128xf32, #tpu.memory_space<vmem>>, %arg13: memref<8x2x128xf32, #tpu.memory_space<vmem>>) attributes {dimension_semantics = [], scalar_prefetch = 0 : i64, scratch_operands = 0 : i64, tpu.core_type = #tpu.core_type<tc>} {
    %c0 = arith.constant 0 : index
    %c0_0 = arith.constant 0 : index
    %c0_1 = arith.constant 0 : index
    %0 = vector.load %arg2[%c0, %c0_0, %c0_1] : memref<8x2x32xf32, #tpu.memory_space<vmem>>, vector<8x2x32xf32>
    %c0_2 = arith.constant 0 : index
    %c0_3 = arith.constant 0 : index
    %c0_4 = arith.constant 0 : index
    %1 = vector.load %arg3[%c0_2, %c0_3, %c0_4] : memref<8x2x32xf32, #tpu.memory_space<vmem>>, vector<8x2x32xf32>
    %c0_5 = arith.constant 0 : index
    %c0_6 = arith.constant 0 : index
    %2 = vector.load %arg6[%c0_5, %c0_6] : memref<128x16xf32, #tpu.memory_space<vmem>>, vector<128x16xf32>
    %c0_7 = arith.constant 0 : index
    %c0_8 = arith.constant 0 : index
    %3 = vector.load %arg7[%c0_7, %c0_8] : memref<32x32xf32, #tpu.memory_space<vmem>>, vector<32x32xf32>
    %c0_9 = arith.constant 0 : index
    %c0_10 = arith.constant 0 : index
    %4 = vector.load %arg8[%c0_9, %c0_10] : memref<1x32xf32, #tpu.memory_space<vmem>>, vector<1x32xf32>
    %c0_11 = arith.constant 0 : index
    %c0_12 = arith.constant 0 : index
    %5 = vector.load %arg9[%c0_11, %c0_12] : memref<80x128xf32, #tpu.memory_space<vmem>>, vector<80x128xf32>
    %c0_13 = arith.constant 0 : index
    %c0_14 = arith.constant 0 : index
    %6 = vector.load %arg10[%c0_13, %c0_14] : memref<1x128xf32, #tpu.memory_space<vmem>>, vector<1x128xf32>
    %c0_15 = arith.constant 0 : index
    %c0_16 = arith.constant 0 : index
    %7 = vector.load %arg11[%c0_15, %c0_16] : memref<64x128xf32, #tpu.memory_space<vmem>>, vector<64x128xf32>
    %c0_17 = arith.constant 0 : index
    %c0_18 = arith.constant 0 : index
    %8 = vector.load %arg12[%c0_17, %c0_18] : memref<1x128xf32, #tpu.memory_space<vmem>>, vector<1x128xf32>
    %9 = tpu.iota {dimensions = array<i32: 1>} : vector<2x128xi32>
    %cst = arith.constant 0.000000e+00 : f32
    %10 = vector.broadcast %cst : f32 to vector<8x2x128xf32>
    %c0_19 = arith.constant 0 : index
    %c0_20 = arith.constant 0 : index
    %c0_21 = arith.constant 0 : index
    %11 = vector.load %arg13[%c0_19, %c0_20, %c0_21] : memref<8x2x128xf32, #tpu.memory_space<vmem>>, vector<8x2x128xf32>
    tpu.vector_store %arg13[%c0_19, %c0_20, %c0_21], %10 {strides = array<i32>} : memref<8x2x128xf32, #tpu.memory_space<vmem>>, vector<8x2x128xf32>,
    %c0_22 = arith.constant 0 : index
    %c0_23 = arith.constant 0 : index
    %12 = vector.load %arg4[%c0_22, %c0_23] : memref<2x32xf32, #tpu.memory_space<vmem>>, vector<2x32xf32>
    %c0_24 = arith.constant 0 : index
    %c0_25 = arith.constant 0 : index
    %13 = vector.load %arg5[%c0_24, %c0_25] : memref<2x32xf32, #tpu.memory_space<vmem>>, vector<2x32xf32>
    %c0_26 = arith.constant 0 : index
    %c0_27 = arith.constant 0 : index
    %c0_28 = arith.constant 0 : index
    %14 = vector.load %arg1[%c0_26, %c0_27, %c0_28] : memref<8x2x16xf32, #tpu.memory_space<vmem>>, vector<1x2x16xf32>
    %15 = vector.shape_cast %14 : vector<1x2x16xf32> to vector<2x16xf32>
    %c0_i32 = arith.constant 0 : i32
    %c1_i32 = arith.constant 1 : i32
    %16 = arith.addi %c0_i32, %c1_i32 : i32
    %cst_29 = arith.constant dense<0.000000e+00> : vector<2x32xf32>
    %17 = tpu.matmul %12, %3, %cst_29 {dimension_numbers = #tpu.dot_dimension_numbers<[1], [0], [0], [1], [0, 0, 1, 1], [], []>} : vector<2x32xf32>, vector<32x32xf32>, vector<2x32xf32> -> vector<2x32xf32>
    %18 = vector.shape_cast %17 : vector<2x32xf32> to vector<1x2x32xf32>
    %19 = vector.broadcast %18 : vector<1x2x32xf32> to vector<8x2x32xf32>
    %20 = arith.addf %19, %1 : vector<8x2x32xf32>
    %cst_30 = arith.constant 0.000000e+00 : f32
    %21 = vector.broadcast %cst_30 : f32 to vector<8x2x32xf32>
    %22 = arith.maximumf %20, %21 : vector<8x2x32xf32>
    %23 = vector.shape_cast %4 : vector<1x32xf32> to vector<1x1x32xf32>
    %24 = vector.broadcast %23 : vector<1x1x32xf32> to vector<8x2x32xf32>
    %25 = arith.mulf %22, %24 : vector<8x2x32xf32>
    %cst_31 = arith.constant dense<0.000000e+00> : vector<8x2xf32>
    %26 = vector.multi_reduction <add>, %25, %cst_31 [2] : vector<8x2x32xf32> to vector<8x2xf32>
    %27 = vector.shape_cast %26 : vector<8x2xf32> to vector<8x2x1xf32>
    %cst_32 = arith.constant dense<0xFF800000> : vector<2x1xf32>
    %28 = vector.multi_reduction <maximumf>, %27, %cst_32 [0] : vector<8x2x1xf32> to vector<2x1xf32>
    %29 = vector.shape_cast %28 : vector<2x1xf32> to vector<1x2x1xf32>
    %30 = vector.broadcast %29 : vector<1x2x1xf32> to vector<8x2x1xf32>
    %31 = arith.subf %27, %30 : vector<8x2x1xf32>
    %32 = math.exp %31 : vector<8x2x1xf32>
    %cst_33 = arith.constant dense<0.000000e+00> : vector<2x1xf32>
    %33 = vector.multi_reduction <add>, %32, %cst_33 [0] : vector<8x2x1xf32> to vector<2x1xf32>
    %34 = vector.shape_cast %33 : vector<2x1xf32> to vector<1x2x1xf32>
    %35 = tpu.reciprocal %34 {approx = true} : vector<1x2x1xf32> -> vector<1x2x1xf32>
    %36 = vector.broadcast %35 : vector<1x2x1xf32> to vector<8x2x1xf32>
    %37 = arith.mulf %32, %36 : vector<8x2x1xf32>
    %38 = vector.broadcast %37 : vector<8x2x1xf32> to vector<8x2x32xf32>
    %39 = arith.mulf %38, %0 : vector<8x2x32xf32>
    %cst_34 = arith.constant dense<0.000000e+00> : vector<2x32xf32>
    %40 = vector.multi_reduction <add>, %39, %cst_34 [0] : vector<8x2x32xf32> to vector<2x32xf32>
    %41 = tpu.concatenate %15, %40, %12 in 1 : vector<2x16xf32>, vector<2x32xf32>, vector<2x32xf32> -> vector<2x80xf32>
    %cst_35 = arith.constant dense<0.000000e+00> : vector<2x128xf32>
    %42 = tpu.matmul %41, %5, %cst_35 {dimension_numbers = #tpu.dot_dimension_numbers<[1], [0], [0], [1], [0, 0, 1, 1], [], []>} : vector<2x80xf32>, vector<80x128xf32>, vector<2x128xf32> -> vector<2x128xf32>
    %43 = vector.broadcast %6 : vector<1x128xf32> to vector<2x128xf32>
    %44 = arith.addf %42, %43 : vector<2x128xf32>
    %45 = vector.extract_strided_slice %44 {offsets = [0, 0], sizes = [2, 32], strides = [1, 1]} : vector<2x128xf32> to vector<2x32xf32>
    %46 = arith.negf %45 : vector<2x32xf32>
    %47 = math.exp %46 : vector<2x32xf32>
    %cst_36 = arith.constant 1.000000e+00 : f32
    %48 = vector.broadcast %cst_36 : f32 to vector<2x32xf32>
    %49 = arith.addf %48, %47 : vector<2x32xf32>
    %50 = arith.divf %48, %49 : vector<2x32xf32>
    %51 = vector.extract_strided_slice %44 {offsets = [0, 32], sizes = [2, 32], strides = [1, 1]} : vector<2x128xf32> to vector<2x32xf32>
    %52 = arith.negf %51 : vector<2x32xf32>
    %53 = math.exp %52 : vector<2x32xf32>
    %cst_37 = arith.constant 1.000000e+00 : f32
    %54 = vector.broadcast %cst_37 : f32 to vector<2x32xf32>
    %55 = arith.addf %54, %53 : vector<2x32xf32>
    %56 = arith.divf %54, %55 : vector<2x32xf32>
    %57 = vector.extract_strided_slice %44 {offsets = [0, 64], sizes = [2, 32], strides = [1, 1]} : vector<2x128xf32> to vector<2x32xf32>
    %58 = math.tanh %57 : vector<2x32xf32>
    %59 = vector.extract_strided_slice %44 {offsets = [0, 96], sizes = [2, 32], strides = [1, 1]} : vector<2x128xf32> to vector<2x32xf32>
    %60 = arith.negf %59 : vector<2x32xf32>
    %61 = math.exp %60 : vector<2x32xf32>
    %cst_38 = arith.constant 1.000000e+00 : f32
    %62 = vector.broadcast %cst_38 : f32 to vector<2x32xf32>
    %63 = arith.addf %62, %61 : vector<2x32xf32>
    %64 = arith.divf %62, %63 : vector<2x32xf32>
    %65 = arith.mulf %56, %13 : vector<2x32xf32>
    %66 = arith.mulf %50, %58 : vector<2x32xf32>
    %67 = arith.addf %65, %66 : vector<2x32xf32>
    %68 = math.tanh %67 : vector<2x32xf32>
    %69 = arith.mulf %64, %68 : vector<2x32xf32>
    %70 = tpu.concatenate %69, %40 in 1 : vector<2x32xf32>, vector<2x32xf32> -> vector<2x64xf32>
    %cst_39 = arith.constant dense<0.000000e+00> : vector<2x128xf32>
    %71 = tpu.matmul %70, %7, %cst_39 {dimension_numbers = #tpu.dot_dimension_numbers<[1], [0], [0], [1], [0, 0, 1, 1], [], []>} : vector<2x64xf32>, vector<64x128xf32>, vector<2x128xf32> -> vector<2x128xf32>
    %72 = vector.broadcast %8 : vector<1x128xf32> to vector<2x128xf32>
    %73 = arith.addf %71, %72 : vector<2x128xf32>
    %cst_40 = arith.constant dense<0xFF800000> : vector<2xf32>
    %74 = vector.multi_reduction <maximumf>, %73, %cst_40 [1] : vector<2x128xf32> to vector<2xf32>
    %75 = vector.shape_cast %74 : vector<2xf32> to vector<2x1xf32>
    %76 = vector.broadcast %75 : vector<2x1xf32> to vector<2x128xf32>
    %77 = arith.subf %73, %76 : vector<2x128xf32>
    %78 = math.exp %77 : vector<2x128xf32>
    %cst_41 = arith.constant dense<0.000000e+00> : vector<2xf32>
    %79 = vector.multi_reduction <add>, %78, %cst_41 [1] : vector<2x128xf32> to vector<2xf32>
    %80 = vector.shape_cast %79 : vector<2xf32> to vector<2x1xf32>
    %81 = math.log %80 : vector<2x1xf32>
    %82 = arith.addf %75, %81 : vector<2x1xf32>
    %83 = vector.broadcast %82 : vector<2x1xf32> to vector<2x128xf32>
    %84 = arith.subf %73, %83 : vector<2x128xf32>
    %85 = arith.index_cast %16 : i32 to index
    %c0_42 = arith.constant 0 : index
    %c0_43 = arith.constant 0 : index
    %86 = vector.load %arg13[%85, %c0_42, %c0_43] : memref<8x2x128xf32, #tpu.memory_space<vmem>>, vector<1x2x128xf32>
    %87 = vector.shape_cast %86 : vector<1x2x128xf32> to vector<2x128xf32>
    %88 = vector.shape_cast %84 : vector<2x128xf32> to vector<1x2x128xf32>
    tpu.vector_store %arg13[%85, %c0_42, %c0_43], %88 {strides = array<i32>} : memref<8x2x128xf32, #tpu.memory_space<vmem>>, vector<1x2x128xf32>,
    %89 = vector.broadcast %75 : vector<2x1xf32> to vector<2x128xf32>
    %90 = arith.cmpf oeq, %73, %89 : vector<2x128xf32>
    %c128_i32 = arith.constant 128 : i32
    %91 = vector.broadcast %c128_i32 : i32 to vector<2x128xi32>
    %92 = arith.select %90, %9, %91 : vector<2x128xi1>, vector<2x128xi32>
    %cst_44 = arith.constant dense<2147483647> : vector<2xi32>
    %93 = vector.multi_reduction <minsi>, %92, %cst_44 [1] : vector<2x128xi32> to vector<2xi32>
    %94 = vector.shape_cast %93 : vector<2xi32> to vector<2x1xi32>
    %95 = vector.broadcast %94 : vector<2x1xi32> to vector<2x128xi32>
    %96 = arith.cmpi eq, %9, %95 : vector<2x128xi32>
    %97 = arith.extui %96 : vector<2x128xi1> to vector<2x128xi32>
    %98 = arith.sitofp %97 : vector<2x128xi32> to vector<2x128xf32>
    %cst_45 = arith.constant dense<0.000000e+00> : vector<2x16xf32>
    %99 = tpu.matmul %98, %2, %cst_45 {dimension_numbers = #tpu.dot_dimension_numbers<[1], [0], [0], [1], [0, 0, 1, 1], [], []>} : vector<2x128xf32>, vector<128x16xf32>, vector<2x16xf32> -> vector<2x16xf32>
    %100 = arith.index_cast %16 : i32 to index
    %c0_46 = arith.constant 0 : index
    %101 = vector.load %arg0[%100, %c0_46] : memref<8x1xf32, #tpu.memory_space<vmem>>, vector<1x1xf32>
    %102 = vector.shape_cast %101 : vector<1x1xf32> to vector<1xf32>
    %103 = arith.index_cast %16 : i32 to index
    %c0_47 = arith.constant 0 : index
    %c0_48 = arith.constant 0 : index
    %104 = vector.load %arg1[%103, %c0_47, %c0_48] : memref<8x2x16xf32, #tpu.memory_space<vmem>>, vector<1x2x16xf32>
    %105 = vector.shape_cast %104 : vector<1x2x16xf32> to vector<2x16xf32>
    %106 = vector.shape_cast %102 : vector<1xf32> to vector<1x1xf32>
    %107 = vector.broadcast %106 : vector<1x1xf32> to vector<2x16xf32>
    %108 = arith.mulf %107, %105 : vector<2x16xf32>
    %cst_49 = arith.constant 1.000000e+00 : f32
    %109 = vector.broadcast %cst_49 : f32 to vector<1xf32>
    %110 = arith.subf %109, %102 : vector<1xf32>
    %111 = vector.shape_cast %110 : vector<1xf32> to vector<1x1xf32>
    %112 = vector.broadcast %111 : vector<1x1xf32> to vector<2x16xf32>
    %113 = arith.mulf %112, %99 : vector<2x16xf32>
    %114 = arith.addf %108, %113 : vector<2x16xf32>
    %c1_i32_50 = arith.constant 1 : i32
    %c1_i32_51 = arith.constant 1 : i32
    %115 = arith.addi %c1_i32_50, %c1_i32_51 : i32
    %cst_52 = arith.constant dense<0.000000e+00> : vector<2x32xf32>
    %116 = tpu.matmul %69, %3, %cst_52 {dimension_numbers = #tpu.dot_dimension_numbers<[1], [0], [0], [1], [0, 0, 1, 1], [], []>} : vector<2x32xf32>, vector<32x32xf32>, vector<2x32xf32> -> vector<2x32xf32>
    %117 = vector.shape_cast %116 : vector<2x32xf32> to vector<1x2x32xf32>
    %118 = vector.broadcast %117 : vector<1x2x32xf32> to vector<8x2x32xf32>
    %119 = arith.addf %118, %1 : vector<8x2x32xf32>
    %cst_53 = arith.constant 0.000000e+00 : f32
    %120 = vector.broadcast %cst_53 : f32 to vector<8x2x32xf32>
    %121 = arith.maximumf %119, %120 : vector<8x2x32xf32>
    %122 = vector.shape_cast %4 : vector<1x32xf32> to vector<1x1x32xf32>
    %123 = vector.broadcast %122 : vector<1x1x32xf32> to vector<8x2x32xf32>
    %124 = arith.mulf %121, %123 : vector<8x2x32xf32>
    %cst_54 = arith.constant dense<0.000000e+00> : vector<8x2xf32>
    %125 = vector.multi_reduction <add>, %124, %cst_54 [2] : vector<8x2x32xf32> to vector<8x2xf32>
    %126 = vector.shape_cast %125 : vector<8x2xf32> to vector<8x2x1xf32>
    %cst_55 = arith.constant dense<0xFF800000> : vector<2x1xf32>
    %127 = vector.multi_reduction <maximumf>, %126, %cst_55 [0] : vector<8x2x1xf32> to vector<2x1xf32>
    %128 = vector.shape_cast %127 : vector<2x1xf32> to vector<1x2x1xf32>
    %129 = vector.broadcast %128 : vector<1x2x1xf32> to vector<8x2x1xf32>
    %130 = arith.subf %126, %129 : vector<8x2x1xf32>
    %131 = math.exp %130 : vector<8x2x1xf32>
    %cst_56 = arith.constant dense<0.000000e+00> : vector<2x1xf32>
    %132 = vector.multi_reduction <add>, %131, %cst_56 [0] : vector<8x2x1xf32> to vector<2x1xf32>
    %133 = vector.shape_cast %132 : vector<2x1xf32> to vector<1x2x1xf32>
    %134 = tpu.reciprocal %133 {approx = true} : vector<1x2x1xf32> -> vector<1x2x1xf32>
    %135 = vector.broadcast %134 : vector<1x2x1xf32> to vector<8x2x1xf32>
    %136 = arith.mulf %131, %135 : vector<8x2x1xf32>
    %137 = vector.broadcast %136 : vector<8x2x1xf32> to vector<8x2x32xf32>
    %138 = arith.mulf %137, %0 : vector<8x2x32xf32>
    %cst_57 = arith.constant dense<0.000000e+00> : vector<2x32xf32>
    %139 = vector.multi_reduction <add>, %138, %cst_57 [0] : vector<8x2x32xf32> to vector<2x32xf32>
    %140 = tpu.concatenate %114, %139, %69 in 1 : vector<2x16xf32>, vector<2x32xf32>, vector<2x32xf32> -> vector<2x80xf32>
    %cst_58 = arith.constant dense<0.000000e+00> : vector<2x128xf32>
    %141 = tpu.matmul %140, %5, %cst_58 {dimension_numbers = #tpu.dot_dimension_numbers<[1], [0], [0], [1], [0, 0, 1, 1], [], []>} : vector<2x80xf32>, vector<80x128xf32>, vector<2x128xf32> -> vector<2x128xf32>
    %142 = vector.broadcast %6 : vector<1x128xf32> to vector<2x128xf32>
    %143 = arith.addf %141, %142 : vector<2x128xf32>
    %144 = vector.extract_strided_slice %143 {offsets = [0, 0], sizes = [2, 32], strides = [1, 1]} : vector<2x128xf32> to vector<2x32xf32>
    %145 = arith.negf %144 : vector<2x32xf32>
    %146 = math.exp %145 : vector<2x32xf32>
    %cst_59 = arith.constant 1.000000e+00 : f32
    %147 = vector.broadcast %cst_59 : f32 to vector<2x32xf32>
    %148 = arith.addf %147, %146 : vector<2x32xf32>
    %149 = arith.divf %147, %148 : vector<2x32xf32>
    %150 = vector.extract_strided_slice %143 {offsets = [0, 32], sizes = [2, 32], strides = [1, 1]} : vector<2x128xf32> to vector<2x32xf32>
    %151 = arith.negf %150 : vector<2x32xf32>
    %152 = math.exp %151 : vector<2x32xf32>
    %cst_60 = arith.constant 1.000000e+00 : f32
    %153 = vector.broadcast %cst_60 : f32 to vector<2x32xf32>
    %154 = arith.addf %153, %152 : vector<2x32xf32>
    %155 = arith.divf %153, %154 : vector<2x32xf32>
    %156 = vector.extract_strided_slice %143 {offsets = [0, 64], sizes = [2, 32], strides = [1, 1]} : vector<2x128xf32> to vector<2x32xf32>
    %157 = math.tanh %156 : vector<2x32xf32>
    %158 = vector.extract_strided_slice %143 {offsets = [0, 96], sizes = [2, 32], strides = [1, 1]} : vector<2x128xf32> to vector<2x32xf32>
    %159 = arith.negf %158 : vector<2x32xf32>
    %160 = math.exp %159 : vector<2x32xf32>
    %cst_61 = arith.constant 1.000000e+00 : f32
    %161 = vector.broadcast %cst_61 : f32 to vector<2x32xf32>
    %162 = arith.addf %161, %160 : vector<2x32xf32>
    %163 = arith.divf %161, %162 : vector<2x32xf32>
    %164 = arith.mulf %155, %67 : vector<2x32xf32>
    %165 = arith.mulf %149, %157 : vector<2x32xf32>
    %166 = arith.addf %164, %165 : vector<2x32xf32>
    %167 = math.tanh %166 : vector<2x32xf32>
    %168 = arith.mulf %163, %167 : vector<2x32xf32>
    %169 = tpu.concatenate %168, %139 in 1 : vector<2x32xf32>, vector<2x32xf32> -> vector<2x64xf32>
    %cst_62 = arith.constant dense<0.000000e+00> : vector<2x128xf32>
    %170 = tpu.matmul %169, %7, %cst_62 {dimension_numbers = #tpu.dot_dimension_numbers<[1], [0], [0], [1], [0, 0, 1, 1], [], []>} : vector<2x64xf32>, vector<64x128xf32>, vector<2x128xf32> -> vector<2x128xf32>
    %171 = vector.broadcast %8 : vector<1x128xf32> to vector<2x128xf32>
    %172 = arith.addf %170, %171 : vector<2x128xf32>
    %cst_63 = arith.constant dense<0xFF800000> : vector<2xf32>
    %173 = vector.multi_reduction <maximumf>, %172, %cst_63 [1] : vector<2x128xf32> to vector<2xf32>
    %174 = vector.shape_cast %173 : vector<2xf32> to vector<2x1xf32>
    %175 = vector.broadcast %174 : vector<2x1xf32> to vector<2x128xf32>
    %176 = arith.subf %172, %175 : vector<2x128xf32>
    %177 = math.exp %176 : vector<2x128xf32>
    %cst_64 = arith.constant dense<0.000000e+00> : vector<2xf32>
    %178 = vector.multi_reduction <add>, %177, %cst_64 [1] : vector<2x128xf32> to vector<2xf32>
    %179 = vector.shape_cast %178 : vector<2xf32> to vector<2x1xf32>
    %180 = math.log %179 : vector<2x1xf32>
    %181 = arith.addf %174, %180 : vector<2x1xf32>
    %182 = vector.broadcast %181 : vector<2x1xf32> to vector<2x128xf32>
    %183 = arith.subf %172, %182 : vector<2x128xf32>
    %184 = arith.index_cast %115 : i32 to index
    %c0_65 = arith.constant 0 : index
    %c0_66 = arith.constant 0 : index
    %185 = vector.load %arg13[%184, %c0_65, %c0_66] : memref<8x2x128xf32, #tpu.memory_space<vmem>>, vector<1x2x128xf32>
    %186 = vector.shape_cast %185 : vector<1x2x128xf32> to vector<2x128xf32>
    %187 = vector.shape_cast %183 : vector<2x128xf32> to vector<1x2x128xf32>
    tpu.vector_store %arg13[%184, %c0_65, %c0_66], %187 {strides = array<i32>} : memref<8x2x128xf32, #tpu.memory_space<vmem>>, vector<1x2x128xf32>,
    %188 = vector.broadcast %174 : vector<2x1xf32> to vector<2x128xf32>
    %189 = arith.cmpf oeq, %172, %188 : vector<2x128xf32>
    %c128_i32_67 = arith.constant 128 : i32
    %190 = vector.broadcast %c128_i32_67 : i32 to vector<2x128xi32>
    %191 = arith.select %189, %9, %190 : vector<2x128xi1>, vector<2x128xi32>
    %cst_68 = arith.constant dense<2147483647> : vector<2xi32>
    %192 = vector.multi_reduction <minsi>, %191, %cst_68 [1] : vector<2x128xi32> to vector<2xi32>
    %193 = vector.shape_cast %192 : vector<2xi32> to vector<2x1xi32>
    %194 = vector.broadcast %193 : vector<2x1xi32> to vector<2x128xi32>
    %195 = arith.cmpi eq, %9, %194 : vector<2x128xi32>
    %196 = arith.extui %195 : vector<2x128xi1> to vector<2x128xi32>
    %197 = arith.sitofp %196 : vector<2x128xi32> to vector<2x128xf32>
    %cst_69 = arith.constant dense<0.000000e+00> : vector<2x16xf32>
    %198 = tpu.matmul %197, %2, %cst_69 {dimension_numbers = #tpu.dot_dimension_numbers<[1], [0], [0], [1], [0, 0, 1, 1], [], []>} : vector<2x128xf32>, vector<128x16xf32>, vector<2x16xf32> -> vector<2x16xf32>
    %199 = arith.index_cast %115 : i32 to index
    %c0_70 = arith.constant 0 : index
    %200 = vector.load %arg0[%199, %c0_70] : memref<8x1xf32, #tpu.memory_space<vmem>>, vector<1x1xf32>
    %201 = vector.shape_cast %200 : vector<1x1xf32> to vector<1xf32>
    %202 = arith.index_cast %115 : i32 to index
    %c0_71 = arith.constant 0 : index
    %c0_72 = arith.constant 0 : index
    %203 = vector.load %arg1[%202, %c0_71, %c0_72] : memref<8x2x16xf32, #tpu.memory_space<vmem>>, vector<1x2x16xf32>
    %204 = vector.shape_cast %203 : vector<1x2x16xf32> to vector<2x16xf32>
    %205 = vector.shape_cast %201 : vector<1xf32> to vector<1x1xf32>
    %206 = vector.broadcast %205 : vector<1x1xf32> to vector<2x16xf32>
    %207 = arith.mulf %206, %204 : vector<2x16xf32>
    %cst_73 = arith.constant 1.000000e+00 : f32
    %208 = vector.broadcast %cst_73 : f32 to vector<1xf32>
    %209 = arith.subf %208, %201 : vector<1xf32>
    %210 = vector.shape_cast %209 : vector<1xf32> to vector<1x1xf32>
    %211 = vector.broadcast %210 : vector<1x1xf32> to vector<2x16xf32>
    %212 = arith.mulf %211, %198 : vector<2x16xf32>
    %213 = arith.addf %207, %212 : vector<2x16xf32>
    %c2_i32 = arith.constant 2 : i32
    %c1_i32_74 = arith.constant 1 : i32
    %214 = arith.addi %c2_i32, %c1_i32_74 : i32
    %cst_75 = arith.constant dense<0.000000e+00> : vector<2x32xf32>
    %215 = tpu.matmul %168, %3, %cst_75 {dimension_numbers = #tpu.dot_dimension_numbers<[1], [0], [0], [1], [0, 0, 1, 1], [], []>} : vector<2x32xf32>, vector<32x32xf32>, vector<2x32xf32> -> vector<2x32xf32>
    %216 = vector.shape_cast %215 : vector<2x32xf32> to vector<1x2x32xf32>
    %217 = vector.broadcast %216 : vector<1x2x32xf32> to vector<8x2x32xf32>
    %218 = arith.addf %217, %1 : vector<8x2x32xf32>
    %cst_76 = arith.constant 0.000000e+00 : f32
    %219 = vector.broadcast %cst_76 : f32 to vector<8x2x32xf32>
    %220 = arith.maximumf %218, %219 : vector<8x2x32xf32>
    %221 = vector.shape_cast %4 : vector<1x32xf32> to vector<1x1x32xf32>
    %222 = vector.broadcast %221 : vector<1x1x32xf32> to vector<8x2x32xf32>
    %223 = arith.mulf %220, %222 : vector<8x2x32xf32>
    %cst_77 = arith.constant dense<0.000000e+00> : vector<8x2xf32>
    %224 = vector.multi_reduction <add>, %223, %cst_77 [2] : vector<8x2x32xf32> to vector<8x2xf32>
    %225 = vector.shape_cast %224 : vector<8x2xf32> to vector<8x2x1xf32>
    %cst_78 = arith.constant dense<0xFF800000> : vector<2x1xf32>
    %226 = vector.multi_reduction <maximumf>, %225, %cst_78 [0] : vector<8x2x1xf32> to vector<2x1xf32>
    %227 = vector.shape_cast %226 : vector<2x1xf32> to vector<1x2x1xf32>
    %228 = vector.broadcast %227 : vector<1x2x1xf32> to vector<8x2x1xf32>
    %229 = arith.subf %225, %228 : vector<8x2x1xf32>
    %230 = math.exp %229 : vector<8x2x1xf32>
    %cst_79 = arith.constant dense<0.000000e+00> : vector<2x1xf32>
    %231 = vector.multi_reduction <add>, %230, %cst_79 [0] : vector<8x2x1xf32> to vector<2x1xf32>
    %232 = vector.shape_cast %231 : vector<2x1xf32> to vector<1x2x1xf32>
    %233 = tpu.reciprocal %232 {approx = true} : vector<1x2x1xf32> -> vector<1x2x1xf32>
    %234 = vector.broadcast %233 : vector<1x2x1xf32> to vector<8x2x1xf32>
    %235 = arith.mulf %230, %234 : vector<8x2x1xf32>
    %236 = vector.broadcast %235 : vector<8x2x1xf32> to vector<8x2x32xf32>
    %237 = arith.mulf %236, %0 : vector<8x2x32xf32>
    %cst_80 = arith.constant dense<0.000000e+00> : vector<2x32xf32>
    %238 = vector.multi_reduction <add>, %237, %cst_80 [0] : vector<8x2x32xf32> to vector<2x32xf32>
    %239 = tpu.concatenate %213, %238, %168 in 1 : vector<2x16xf32>, vector<2x32xf32>, vector<2x32xf32> -> vector<2x80xf32>
    %cst_81 = arith.constant dense<0.000000e+00> : vector<2x128xf32>
    %240 = tpu.matmul %239, %5, %cst_81 {dimension_numbers = #tpu.dot_dimension_numbers<[1], [0], [0], [1], [0, 0, 1, 1], [], []>} : vector<2x80xf32>, vector<80x128xf32>, vector<2x128xf32> -> vector<2x128xf32>
    %241 = vector.broadcast %6 : vector<1x128xf32> to vector<2x128xf32>
    %242 = arith.addf %240, %241 : vector<2x128xf32>
    %243 = vector.extract_strided_slice %242 {offsets = [0, 0], sizes = [2, 32], strides = [1, 1]} : vector<2x128xf32> to vector<2x32xf32>
    %244 = arith.negf %243 : vector<2x32xf32>
    %245 = math.exp %244 : vector<2x32xf32>
    %cst_82 = arith.constant 1.000000e+00 : f32
    %246 = vector.broadcast %cst_82 : f32 to vector<2x32xf32>
    %247 = arith.addf %246, %245 : vector<2x32xf32>
    %248 = arith.divf %246, %247 : vector<2x32xf32>
    %249 = vector.extract_strided_slice %242 {offsets = [0, 32], sizes = [2, 32], strides = [1, 1]} : vector<2x128xf32> to vector<2x32xf32>
    %250 = arith.negf %249 : vector<2x32xf32>
    %251 = math.exp %250 : vector<2x32xf32>
    %cst_83 = arith.constant 1.000000e+00 : f32
    %252 = vector.broadcast %cst_83 : f32 to vector<2x32xf32>
    %253 = arith.addf %252, %251 : vector<2x32xf32>
    %254 = arith.divf %252, %253 : vector<2x32xf32>
    %255 = vector.extract_strided_slice %242 {offsets = [0, 64], sizes = [2, 32], strides = [1, 1]} : vector<2x128xf32> to vector<2x32xf32>
    %256 = math.tanh %255 : vector<2x32xf32>
    %257 = vector.extract_strided_slice %242 {offsets = [0, 96], sizes = [2, 32], strides = [1, 1]} : vector<2x128xf32> to vector<2x32xf32>
    %258 = arith.negf %257 : vector<2x32xf32>
    %259 = math.exp %258 : vector<2x32xf32>
    %cst_84 = arith.constant 1.000000e+00 : f32
    %260 = vector.broadcast %cst_84 : f32 to vector<2x32xf32>
    %261 = arith.addf %260, %259 : vector<2x32xf32>
    %262 = arith.divf %260, %261 : vector<2x32xf32>
    %263 = arith.mulf %254, %166 : vector<2x32xf32>
    %264 = arith.mulf %248, %256 : vector<2x32xf32>
    %265 = arith.addf %263, %264 : vector<2x32xf32>
    %266 = math.tanh %265 : vector<2x32xf32>
    %267 = arith.mulf %262, %266 : vector<2x32xf32>
    %268 = tpu.concatenate %267, %238 in 1 : vector<2x32xf32>, vector<2x32xf32> -> vector<2x64xf32>
    %cst_85 = arith.constant dense<0.000000e+00> : vector<2x128xf32>
    %269 = tpu.matmul %268, %7, %cst_85 {dimension_numbers = #tpu.dot_dimension_numbers<[1], [0], [0], [1], [0, 0, 1, 1], [], []>} : vector<2x64xf32>, vector<64x128xf32>, vector<2x128xf32> -> vector<2x128xf32>
    %270 = vector.broadcast %8 : vector<1x128xf32> to vector<2x128xf32>
    %271 = arith.addf %269, %270 : vector<2x128xf32>
    %cst_86 = arith.constant dense<0xFF800000> : vector<2xf32>
    %272 = vector.multi_reduction <maximumf>, %271, %cst_86 [1] : vector<2x128xf32> to vector<2xf32>
    %273 = vector.shape_cast %272 : vector<2xf32> to vector<2x1xf32>
    %274 = vector.broadcast %273 : vector<2x1xf32> to vector<2x128xf32>
    %275 = arith.subf %271, %274 : vector<2x128xf32>
    %276 = math.exp %275 : vector<2x128xf32>
    %cst_87 = arith.constant dense<0.000000e+00> : vector<2xf32>
    %277 = vector.multi_reduction <add>, %276, %cst_87 [1] : vector<2x128xf32> to vector<2xf32>
    %278 = vector.shape_cast %277 : vector<2xf32> to vector<2x1xf32>
    %279 = math.log %278 : vector<2x1xf32>
    %280 = arith.addf %273, %279 : vector<2x1xf32>
    %281 = vector.broadcast %280 : vector<2x1xf32> to vector<2x128xf32>
    %282 = arith.subf %271, %281 : vector<2x128xf32>
    %283 = arith.index_cast %214 : i32 to index
    %c0_88 = arith.constant 0 : index
    %c0_89 = arith.constant 0 : index
    %284 = vector.load %arg13[%283, %c0_88, %c0_89] : memref<8x2x128xf32, #tpu.memory_space<vmem>>, vector<1x2x128xf32>
    %285 = vector.shape_cast %284 : vector<1x2x128xf32> to vector<2x128xf32>
    %286 = vector.shape_cast %282 : vector<2x128xf32> to vector<1x2x128xf32>
    tpu.vector_store %arg13[%283, %c0_88, %c0_89], %286 {strides = array<i32>} : memref<8x2x128xf32, #tpu.memory_space<vmem>>, vector<1x2x128xf32>,
    %287 = vector.broadcast %273 : vector<2x1xf32> to vector<2x128xf32>
    %288 = arith.cmpf oeq, %271, %287 : vector<2x128xf32>
    %c128_i32_90 = arith.constant 128 : i32
    %289 = vector.broadcast %c128_i32_90 : i32 to vector<2x128xi32>
    %290 = arith.select %288, %9, %289 : vector<2x128xi1>, vector<2x128xi32>
    %cst_91 = arith.constant dense<2147483647> : vector<2xi32>
    %291 = vector.multi_reduction <minsi>, %290, %cst_91 [1] : vector<2x128xi32> to vector<2xi32>
    %292 = vector.shape_cast %291 : vector<2xi32> to vector<2x1xi32>
    %293 = vector.broadcast %292 : vector<2x1xi32> to vector<2x128xi32>
    %294 = arith.cmpi eq, %9, %293 : vector<2x128xi32>
    %295 = arith.extui %294 : vector<2x128xi1> to vector<2x128xi32>
    %296 = arith.sitofp %295 : vector<2x128xi32> to vector<2x128xf32>
    %cst_92 = arith.constant dense<0.000000e+00> : vector<2x16xf32>
    %297 = tpu.matmul %296, %2, %cst_92 {dimension_numbers = #tpu.dot_dimension_numbers<[1], [0], [0], [1], [0, 0, 1, 1], [], []>} : vector<2x128xf32>, vector<128x16xf32>, vector<2x16xf32> -> vector<2x16xf32>
    %298 = arith.index_cast %214 : i32 to index
    %c0_93 = arith.constant 0 : index
    %299 = vector.load %arg0[%298, %c0_93] : memref<8x1xf32, #tpu.memory_space<vmem>>, vector<1x1xf32>
    %300 = vector.shape_cast %299 : vector<1x1xf32> to vector<1xf32>
    %301 = arith.index_cast %214 : i32 to index
    %c0_94 = arith.constant 0 : index
    %c0_95 = arith.constant 0 : index
    %302 = vector.load %arg1[%301, %c0_94, %c0_95] : memref<8x2x16xf32, #tpu.memory_space<vmem>>, vector<1x2x16xf32>
    %303 = vector.shape_cast %302 : vector<1x2x16xf32> to vector<2x16xf32>
    %304 = vector.shape_cast %300 : vector<1xf32> to vector<1x1xf32>
    %305 = vector.broadcast %304 : vector<1x1xf32> to vector<2x16xf32>
    %306 = arith.mulf %305, %303 : vector<2x16xf32>
    %cst_96 = arith.constant 1.000000e+00 : f32
    %307 = vector.broadcast %cst_96 : f32 to vector<1xf32>
    %308 = arith.subf %307, %300 : vector<1xf32>
    %309 = vector.shape_cast %308 : vector<1xf32> to vector<1x1xf32>
    %310 = vector.broadcast %309 : vector<1x1xf32> to vector<2x16xf32>
    %311 = arith.mulf %310, %297 : vector<2x16xf32>
    %312 = arith.addf %306, %311 : vector<2x16xf32>
    %c3_i32 = arith.constant 3 : i32
    %c1_i32_97 = arith.constant 1 : i32
    %313 = arith.addi %c3_i32, %c1_i32_97 : i32
    %cst_98 = arith.constant dense<0.000000e+00> : vector<2x32xf32>
    %314 = tpu.matmul %267, %3, %cst_98 {dimension_numbers = #tpu.dot_dimension_numbers<[1], [0], [0], [1], [0, 0, 1, 1], [], []>} : vector<2x32xf32>, vector<32x32xf32>, vector<2x32xf32> -> vector<2x32xf32>
    %315 = vector.shape_cast %314 : vector<2x32xf32> to vector<1x2x32xf32>
    %316 = vector.broadcast %315 : vector<1x2x32xf32> to vector<8x2x32xf32>
    %317 = arith.addf %316, %1 : vector<8x2x32xf32>
    %cst_99 = arith.constant 0.000000e+00 : f32
    %318 = vector.broadcast %cst_99 : f32 to vector<8x2x32xf32>
    %319 = arith.maximumf %317, %318 : vector<8x2x32xf32>
    %320 = vector.shape_cast %4 : vector<1x32xf32> to vector<1x1x32xf32>
    %321 = vector.broadcast %320 : vector<1x1x32xf32> to vector<8x2x32xf32>
    %322 = arith.mulf %319, %321 : vector<8x2x32xf32>
    %cst_100 = arith.constant dense<0.000000e+00> : vector<8x2xf32>
    %323 = vector.multi_reduction <add>, %322, %cst_100 [2] : vector<8x2x32xf32> to vector<8x2xf32>
    %324 = vector.shape_cast %323 : vector<8x2xf32> to vector<8x2x1xf32>
    %cst_101 = arith.constant dense<0xFF800000> : vector<2x1xf32>
    %325 = vector.multi_reduction <maximumf>, %324, %cst_101 [0] : vector<8x2x1xf32> to vector<2x1xf32>
    %326 = vector.shape_cast %325 : vector<2x1xf32> to vector<1x2x1xf32>
    %327 = vector.broadcast %326 : vector<1x2x1xf32> to vector<8x2x1xf32>
    %328 = arith.subf %324, %327 : vector<8x2x1xf32>
    %329 = math.exp %328 : vector<8x2x1xf32>
    %cst_102 = arith.constant dense<0.000000e+00> : vector<2x1xf32>
    %330 = vector.multi_reduction <add>, %329, %cst_102 [0] : vector<8x2x1xf32> to vector<2x1xf32>
    %331 = vector.shape_cast %330 : vector<2x1xf32> to vector<1x2x1xf32>
    %332 = tpu.reciprocal %331 {approx = true} : vector<1x2x1xf32> -> vector<1x2x1xf32>
    %333 = vector.broadcast %332 : vector<1x2x1xf32> to vector<8x2x1xf32>
    %334 = arith.mulf %329, %333 : vector<8x2x1xf32>
    %335 = vector.broadcast %334 : vector<8x2x1xf32> to vector<8x2x32xf32>
    %336 = arith.mulf %335, %0 : vector<8x2x32xf32>
    %cst_103 = arith.constant dense<0.000000e+00> : vector<2x32xf32>
    %337 = vector.multi_reduction <add>, %336, %cst_103 [0] : vector<8x2x32xf32> to vector<2x32xf32>
    %338 = tpu.concatenate %312, %337, %267 in 1 : vector<2x16xf32>, vector<2x32xf32>, vector<2x32xf32> -> vector<2x80xf32>
    %cst_104 = arith.constant dense<0.000000e+00> : vector<2x128xf32>
    %339 = tpu.matmul %338, %5, %cst_104 {dimension_numbers = #tpu.dot_dimension_numbers<[1], [0], [0], [1], [0, 0, 1, 1], [], []>} : vector<2x80xf32>, vector<80x128xf32>, vector<2x128xf32> -> vector<2x128xf32>
    %340 = vector.broadcast %6 : vector<1x128xf32> to vector<2x128xf32>
    %341 = arith.addf %339, %340 : vector<2x128xf32>
    %342 = vector.extract_strided_slice %341 {offsets = [0, 0], sizes = [2, 32], strides = [1, 1]} : vector<2x128xf32> to vector<2x32xf32>
    %343 = arith.negf %342 : vector<2x32xf32>
    %344 = math.exp %343 : vector<2x32xf32>
    %cst_105 = arith.constant 1.000000e+00 : f32
    %345 = vector.broadcast %cst_105 : f32 to vector<2x32xf32>
    %346 = arith.addf %345, %344 : vector<2x32xf32>
    %347 = arith.divf %345, %346 : vector<2x32xf32>
    %348 = vector.extract_strided_slice %341 {offsets = [0, 32], sizes = [2, 32], strides = [1, 1]} : vector<2x128xf32> to vector<2x32xf32>
    %349 = arith.negf %348 : vector<2x32xf32>
    %350 = math.exp %349 : vector<2x32xf32>
    %cst_106 = arith.constant 1.000000e+00 : f32
    %351 = vector.broadcast %cst_106 : f32 to vector<2x32xf32>
    %352 = arith.addf %351, %350 : vector<2x32xf32>
    %353 = arith.divf %351, %352 : vector<2x32xf32>
    %354 = vector.extract_strided_slice %341 {offsets = [0, 64], sizes = [2, 32], strides = [1, 1]} : vector<2x128xf32> to vector<2x32xf32>
    %355 = math.tanh %354 : vector<2x32xf32>
    %356 = vector.extract_strided_slice %341 {offsets = [0, 96], sizes = [2, 32], strides = [1, 1]} : vector<2x128xf32> to vector<2x32xf32>
    %357 = arith.negf %356 : vector<2x32xf32>
    %358 = math.exp %357 : vector<2x32xf32>
    %cst_107 = arith.constant 1.000000e+00 : f32
    %359 = vector.broadcast %cst_107 : f32 to vector<2x32xf32>
    %360 = arith.addf %359, %358 : vector<2x32xf32>
    %361 = arith.divf %359, %360 : vector<2x32xf32>
    %362 = arith.mulf %353, %265 : vector<2x32xf32>
    %363 = arith.mulf %347, %355 : vector<2x32xf32>
    %364 = arith.addf %362, %363 : vector<2x32xf32>
    %365 = math.tanh %364 : vector<2x32xf32>
    %366 = arith.mulf %361, %365 : vector<2x32xf32>
    %367 = tpu.concatenate %366, %337 in 1 : vector<2x32xf32>, vector<2x32xf32> -> vector<2x64xf32>
    %cst_108 = arith.constant dense<0.000000e+00> : vector<2x128xf32>
    %368 = tpu.matmul %367, %7, %cst_108 {dimension_numbers = #tpu.dot_dimension_numbers<[1], [0], [0], [1], [0, 0, 1, 1], [], []>} : vector<2x64xf32>, vector<64x128xf32>, vector<2x128xf32> -> vector<2x128xf32>
    %369 = vector.broadcast %8 : vector<1x128xf32> to vector<2x128xf32>
    %370 = arith.addf %368, %369 : vector<2x128xf32>
    %cst_109 = arith.constant dense<0xFF800000> : vector<2xf32>
    %371 = vector.multi_reduction <maximumf>, %370, %cst_109 [1] : vector<2x128xf32> to vector<2xf32>
    %372 = vector.shape_cast %371 : vector<2xf32> to vector<2x1xf32>
    %373 = vector.broadcast %372 : vector<2x1xf32> to vector<2x128xf32>
    %374 = arith.subf %370, %373 : vector<2x128xf32>
    %375 = math.exp %374 : vector<2x128xf32>
    %cst_110 = arith.constant dense<0.000000e+00> : vector<2xf32>
    %376 = vector.multi_reduction <add>, %375, %cst_110 [1] : vector<2x128xf32> to vector<2xf32>
    %377 = vector.shape_cast %376 : vector<2xf32> to vector<2x1xf32>
    %378 = math.log %377 : vector<2x1xf32>
    %379 = arith.addf %372, %378 : vector<2x1xf32>
    %380 = vector.broadcast %379 : vector<2x1xf32> to vector<2x128xf32>
    %381 = arith.subf %370, %380 : vector<2x128xf32>
    %382 = arith.index_cast %313 : i32 to index
    %c0_111 = arith.constant 0 : index
    %c0_112 = arith.constant 0 : index
    %383 = vector.load %arg13[%382, %c0_111, %c0_112] : memref<8x2x128xf32, #tpu.memory_space<vmem>>, vector<1x2x128xf32>
    %384 = vector.shape_cast %383 : vector<1x2x128xf32> to vector<2x128xf32>
    %385 = vector.shape_cast %381 : vector<2x128xf32> to vector<1x2x128xf32>
    tpu.vector_store %arg13[%382, %c0_111, %c0_112], %385 {strides = array<i32>} : memref<8x2x128xf32, #tpu.memory_space<vmem>>, vector<1x2x128xf32>,
    %386 = vector.broadcast %372 : vector<2x1xf32> to vector<2x128xf32>
    %387 = arith.cmpf oeq, %370, %386 : vector<2x128xf32>
    %c128_i32_113 = arith.constant 128 : i32
    %388 = vector.broadcast %c128_i32_113 : i32 to vector<2x128xi32>
    %389 = arith.select %387, %9, %388 : vector<2x128xi1>, vector<2x128xi32>
    %cst_114 = arith.constant dense<2147483647> : vector<2xi32>
    %390 = vector.multi_reduction <minsi>, %389, %cst_114 [1] : vector<2x128xi32> to vector<2xi32>
    %391 = vector.shape_cast %390 : vector<2xi32> to vector<2x1xi32>
    %392 = vector.broadcast %391 : vector<2x1xi32> to vector<2x128xi32>
    %393 = arith.cmpi eq, %9, %392 : vector<2x128xi32>
    %394 = arith.extui %393 : vector<2x128xi1> to vector<2x128xi32>
    %395 = arith.sitofp %394 : vector<2x128xi32> to vector<2x128xf32>
    %cst_115 = arith.constant dense<0.000000e+00> : vector<2x16xf32>
    %396 = tpu.matmul %395, %2, %cst_115 {dimension_numbers = #tpu.dot_dimension_numbers<[1], [0], [0], [1], [0, 0, 1, 1], [], []>} : vector<2x128xf32>, vector<128x16xf32>, vector<2x16xf32> -> vector<2x16xf32>
    %397 = arith.index_cast %313 : i32 to index
    %c0_116 = arith.constant 0 : index
    %398 = vector.load %arg0[%397, %c0_116] : memref<8x1xf32, #tpu.memory_space<vmem>>, vector<1x1xf32>
    %399 = vector.shape_cast %398 : vector<1x1xf32> to vector<1xf32>
    %400 = arith.index_cast %313 : i32 to index
    %c0_117 = arith.constant 0 : index
    %c0_118 = arith.constant 0 : index
    %401 = vector.load %arg1[%400, %c0_117, %c0_118] : memref<8x2x16xf32, #tpu.memory_space<vmem>>, vector<1x2x16xf32>
    %402 = vector.shape_cast %401 : vector<1x2x16xf32> to vector<2x16xf32>
    %403 = vector.shape_cast %399 : vector<1xf32> to vector<1x1xf32>
    %404 = vector.broadcast %403 : vector<1x1xf32> to vector<2x16xf32>
    %405 = arith.mulf %404, %402 : vector<2x16xf32>
    %cst_119 = arith.constant 1.000000e+00 : f32
    %406 = vector.broadcast %cst_119 : f32 to vector<1xf32>
    %407 = arith.subf %406, %399 : vector<1xf32>
    %408 = vector.shape_cast %407 : vector<1xf32> to vector<1x1xf32>
    %409 = vector.broadcast %408 : vector<1x1xf32> to vector<2x16xf32>
    %410 = arith.mulf %409, %396 : vector<2x16xf32>
    %411 = arith.addf %405, %410 : vector<2x16xf32>
    %c4_i32 = arith.constant 4 : i32
    %c1_i32_120 = arith.constant 1 : i32
    %412 = arith.addi %c4_i32, %c1_i32_120 : i32
    %cst_121 = arith.constant dense<0.000000e+00> : vector<2x32xf32>
    %413 = tpu.matmul %366, %3, %cst_121 {dimension_numbers = #tpu.dot_dimension_numbers<[1], [0], [0], [1], [0, 0, 1, 1], [], []>} : vector<2x32xf32>, vector<32x32xf32>, vector<2x32xf32> -> vector<2x32xf32>
    %414 = vector.shape_cast %413 : vector<2x32xf32> to vector<1x2x32xf32>
    %415 = vector.broadcast %414 : vector<1x2x32xf32> to vector<8x2x32xf32>
    %416 = arith.addf %415, %1 : vector<8x2x32xf32>
    %cst_122 = arith.constant 0.000000e+00 : f32
    %417 = vector.broadcast %cst_122 : f32 to vector<8x2x32xf32>
    %418 = arith.maximumf %416, %417 : vector<8x2x32xf32>
    %419 = vector.shape_cast %4 : vector<1x32xf32> to vector<1x1x32xf32>
    %420 = vector.broadcast %419 : vector<1x1x32xf32> to vector<8x2x32xf32>
    %421 = arith.mulf %418, %420 : vector<8x2x32xf32>
    %cst_123 = arith.constant dense<0.000000e+00> : vector<8x2xf32>
    %422 = vector.multi_reduction <add>, %421, %cst_123 [2] : vector<8x2x32xf32> to vector<8x2xf32>
    %423 = vector.shape_cast %422 : vector<8x2xf32> to vector<8x2x1xf32>
    %cst_124 = arith.constant dense<0xFF800000> : vector<2x1xf32>
    %424 = vector.multi_reduction <maximumf>, %423, %cst_124 [0] : vector<8x2x1xf32> to vector<2x1xf32>
    %425 = vector.shape_cast %424 : vector<2x1xf32> to vector<1x2x1xf32>
    %426 = vector.broadcast %425 : vector<1x2x1xf32> to vector<8x2x1xf32>
    %427 = arith.subf %423, %426 : vector<8x2x1xf32>
    %428 = math.exp %427 : vector<8x2x1xf32>
    %cst_125 = arith.constant dense<0.000000e+00> : vector<2x1xf32>
    %429 = vector.multi_reduction <add>, %428, %cst_125 [0] : vector<8x2x1xf32> to vector<2x1xf32>
    %430 = vector.shape_cast %429 : vector<2x1xf32> to vector<1x2x1xf32>
    %431 = tpu.reciprocal %430 {approx = true} : vector<1x2x1xf32> -> vector<1x2x1xf32>
    %432 = vector.broadcast %431 : vector<1x2x1xf32> to vector<8x2x1xf32>
    %433 = arith.mulf %428, %432 : vector<8x2x1xf32>
    %434 = vector.broadcast %433 : vector<8x2x1xf32> to vector<8x2x32xf32>
    %435 = arith.mulf %434, %0 : vector<8x2x32xf32>
    %cst_126 = arith.constant dense<0.000000e+00> : vector<2x32xf32>
    %436 = vector.multi_reduction <add>, %435, %cst_126 [0] : vector<8x2x32xf32> to vector<2x32xf32>
    %437 = tpu.concatenate %411, %436, %366 in 1 : vector<2x16xf32>, vector<2x32xf32>, vector<2x32xf32> -> vector<2x80xf32>
    %cst_127 = arith.constant dense<0.000000e+00> : vector<2x128xf32>
    %438 = tpu.matmul %437, %5, %cst_127 {dimension_numbers = #tpu.dot_dimension_numbers<[1], [0], [0], [1], [0, 0, 1, 1], [], []>} : vector<2x80xf32>, vector<80x128xf32>, vector<2x128xf32> -> vector<2x128xf32>
    %439 = vector.broadcast %6 : vector<1x128xf32> to vector<2x128xf32>
    %440 = arith.addf %438, %439 : vector<2x128xf32>
    %441 = vector.extract_strided_slice %440 {offsets = [0, 0], sizes = [2, 32], strides = [1, 1]} : vector<2x128xf32> to vector<2x32xf32>
    %442 = arith.negf %441 : vector<2x32xf32>
    %443 = math.exp %442 : vector<2x32xf32>
    %cst_128 = arith.constant 1.000000e+00 : f32
    %444 = vector.broadcast %cst_128 : f32 to vector<2x32xf32>
    %445 = arith.addf %444, %443 : vector<2x32xf32>
    %446 = arith.divf %444, %445 : vector<2x32xf32>
    %447 = vector.extract_strided_slice %440 {offsets = [0, 32], sizes = [2, 32], strides = [1, 1]} : vector<2x128xf32> to vector<2x32xf32>
    %448 = arith.negf %447 : vector<2x32xf32>
    %449 = math.exp %448 : vector<2x32xf32>
    %cst_129 = arith.constant 1.000000e+00 : f32
    %450 = vector.broadcast %cst_129 : f32 to vector<2x32xf32>
    %451 = arith.addf %450, %449 : vector<2x32xf32>
    %452 = arith.divf %450, %451 : vector<2x32xf32>
    %453 = vector.extract_strided_slice %440 {offsets = [0, 64], sizes = [2, 32], strides = [1, 1]} : vector<2x128xf32> to vector<2x32xf32>
    %454 = math.tanh %453 : vector<2x32xf32>
    %455 = vector.extract_strided_slice %440 {offsets = [0, 96], sizes = [2, 32], strides = [1, 1]} : vector<2x128xf32> to vector<2x32xf32>
    %456 = arith.negf %455 : vector<2x32xf32>
    %457 = math.exp %456 : vector<2x32xf32>
    %cst_130 = arith.constant 1.000000e+00 : f32
    %458 = vector.broadcast %cst_130 : f32 to vector<2x32xf32>
    %459 = arith.addf %458, %457 : vector<2x32xf32>
    %460 = arith.divf %458, %459 : vector<2x32xf32>
    %461 = arith.mulf %452, %364 : vector<2x32xf32>
    %462 = arith.mulf %446, %454 : vector<2x32xf32>
    %463 = arith.addf %461, %462 : vector<2x32xf32>
    %464 = math.tanh %463 : vector<2x32xf32>
    %465 = arith.mulf %460, %464 : vector<2x32xf32>
    %466 = tpu.concatenate %465, %436 in 1 : vector<2x32xf32>, vector<2x32xf32> -> vector<2x64xf32>
    %cst_131 = arith.constant dense<0.000000e+00> : vector<2x128xf32>
    %467 = tpu.matmul %466, %7, %cst_131 {dimension_numbers = #tpu.dot_dimension_numbers<[1], [0], [0], [1], [0, 0, 1, 1], [], []>} : vector<2x64xf32>, vector<64x128xf32>, vector<2x128xf32> -> vector<2x128xf32>
    %468 = vector.broadcast %8 : vector<1x128xf32> to vector<2x128xf32>
    %469 = arith.addf %467, %468 : vector<2x128xf32>
    %cst_132 = arith.constant dense<0xFF800000> : vector<2xf32>
    %470 = vector.multi_reduction <maximumf>, %469, %cst_132 [1] : vector<2x128xf32> to vector<2xf32>
    %471 = vector.shape_cast %470 : vector<2xf32> to vector<2x1xf32>
    %472 = vector.broadcast %471 : vector<2x1xf32> to vector<2x128xf32>
    %473 = arith.subf %469, %472 : vector<2x128xf32>
    %474 = math.exp %473 : vector<2x128xf32>
    %cst_133 = arith.constant dense<0.000000e+00> : vector<2xf32>
    %475 = vector.multi_reduction <add>, %474, %cst_133 [1] : vector<2x128xf32> to vector<2xf32>
    %476 = vector.shape_cast %475 : vector<2xf32> to vector<2x1xf32>
    %477 = math.log %476 : vector<2x1xf32>
    %478 = arith.addf %471, %477 : vector<2x1xf32>
    %479 = vector.broadcast %478 : vector<2x1xf32> to vector<2x128xf32>
    %480 = arith.subf %469, %479 : vector<2x128xf32>
    %481 = arith.index_cast %412 : i32 to index
    %c0_134 = arith.constant 0 : index
    %c0_135 = arith.constant 0 : index
    %482 = vector.load %arg13[%481, %c0_134, %c0_135] : memref<8x2x128xf32, #tpu.memory_space<vmem>>, vector<1x2x128xf32>
    %483 = vector.shape_cast %482 : vector<1x2x128xf32> to vector<2x128xf32>
    %484 = vector.shape_cast %480 : vector<2x128xf32> to vector<1x2x128xf32>
    tpu.vector_store %arg13[%481, %c0_134, %c0_135], %484 {strides = array<i32>} : memref<8x2x128xf32, #tpu.memory_space<vmem>>, vector<1x2x128xf32>,
    %485 = vector.broadcast %471 : vector<2x1xf32> to vector<2x128xf32>
    %486 = arith.cmpf oeq, %469, %485 : vector<2x128xf32>
    %c128_i32_136 = arith.constant 128 : i32
    %487 = vector.broadcast %c128_i32_136 : i32 to vector<2x128xi32>
    %488 = arith.select %486, %9, %487 : vector<2x128xi1>, vector<2x128xi32>
    %cst_137 = arith.constant dense<2147483647> : vector<2xi32>
    %489 = vector.multi_reduction <minsi>, %488, %cst_137 [1] : vector<2x128xi32> to vector<2xi32>
    %490 = vector.shape_cast %489 : vector<2xi32> to vector<2x1xi32>
    %491 = vector.broadcast %490 : vector<2x1xi32> to vector<2x128xi32>
    %492 = arith.cmpi eq, %9, %491 : vector<2x128xi32>
    %493 = arith.extui %492 : vector<2x128xi1> to vector<2x128xi32>
    %494 = arith.sitofp %493 : vector<2x128xi32> to vector<2x128xf32>
    %cst_138 = arith.constant dense<0.000000e+00> : vector<2x16xf32>
    %495 = tpu.matmul %494, %2, %cst_138 {dimension_numbers = #tpu.dot_dimension_numbers<[1], [0], [0], [1], [0, 0, 1, 1], [], []>} : vector<2x128xf32>, vector<128x16xf32>, vector<2x16xf32> -> vector<2x16xf32>
    %496 = arith.index_cast %412 : i32 to index
    %c0_139 = arith.constant 0 : index
    %497 = vector.load %arg0[%496, %c0_139] : memref<8x1xf32, #tpu.memory_space<vmem>>, vector<1x1xf32>
    %498 = vector.shape_cast %497 : vector<1x1xf32> to vector<1xf32>
    %499 = arith.index_cast %412 : i32 to index
    %c0_140 = arith.constant 0 : index
    %c0_141 = arith.constant 0 : index
    %500 = vector.load %arg1[%499, %c0_140, %c0_141] : memref<8x2x16xf32, #tpu.memory_space<vmem>>, vector<1x2x16xf32>
    %501 = vector.shape_cast %500 : vector<1x2x16xf32> to vector<2x16xf32>
    %502 = vector.shape_cast %498 : vector<1xf32> to vector<1x1xf32>
    %503 = vector.broadcast %502 : vector<1x1xf32> to vector<2x16xf32>
    %504 = arith.mulf %503, %501 : vector<2x16xf32>
    %cst_142 = arith.constant 1.000000e+00 : f32
    %505 = vector.broadcast %cst_142 : f32 to vector<1xf32>
    %506 = arith.subf %505, %498 : vector<1xf32>
    %507 = vector.shape_cast %506 : vector<1xf32> to vector<1x1xf32>
    %508 = vector.broadcast %507 : vector<1x1xf32> to vector<2x16xf32>
    %509 = arith.mulf %508, %495 : vector<2x16xf32>
    %510 = arith.addf %504, %509 : vector<2x16xf32>
    %c5_i32 = arith.constant 5 : i32
    %c1_i32_143 = arith.constant 1 : i32
    %511 = arith.addi %c5_i32, %c1_i32_143 : i32
    %cst_144 = arith.constant dense<0.000000e+00> : vector<2x32xf32>
    %512 = tpu.matmul %465, %3, %cst_144 {dimension_numbers = #tpu.dot_dimension_numbers<[1], [0], [0], [1], [0, 0, 1, 1], [], []>} : vector<2x32xf32>, vector<32x32xf32>, vector<2x32xf32> -> vector<2x32xf32>
    %513 = vector.shape_cast %512 : vector<2x32xf32> to vector<1x2x32xf32>
    %514 = vector.broadcast %513 : vector<1x2x32xf32> to vector<8x2x32xf32>
    %515 = arith.addf %514, %1 : vector<8x2x32xf32>
    %cst_145 = arith.constant 0.000000e+00 : f32
    %516 = vector.broadcast %cst_145 : f32 to vector<8x2x32xf32>
    %517 = arith.maximumf %515, %516 : vector<8x2x32xf32>
    %518 = vector.shape_cast %4 : vector<1x32xf32> to vector<1x1x32xf32>
    %519 = vector.broadcast %518 : vector<1x1x32xf32> to vector<8x2x32xf32>
    %520 = arith.mulf %517, %519 : vector<8x2x32xf32>
    %cst_146 = arith.constant dense<0.000000e+00> : vector<8x2xf32>
    %521 = vector.multi_reduction <add>, %520, %cst_146 [2] : vector<8x2x32xf32> to vector<8x2xf32>
    %522 = vector.shape_cast %521 : vector<8x2xf32> to vector<8x2x1xf32>
    %cst_147 = arith.constant dense<0xFF800000> : vector<2x1xf32>
    %523 = vector.multi_reduction <maximumf>, %522, %cst_147 [0] : vector<8x2x1xf32> to vector<2x1xf32>
    %524 = vector.shape_cast %523 : vector<2x1xf32> to vector<1x2x1xf32>
    %525 = vector.broadcast %524 : vector<1x2x1xf32> to vector<8x2x1xf32>
    %526 = arith.subf %522, %525 : vector<8x2x1xf32>
    %527 = math.exp %526 : vector<8x2x1xf32>
    %cst_148 = arith.constant dense<0.000000e+00> : vector<2x1xf32>
    %528 = vector.multi_reduction <add>, %527, %cst_148 [0] : vector<8x2x1xf32> to vector<2x1xf32>
    %529 = vector.shape_cast %528 : vector<2x1xf32> to vector<1x2x1xf32>
    %530 = tpu.reciprocal %529 {approx = true} : vector<1x2x1xf32> -> vector<1x2x1xf32>
    %531 = vector.broadcast %530 : vector<1x2x1xf32> to vector<8x2x1xf32>
    %532 = arith.mulf %527, %531 : vector<8x2x1xf32>
    %533 = vector.broadcast %532 : vector<8x2x1xf32> to vector<8x2x32xf32>
    %534 = arith.mulf %533, %0 : vector<8x2x32xf32>
    %cst_149 = arith.constant dense<0.000000e+00> : vector<2x32xf32>
    %535 = vector.multi_reduction <add>, %534, %cst_149 [0] : vector<8x2x32xf32> to vector<2x32xf32>
    %536 = tpu.concatenate %510, %535, %465 in 1 : vector<2x16xf32>, vector<2x32xf32>, vector<2x32xf32> -> vector<2x80xf32>
    %cst_150 = arith.constant dense<0.000000e+00> : vector<2x128xf32>
    %537 = tpu.matmul %536, %5, %cst_150 {dimension_numbers = #tpu.dot_dimension_numbers<[1], [0], [0], [1], [0, 0, 1, 1], [], []>} : vector<2x80xf32>, vector<80x128xf32>, vector<2x128xf32> -> vector<2x128xf32>
    %538 = vector.broadcast %6 : vector<1x128xf32> to vector<2x128xf32>
    %539 = arith.addf %537, %538 : vector<2x128xf32>
    %540 = vector.extract_strided_slice %539 {offsets = [0, 0], sizes = [2, 32], strides = [1, 1]} : vector<2x128xf32> to vector<2x32xf32>
    %541 = arith.negf %540 : vector<2x32xf32>
    %542 = math.exp %541 : vector<2x32xf32>
    %cst_151 = arith.constant 1.000000e+00 : f32
    %543 = vector.broadcast %cst_151 : f32 to vector<2x32xf32>
    %544 = arith.addf %543, %542 : vector<2x32xf32>
    %545 = arith.divf %543, %544 : vector<2x32xf32>
    %546 = vector.extract_strided_slice %539 {offsets = [0, 32], sizes = [2, 32], strides = [1, 1]} : vector<2x128xf32> to vector<2x32xf32>
    %547 = arith.negf %546 : vector<2x32xf32>
    %548 = math.exp %547 : vector<2x32xf32>
    %cst_152 = arith.constant 1.000000e+00 : f32
    %549 = vector.broadcast %cst_152 : f32 to vector<2x32xf32>
    %550 = arith.addf %549, %548 : vector<2x32xf32>
    %551 = arith.divf %549, %550 : vector<2x32xf32>
    %552 = vector.extract_strided_slice %539 {offsets = [0, 64], sizes = [2, 32], strides = [1, 1]} : vector<2x128xf32> to vector<2x32xf32>
    %553 = math.tanh %552 : vector<2x32xf32>
    %554 = vector.extract_strided_slice %539 {offsets = [0, 96], sizes = [2, 32], strides = [1, 1]} : vector<2x128xf32> to vector<2x32xf32>
    %555 = arith.negf %554 : vector<2x32xf32>
    %556 = math.exp %555 : vector<2x32xf32>
    %cst_153 = arith.constant 1.000000e+00 : f32
    %557 = vector.broadcast %cst_153 : f32 to vector<2x32xf32>
    %558 = arith.addf %557, %556 : vector<2x32xf32>
    %559 = arith.divf %557, %558 : vector<2x32xf32>
    %560 = arith.mulf %551, %463 : vector<2x32xf32>
    %561 = arith.mulf %545, %553 : vector<2x32xf32>
    %562 = arith.addf %560, %561 : vector<2x32xf32>
    %563 = math.tanh %562 : vector<2x32xf32>
    %564 = arith.mulf %559, %563 : vector<2x32xf32>
    %565 = tpu.concatenate %564, %535 in 1 : vector<2x32xf32>, vector<2x32xf32> -> vector<2x64xf32>
    %cst_154 = arith.constant dense<0.000000e+00> : vector<2x128xf32>
    %566 = tpu.matmul %565, %7, %cst_154 {dimension_numbers = #tpu.dot_dimension_numbers<[1], [0], [0], [1], [0, 0, 1, 1], [], []>} : vector<2x64xf32>, vector<64x128xf32>, vector<2x128xf32> -> vector<2x128xf32>
    %567 = vector.broadcast %8 : vector<1x128xf32> to vector<2x128xf32>
    %568 = arith.addf %566, %567 : vector<2x128xf32>
    %cst_155 = arith.constant dense<0xFF800000> : vector<2xf32>
    %569 = vector.multi_reduction <maximumf>, %568, %cst_155 [1] : vector<2x128xf32> to vector<2xf32>
    %570 = vector.shape_cast %569 : vector<2xf32> to vector<2x1xf32>
    %571 = vector.broadcast %570 : vector<2x1xf32> to vector<2x128xf32>
    %572 = arith.subf %568, %571 : vector<2x128xf32>
    %573 = math.exp %572 : vector<2x128xf32>
    %cst_156 = arith.constant dense<0.000000e+00> : vector<2xf32>
    %574 = vector.multi_reduction <add>, %573, %cst_156 [1] : vector<2x128xf32> to vector<2xf32>
    %575 = vector.shape_cast %574 : vector<2xf32> to vector<2x1xf32>
    %576 = math.log %575 : vector<2x1xf32>
    %577 = arith.addf %570, %576 : vector<2x1xf32>
    %578 = vector.broadcast %577 : vector<2x1xf32> to vector<2x128xf32>
    %579 = arith.subf %568, %578 : vector<2x128xf32>
    %580 = arith.index_cast %511 : i32 to index
    %c0_157 = arith.constant 0 : index
    %c0_158 = arith.constant 0 : index
    %581 = vector.load %arg13[%580, %c0_157, %c0_158] : memref<8x2x128xf32, #tpu.memory_space<vmem>>, vector<1x2x128xf32>
    %582 = vector.shape_cast %581 : vector<1x2x128xf32> to vector<2x128xf32>
    %583 = vector.shape_cast %579 : vector<2x128xf32> to vector<1x2x128xf32>
    tpu.vector_store %arg13[%580, %c0_157, %c0_158], %583 {strides = array<i32>} : memref<8x2x128xf32, #tpu.memory_space<vmem>>, vector<1x2x128xf32>,
    %584 = vector.broadcast %570 : vector<2x1xf32> to vector<2x128xf32>
    %585 = arith.cmpf oeq, %568, %584 : vector<2x128xf32>
    %c128_i32_159 = arith.constant 128 : i32
    %586 = vector.broadcast %c128_i32_159 : i32 to vector<2x128xi32>
    %587 = arith.select %585, %9, %586 : vector<2x128xi1>, vector<2x128xi32>
    %cst_160 = arith.constant dense<2147483647> : vector<2xi32>
    %588 = vector.multi_reduction <minsi>, %587, %cst_160 [1] : vector<2x128xi32> to vector<2xi32>
    %589 = vector.shape_cast %588 : vector<2xi32> to vector<2x1xi32>
    %590 = vector.broadcast %589 : vector<2x1xi32> to vector<2x128xi32>
    %591 = arith.cmpi eq, %9, %590 : vector<2x128xi32>
    %592 = arith.extui %591 : vector<2x128xi1> to vector<2x128xi32>
    %593 = arith.sitofp %592 : vector<2x128xi32> to vector<2x128xf32>
    %cst_161 = arith.constant dense<0.000000e+00> : vector<2x16xf32>
    %594 = tpu.matmul %593, %2, %cst_161 {dimension_numbers = #tpu.dot_dimension_numbers<[1], [0], [0], [1], [0, 0, 1, 1], [], []>} : vector<2x128xf32>, vector<128x16xf32>, vector<2x16xf32> -> vector<2x16xf32>
    %595 = arith.index_cast %511 : i32 to index
    %c0_162 = arith.constant 0 : index
    %596 = vector.load %arg0[%595, %c0_162] : memref<8x1xf32, #tpu.memory_space<vmem>>, vector<1x1xf32>
    %597 = vector.shape_cast %596 : vector<1x1xf32> to vector<1xf32>
    %598 = arith.index_cast %511 : i32 to index
    %c0_163 = arith.constant 0 : index
    %c0_164 = arith.constant 0 : index
    %599 = vector.load %arg1[%598, %c0_163, %c0_164] : memref<8x2x16xf32, #tpu.memory_space<vmem>>, vector<1x2x16xf32>
    %600 = vector.shape_cast %599 : vector<1x2x16xf32> to vector<2x16xf32>
    %601 = vector.shape_cast %597 : vector<1xf32> to vector<1x1xf32>
    %602 = vector.broadcast %601 : vector<1x1xf32> to vector<2x16xf32>
    %603 = arith.mulf %602, %600 : vector<2x16xf32>
    %cst_165 = arith.constant 1.000000e+00 : f32
    %604 = vector.broadcast %cst_165 : f32 to vector<1xf32>
    %605 = arith.subf %604, %597 : vector<1xf32>
    %606 = vector.shape_cast %605 : vector<1xf32> to vector<1x1xf32>
    %607 = vector.broadcast %606 : vector<1x1xf32> to vector<2x16xf32>
    %608 = arith.mulf %607, %594 : vector<2x16xf32>
    %609 = arith.addf %603, %608 : vector<2x16xf32>
    %c6_i32 = arith.constant 6 : i32
    %c1_i32_166 = arith.constant 1 : i32
    %610 = arith.addi %c6_i32, %c1_i32_166 : i32
    %cst_167 = arith.constant dense<0.000000e+00> : vector<2x32xf32>
    %611 = tpu.matmul %564, %3, %cst_167 {dimension_numbers = #tpu.dot_dimension_numbers<[1], [0], [0], [1], [0, 0, 1, 1], [], []>} : vector<2x32xf32>, vector<32x32xf32>, vector<2x32xf32> -> vector<2x32xf32>
    %612 = vector.shape_cast %611 : vector<2x32xf32> to vector<1x2x32xf32>
    %613 = vector.broadcast %612 : vector<1x2x32xf32> to vector<8x2x32xf32>
    %614 = arith.addf %613, %1 : vector<8x2x32xf32>
    %cst_168 = arith.constant 0.000000e+00 : f32
    %615 = vector.broadcast %cst_168 : f32 to vector<8x2x32xf32>
    %616 = arith.maximumf %614, %615 : vector<8x2x32xf32>
    %617 = vector.shape_cast %4 : vector<1x32xf32> to vector<1x1x32xf32>
    %618 = vector.broadcast %617 : vector<1x1x32xf32> to vector<8x2x32xf32>
    %619 = arith.mulf %616, %618 : vector<8x2x32xf32>
    %cst_169 = arith.constant dense<0.000000e+00> : vector<8x2xf32>
    %620 = vector.multi_reduction <add>, %619, %cst_169 [2] : vector<8x2x32xf32> to vector<8x2xf32>
    %621 = vector.shape_cast %620 : vector<8x2xf32> to vector<8x2x1xf32>
    %cst_170 = arith.constant dense<0xFF800000> : vector<2x1xf32>
    %622 = vector.multi_reduction <maximumf>, %621, %cst_170 [0] : vector<8x2x1xf32> to vector<2x1xf32>
    %623 = vector.shape_cast %622 : vector<2x1xf32> to vector<1x2x1xf32>
    %624 = vector.broadcast %623 : vector<1x2x1xf32> to vector<8x2x1xf32>
    %625 = arith.subf %621, %624 : vector<8x2x1xf32>
    %626 = math.exp %625 : vector<8x2x1xf32>
    %cst_171 = arith.constant dense<0.000000e+00> : vector<2x1xf32>
    %627 = vector.multi_reduction <add>, %626, %cst_171 [0] : vector<8x2x1xf32> to vector<2x1xf32>
    %628 = vector.shape_cast %627 : vector<2x1xf32> to vector<1x2x1xf32>
    %629 = tpu.reciprocal %628 {approx = true} : vector<1x2x1xf32> -> vector<1x2x1xf32>
    %630 = vector.broadcast %629 : vector<1x2x1xf32> to vector<8x2x1xf32>
    %631 = arith.mulf %626, %630 : vector<8x2x1xf32>
    %632 = vector.broadcast %631 : vector<8x2x1xf32> to vector<8x2x32xf32>
    %633 = arith.mulf %632, %0 : vector<8x2x32xf32>
    %cst_172 = arith.constant dense<0.000000e+00> : vector<2x32xf32>
    %634 = vector.multi_reduction <add>, %633, %cst_172 [0] : vector<8x2x32xf32> to vector<2x32xf32>
    %635 = tpu.concatenate %609, %634, %564 in 1 : vector<2x16xf32>, vector<2x32xf32>, vector<2x32xf32> -> vector<2x80xf32>
    %cst_173 = arith.constant dense<0.000000e+00> : vector<2x128xf32>
    %636 = tpu.matmul %635, %5, %cst_173 {dimension_numbers = #tpu.dot_dimension_numbers<[1], [0], [0], [1], [0, 0, 1, 1], [], []>} : vector<2x80xf32>, vector<80x128xf32>, vector<2x128xf32> -> vector<2x128xf32>
    %637 = vector.broadcast %6 : vector<1x128xf32> to vector<2x128xf32>
    %638 = arith.addf %636, %637 : vector<2x128xf32>
    %639 = vector.extract_strided_slice %638 {offsets = [0, 0], sizes = [2, 32], strides = [1, 1]} : vector<2x128xf32> to vector<2x32xf32>
    %640 = arith.negf %639 : vector<2x32xf32>
    %641 = math.exp %640 : vector<2x32xf32>
    %cst_174 = arith.constant 1.000000e+00 : f32
    %642 = vector.broadcast %cst_174 : f32 to vector<2x32xf32>
    %643 = arith.addf %642, %641 : vector<2x32xf32>
    %644 = arith.divf %642, %643 : vector<2x32xf32>
    %645 = vector.extract_strided_slice %638 {offsets = [0, 32], sizes = [2, 32], strides = [1, 1]} : vector<2x128xf32> to vector<2x32xf32>
    %646 = arith.negf %645 : vector<2x32xf32>
    %647 = math.exp %646 : vector<2x32xf32>
    %cst_175 = arith.constant 1.000000e+00 : f32
    %648 = vector.broadcast %cst_175 : f32 to vector<2x32xf32>
    %649 = arith.addf %648, %647 : vector<2x32xf32>
    %650 = arith.divf %648, %649 : vector<2x32xf32>
    %651 = vector.extract_strided_slice %638 {offsets = [0, 64], sizes = [2, 32], strides = [1, 1]} : vector<2x128xf32> to vector<2x32xf32>
    %652 = math.tanh %651 : vector<2x32xf32>
    %653 = vector.extract_strided_slice %638 {offsets = [0, 96], sizes = [2, 32], strides = [1, 1]} : vector<2x128xf32> to vector<2x32xf32>
    %654 = arith.negf %653 : vector<2x32xf32>
    %655 = math.exp %654 : vector<2x32xf32>
    %cst_176 = arith.constant 1.000000e+00 : f32
    %656 = vector.broadcast %cst_176 : f32 to vector<2x32xf32>
    %657 = arith.addf %656, %655 : vector<2x32xf32>
    %658 = arith.divf %656, %657 : vector<2x32xf32>
    %659 = arith.mulf %650, %562 : vector<2x32xf32>
    %660 = arith.mulf %644, %652 : vector<2x32xf32>
    %661 = arith.addf %659, %660 : vector<2x32xf32>
    %662 = math.tanh %661 : vector<2x32xf32>
    %663 = arith.mulf %658, %662 : vector<2x32xf32>
    %664 = tpu.concatenate %663, %634 in 1 : vector<2x32xf32>, vector<2x32xf32> -> vector<2x64xf32>
    %cst_177 = arith.constant dense<0.000000e+00> : vector<2x128xf32>
    %665 = tpu.matmul %664, %7, %cst_177 {dimension_numbers = #tpu.dot_dimension_numbers<[1], [0], [0], [1], [0, 0, 1, 1], [], []>} : vector<2x64xf32>, vector<64x128xf32>, vector<2x128xf32> -> vector<2x128xf32>
    %666 = vector.broadcast %8 : vector<1x128xf32> to vector<2x128xf32>
    %667 = arith.addf %665, %666 : vector<2x128xf32>
    %cst_178 = arith.constant dense<0xFF800000> : vector<2xf32>
    %668 = vector.multi_reduction <maximumf>, %667, %cst_178 [1] : vector<2x128xf32> to vector<2xf32>
    %669 = vector.shape_cast %668 : vector<2xf32> to vector<2x1xf32>
    %670 = vector.broadcast %669 : vector<2x1xf32> to vector<2x128xf32>
    %671 = arith.subf %667, %670 : vector<2x128xf32>
    %672 = math.exp %671 : vector<2x128xf32>
    %cst_179 = arith.constant dense<0.000000e+00> : vector<2xf32>
    %673 = vector.multi_reduction <add>, %672, %cst_179 [1] : vector<2x128xf32> to vector<2xf32>
    %674 = vector.shape_cast %673 : vector<2xf32> to vector<2x1xf32>
    %675 = math.log %674 : vector<2x1xf32>
    %676 = arith.addf %669, %675 : vector<2x1xf32>
    %677 = vector.broadcast %676 : vector<2x1xf32> to vector<2x128xf32>
    %678 = arith.subf %667, %677 : vector<2x128xf32>
    %679 = arith.index_cast %610 : i32 to index
    %c0_180 = arith.constant 0 : index
    %c0_181 = arith.constant 0 : index
    %680 = vector.load %arg13[%679, %c0_180, %c0_181] : memref<8x2x128xf32, #tpu.memory_space<vmem>>, vector<1x2x128xf32>
    %681 = vector.shape_cast %680 : vector<1x2x128xf32> to vector<2x128xf32>
    %682 = vector.shape_cast %678 : vector<2x128xf32> to vector<1x2x128xf32>
    tpu.vector_store %arg13[%679, %c0_180, %c0_181], %682 {strides = array<i32>} : memref<8x2x128xf32, #tpu.memory_space<vmem>>, vector<1x2x128xf32>,
    %683 = vector.broadcast %669 : vector<2x1xf32> to vector<2x128xf32>
    %684 = arith.cmpf oeq, %667, %683 : vector<2x128xf32>
    %c128_i32_182 = arith.constant 128 : i32
    %685 = vector.broadcast %c128_i32_182 : i32 to vector<2x128xi32>
    %686 = arith.select %684, %9, %685 : vector<2x128xi1>, vector<2x128xi32>
    %cst_183 = arith.constant dense<2147483647> : vector<2xi32>
    %687 = vector.multi_reduction <minsi>, %686, %cst_183 [1] : vector<2x128xi32> to vector<2xi32>
    %688 = vector.shape_cast %687 : vector<2xi32> to vector<2x1xi32>
    %689 = vector.broadcast %688 : vector<2x1xi32> to vector<2x128xi32>
    %690 = arith.cmpi eq, %9, %689 : vector<2x128xi32>
    %691 = arith.extui %690 : vector<2x128xi1> to vector<2x128xi32>
    %692 = arith.sitofp %691 : vector<2x128xi32> to vector<2x128xf32>
    %cst_184 = arith.constant dense<0.000000e+00> : vector<2x16xf32>
    %693 = tpu.matmul %692, %2, %cst_184 {dimension_numbers = #tpu.dot_dimension_numbers<[1], [0], [0], [1], [0, 0, 1, 1], [], []>} : vector<2x128xf32>, vector<128x16xf32>, vector<2x16xf32> -> vector<2x16xf32>
    %694 = arith.index_cast %610 : i32 to index
    %c0_185 = arith.constant 0 : index
    %695 = vector.load %arg0[%694, %c0_185] : memref<8x1xf32, #tpu.memory_space<vmem>>, vector<1x1xf32>
    %696 = vector.shape_cast %695 : vector<1x1xf32> to vector<1xf32>
    %697 = arith.index_cast %610 : i32 to index
    %c0_186 = arith.constant 0 : index
    %c0_187 = arith.constant 0 : index
    %698 = vector.load %arg1[%697, %c0_186, %c0_187] : memref<8x2x16xf32, #tpu.memory_space<vmem>>, vector<1x2x16xf32>
    %699 = vector.shape_cast %698 : vector<1x2x16xf32> to vector<2x16xf32>
    %700 = vector.shape_cast %696 : vector<1xf32> to vector<1x1xf32>
    %701 = vector.broadcast %700 : vector<1x1xf32> to vector<2x16xf32>
    %702 = arith.mulf %701, %699 : vector<2x16xf32>
    %cst_188 = arith.constant 1.000000e+00 : f32
    %703 = vector.broadcast %cst_188 : f32 to vector<1xf32>
    %704 = arith.subf %703, %696 : vector<1xf32>
    %705 = vector.shape_cast %704 : vector<1xf32> to vector<1x1xf32>
    %706 = vector.broadcast %705 : vector<1x1xf32> to vector<2x16xf32>
    %707 = arith.mulf %706, %693 : vector<2x16xf32>
    %708 = arith.addf %702, %707 : vector<2x16xf32>
    %c7_i32 = arith.constant 7 : i32
    return
  }
}

</mosaic_0001>

<bundles_post_ra>
// kernel: seq2seq_forward.2
= control target key start
LH: loop header
LB: loop body
LE: loop exit
PB: predicated region body
PF: predicated region fallthrough
CT: control target
= control target key end

     0   :  { %v1171_v16 = vmov 0.0   ;;  %vm78_vm0 = vcmask 1041408   ;;  %s1172_s22 = smov 64   ;;  %vm141_vm9 = vcmask 254976   ;;  %vm31_vm10 = vcmask 523264   ;;  %s1173_s11 = smov 96   ;;  %s1588_s1 = inlined_call_operand.vmem [shape: f32[64,256], index: 1, kind: input, shape index: {}]   ;;  %s1589_s0 = inlined_call_operand.vmem [shape: f32[8,2,256], index: 0, kind: input, shape index: {}]   ;;  %s1590_s2 = inlined_call_operand.vmem [shape: f32[8,2,32], index: 2, kind: output, shape index: {0}]   ;;  %s1591_s3 = inlined_call_operand.vmem [shape: f32[2,32], index: 3, kind: output, shape index: {1}]   ;;  %s1592_s4 = inlined_call_operand.vmem [shape: f32[2,32], index: 4, kind: output, shape index: {2}]  }
   0x1   :  { %v1202_v0 = vld [vmem:[%s1588_s1 + $0x78] sm:$0xff]  ;;  %v1207_v1 = vld [vmem:[%s1588_s1 + $0x70] sm:$0xff]  ;;  %v1212_v2 = vld [vmem:[%s1588_s1 + $0x68] sm:$0xff] }
   0x2   :  { %63 = vmatpush.msra.mxu1 %v1202_v0  ;;  %43 = vmatpush.msra.mxu0 %v1207_v1  ;;  %v1219_v3 = vld [vmem:[%s1588_s1 + $0x60] sm:$0xff]  ;;  %v1224_v4 = vld [vmem:[%s1588_s1 + $0x58] sm:$0xff]  ;;  %v1229_v5 = vld [vmem:[%s1588_s1 + $0x50] sm:$0xff] }
   0x3   :  { %163 = vmatpush.msra.mxu2 %v1207_v1  ;;  %183 = vmatpush.msra.mxu3 %v1202_v0  ;;  %v1238_v6 = vld [vmem:[%s1588_s1 + $0x48] sm:$0xff]  ;;  %v1243_v7 = vld [vmem:[%s1588_s1 + $0x40] sm:$0xff]  ;;  %v1252_v8 = vld [vmem:[%s1588_s1 + $0x38] sm:$0xff] }
   0x4   :  { %64 = vmatpush.msra.mxu1 %v1212_v2  ;;  %44 = vmatpush.msra.mxu0 %v1219_v3  ;;  %v1257_v9 = vld [vmem:[%s1588_s1 + $0x30] sm:$0xff]  ;;  %v1266_v10 = vld [vmem:[%s1588_s1 + $0x28] sm:$0xff]  ;;  %v1271_v11 = vld [vmem:[%s1588_s1 + $0x20] sm:$0xff] }
   0x5   :  { %164 = vmatpush.msra.mxu2 %v1219_v3  ;;  %184 = vmatpush.msra.mxu3 %v1212_v2  ;;  %v1280_v12 = vld [vmem:[%s1588_s1 + $0x18] sm:$0xff]  ;;  %v1285_v13 = vld [vmem:[%s1588_s1 + $0x10] sm:$0xff]  ;;  %v1294_v14 = vld [vmem:[%s1588_s1 + $0x8] sm:$0xff] }
   0x6   :  { %65 = vmatpush.msra.mxu1 %v1224_v4  ;;  %45 = vmatpush.msra.mxu0 %v1229_v5  ;;  %v1299_v15 = vld [vmem:[%s1588_s1] sm:$0xff] }
   0x7   :  { %165 = vmatpush.msra.mxu2 %v1229_v5  ;;  %185 = vmatpush.msra.mxu3 %v1224_v4  ;;  %v30_v20 = vld [vmem:[%s1589_s0] sm:$0xf]  ;;  %v1037_v62 = vld [vmem:[%s1589_s0 + $0x4] sm:$0xf] }
   0x8   :  { %66 = vmatpush.msra.mxu1 %v1238_v6  ;;  %46 = vmatpush.msra.mxu0 %v1243_v7 }
   0x9   :  { %166 = vmatpush.msra.mxu2 %v1243_v7  ;;  %186 = vmatpush.msra.mxu3 %v1238_v6 }
   0xa   :  { %67 = vmatpush.msra.mxu1 %v1252_v8  ;;  %47 = vmatpush.msra.mxu0 %v1257_v9 }
   0xb   :  { %167 = vmatpush.msra.mxu2 %v1257_v9  ;;  %187 = vmatpush.msra.mxu3 %v1252_v8 }
   0xc   :  { %68 = vmatpush.msra.mxu1 %v1266_v10  ;;  %48 = vmatpush.msra.mxu0 %v1271_v11 }
   0xd   :  { %168 = vmatpush.msra.mxu2 %v1271_v11  ;;  %188 = vmatpush.msra.mxu3 %v1266_v10 }
   0xe   :  { %69 = vmatpush.msra.mxu1 %v1280_v12  ;;  %49 = vmatpush.msra.mxu0 %v1285_v13 }
   0xf   :  { %169 = vmatpush.msra.mxu2 %v1285_v13  ;;  %189 = vmatpush.msra.mxu3 %v1280_v12 }
  0x10   :  { %70 = vmatpush.msra.mxu1 %v1294_v14  ;;  %50 = vmatpush.msra.mxu0 %v1299_v15 }
  0x11   :  { %71 = vmatmul.f32.vlgmr.msra.gmra.mxu1 %v1171_v16  ;;  %51 = vmatmul.f32.vlgmr.msra.gmra.mxu0 %v1171_v16 }
  0x12   :  { %170 = vmatpush.msra.mxu2 %v1299_v15  ;;  %190 = vmatpush.msra.mxu3 %v1294_v14 }
  0x13   :  { %282 = vmatpush.msrb.mxu0 %v1207_v1  ;;  %302 = vmatpush.msrb.mxu1 %v1202_v0 }
  0x14   :  { %401 = vmatpush.msrb.mxu2 %v1207_v1  ;;  %421 = vmatpush.msrb.mxu3 %v1202_v0 }
  0x15   :  { %283 = vmatpush.msrb.mxu0 %v1219_v3  ;;  %303 = vmatpush.msrb.mxu1 %v1212_v2 }
  0x16   :  { %402 = vmatpush.msrb.mxu2 %v1219_v3  ;;  %422 = vmatpush.msrb.mxu3 %v1212_v2 }
  0x17   :  { %284 = vmatpush.msrb.mxu0 %v1229_v5  ;;  %304 = vmatpush.msrb.mxu1 %v1224_v4 }
  0x18   :  { %403 = vmatpush.msrb.mxu2 %v1229_v5  ;;  %423 = vmatpush.msrb.mxu3 %v1224_v4 }
  0x19   :  { %285 = vmatpush.msrb.mxu0 %v1243_v7  ;;  %305 = vmatpush.msrb.mxu1 %v1238_v6 }
  0x1a   :  { %404 = vmatpush.msrb.mxu2 %v1243_v7  ;;  %424 = vmatpush.msrb.mxu3 %v1238_v6 }
  0x1b   :  { %286 = vmatpush.msrb.mxu0 %v1257_v9  ;;  %306 = vmatpush.msrb.mxu1 %v1252_v8 }
  0x1c   :  { %405 = vmatpush.msrb.mxu2 %v1257_v9  ;;  %425 = vmatpush.msrb.mxu3 %v1252_v8 }
  0x1d   :  { %287 = vmatpush.msrb.mxu0 %v1271_v11  ;;  %307 = vmatpush.msrb.mxu1 %v1266_v10 }
  0x1e   :  { %406 = vmatpush.msrb.mxu2 %v1271_v11  ;;  %426 = vmatpush.msrb.mxu3 %v1266_v10 }
  0x1f   :  { %288 = vmatpush.msrb.mxu0 %v1285_v13  ;;  %308 = vmatpush.msrb.mxu1 %v1280_v12 }
  0x20   :  { %407 = vmatpush.msrb.mxu2 %v1285_v13  ;;  %427 = vmatpush.msrb.mxu3 %v1280_v12 }
  0x21   :  { %289 = vmatpush.msrb.mxu0 %v1299_v15  ;;  %309 = vmatpush.msrb.mxu1 %v1294_v14 }
  0x22   :  { %408 = vmatpush.msrb.mxu2 %v1299_v15  ;;  %428 = vmatpush.msrb.mxu3 %v1294_v14 }
  0x23   :  { %520 = vmatpush.msra.mxu0 %v1207_v1  ;;  %540 = vmatpush.msra.mxu1 %v1202_v0 }
  0x25   :  { %521 = vmatpush.msra.mxu0 %v1219_v3  ;;  %541 = vmatpush.msra.mxu1 %v1212_v2 }
  0x27   :  { %522 = vmatpush.msra.mxu0 %v1229_v5  ;;  %542 = vmatpush.msra.mxu1 %v1224_v4 }
  0x29   :  { %523 = vmatpush.msra.mxu0 %v1243_v7  ;;  %543 = vmatpush.msra.mxu1 %v1238_v6 }
  0x2b   :  { %524 = vmatpush.msra.mxu0 %v1257_v9  ;;  %544 = vmatpush.msra.mxu1 %v1252_v8 }
  0x2d   :  { %525 = vmatpush.msra.mxu0 %v1271_v11  ;;  %545 = vmatpush.msra.mxu1 %v1266_v10 }
  0x2f   :  { %526 = vmatpush.msra.mxu0 %v1285_v13  ;;  %546 = vmatpush.msra.mxu1 %v1280_v12 }
  0x31   :  { %527 = vmatpush.msra.mxu0 %v1299_v15  ;;  %547 = vmatpush.msra.mxu1 %v1294_v14 }
  0x8e   :  { %v72_v17 = vpop.f32.mrf.mxu1  ;;  %v52_v18 = vpop.f32.mrf.mxu0 }
  0x8f   :  { %v77_v19 = vrot.slane %v72_v17, 6 }
  0x91   :  { %v79_v21 = vsel %vm78_vm0, %v52_v18, %v77_v19 }
  0x92   :  { %v81_v22 = vadd.f32 %v79_v21, %v30_v20 }
  0x94   :  { %v1035_v23 = vmul.f32 -1.442695, %v81_v22  ;;  %v102_v27 = vrot.slane %v81_v22, 2 }
  0x96   :  { %1075 = vpow2.f32 %v1035_v23 }
  0x9c   :  { %v1076_v24 = vpop.eup %1075 }
  0x9d   :  { %v85_v25 = vadd.f32 1.0, %v1076_v24 }
  0x9f   :  { %1077 = vrcp.f32 %v85_v25  ;;  %v97_v30 = vand.u32 2147483648, %v85_v25  ;;  %v95_v32 = vand.u32 2147483647, %v85_v25  ;;  %vm91_vm2 = vweird.f32 %v85_v25 }
  0xa0   :  { %1079 = vtanh.f32 %v102_v27 }
  0xa1   :  { %v98_v34 = vor.u32 1.1754944e-38, %v97_v30  ;;  %vm96_vm4 = vcmp.eq.f32.partialorder %v95_v32, 8.507059e+37 }
  0xa5   :  { %v1078_v26 = vpop.eup %1077 }
  0xa6   :  { %v87_v28 = vmul.f32 %v1078_v26, %v85_v25  ;;  %vm92_vm1 = vweird.f32 %v1078_v26  ;;  %v1080_v36 = vpop.eup %1079 }
  0xa7   :  { %vm93_vm3 = vmor %vm91_vm2, %vm92_vm1 }
  0xa8   :  { %v88_v29 = vsub.f32 1.0, %v87_v28 }
  0xaa   :  { %v89_v31 = vmul.f32 %v1078_v26, %v88_v29 }
  0xac   :  { %v90_v33 = vadd.f32 %v1078_v26, %v89_v31 }
  0xae   :  { %v94_v35 = vsel %vm93_vm3, %v1078_v26, %v90_v33 }
  0xaf   :  { %v99_v37 = vsel %vm96_vm4, %v98_v34, %v94_v35 }
  0xb0   :  { %v129_v38 = vmul.f32 %v1080_v36, %v99_v37  ;;  %v128_v39 = vmul.f32 0.0, %v99_v37 }
  0xb2   :  { %131 = vrot.lane.b32.xlu0 %v129_v38, %s1172_s22 }
  0xba   :  { %105 = vrot.lane.b32.xlu0 %v81_v22, %s1172_s22 }
 0x124   :  { %v132_v40 = vpop.permute.xlu0 %131 }
 0x125   :  { %v1365_v41 = vadd.f32 %v132_v40, %v128_v39 }
 0x127   :  { %1081 = vtanh.f32 %v1365_v41 }
 0x12c   :  { %v106_v43 = vpop.permute.xlu0 %105 }
 0x12d   :  { %v1082_v42 = vpop.eup %1081  ;;  %v107_v44 = vrot.slane %v106_v43, 2 }
 0x12e   :  { %137 = vrot.lane.b32.xlu1 %v1082_v42, %s1172_s22 }
 0x12f   :  { %v1036_v45 = vmul.f32 -1.442695, %v107_v44 }
 0x131   :  { %1083 = vpow2.f32 %v1036_v45 }
 0x137   :  { %v1084_v46 = vpop.eup %1083 }
 0x138   :  { %v112_v47 = vadd.f32 1.0, %v1084_v46 }
 0x13a   :  { %1085 = vrcp.f32 %v112_v47  ;;  %v124_v53 = vand.u32 2147483648, %v112_v47  ;;  %vm118_vm6 = vweird.f32 %v112_v47  ;;  %v122_v54 = vand.u32 2147483647, %v112_v47 }
 0x13c   :  { %v125_v56 = vor.u32 1.1754944e-38, %v124_v53  ;;  %vm123_vm8 = vcmp.eq.f32.partialorder %v122_v54, 8.507059e+37 }
 0x140   :  { %v1086_v48 = vpop.eup %1085 }
 0x141   :  { %v114_v49 = vmul.f32 %v1086_v48, %v112_v47  ;;  %vm119_vm5 = vweird.f32 %v1086_v48 }
 0x142   :  { %vm120_vm7 = vmor %vm118_vm6, %vm119_vm5 }
 0x143   :  { %v115_v50 = vsub.f32 1.0, %v114_v49 }
 0x145   :  { %v116_v51 = vmul.f32 %v1086_v48, %v115_v50 }
 0x147   :  { %v117_v52 = vadd.f32 %v1086_v48, %v116_v51 }
 0x149   :  { %v121_v55 = vsel %vm120_vm7, %v1086_v48, %v117_v52 }
 0x14a   :  { %v126_v57 = vsel %vm123_vm8, %v125_v56, %v121_v55 }
 0x1a0   :  { %v138_v58 = vpop.permute.xlu1 %137 }
 0x1a1   :  { %v140_v59 = vmul.f32 %v138_v58, %v126_v57  ;;  %v1042_v58 = vld [vmem:[%s1589_s0 + $0x8] sm:$0xf] }
 0x1a3   :  { %142 = vst.msk [vmem:[#allocation2] sm:$0x3] %vm141_vm9, %v140_v59  ;;  %1038 = vmatmul.msk.f32.vlgmr.msra.gmra.mxu2 %vm31_vm10, %v140_v59  ;;  %1039 = vmatmul.msk.f32.vlgmr.msra.gmra.mxu3 %vm31_vm10, %v140_v59 }
 0x1a4   :  { %144 = vst [vmem:[#allocation1] ss:$4 sm:$0xff] %v140_v59  ;;  %639 = vmatpush.msra.mxu2 %v1207_v1  ;;  %659 = vmatpush.msra.mxu3 %v1202_v0 }
 0x1a6   :  { %640 = vmatpush.msra.mxu2 %v1219_v3  ;;  %660 = vmatpush.msra.mxu3 %v1212_v2 }
 0x1a8   :  { %641 = vmatpush.msra.mxu2 %v1229_v5  ;;  %661 = vmatpush.msra.mxu3 %v1224_v4 }
 0x1aa   :  { %642 = vmatpush.msra.mxu2 %v1243_v7  ;;  %662 = vmatpush.msra.mxu3 %v1238_v6 }
 0x1ab   :  { %v1399_v55 = vld.sshfl [vmem:[#allocation1] sm:$0xff pattern:$0x73625140] }
 0x1ac   :  { %643 = vmatpush.msra.mxu2 %v1257_v9  ;;  %663 = vmatpush.msra.mxu3 %v1252_v8 }
 0x1ae   :  { %644 = vmatpush.msra.mxu2 %v1271_v11  ;;  %664 = vmatpush.msra.mxu3 %v1266_v10 }
 0x1b0   :  { %645 = vmatpush.msra.mxu2 %v1285_v13  ;;  %665 = vmatpush.msra.mxu3 %v1280_v12 }
 0x1b2   :  { %646 = vmatpush.msra.mxu2 %v1299_v15  ;;  %666 = vmatpush.msra.mxu3 %v1294_v14 }
 0x226   :  { %v192_v60 = vpop.f32.mrf.mxu3  ;;  %v172_v63 = vpop.f32.mrf.mxu2 }
 0x227   :  { %v197_v61 = vrot.slane %v192_v60, 6 }
 0x229   :  { %v198_v16 = vsel %vm78_vm0, %v172_v63, %v197_v61 }
 0x22a   :  { %v200_v17 = vadd.f32 %v1037_v62, %v198_v16 }
 0x22c   :  { %224 = vrot.lane.b32.xlu2 %v200_v17, %s1172_s22  ;;  %v1040_v18 = vmul.f32 -1.442695, %v200_v17  ;;  %v221_v22 = vrot.slane %v200_v17, 2 }
 0x22e   :  { %1087 = vpow2.f32 %v1040_v18 }
 0x234   :  { %v1088_v19 = vpop.eup %1087 }
 0x235   :  { %v204_v20 = vadd.f32 1.0, %v1088_v19 }
 0x237   :  { %1089 = vrcp.f32 %v204_v20  ;;  %v216_v25 = vand.u32 2147483648, %v204_v20  ;;  %v214_v27 = vand.u32 2147483647, %v204_v20  ;;  %vm210_vm12 = vweird.f32 %v204_v20 }
 0x238   :  { %1091 = vtanh.f32 %v221_v22 }
 0x239   :  { %v217_v29 = vor.u32 1.1754944e-38, %v216_v25  ;;  %vm215_vm14 = vcmp.eq.f32.partialorder %v214_v27, 8.507059e+37 }
 0x23d   :  { %v1090_v21 = vpop.eup %1089 }
 0x23e   :  { %v206_v23 = vmul.f32 %v1090_v21, %v204_v20  ;;  %vm211_vm11 = vweird.f32 %v1090_v21  ;;  %v1092_v31 = vpop.eup %1091 }
 0x23f   :  { %vm212_vm13 = vmor %vm210_vm12, %vm211_vm11 }
 0x240   :  { %v207_v24 = vsub.f32 1.0, %v206_v23 }
 0x242   :  { %v208_v26 = vmul.f32 %v1090_v21, %v207_v24 }
 0x244   :  { %v209_v28 = vadd.f32 %v1090_v21, %v208_v26 }
 0x246   :  { %v213_v30 = vsel %vm212_vm13, %v1090_v21, %v209_v28 }
 0x247   :  { %v218_v32 = vsel %vm215_vm14, %v217_v29, %v213_v30 }
 0x248   :  { %v248_v33 = vmul.f32 %v1092_v31, %v218_v32  ;;  %v247_v34 = vmul.f32 %v218_v32, %v1365_v41 }
 0x24a   :  { %250 = vrot.lane.b32.xlu1 %v248_v33, %s1172_s22 }
 0x286   :  { %v225_v38 = vpop.permute.xlu2 %224 }
 0x287   :  { %v226_v39 = vrot.slane %v225_v38, 2 }
 0x289   :  { %v1041_v40 = vmul.f32 -1.442695, %v226_v39 }
 0x2bc   :  { %v251_v35 = vpop.permute.xlu1 %250 }
 0x2bd   :  { %v1395_v36 = vadd.f32 %v251_v35, %v247_v34 }
 0x2bf   :  { %1093 = vtanh.f32 %v1395_v36 }
 0x2c0   :  { %1095 = vpow2.f32 %v1041_v40 }
 0x2c5   :  { %v1094_v37 = vpop.eup %1093 }
 0x2c6   :  { %256 = vrot.lane.b32.xlu2 %v1094_v37, %s1172_s22  ;;  %v1096_v42 = vpop.eup %1095 }
 0x2c7   :  { %v231_v43 = vadd.f32 1.0, %v1096_v42 }
 0x2c9   :  { %1097 = vrcp.f32 %v231_v43  ;;  %v243_v48 = vand.u32 2147483648, %v231_v43  ;;  %vm237_vm1 = vweird.f32 %v231_v43  ;;  %v241_v49 = vand.u32 2147483647, %v231_v43 }
 0x2cb   :  { %v244_v51 = vor.u32 1.1754944e-38, %v243_v48  ;;  %vm242_vm3 = vcmp.eq.f32.partialorder %v241_v49, 8.507059e+37 }
 0x2cf   :  { %v1098_v44 = vpop.eup %1097 }
 0x2d0   :  { %v233_v45 = vmul.f32 %v1098_v44, %v231_v43  ;;  %vm238_vm15 = vweird.f32 %v1098_v44 }
 0x2d1   :  { %vm239_vm2 = vmor %vm237_vm1, %vm238_vm15 }
 0x2d2   :  { %v234_v46 = vsub.f32 1.0, %v233_v45 }
 0x2d4   :  { %v235_v47 = vmul.f32 %v1098_v44, %v234_v46 }
 0x2d6   :  { %v236_v41 = vadd.f32 %v1098_v44, %v235_v47 }
 0x2d8   :  { %v240_v50 = vsel %vm239_vm2, %v1098_v44, %v236_v41 }
 0x2d9   :  { %v245_v52 = vsel %vm242_vm3, %v244_v51, %v240_v50 }
 0x320   :  { %v257_v53 = vpop.permute.xlu2 %256 }
 0x321   :  { %v259_v54 = vmul.f32 %v257_v53, %v245_v52 }
 0x323   :  { %261 = vst.msk [vmem:[#allocation2 + $0x2] sm:$0x3] %vm141_vm9, %v259_v54  ;;  %1043 = vmatmul.msk.f32.vlgmr.msrb.gmra.mxu0 %vm31_vm10, %v259_v54  ;;  %1044 = vmatmul.msk.f32.vlgmr.msrb.gmra.mxu1 %vm31_vm10, %v259_v54 }
 0x324   :  { %263 = vst [vmem:[#allocation1] ss:$4 sm:$0xff] %v259_v54  ;;  %758 = vmatpush.msrb.mxu0 %v1207_v1  ;;  %778 = vmatpush.msrb.mxu1 %v1202_v0 }
 0x326   :  { %759 = vmatpush.msrb.mxu0 %v1219_v3  ;;  %779 = vmatpush.msrb.mxu1 %v1212_v2 }
 0x328   :  { %760 = vmatpush.msrb.mxu0 %v1229_v5  ;;  %780 = vmatpush.msrb.mxu1 %v1224_v4 }
 0x32a   :  { %761 = vmatpush.msrb.mxu0 %v1243_v7  ;;  %781 = vmatpush.msrb.mxu1 %v1238_v6 }
 0x32b   :  { %v1431_v51 = vld.sshfl [vmem:[#allocation1] sm:$0xff pattern:$0x73625140] }
 0x32c   :  { %762 = vmatpush.msrb.mxu0 %v1257_v9  ;;  %782 = vmatpush.msrb.mxu1 %v1252_v8 }
 0x32e   :  { %763 = vmatpush.msrb.mxu0 %v1271_v11  ;;  %783 = vmatpush.msrb.mxu1 %v1266_v10 }
 0x330   :  { %764 = vmatpush.msrb.mxu0 %v1285_v13  ;;  %784 = vmatpush.msrb.mxu1 %v1280_v12 }
 0x332   :  { %765 = vmatpush.msrb.mxu0 %v1299_v15  ;;  %785 = vmatpush.msrb.mxu1 %v1294_v14 }
 0x3a0   :  { %v311_v56 = vpop.f32.mrf.mxu1  ;;  %v291_v59 = vpop.f32.mrf.mxu0 }
 0x3a1   :  { %v316_v57 = vrot.slane %v311_v56, 6 }
 0x3a3   :  { %v317_v60 = vsel %vm78_vm0, %v291_v59, %v316_v57 }
 0x3a4   :  { %v319_v61 = vadd.f32 %v1042_v58, %v317_v60 }
 0x3a6   :  { %343 = vrot.lane.b32.xlu1 %v319_v61, %s1172_s22  ;;  %v1045_v62 = vmul.f32 -1.442695, %v319_v61  ;;  %v340_v18 = vrot.slane %v319_v61, 2 }
 0x3a8   :  { %1099 = vpow2.f32 %v1045_v62 }
 0x3ae   :  { %v1100_v63 = vpop.eup %1099 }
 0x3af   :  { %v323_v16 = vadd.f32 1.0, %v1100_v63 }
 0x3b1   :  { %1101 = vrcp.f32 %v323_v16  ;;  %v335_v21 = vand.u32 2147483648, %v323_v16  ;;  %v333_v23 = vand.u32 2147483647, %v323_v16  ;;  %vm329_vm5 = vweird.f32 %v323_v16 }
 0x3b2   :  { %1103 = vtanh.f32 %v340_v18 }
 0x3b3   :  { %v336_v25 = vor.u32 1.1754944e-38, %v335_v21  ;;  %vm334_vm7 = vcmp.eq.f32.partialorder %v333_v23, 8.507059e+37 }
 0x3b7   :  { %v1102_v17 = vpop.eup %1101 }
 0x3b8   :  { %v325_v19 = vmul.f32 %v1102_v17, %v323_v16  ;;  %vm330_vm4 = vweird.f32 %v1102_v17  ;;  %v1104_v27 = vpop.eup %1103 }
 0x3b9   :  { %vm331_vm6 = vmor %vm329_vm5, %vm330_vm4 }
 0x3ba   :  { %v326_v20 = vsub.f32 1.0, %v325_v19 }
 0x3bc   :  { %v327_v22 = vmul.f32 %v1102_v17, %v326_v20 }
 0x3be   :  { %v328_v24 = vadd.f32 %v1102_v17, %v327_v22 }
 0x3c0   :  { %v332_v26 = vsel %vm331_vm6, %v1102_v17, %v328_v24 }
 0x3c1   :  { %v337_v28 = vsel %vm334_vm7, %v336_v25, %v332_v26 }
 0x3c2   :  { %v367_v29 = vmul.f32 %v1104_v27, %v337_v28  ;;  %v366_v30 = vmul.f32 %v337_v28, %v1395_v36 }
 0x3c4   :  { %369 = vrot.lane.b32.xlu0 %v367_v29, %s1172_s22 }
 0x418   :  { %v344_v34 = vpop.permute.xlu1 %343 }
 0x419   :  { %v345_v35 = vrot.slane %v344_v34, 2 }
 0x41b   :  { %v1046_v37 = vmul.f32 -1.442695, %v345_v35  ;;  %v1052_v35 = vld [vmem:[%s1589_s0 + $0x10] sm:$0xf] }
 0x436   :  { %v370_v31 = vpop.permute.xlu0 %369 }
 0x437   :  { %v1427_v32 = vadd.f32 %v370_v31, %v366_v30 }
 0x439   :  { %1105 = vtanh.f32 %v1427_v32 }
 0x43a   :  { %1107 = vpow2.f32 %v1046_v37 }
 0x43f   :  { %v1106_v33 = vpop.eup %1105 }
 0x440   :  { %375 = vrot.lane.b32.xlu2 %v1106_v33, %s1172_s22  ;;  %v1108_v38 = vpop.eup %1107 }
 0x441   :  { %v350_v39 = vadd.f32 1.0, %v1108_v38 }
 0x443   :  { %1109 = vrcp.f32 %v350_v39  ;;  %v362_v45 = vand.u32 2147483648, %v350_v39  ;;  %vm356_vm11 = vweird.f32 %v350_v39  ;;  %v360_v46 = vand.u32 2147483647, %v350_v39 }
 0x445   :  { %v363_v41 = vor.u32 1.1754944e-38, %v362_v45  ;;  %vm361_vm13 = vcmp.eq.f32.partialorder %v360_v46, 8.507059e+37 }
 0x449   :  { %v1110_v40 = vpop.eup %1109 }
 0x44a   :  { %v352_v42 = vmul.f32 %v1110_v40, %v350_v39  ;;  %vm357_vm8 = vweird.f32 %v1110_v40 }
 0x44b   :  { %vm358_vm12 = vmor %vm356_vm11, %vm357_vm8 }
 0x44c   :  { %v353_v43 = vsub.f32 1.0, %v352_v42 }
 0x44e   :  { %v354_v44 = vmul.f32 %v1110_v40, %v353_v43 }
 0x450   :  { %v355_v36 = vadd.f32 %v1110_v40, %v354_v44 }
 0x452   :  { %v359_v47 = vsel %vm358_vm12, %v1110_v40, %v355_v36 }
 0x453   :  { %v364_v48 = vsel %vm361_vm13, %v363_v41, %v359_v47 }
 0x49a   :  { %v376_v49 = vpop.permute.xlu2 %375 }
 0x49b   :  { %v378_v50 = vmul.f32 %v376_v49, %v364_v48 }
 0x49d   :  { %380 = vst.msk [vmem:[#allocation2 + $0x4] sm:$0x3] %vm141_vm9, %v378_v50  ;;  %1048 = vmatmul.msk.f32.vlgmr.msrb.gmra.mxu2 %vm31_vm10, %v378_v50  ;;  %1049 = vmatmul.msk.f32.vlgmr.msrb.gmra.mxu3 %vm31_vm10, %v378_v50 }
 0x49e   :  { %382 = vst [vmem:[#allocation1] ss:$4 sm:$0xff] %v378_v50  ;;  %877 = vmatpush.msrb.mxu2 %v1207_v1  ;;  %897 = vmatpush.msrb.mxu3 %v1202_v0 }
 0x4a0   :  { %878 = vmatpush.msrb.mxu2 %v1219_v3  ;;  %898 = vmatpush.msrb.mxu3 %v1212_v2  ;;  %v1047_v2 = vld [vmem:[%s1589_s0 + $0xc] sm:$0xf] }
 0x4a2   :  { %879 = vmatpush.msrb.mxu2 %v1229_v5  ;;  %899 = vmatpush.msrb.mxu3 %v1224_v4 }
 0x4a4   :  { %880 = vmatpush.msrb.mxu2 %v1243_v7  ;;  %900 = vmatpush.msrb.mxu3 %v1238_v6 }
 0x4a6   :  { %881 = vmatpush.msrb.mxu2 %v1257_v9  ;;  %901 = vmatpush.msrb.mxu3 %v1252_v8 }
 0x4a8   :  { %882 = vmatpush.msrb.mxu2 %v1271_v11  ;;  %902 = vmatpush.msrb.mxu3 %v1266_v10 }
 0x4aa   :  { %883 = vmatpush.msrb.mxu2 %v1285_v13  ;;  %903 = vmatpush.msrb.mxu3 %v1280_v12 }
 0x4ac   :  { %884 = vmatpush.msrb.mxu2 %v1299_v15  ;;  %904 = vmatpush.msrb.mxu3 %v1294_v14 }
 0x520   :  { %v430_v0 = vpop.f32.mrf.mxu3  ;;  %v410_v3 = vpop.f32.mrf.mxu2 }
 0x521   :  { %v435_v1 = vrot.slane %v430_v0, 6 }
 0x523   :  { %v436_v4 = vsel %vm78_vm0, %v410_v3, %v435_v1 }
 0x524   :  { %v438_v5 = vadd.f32 %v1047_v2, %v436_v4 }
 0x526   :  { %462 = vrot.lane.b32.xlu1 %v438_v5, %s1172_s22  ;;  %v1050_v6 = vmul.f32 -1.442695, %v438_v5  ;;  %v459_v10 = vrot.slane %v438_v5, 2 }
 0x528   :  { %1111 = vpow2.f32 %v1050_v6 }
 0x52e   :  { %v1112_v7 = vpop.eup %1111 }
 0x52f   :  { %v442_v8 = vadd.f32 1.0, %v1112_v7 }
 0x531   :  { %1113 = vrcp.f32 %v442_v8  ;;  %v454_v13 = vand.u32 2147483648, %v442_v8  ;;  %v452_v15 = vand.u32 2147483647, %v442_v8  ;;  %vm448_vm15 = vweird.f32 %v442_v8 }
 0x532   :  { %1115 = vtanh.f32 %v459_v10 }
 0x533   :  { %v455_v53 = vor.u32 1.1754944e-38, %v454_v13  ;;  %vm453_vm2 = vcmp.eq.f32.partialorder %v452_v15, 8.507059e+37 }
 0x537   :  { %v1114_v9 = vpop.eup %1113 }
 0x538   :  { %v444_v11 = vmul.f32 %v1114_v9, %v442_v8  ;;  %vm449_vm14 = vweird.f32 %v1114_v9  ;;  %v1116_v56 = vpop.eup %1115 }
 0x539   :  { %vm450_vm1 = vmor %vm448_vm15, %vm449_vm14 }
 0x53a   :  { %v445_v12 = vsub.f32 1.0, %v444_v11 }
 0x53c   :  { %v446_v14 = vmul.f32 %v1114_v9, %v445_v12 }
 0x53e   :  { %v447_v52 = vadd.f32 %v1114_v9, %v446_v14 }
 0x540   :  { %v451_v54 = vsel %vm450_vm1, %v1114_v9, %v447_v52 }
 0x541   :  { %v456_v57 = vsel %vm453_vm2, %v455_v53, %v451_v54 }
 0x542   :  { %v486_v58 = vmul.f32 %v1116_v56, %v456_v57  ;;  %v485_v59 = vmul.f32 %v456_v57, %v1427_v32  ;;  %v1463_v32 = vld.sshfl [vmem:[#allocation1] sm:$0xff pattern:$0x73625140] }
 0x544   :  { %488 = vrot.lane.b32.xlu0 %v486_v58, %s1172_s22 }
 0x598   :  { %v463_v63 = vpop.permute.xlu1 %462 }
 0x599   :  { %v464_v16 = vrot.slane %v463_v63, 2 }
 0x59b   :  { %v1051_v17 = vmul.f32 -1.442695, %v464_v16 }
 0x5b6   :  { %v489_v60 = vpop.permute.xlu0 %488 }
 0x5b7   :  { %v1459_v61 = vadd.f32 %v489_v60, %v485_v59 }
 0x5b9   :  { %1117 = vtanh.f32 %v1459_v61 }
 0x5ba   :  { %1119 = vpow2.f32 %v1051_v17  ;;  %v1057_v17 = vld [vmem:[%s1589_s0 + $0x14] sm:$0xf] }
 0x5bf   :  { %v1118_v62 = vpop.eup %1117 }
 0x5c0   :  { %494 = vrot.lane.b32.xlu2 %v1118_v62, %s1172_s22  ;;  %v1120_v18 = vpop.eup %1119 }
 0x5c1   :  { %v469_v19 = vadd.f32 1.0, %v1120_v18 }
 0x5c3   :  { %1121 = vrcp.f32 %v469_v19  ;;  %v481_v25 = vand.u32 2147483648, %v469_v19  ;;  %vm475_vm4 = vweird.f32 %v469_v19  ;;  %v479_v26 = vand.u32 2147483647, %v469_v19 }
 0x5c5   :  { %v482_v28 = vor.u32 1.1754944e-38, %v481_v25  ;;  %vm480_vm6 = vcmp.eq.f32.partialorder %v479_v26, 8.507059e+37 }
 0x5c9   :  { %v1122_v20 = vpop.eup %1121 }
 0x5ca   :  { %v471_v21 = vmul.f32 %v1122_v20, %v469_v19  ;;  %vm476_vm3 = vweird.f32 %v1122_v20 }
 0x5cb   :  { %vm477_vm5 = vmor %vm475_vm4, %vm476_vm3 }
 0x5cc   :  { %v472_v22 = vsub.f32 1.0, %v471_v21 }
 0x5ce   :  { %v473_v23 = vmul.f32 %v1122_v20, %v472_v22 }
 0x5d0   :  { %v474_v24 = vadd.f32 %v1122_v20, %v473_v23 }
 0x5d2   :  { %v478_v27 = vsel %vm477_vm5, %v1122_v20, %v474_v24 }
 0x5d3   :  { %v483_v29 = vsel %vm480_vm6, %v482_v28, %v478_v27 }
 0x61a   :  { %v495_v30 = vpop.permute.xlu2 %494 }
 0x61b   :  { %v497_v31 = vmul.f32 %v495_v30, %v483_v29 }
 0x61d   :  { %499 = vst.msk [vmem:[#allocation2 + $0x6] sm:$0x3] %vm141_vm9, %v497_v31  ;;  %1053 = vmatmul.msk.f32.vlgmr.msra.gmra.mxu0 %vm31_vm10, %v497_v31  ;;  %1054 = vmatmul.msk.f32.vlgmr.msra.gmra.mxu1 %vm31_vm10, %v497_v31 }
 0x61e   :  { %501 = vst [vmem:[#allocation1] ss:$4 sm:$0xff] %v497_v31 }
 0x625   :  { %v1479_v62 = vld.sshfl [vmem:[#allocation1] sm:$0xff pattern:$0x73625140] }
 0x69a   :  { %v549_v33 = vpop.f32.mrf.mxu1  ;;  %v529_v37 = vpop.f32.mrf.mxu0 }
 0x69b   :  { %v554_v34 = vrot.slane %v549_v33, 6 }
 0x69d   :  { %v555_v38 = vsel %vm78_vm0, %v529_v37, %v554_v34 }
 0x69e   :  { %v557_v39 = vadd.f32 %v1052_v35, %v555_v38 }
 0x6a0   :  { %581 = vrot.lane.b32.xlu1 %v557_v39, %s1172_s22  ;;  %v1055_v40 = vmul.f32 -1.442695, %v557_v39  ;;  %v578_v36 = vrot.slane %v557_v39, 2 }
 0x6a2   :  { %1123 = vpow2.f32 %v1055_v40 }
 0x6a8   :  { %v1124_v42 = vpop.eup %1123 }
 0x6a9   :  { %v561_v43 = vadd.f32 1.0, %v1124_v42 }
 0x6ab   :  { %1125 = vrcp.f32 %v561_v43  ;;  %v573_v47 = vand.u32 2147483648, %v561_v43  ;;  %v571_v48 = vand.u32 2147483647, %v561_v43  ;;  %vm567_vm8 = vweird.f32 %v561_v43 }
 0x6ac   :  { %1127 = vtanh.f32 %v578_v36 }
 0x6ad   :  { %v574_v50 = vor.u32 1.1754944e-38, %v573_v47  ;;  %vm572_vm12 = vcmp.eq.f32.partialorder %v571_v48, 8.507059e+37 }
 0x6b1   :  { %v1126_v44 = vpop.eup %1125 }
 0x6b2   :  { %v563_v45 = vmul.f32 %v1126_v44, %v561_v43  ;;  %vm568_vm7 = vweird.f32 %v1126_v44  ;;  %v1128_v1 = vpop.eup %1127 }
 0x6b3   :  { %vm569_vm11 = vmor %vm567_vm8, %vm568_vm7 }
 0x6b4   :  { %v564_v46 = vsub.f32 1.0, %v563_v45 }
 0x6b6   :  { %v565_v41 = vmul.f32 %v1126_v44, %v564_v46 }
 0x6b8   :  { %v566_v49 = vadd.f32 %v1126_v44, %v565_v41 }
 0x6ba   :  { %v570_v0 = vsel %vm569_vm11, %v1126_v44, %v566_v49 }
 0x6bb   :  { %v575_v2 = vsel %vm572_vm12, %v574_v50, %v570_v0 }
 0x6bc   :  { %v605_v3 = vmul.f32 %v1128_v1, %v575_v2  ;;  %v604_v4 = vmul.f32 %v575_v2, %v1459_v61 }
 0x6be   :  { %607 = vrot.lane.b32.xlu0 %v605_v3, %s1172_s22 }
 0x712   :  { %v582_v8 = vpop.permute.xlu1 %581 }
 0x713   :  { %v583_v9 = vrot.slane %v582_v8, 2 }
 0x715   :  { %v1056_v10 = vmul.f32 -1.442695, %v583_v9 }
 0x730   :  { %v608_v5 = vpop.permute.xlu0 %607 }
 0x731   :  { %v1475_v6 = vadd.f32 %v608_v5, %v604_v4 }
 0x733   :  { %1129 = vtanh.f32 %v1475_v6 }
 0x734   :  { %1131 = vpow2.f32 %v1056_v10 }
 0x739   :  { %v1130_v7 = vpop.eup %1129 }
 0x73a   :  { %613 = vrot.lane.b32.xlu2 %v1130_v7, %s1172_s22  ;;  %v1132_v11 = vpop.eup %1131 }
 0x73b   :  { %v588_v12 = vadd.f32 1.0, %v1132_v11  ;;  %v1062_v11 = vld [vmem:[%s1589_s0 + $0x18] sm:$0xf] }
 0x73d   :  { %1133 = vrcp.f32 %v588_v12  ;;  %v600_v54 = vand.u32 2147483648, %v588_v12  ;;  %vm594_vm14 = vweird.f32 %v588_v12  ;;  %v598_v56 = vand.u32 2147483647, %v588_v12 }
 0x73f   :  { %v601_v58 = vor.u32 1.1754944e-38, %v600_v54  ;;  %vm599_vm1 = vcmp.eq.f32.partialorder %v598_v56, 8.507059e+37 }
 0x743   :  { %v1134_v13 = vpop.eup %1133 }
 0x744   :  { %v590_v14 = vmul.f32 %v1134_v13, %v588_v12  ;;  %vm595_vm13 = vweird.f32 %v1134_v13 }
 0x745   :  { %vm596_vm15 = vmor %vm594_vm14, %vm595_vm13 }
 0x746   :  { %v591_v15 = vsub.f32 1.0, %v590_v14 }
 0x748   :  { %v592_v52 = vmul.f32 %v1134_v13, %v591_v15 }
 0x74a   :  { %v593_v53 = vadd.f32 %v1134_v13, %v592_v52 }
 0x74c   :  { %v597_v57 = vsel %vm596_vm15, %v1134_v13, %v593_v53 }
 0x74d   :  { %v602_v59 = vsel %vm599_vm1, %v601_v58, %v597_v57 }
 0x794   :  { %v614_v60 = vpop.permute.xlu2 %613 }
 0x795   :  { %v616_v61 = vmul.f32 %v614_v60, %v602_v59 }
 0x797   :  { %618 = vst.msk [vmem:[#allocation2 + $0x8] sm:$0x3] %vm141_vm9, %v616_v61  ;;  %1058 = vmatmul.msk.f32.vlgmr.msra.gmra.mxu2 %vm31_vm10, %v616_v61  ;;  %1059 = vmatmul.msk.f32.vlgmr.msra.gmra.mxu3 %vm31_vm10, %v616_v61 }
 0x798   :  { %620 = vst [vmem:[#allocation1] ss:$4 sm:$0xff] %v616_v61 }
 0x79f   :  { %v1498_v8 = vld.sshfl [vmem:[#allocation1] sm:$0xff pattern:$0x73625140] }
 0x81a   :  { %v668_v63 = vpop.f32.mrf.mxu3  ;;  %v648_v18 = vpop.f32.mrf.mxu2 }
 0x81b   :  { %v673_v16 = vrot.slane %v668_v63, 6 }
 0x81d   :  { %v674_v19 = vsel %vm78_vm0, %v648_v18, %v673_v16 }
 0x81e   :  { %v676_v20 = vadd.f32 %v1057_v17, %v674_v19 }
 0x820   :  { %700 = vrot.lane.b32.xlu1 %v676_v20, %s1172_s22  ;;  %v1060_v21 = vmul.f32 -1.442695, %v676_v20  ;;  %v697_v25 = vrot.slane %v676_v20, 2 }
 0x822   :  { %1135 = vpow2.f32 %v1060_v21 }
 0x828   :  { %v1136_v22 = vpop.eup %1135 }
 0x829   :  { %v680_v23 = vadd.f32 1.0, %v1136_v22 }
 0x82b   :  { %1137 = vrcp.f32 %v680_v23  ;;  %v692_v28 = vand.u32 2147483648, %v680_v23  ;;  %v690_v30 = vand.u32 2147483647, %v680_v23  ;;  %vm686_vm3 = vweird.f32 %v680_v23 }
 0x82c   :  { %1139 = vtanh.f32 %v697_v25 }
 0x82d   :  { %v693_v33 = vor.u32 1.1754944e-38, %v692_v28  ;;  %vm691_vm5 = vcmp.eq.f32.partialorder %v690_v30, 8.507059e+37 }
 0x831   :  { %v1138_v24 = vpop.eup %1137 }
 0x832   :  { %v682_v26 = vmul.f32 %v1138_v24, %v680_v23  ;;  %vm687_vm2 = vweird.f32 %v1138_v24  ;;  %v1140_v35 = vpop.eup %1139 }
 0x833   :  { %vm688_vm4 = vmor %vm686_vm3, %vm687_vm2 }
 0x834   :  { %v683_v27 = vsub.f32 1.0, %v682_v26 }
 0x836   :  { %v684_v29 = vmul.f32 %v1138_v24, %v683_v27 }
 0x838   :  { %v685_v31 = vadd.f32 %v1138_v24, %v684_v29 }
 0x83a   :  { %v689_v34 = vsel %vm688_vm4, %v1138_v24, %v685_v31 }
 0x83b   :  { %v694_v37 = vsel %vm691_vm5, %v693_v33, %v689_v34 }
 0x83c   :  { %v724_v38 = vmul.f32 %v1140_v35, %v694_v37  ;;  %v723_v39 = vmul.f32 %v694_v37, %v1475_v6 }
 0x83e   :  { %726 = vrot.lane.b32.xlu0 %v724_v38, %s1172_s22 }
 0x892   :  { %v701_v44 = vpop.permute.xlu1 %700 }
 0x893   :  { %v702_v36 = vrot.slane %v701_v44, 2 }
 0x895   :  { %v1061_v45 = vmul.f32 -1.442695, %v702_v36 }
 0x8b0   :  { %v727_v40 = vpop.permute.xlu0 %726 }
 0x8b1   :  { %v1491_v42 = vadd.f32 %v727_v40, %v723_v39 }
 0x8b3   :  { %1141 = vtanh.f32 %v1491_v42 }
 0x8b4   :  { %1143 = vpow2.f32 %v1061_v45 }
 0x8b9   :  { %v1142_v43 = vpop.eup %1141 }
 0x8ba   :  { %732 = vrot.lane.b32.xlu2 %v1142_v43, %s1172_s22  ;;  %v1144_v46 = vpop.eup %1143 }
 0x8bb   :  { %v707_v47 = vadd.f32 1.0, %v1144_v46 }
 0x8bd   :  { %1145 = vrcp.f32 %v707_v47  ;;  %v719_v1 = vand.u32 2147483648, %v707_v47  ;;  %vm713_vm7 = vweird.f32 %v707_v47  ;;  %v717_v2 = vand.u32 2147483647, %v707_v47 }
 0x8bf   :  { %v720_v4 = vor.u32 1.1754944e-38, %v719_v1  ;;  %vm718_vm11 = vcmp.eq.f32.partialorder %v717_v2, 8.507059e+37 }
 0x8c3   :  { %v1146_v41 = vpop.eup %1145 }
 0x8c4   :  { %v709_v48 = vmul.f32 %v1146_v41, %v707_v47  ;;  %vm714_vm6 = vweird.f32 %v1146_v41  ;;  %v1067_v47 = vld [vmem:[%s1589_s0 + $0x1c] sm:$0xf] }
 0x8c5   :  { %vm715_vm8 = vmor %vm713_vm7, %vm714_vm6 }
 0x8c6   :  { %v710_v49 = vsub.f32 1.0, %v709_v48 }
 0x8c8   :  { %v711_v50 = vmul.f32 %v1146_v41, %v710_v49 }
 0x8ca   :  { %v712_v0 = vadd.f32 %v1146_v41, %v711_v50 }
 0x8cc   :  { %v716_v3 = vsel %vm715_vm8, %v1146_v41, %v712_v0 }
 0x8cd   :  { %v721_v5 = vsel %vm718_vm11, %v720_v4, %v716_v3 }
 0x914   :  { %v733_v6 = vpop.permute.xlu2 %732 }
 0x915   :  { %v735_v7 = vmul.f32 %v733_v6, %v721_v5 }
 0x917   :  { %737 = vst.msk [vmem:[#allocation2 + $0xa] sm:$0x3] %vm141_vm9, %v735_v7  ;;  %1063 = vmatmul.msk.f32.vlgmr.msrb.gmra.mxu0 %vm31_vm10, %v735_v7  ;;  %1064 = vmatmul.msk.f32.vlgmr.msrb.gmra.mxu1 %vm31_vm10, %v735_v7 }
 0x918   :  { %739 = vst [vmem:[#allocation1] ss:$4 sm:$0xff] %v735_v7 }
 0x91f   :  { %v1514_v36 = vld.sshfl [vmem:[#allocation1] sm:$0xff pattern:$0x73625140] }
 0x994   :  { %v787_v9 = vpop.f32.mrf.mxu1  ;;  %v767_v12 = vpop.f32.mrf.mxu0 }
 0x995   :  { %v792_v10 = vrot.slane %v787_v9, 6 }
 0x997   :  { %v793_v13 = vsel %vm78_vm0, %v767_v12, %v792_v10 }
 0x998   :  { %v795_v14 = vadd.f32 %v1062_v11, %v793_v13 }
 0x99a   :  { %819 = vrot.lane.b32.xlu1 %v795_v14, %s1172_s22  ;;  %v1065_v15 = vmul.f32 -1.442695, %v795_v14  ;;  %v816_v56 = vrot.slane %v795_v14, 2 }
 0x99c   :  { %1147 = vpow2.f32 %v1065_v15 }
 0x9a2   :  { %v1148_v52 = vpop.eup %1147 }
 0x9a3   :  { %v799_v53 = vadd.f32 1.0, %v1148_v52 }
 0x9a5   :  { %1149 = vrcp.f32 %v799_v53  ;;  %v811_v59 = vand.u32 2147483648, %v799_v53  ;;  %v809_v61 = vand.u32 2147483647, %v799_v53  ;;  %vm805_vm13 = vweird.f32 %v799_v53 }
 0x9a6   :  { %1151 = vtanh.f32 %v816_v56 }
 0x9a7   :  { %v812_v16 = vor.u32 1.1754944e-38, %v811_v59  ;;  %vm810_vm15 = vcmp.eq.f32.partialorder %v809_v61, 8.507059e+37 }
 0x9ab   :  { %v1150_v54 = vpop.eup %1149 }
 0x9ac   :  { %v801_v57 = vmul.f32 %v1150_v54, %v799_v53  ;;  %vm806_vm12 = vweird.f32 %v1150_v54  ;;  %v1152_v18 = vpop.eup %1151 }
 0x9ad   :  { %vm807_vm14 = vmor %vm805_vm13, %vm806_vm12 }
 0x9ae   :  { %v802_v58 = vsub.f32 1.0, %v801_v57 }
 0x9b0   :  { %v803_v60 = vmul.f32 %v1150_v54, %v802_v58 }
 0x9b2   :  { %v804_v63 = vadd.f32 %v1150_v54, %v803_v60 }
 0x9b4   :  { %v808_v17 = vsel %vm807_vm14, %v1150_v54, %v804_v63 }
 0x9b5   :  { %v813_v19 = vsel %vm810_vm15, %v812_v16, %v808_v17 }
 0x9b6   :  { %v843_v20 = vmul.f32 %v1152_v18, %v813_v19  ;;  %v842_v21 = vmul.f32 %v813_v19, %v1491_v42  ;;  %v987_v18 = vld [vmem:[#allocation2 + $0x8] sm:$0x3] }
 0x9b8   :  { %845 = vrot.lane.b32.xlu0 %v843_v20, %s1172_s22 }
 0xa0c   :  { %v820_v25 = vpop.permute.xlu1 %819 }
 0xa0d   :  { %v821_v26 = vrot.slane %v820_v25, 2 }
 0xa0f   :  { %v1066_v27 = vmul.f32 -1.442695, %v821_v26 }
 0xa2a   :  { %v846_v22 = vpop.permute.xlu0 %845 }
 0xa2b   :  { %v1507_v23 = vadd.f32 %v846_v22, %v842_v21  ;;  %v984_v22 = vld [vmem:[#allocation2 + $0x2] sm:$0x3] }
 0xa2d   :  { %1153 = vtanh.f32 %v1507_v23 }
 0xa2e   :  { %1155 = vpow2.f32 %v1066_v27 }
 0xa33   :  { %v1154_v24 = vpop.eup %1153 }
 0xa34   :  { %851 = vrot.lane.b32.xlu2 %v1154_v24, %s1172_s22  ;;  %v1156_v28 = vpop.eup %1155 }
 0xa35   :  { %v826_v29 = vadd.f32 1.0, %v1156_v28 }
 0xa37   :  { %1157 = vrcp.f32 %v826_v29  ;;  %v838_v37 = vand.u32 2147483648, %v826_v29  ;;  %vm832_vm2 = vweird.f32 %v826_v29  ;;  %v836_v38 = vand.u32 2147483647, %v826_v29 }
 0xa39   :  { %v839_v40 = vor.u32 1.1754944e-38, %v838_v37  ;;  %vm837_vm4 = vcmp.eq.f32.partialorder %v836_v38, 8.507059e+37 }
 0xa3d   :  { %v1158_v30 = vpop.eup %1157 }
 0xa3e   :  { %v828_v31 = vmul.f32 %v1158_v30, %v826_v29  ;;  %vm833_vm1 = vweird.f32 %v1158_v30 }
 0xa3f   :  { %vm834_vm3 = vmor %vm832_vm2, %vm833_vm1 }
 0xa40   :  { %v829_v33 = vsub.f32 1.0, %v828_v31 }
 0xa42   :  { %v830_v34 = vmul.f32 %v1158_v30, %v829_v33 }
 0xa44   :  { %v831_v35 = vadd.f32 %v1158_v30, %v830_v34 }
 0xa46   :  { %v835_v39 = vsel %vm834_vm3, %v1158_v30, %v831_v35 }
 0xa47   :  { %v840_v42 = vsel %vm837_vm4, %v839_v40, %v835_v39 }
 0xa8e   :  { %v852_v43 = vpop.permute.xlu2 %851 }
 0xa8f   :  { %v854_v44 = vmul.f32 %v852_v43, %v840_v42 }
 0xa91   :  { %856 = vst.msk [vmem:[#allocation2 + $0xc] sm:$0x3] %vm141_vm9, %v854_v44  ;;  %1068 = vmatmul.msk.f32.vlgmr.msrb.gmra.mxu2 %vm31_vm10, %v854_v44  ;;  %1069 = vmatmul.msk.f32.vlgmr.msrb.gmra.mxu3 %vm31_vm10, %v854_v44 }
 0xa92   :  { %858 = vst [vmem:[#allocation1] ss:$4 sm:$0xff] %v854_v44 }
 0xa98   :  { %v989_v53 = vld [vmem:[#allocation2 + $0xc] sm:$0x3] }
 0xb14   :  { %v906_v45 = vpop.f32.mrf.mxu3  ;;  %v886_v41 = vpop.f32.mrf.mxu2 }
 0xb15   :  { %v911_v46 = vrot.slane %v906_v45, 6 }
 0xb17   :  { %v912_v48 = vsel %vm78_vm0, %v886_v41, %v911_v46 }
 0xb18   :  { %v914_v49 = vadd.f32 %v1067_v47, %v912_v48  ;;  %v988_v47 = vld [vmem:[#allocation2 + $0xa] sm:$0x3] }
 0xb1a   :  { %938 = vrot.lane.b32.xlu1 %v914_v49, %s1172_s22  ;;  %v1070_v50 = vmul.f32 -1.442695, %v914_v49  ;;  %v935_v3 = vrot.slane %v914_v49, 2 }
 0xb1c   :  { %1159 = vpow2.f32 %v1070_v50 }
 0xb22   :  { %v1160_v0 = vpop.eup %1159  ;;  %265 = vrot.lane.b32.xlu1 %v1431_v51, %s1173_s11 }
 0xb23   :  { %v918_v1 = vadd.f32 1.0, %v1160_v0  ;;  %v985_v0 = vld [vmem:[#allocation2 + $0x4] sm:$0x3] }
 0xb25   :  { %1161 = vrcp.f32 %v918_v1  ;;  %v930_v6 = vand.u32 2147483648, %v918_v1  ;;  %v928_v9 = vand.u32 2147483647, %v918_v1  ;;  %vm924_vm10 = vweird.f32 %v918_v1 }
 0xb26   :  { %1163 = vtanh.f32 %v935_v3 }
 0xb27   :  { %v931_v11 = vor.u32 1.1754944e-38, %v930_v6  ;;  %vm929_vm6 = vcmp.eq.f32.partialorder %v928_v9, 8.507059e+37 }
 0xb2a   :  { %622 = vrot.lane.b32.xlu1 %v1498_v8, %s1173_s11  ;;  %v859_v8 = vld.sshfl [vmem:[#allocation1] sm:$0xff pattern:$0x73625140] }
 0xb2b   :  { %v1162_v2 = vpop.eup %1161 }
 0xb2c   :  { %v920_v4 = vmul.f32 %v1162_v2, %v918_v1  ;;  %vm925_vm0 = vweird.f32 %v1162_v2  ;;  %v1164_v51 = vpop.eup %1163 }
 0xb2d   :  { %vm926_vm5 = vmor %vm924_vm10, %vm925_vm0 }
 0xb2e   :  { %v921_v5 = vsub.f32 1.0, %v920_v4 }
 0xb30   :  { %v922_v7 = vmul.f32 %v1162_v2, %v921_v5  ;;  %v983_v5 = vld [vmem:[#allocation2] sm:$0x3] }
 0xb32   :  { %v923_v10 = vadd.f32 %v1162_v2, %v922_v7 }
 0xb34   :  { %v927_v12 = vsel %vm926_vm5, %v1162_v2, %v923_v10 }
 0xb35   :  { %v932_v13 = vsel %vm929_vm6, %v931_v11, %v927_v12 }
 0xb36   :  { %v962_v14 = vmul.f32 %v1164_v51, %v932_v13  ;;  %v961_v59 = vmul.f32 %v932_v13, %v1507_v23 }
 0xb38   :  { %964 = vrot.lane.b32.xlu0 %v962_v14, %s1172_s22 }
 0xb40   :  { %146 = vrot.lane.b32.xlu0 %v1399_v55, %s1173_s11  ;;  %v986_v55 = vld [vmem:[#allocation2 + $0x6] sm:$0x3] }
 0xb48   :  { %503 = vrot.lane.b32.xlu0 %v1479_v62, %s1173_s11 }
 0xb50   :  { %860 = vrot.lane.b32.xlu0 %v859_v8, %s1173_s11 }
 0xb8c   :  { %v939_v15 = vpop.permute.xlu1 %938 }
 0xb94   :  { %v266_v52 = vpop.permute.xlu1 %265 }
 0xb95   :  { %269 = vst.msk [vmem:[#allocation3 + $0xc] sm:$0x3] %vm141_vm9, %v266_v52 }
 0xb9c   :  { %v997_v54 = vld [vmem:[#allocation3 + $0xc] sm:$0x3]  ;;  %v623_v56 = vpop.permute.xlu1 %622 }
 0xb9d   :  { %v1005_v57 = vadd.f32 %v997_v54, %v989_v53  ;;  %626 = vst.msk [vmem:[#allocation3 + $0x6] sm:$0x3] %vm141_vm9, %v623_v56 }
 0xb9f   :  { %1013 = vst.msk [vmem:[%s1590_s2 + $0xc] sm:$0x3] %vm141_vm9, %v1005_v57 }
 0xba4   :  { %v994_v62 = vld [vmem:[#allocation3 + $0x6] sm:$0x3] }
 0xba5   :  { %v1002_v58 = vadd.f32 %v994_v62, %v986_v55 }
 0xba7   :  { %1010 = vst.msk [vmem:[%s1590_s2 + $0x6] sm:$0x3] %vm141_vm9, %v1002_v58 }
 0xbaa   :  { %v965_v60 = vpop.permute.xlu0 %964 }
 0xbab   :  { %v967_v61 = vadd.f32 %v965_v60, %v961_v59 }
 0xbad   :  { %1165 = vtanh.f32 %v967_v61 }
 0xbb2   :  { %v147_v63 = vpop.permute.xlu0 %146 }
 0xbb3   :  { %v1166_v16 = vpop.eup %1165  ;;  %150 = vst.msk [vmem:[#allocation3 + $0xe] sm:$0x3] %vm141_vm9, %v147_v63 }
 0xbb4   :  { %970 = vrot.lane.b32.xlu2 %v1166_v16, %s1172_s22 }
 0xbba   :  { %v504_v17 = vpop.permute.xlu0 %503  ;;  %v998_v44 = vld [vmem:[#allocation3 + $0xe] sm:$0x3] }
 0xbbb   :  { %507 = vst.msk [vmem:[#allocation3 + $0x8] sm:$0x3] %vm141_vm9, %v504_v17 }
 0xbbc   :  { %384 = vrot.lane.b32.xlu2 %v1463_v32, %s1173_s11  ;;  %v940_v32 = vrot.slane %v939_v15, 2 }
 0xbbe   :  { %v1071_v25 = vmul.f32 -1.442695, %v940_v32 }
 0xbc0   :  { %1167 = vpow2.f32 %v1071_v25 }
 0xbc2   :  { %v995_v19 = vld [vmem:[#allocation3 + $0x8] sm:$0x3]  ;;  %v861_v20 = vpop.permute.xlu0 %860 }
 0xbc3   :  { %v1003_v21 = vadd.f32 %v995_v19, %v987_v18  ;;  %864 = vst.msk [vmem:[#allocation3 + $0x2] sm:$0x3] %vm141_vm9, %v861_v20 }
 0xbc4   :  { %741 = vrot.lane.b32.xlu2 %v1514_v36, %s1173_s11 }
 0xbc5   :  { %1011 = vst.msk [vmem:[%s1590_s2 + $0x8] sm:$0x3] %vm141_vm9, %v1003_v21 }
 0xbc6   :  { %v1168_v26 = vpop.eup %1167 }
 0xbc7   :  { %v945_v27 = vadd.f32 1.0, %v1168_v26 }
 0xbc9   :  { %1169 = vrcp.f32 %v945_v27  ;;  %v957_v34 = vand.u32 2147483648, %v945_v27  ;;  %vm951_vm8 = vweird.f32 %v945_v27  ;;  %v955_v35 = vand.u32 2147483647, %v945_v27 }
 0xbca   :  { %v992_v23 = vld [vmem:[#allocation3 + $0x2] sm:$0x3] }
 0xbcb   :  { %v1000_v24 = vadd.f32 %v992_v23, %v984_v22  ;;  %v958_v38 = vor.u32 1.1754944e-38, %v957_v34  ;;  %vm956_vm12 = vcmp.eq.f32.partialorder %v955_v35, 8.507059e+37 }
 0xbcd   :  { %1008 = vst.msk [vmem:[%s1590_s2 + $0x2] sm:$0x3] %vm141_vm9, %v1000_v24 }
 0xbcf   :  { %v1170_v28 = vpop.eup %1169 }
 0xbd0   :  { %v947_v29 = vmul.f32 %v1170_v28, %v945_v27  ;;  %vm952_vm7 = vweird.f32 %v1170_v28 }
 0xbd1   :  { %vm953_vm11 = vmor %vm951_vm8, %vm952_vm7 }
 0xbd2   :  { %v948_v30 = vsub.f32 1.0, %v947_v29 }
 0xbd4   :  { %v949_v31 = vmul.f32 %v1170_v28, %v948_v30 }
 0xbd6   :  { %v950_v33 = vadd.f32 %v1170_v28, %v949_v31 }
 0xbd8   :  { %v954_v37 = vsel %vm953_vm11, %v1170_v28, %v950_v33 }
 0xbd9   :  { %v959_v39 = vsel %vm956_vm12, %v958_v38, %v954_v37 }
 0xc0e   :  { %v971_v40 = vpop.permute.xlu2 %970 }
 0xc0f   :  { %v973_v42 = vmul.f32 %v971_v40, %v959_v39 }
 0xc11   :  { %975 = vst.msk [vmem:[#allocation2 + $0xe] sm:$0x3] %vm141_vm9, %v973_v42 }
 0xc12   :  { %1015 = vst.msk [vmem:[%s1591_s3] sm:$0x3] %vm141_vm9, %v973_v42 }
 0xc13   :  { %977 = vst [vmem:[#allocation1] ss:$4 sm:$0xff] %v973_v42 }
 0xc16   :  { %v385_v43 = vpop.permute.xlu2 %384 }
 0xc17   :  { %388 = vst.msk [vmem:[#allocation3 + $0xa] sm:$0x3] %vm141_vm9, %v385_v43 }
 0xc18   :  { %v990_v36 = vld [vmem:[#allocation2 + $0xe] sm:$0x3] }
 0xc19   :  { %v1006_v45 = vadd.f32 %v998_v44, %v990_v36 }
 0xc1a   :  { %v978_v46 = vld.sshfl [vmem:[#allocation1] sm:$0xff pattern:$0x73625140] }
 0xc1b   :  { %1014 = vst.msk [vmem:[%s1590_s2 + $0xe] sm:$0x3] %vm141_vm9, %v1006_v45  ;;  %979 = vrot.lane.b32.xlu1 %v978_v46, %s1173_s11 }
 0xc1c   :  { %1017 = vst [vmem:[#allocation1] ss:$4 sm:$0xff] %v967_v61 }
 0xc1e   :  { %v996_v41 = vld [vmem:[#allocation3 + $0xa] sm:$0x3]  ;;  %v742_v48 = vpop.permute.xlu2 %741 }
 0xc1f   :  { %v1004_v49 = vadd.f32 %v996_v41, %v988_v47  ;;  %745 = vst.msk [vmem:[#allocation3 + $0x4] sm:$0x3] %vm141_vm9, %v742_v48 }
 0xc21   :  { %1012 = vst.msk [vmem:[%s1590_s2 + $0xa] sm:$0x3] %vm141_vm9, %v1004_v49 }
 0xc23   :  { %v1018_v50 = vld.sshfl [vmem:[#allocation1] sm:$0xff pattern:$0x73625140] }
 0xc24   :  { %1019 = vrot.lane.b32.xlu2 %v1018_v50, %s1172_s22 }
 0xc26   :  { %v993_v1 = vld [vmem:[#allocation3 + $0x4] sm:$0x3] }
 0xc27   :  { %v1001_v2 = vadd.f32 %v993_v1, %v985_v0 }
 0xc29   :  { %1009 = vst.msk [vmem:[%s1590_s2 + $0x4] sm:$0x3] %vm141_vm9, %v1001_v2 }
 0xc7e   :  { %v1020_v3 = vpop.permute.xlu2 %1019 }
 0xc7f   :  { %1022 = vst.msk [vmem:[%s1592_s4] sm:$0x3] %vm141_vm9, %v1020_v3 }
 0xc8d   :  { %v980_v4 = vpop.permute.xlu1 %979 }
 0xc8e   :  { %982 = vst.msk [vmem:[#allocation3] sm:$0x3] %vm141_vm9, %v980_v4 }
 0xc95   :  { %v991_v6 = vld [vmem:[#allocation3] sm:$0x3] }
 0xc96   :  { %v999_v7 = vadd.f32 %v991_v6, %v983_v5 }
 0xc98   :  { %1007 = vst.msk [vmem:[%s1590_s2] sm:$0x3] %vm141_vm9, %v999_v7 }

// kernel: seq2seq_forward.3
= control target key start
LH: loop header
LB: loop body
LE: loop exit
PB: predicated region body
PF: predicated region fallthrough
CT: control target
= control target key end

     0   :  { %s4510_s0 = inlined_call_operand.vmem [shape: f32[8,1], index: 0, kind: input, shape index: {}]   ;;  %s4511_s1 = inlined_call_operand.vmem [shape: f32[8,2,16], index: 1, kind: input, shape index: {}]   ;;  %s4512_s2 = inlined_call_operand.vmem [shape: f32[8,2,32], index: 2, kind: input, shape index: {}]   ;;  %s4513_s3 = inlined_call_operand.vmem [shape: f32[8,2,32], index: 3, kind: input, shape index: {}]   ;;  %s4514_s4 = inlined_call_operand.vmem [shape: f32[2,32], index: 4, kind: input, shape index: {}]   ;;  %s4515_s5 = inlined_call_operand.vmem [shape: f32[2,32], index: 5, kind: input, shape index: {}]   ;;  %s4516_s6 = inlined_call_operand.vmem [shape: f32[128,16], index: 6, kind: input, shape index: {}]   ;;  %s4517_s7 = inlined_call_operand.vmem [shape: f32[32,32], index: 7, kind: input, shape index: {}]   ;;  %s4518_s8 = inlined_call_operand.vmem [shape: f32[1,32], index: 8, kind: input, shape index: {}]   ;;  %s4519_s9 = inlined_call_operand.vmem [shape: f32[80,128], index: 9, kind: input, shape index: {}]   ;;  %s4520_s10 = inlined_call_operand.vmem [shape: f32[1,128], index: 10, kind: input, shape index: {}]   ;;  %s4521_s11 = inlined_call_operand.vmem [shape: f32[64,128], index: 11, kind: input, shape index: {}]   ;;  %s4522_s12 = inlined_call_operand.vmem [shape: f32[1,128], index: 12, kind: input, shape index: {}]   ;;  %s4523_s13 = inlined_call_operand.hbm [shape: f32[8,2,128], index: 13, kind: output, shape index: {}]  }
   0x1   :  { %v2872_v0 = vld [vmem:[%s4517_s7 + $0x18] sm:$0xff]  ;;  %v2877_v1 = vld [vmem:[%s4517_s7 + $0x10] sm:$0xff]  ;;  %v2883_v2 = vld [vmem:[%s4517_s7 + $0x8] sm:$0xff] }
   0x2   :  { %131 = vmatpush.msra.mxu1 %v2872_v0  ;;  %476 = vmatpush.msra.mxu0 %v2872_v0 }
   0x3   :  { %18 = vsyncpa [#allocation3], 0  ;;  %v2891_v3 = vld [vmem:[%s4517_s7] sm:$0xff]  ;;  %vm115_vm0 = vcmask 261120   ;;  %v2904_v5 = vld [vmem:[%s4513_s3 + $0x8] sm:$0x3] }
   0x4   :  { %132 = vmatpush.msra.mxu1 %v2877_v1  ;;  %477 = vmatpush.msra.mxu0 %v2877_v1  ;;  %v112_v4 = vld [vmem:[%s4514_s4] sm:$0x3]  ;;  %v2909_v6 = vld [vmem:[%s4513_s3 + $0x4] sm:$0x3]  ;;  %v2919_v8 = vld [vmem:[%s4513_s3 + $0xa] sm:$0x3] }
   0x5   :  { %v2914_v7 = vld [vmem:[%s4513_s3] sm:$0x3]  ;;  %v2924_v10 = vld [vmem:[%s4513_s3 + $0x6] sm:$0x3]  ;;  %v2937_v15 = vld [vmem:[%s4513_s3 + $0x2] sm:$0x3] }
   0x6   :  { %133 = vmatpush.msra.mxu1 %v2883_v2  ;;  %478 = vmatpush.msra.mxu0 %v2883_v2  ;;  %v2930_v12 = vld [vmem:[%s4518_s8] ss:$0 sm:$0xff]  ;;  %vm166_vm1 = vcmask 254976   ;;  %v2951_v31 = vld [vmem:[%s4513_s3 + $0xe] sm:$0x3]  ;;  %s2790_s18 = smov 48  }
   0x7   :  { %v2956_v32 = vld [vmem:[%s4513_s3 + $0xc] sm:$0x3]  ;;  %vm191_vm2 = vcmask 1041408   ;;  %s2791_s17 = smov 16   ;;  %s2792_s4 = smov 32   ;;  %vm285_vm3 = vcmask 130048  }
   0x8   :  { %134 = vmatpush.msra.mxu1 %v2891_v3  ;;  %479 = vmatpush.msra.mxu0 %v2891_v3  ;;  %vm287_vm4 = vcmask 392192   ;;  %vm292_vm5 = vcmask 654336   ;;  %s2793_s25 = smov 64   ;;  %vm368_vm10 = vcmask 523264   ;;  %s2794_s28 = smov 80  }
   0x9   :  { %2381 = vmatmul.msk.f32.vlgmr.msra.gmra.mxu1 %vm115_vm0, %v112_v4  ;;  %s2369_s22 = sshll.u32 %s4523_s13, 4  ;;  %s2370_s22 = int_to_ptr.hbm [resolvable:$true] %s2369_s22 }
  0x86   :  { %v136_v9 = vpop.f32.mrf.mxu1 }
  0x87   :  { %v143_v11 = vadd.f32 %v136_v9, %v2904_v5  ;;  %v141_v13 = vadd.f32 %v136_v9, %v2909_v6  ;;  %v139_v14 = vadd.f32 %v136_v9, %v2914_v7  ;;  %v144_v16 = vadd.f32 %v136_v9, %v2919_v8 }
  0x88   :  { %v142_v20 = vadd.f32 %v136_v9, %v2924_v10  ;;  %v140_v21 = vadd.f32 %v136_v9, %v2937_v15  ;;  %v146_v35 = vadd.f32 %v136_v9, %v2951_v31  ;;  %v145_v37 = vadd.f32 %v136_v9, %v2956_v32 }
  0x89   :  { %v151_v17 = vmax.f32 %v143_v11, 0.0  ;;  %v149_v18 = vmax.f32 %v141_v13, 0.0  ;;  %v147_v19 = vmax.f32 %v139_v14, 0.0  ;;  %v152_v25 = vmax.f32 %v144_v16, 0.0 }
  0x8a   :  { %v150_v29 = vmax.f32 %v142_v20, 0.0  ;;  %v148_v30 = vmax.f32 %v140_v21, 0.0  ;;  %v154_v40 = vmax.f32 %v146_v35, 0.0  ;;  %v153_v42 = vmax.f32 %v145_v37, 0.0 }
  0x8b   :  { %v162_v22 = vmul.f32 %v2930_v12, %v151_v17  ;;  %v160_v23 = vmul.f32 %v2930_v12, %v149_v18  ;;  %v158_v24 = vmul.f32 %v2930_v12, %v147_v19  ;;  %v163_v33 = vmul.f32 %v2930_v12, %v152_v25 }
  0x8c   :  { %v161_v34 = vmul.f32 %v2930_v12, %v150_v29  ;;  %v159_v36 = vmul.f32 %v2930_v12, %v148_v30  ;;  %v165_v43 = vmul.f32 %v2930_v12, %v154_v40  ;;  %v164_v44 = vmul.f32 %v2930_v12, %v153_v42 }
  0x8d   :  { %v179_v26 = vsel %vm166_vm1, %v162_v22, 0.0  ;;  %v173_v27 = vsel %vm166_vm1, %v160_v23, 0.0  ;;  %v167_v28 = vsel %vm166_vm1, %v158_v24, 0.0  ;;  %v182_v38 = vsel %vm166_vm1, %v163_v33, 0.0 }
  0x8e   :  { %180 = vadd.xlane.f32.xlu2 %v179_v26  ;;  %174 = vadd.xlane.f32.xlu1 %v173_v27  ;;  %v176_v39 = vsel %vm166_vm1, %v161_v34, 0.0  ;;  %v170_v41 = vsel %vm166_vm1, %v159_v36, 0.0  ;;  %v188_v45 = vsel %vm166_vm1, %v165_v43, 0.0  ;;  %v185_v46 = vsel %vm166_vm1, %v164_v44, 0.0 }
  0x8f   :  { %168 = vadd.xlane.f32.xlu0 %v167_v28 }
  0x96   :  { %183 = vadd.xlane.f32.xlu2 %v182_v38  ;;  %177 = vadd.xlane.f32.xlu1 %v176_v39 }
  0x97   :  { %171 = vadd.xlane.f32.xlu0 %v170_v41 }
  0x9e   :  { %189 = vadd.xlane.f32.xlu1 %v188_v45 }
  0x9f   :  { %186 = vadd.xlane.f32.xlu0 %v185_v46 }
  0xb3   :  { %282 = vrot.lane.b32.xlu0 %v112_v4, %s2790_s18 }
 0x101   :  { %v175_v47 = vpop.xlane.xlu1 %174  ;;  %v181_v48 = vpop.xlane.xlu2 %180 }
 0x102   :  { %v169_v49 = vpop.xlane.xlu0 %168  ;;  %v196_v55 = vsel %vm191_vm2, %v181_v48, -inf  ;;  %v194_v62 = vsel %vm191_vm2, %v175_v47, -inf }
 0x103   :  { %v192_v56 = vsel %vm191_vm2, %v169_v49, -inf }
 0x104   :  { %v197_v9 = vmax.f32 %v192_v56, %v196_v55  ;;  %v2992_v55 = vld [vmem:[%s4519_s9 + $0x40] sm:$0xff] }
 0x109   :  { %v178_v50 = vpop.xlane.xlu1 %177  ;;  %v184_v52 = vpop.xlane.xlu2 %183 }
 0x10a   :  { %v172_v51 = vpop.xlane.xlu0 %171  ;;  %v198_v53 = vsel %vm191_vm2, %v184_v52, -inf  ;;  %v195_v58 = vsel %vm191_vm2, %v178_v50, -inf }
 0x10b   :  { %v193_v54 = vsel %vm191_vm2, %v172_v51, -inf }
 0x10c   :  { %v199_v59 = vmax.f32 %v193_v54, %v198_v53  ;;  %v2987_v54 = vld [vmem:[%s4519_s9 + $0x48] sm:$0xff] }
 0x10d   :  { %302 = vmatpush.msrb.mxu1 %v2987_v54  ;;  %636 = vmatpush.msrb.mxu0 %v2987_v54 }
 0x10e   :  { %v204_v13 = vmax.f32 %v197_v9, %v199_v59  ;;  %v3034_v9 = vld [vmem:[%s4512_s2] sm:$0x3] }
 0x10f   :  { %303 = vmatpush.msrb.mxu1 %v2992_v55  ;;  %637 = vmatpush.msrb.mxu0 %v2992_v55 }
 0x111   :  { %v190_v57 = vpop.xlane.xlu1 %189 }
 0x112   :  { %v202_v60 = vsel %vm191_vm2, %v190_v57, -inf  ;;  %v187_v61 = vpop.xlane.xlu0 %186 }
 0x113   :  { %v203_v63 = vmax.f32 %v195_v58, %v202_v60  ;;  %v200_v4 = vsel %vm191_vm2, %v187_v61, -inf  ;;  %v3000_v58 = vld [vmem:[%s4519_s9 + $0x38] sm:$0xff] }
 0x114   :  { %v201_v11 = vmax.f32 %v194_v62, %v200_v4  ;;  %304 = vmatpush.msrb.mxu1 %v3000_v58  ;;  %638 = vmatpush.msrb.mxu0 %v3000_v58  ;;  %v3015_v62 = vld [vmem:[%s4519_s9 + $0x28] sm:$0xff]  ;;  %v3029_v4 = vld [vmem:[%s4519_s9 + $0x18] sm:$0xff] }
 0x116   :  { %v205_v14 = vmax.f32 %v201_v11, %v203_v63  ;;  %v3022_v63 = vld [vmem:[%s4519_s9 + $0x20] sm:$0xff] }
 0x118   :  { %v206_v16 = vmax.f32 %v204_v13, %v205_v14  ;;  %v3041_v13 = vld [vmem:[%s4512_s2 + $0x2] sm:$0x3]  ;;  %v3046_v14 = vld [vmem:[%s4512_s2 + $0x4] sm:$0x3] }
 0x11a   :  { %v207_v17 = vsub.f32 %v169_v49, %v206_v16  ;;  %v208_v18 = vsub.f32 %v172_v51, %v206_v16  ;;  %v209_v19 = vsub.f32 %v175_v47, %v206_v16  ;;  %v210_v20 = vsub.f32 %v178_v50, %v206_v16 }
 0x11b   :  { %v211_v21 = vsub.f32 %v181_v48, %v206_v16  ;;  %v212_v25 = vsub.f32 %v184_v52, %v206_v16  ;;  %v213_v27 = vsub.f32 %v187_v61, %v206_v16  ;;  %v214_v29 = vsub.f32 %v190_v57, %v206_v16  ;;  %v3008_v61 = vld [vmem:[%s4519_s9 + $0x30] sm:$0xff] }
 0x11c   :  { %v215_v22 = vmul.f32 1.442695, %v207_v17  ;;  %v217_v23 = vmul.f32 1.442695, %v208_v18  ;;  %v219_v24 = vmul.f32 1.442695, %v209_v19  ;;  %305 = vmatpush.msrb.mxu1 %v3008_v61  ;;  %639 = vmatpush.msrb.mxu0 %v3008_v61 }
 0x11d   :  { %v221_v26 = vmul.f32 1.442695, %v210_v20  ;;  %v223_v28 = vmul.f32 1.442695, %v211_v21  ;;  %v225_v30 = vmul.f32 1.442695, %v212_v25 }
 0x11e   :  { %2463 = vpow2.f32 %v215_v22  ;;  %v227_v33 = vmul.f32 1.442695, %v213_v27  ;;  %v229_v36 = vmul.f32 1.442695, %v214_v29  ;;  %306 = vmatpush.msrb.mxu1 %v3015_v62  ;;  %640 = vmatpush.msrb.mxu0 %v3015_v62  ;;  %v3051_v16 = vld [vmem:[%s4519_s9 + $0x10] sm:$0xff]  ;;  %v3062_v22 = vld [vmem:[%s4519_s9 + $0x8] sm:$0xff] }
 0x11f   :  { %2465 = vpow2.f32 %v217_v23  ;;  %v3057_v20 = vld [vmem:[%s4512_s2 + $0x6] sm:$0x3]  ;;  %v3072_v27 = vld [vmem:[%s4512_s2 + $0x8] sm:$0x3] }
 0x120   :  { %2467 = vpow2.f32 %v219_v24  ;;  %307 = vmatpush.msrb.mxu1 %v3022_v63  ;;  %641 = vmatpush.msrb.mxu0 %v3022_v63 }
 0x121   :  { %2469 = vpow2.f32 %v221_v26 }
 0x122   :  { %2471 = vpow2.f32 %v223_v28  ;;  %308 = vmatpush.msrb.mxu1 %v3029_v4  ;;  %642 = vmatpush.msrb.mxu0 %v3029_v4 }
 0x123   :  { %2473 = vpow2.f32 %v225_v30 }
 0x124   :  { %v2464_v34 = vpop.eup %2463  ;;  %2475 = vpow2.f32 %v227_v33  ;;  %309 = vmatpush.msrb.mxu1 %v3051_v16  ;;  %643 = vmatpush.msrb.mxu0 %v3051_v16 }
 0x125   :  { %v2466_v35 = vpop.eup %2465  ;;  %v231_v37 = vsel %vm191_vm2, %v2464_v34, 0.0  ;;  %2477 = vpow2.f32 %v229_v36 }
 0x126   :  { %v2468_v38 = vpop.eup %2467  ;;  %v232_v39 = vsel %vm191_vm2, %v2466_v35, 0.0  ;;  %310 = vmatpush.msrb.mxu1 %v3062_v22  ;;  %644 = vmatpush.msrb.mxu0 %v3062_v22 }
 0x127   :  { %v2470_v40 = vpop.eup %2469  ;;  %v233_v41 = vadd.f32 %v232_v39, %v231_v37  ;;  %v234_v42 = vsel %vm191_vm2, %v2468_v38, 0.0  ;;  %v3090_v39 = vld [vmem:[%s4512_s2 + $0xc] sm:$0x3] }
 0x128   :  { %v2472_v43 = vpop.eup %2471  ;;  %v236_v45 = vsel %vm191_vm2, %v2470_v40, 0.0 }
 0x129   :  { %v235_v44 = vadd.f32 %v234_v42, %v233_v41  ;;  %v2474_v46 = vpop.eup %2473  ;;  %v238_v48 = vsel %vm191_vm2, %v2472_v43, 0.0 }
 0x12a   :  { %v2476_v49 = vpop.eup %2475  ;;  %v240_v51 = vsel %vm191_vm2, %v2474_v46, 0.0 }
 0x12b   :  { %v237_v47 = vadd.f32 %v236_v45, %v235_v44  ;;  %v2478_v52 = vpop.eup %2477  ;;  %v242_v56 = vsel %vm191_vm2, %v2476_v49, 0.0  ;;  %v3097_v44 = vld [vmem:[%s4512_s2 + $0xe] sm:$0x3] }
 0x12c   :  { %v244_v59 = vsel %vm191_vm2, %v2478_v52, 0.0 }
 0x12d   :  { %v239_v50 = vadd.f32 %v238_v48, %v237_v47 }
 0x12f   :  { %v241_v53 = vadd.f32 %v240_v51, %v239_v50 }
 0x131   :  { %v243_v57 = vadd.f32 %v242_v56, %v241_v53 }
 0x133   :  { %v245_v60 = vadd.f32 %v244_v59, %v243_v57  ;;  %v3109_v59 = vld [vmem:[%s4519_s9] sm:$0xff] }
 0x134   :  { %311 = vmatpush.msrb.mxu1 %v3109_v59  ;;  %645 = vmatpush.msrb.mxu0 %v3109_v59 }
 0x135   :  { %2479 = vrcp.f32 %v245_v60  ;;  %v113_v60 = vld [vmem:[%s4515_s5] sm:$0x3] }
 0x13b   :  { %v2480_v11 = vpop.eup %2479 }
 0x13c   :  { %v247_v17 = vmul.f32 %v2480_v11, %v2464_v34  ;;  %v248_v18 = vmul.f32 %v2480_v11, %v2466_v35  ;;  %v249_v19 = vmul.f32 %v2480_v11, %v2468_v38  ;;  %v250_v21 = vmul.f32 %v2480_v11, %v2470_v40  ;;  %v3082_v34 = vld [vmem:[%s4512_s2 + $0xa] sm:$0x3] }
 0x13d   :  { %v251_v23 = vmul.f32 %v2480_v11, %v2472_v43  ;;  %v252_v28 = vmul.f32 %v2480_v11, %v2474_v46  ;;  %v253_v36 = vmul.f32 %v2480_v11, %v2476_v49  ;;  %v254_v41 = vmul.f32 %v2480_v11, %v2478_v52  ;;  %v114_v11 = vld [vmem:[%s4511_s1] sm:$0x3] }
 0x13e   :  { %v255_v24 = vmul.f32 %v247_v17, %v3034_v9  ;;  %v256_v25 = vmul.f32 %v248_v18, %v3041_v13  ;;  %v257_v26 = vmul.f32 %v249_v19, %v3046_v14  ;;  %v258_v29 = vmul.f32 %v250_v21, %v3057_v20  ;;  %v283_v17 = vpop.permute.xlu0 %282 }
 0x13f   :  { %v259_v37 = vmul.f32 %v251_v23, %v3072_v27  ;;  %v260_v42 = vmul.f32 %v252_v28, %v3082_v34  ;;  %v261_v46 = vmul.f32 %v253_v36, %v3090_v39  ;;  %v262_v49 = vmul.f32 %v254_v41, %v3097_v44  ;;  %v3126_v23 = vld [vmem:[%s4520_s10] ss:$0 sm:$0xff] }
 0x140   :  { %v263_v30 = vsel %vm166_vm1, %v255_v24, 0.0  ;;  %v264_v33 = vsel %vm166_vm1, %v256_v25, 0.0  ;;  %v266_v38 = vsel %vm166_vm1, %v257_v26, 0.0  ;;  %v268_v43 = vsel %vm166_vm1, %v258_v29, 0.0 }
 0x141   :  { %v265_v35 = vadd.f32 %v264_v33, %v263_v30  ;;  %v270_v47 = vsel %vm166_vm1, %v259_v37, 0.0  ;;  %v272_v50 = vsel %vm166_vm1, %v260_v42, 0.0  ;;  %v274_v52 = vsel %vm166_vm1, %v261_v46, 0.0 }
 0x142   :  { %v276_v56 = vsel %vm166_vm1, %v262_v49, 0.0 }
 0x143   :  { %v267_v40 = vadd.f32 %v266_v38, %v265_v35 }
 0x145   :  { %v269_v45 = vadd.f32 %v268_v43, %v267_v40 }
 0x147   :  { %v271_v48 = vadd.f32 %v270_v47, %v269_v45 }
 0x149   :  { %v273_v51 = vadd.f32 %v272_v50, %v271_v48 }
 0x14b   :  { %v275_v53 = vadd.f32 %v274_v52, %v273_v51 }
 0x14d   :  { %v277_v57 = vadd.f32 %v276_v56, %v275_v53  ;;  %v3139_v53 = vld [vmem:[%s4521_s11 + $0x38] sm:$0xff]  ;;  %v3144_v56 = vld [vmem:[%s4521_s11 + $0x30] sm:$0xff] }
 0x14e   :  { %380 = vmatpush.msra.mxu2 %v3139_v53 }
 0x14f   :  { %279 = vrot.lane.b32.xlu2 %v277_v57, %s2791_s17 }
 0x150   :  { %381 = vmatpush.msra.mxu2 %v3144_v56 }
 0x157   :  { %337 = vrot.lane.b32.xlu2 %v113_v60, %s2792_s4  ;;  %v3156_v60 = vld [vmem:[%s4521_s11 + $0x20] sm:$0xff] }
 0x1a9   :  { %v280_v18 = vpop.permute.xlu2 %279 }
 0x1aa   :  { %v286_v19 = vsel %vm285_vm3, %v114_v11, %v280_v18  ;;  %v3162_v11 = vld [vmem:[%s4521_s11 + $0x18] sm:$0xff]  ;;  %v3174_v18 = vld [vmem:[%s4521_s11 + $0x8] sm:$0xff] }
 0x1ab   :  { %v288_v21 = vsel %vm287_vm4, %v286_v19, %v283_v17  ;;  %v3168_v17 = vld [vmem:[%s4521_s11 + $0x10] sm:$0xff] }
 0x1ac   :  { %2382 = vmatmul.msk.f32.vlgmr.msrb.gmra.mxu1 %vm292_vm5, %v288_v21  ;;  %4543 = vst [vmem:[#allocation5_spill] sm:$0xff] %v3168_v17 }
 0x1b1   :  { %v338_v48 = vpop.permute.xlu2 %337 }
 0x229   :  { %v313_v24 = vpop.f32.mrf.mxu1 }
 0x22a   :  { %v314_v25 = vadd.f32 %v3126_v23, %v313_v24  ;;  %v3182_v24 = vld [vmem:[%s4521_s11] sm:$0xff] }
 0x22c   :  { %2481 = vtanh.f32 %v314_v25  ;;  %v2383_v28 = vmul.f32 -1.442695, %v314_v25 }
 0x22e   :  { %2483 = vpow2.f32 %v2383_v28 }
 0x232   :  { %v2482_v26 = vpop.eup %2481 }
 0x233   :  { %342 = vrot.lane.b32.xlu1 %v2482_v26, %s2793_s25 }
 0x234   :  { %v2484_v29 = vpop.eup %2483 }
 0x235   :  { %v319_v30 = vadd.f32 1.0, %v2484_v29 }
 0x237   :  { %2485 = vrcp.f32 %v319_v30  ;;  %v331_v40 = vand.u32 2147483648, %v319_v30  ;;  %vm325_vm7 = vweird.f32 %v319_v30  ;;  %v329_v41 = vand.u32 2147483647, %v319_v30 }
 0x239   :  { %v332_v43 = vor.u32 1.1754944e-38, %v331_v40  ;;  %vm330_vm9 = vcmp.eq.f32.partialorder %v329_v41, 8.507059e+37 }
 0x23d   :  { %v2486_v33 = vpop.eup %2485 }
 0x23e   :  { %v321_v35 = vmul.f32 %v2486_v33, %v319_v30  ;;  %vm326_vm6 = vweird.f32 %v2486_v33 }
 0x23f   :  { %vm327_vm8 = vmor %vm325_vm7, %vm326_vm6 }
 0x240   :  { %v322_v36 = vsub.f32 1.0, %v321_v35 }
 0x242   :  { %v323_v37 = vmul.f32 %v2486_v33, %v322_v36 }
 0x244   :  { %v324_v38 = vadd.f32 %v2486_v33, %v323_v37 }
 0x246   :  { %v328_v42 = vsel %vm327_vm8, %v2486_v33, %v324_v38 }
 0x247   :  { %v333_v45 = vsel %vm330_vm9, %v332_v43, %v328_v42 }
 0x248   :  { %v340_v49 = vmul.f32 %v338_v48, %v333_v45 }
 0x2a5   :  { %v343_v46 = vpop.permute.xlu1 %342 }
 0x2a6   :  { %v345_v47 = vmul.f32 %v343_v46, %v333_v45 }
 0x2a8   :  { %347 = vrot.lane.b32.xlu0 %v345_v47, %s2792_s4 }
 0x2b0   :  { %361 = vrot.lane.b32.xlu0 %v277_v57, %s2792_s4  ;;  %v3150_v57 = vld [vmem:[%s4521_s11 + $0x28] sm:$0xff] }
 0x2b1   :  { %382 = vmatpush.msra.mxu2 %v3150_v57 }
 0x2b3   :  { %383 = vmatpush.msra.mxu2 %v3156_v60 }
 0x2b5   :  { %384 = vmatpush.msra.mxu2 %v3162_v11 }
 0x2b7   :  { %385 = vmatpush.msra.mxu2 %v3168_v17 }
 0x2b9   :  { %386 = vmatpush.msra.mxu2 %v3174_v18 }
 0x2bb   :  { %387 = vmatpush.msra.mxu2 %v3182_v24 }
 0x2bd   :  { %706 = vmatpush.msrb.mxu2 %v3139_v53 }
 0x2bf   :  { %707 = vmatpush.msrb.mxu2 %v3144_v56 }
 0x2c1   :  { %708 = vmatpush.msrb.mxu2 %v3150_v57 }
 0x2c3   :  { %709 = vmatpush.msrb.mxu2 %v3156_v60 }
 0x2c5   :  { %710 = vmatpush.msrb.mxu2 %v3162_v11 }
 0x2c7   :  { %711 = vmatpush.msrb.mxu2 %v3168_v17 }
 0x2c9   :  { %712 = vmatpush.msrb.mxu2 %v3174_v18 }
 0x2cb   :  { %713 = vmatpush.msrb.mxu2 %v3182_v24 }
 0x31a   :  { %v348_v50 = vpop.permute.xlu0 %347 }
 0x31b   :  { %v3132_v51 = vadd.f32 %v348_v50, %v340_v49 }
 0x31d   :  { %2487 = vtanh.f32 %v3132_v51 }
 0x322   :  { %v362_v25 = vpop.permute.xlu0 %361 }
 0x323   :  { %v2488_v52 = vpop.eup %2487 }
 0x324   :  { %353 = vrot.lane.b32.xlu2 %v2488_v52, %s2793_s25 }
 0x37e   :  { %v354_v19 = vpop.permute.xlu2 %353 }
 0x37f   :  { %v356_v21 = vmul.f32 %v354_v19, %v333_v45 }
 0x381   :  { %358 = vrot.lane.b32.xlu1 %v356_v21, %s2792_s4 }
 0x3f3   :  { %v359_v26 = vpop.permute.xlu1 %358 }
 0x3f4   :  { %2388 = vmatmul.msk.f32.vlgmr.msra.gmra.mxu0 %vm115_vm0, %v359_v26  ;;  %v364_v28 = vsel %vm115_vm0, %v359_v26, %v362_v25 }
 0x3f5   :  { %2384 = vmatmul.msk.f32.vlgmr.msra.gmra.mxu2 %vm368_vm10, %v364_v28  ;;  %1032 = vmatpush.msra.mxu0 %v3139_v53 }
 0x3f6   :  { %802 = vmatpush.msra.mxu2 %v2872_v0 }
 0x3f7   :  { %1033 = vmatpush.msra.mxu0 %v3144_v56 }
 0x3f8   :  { %803 = vmatpush.msra.mxu2 %v2877_v1  ;;  %v3213_v1 = vld [vmem:[%s4522_s12] ss:$0 sm:$0xff] }
 0x3f9   :  { %1034 = vmatpush.msra.mxu0 %v3150_v57  ;;  %4544 = vst [vmem:[#allocation6_spill] sm:$0xff] %v3213_v1 }
 0x3fa   :  { %804 = vmatpush.msra.mxu2 %v2883_v2 }
 0x3fb   :  { %1035 = vmatpush.msra.mxu0 %v3156_v60 }
 0x3fc   :  { %805 = vmatpush.msra.mxu2 %v2891_v3 }
 0x3fd   :  { %1036 = vmatpush.msra.mxu0 %v3162_v11 }
 0x3ff   :  { %1037 = vmatpush.msra.mxu0 %v3168_v17 }
 0x401   :  { %1038 = vmatpush.msra.mxu0 %v3174_v18 }
 0x403   :  { %1039 = vmatpush.msra.mxu0 %v3182_v24 }
 0x471   :  { %v3208_v0 = vpop.f32.mrf.mxu0 }
 0x472   :  { %v484_v2 = vadd.f32 %v3208_v0, %v2914_v7  ;;  %v487_v36 = vadd.f32 %v3208_v0, %v2924_v10  ;;  %v490_v40 = vadd.f32 %v3208_v0, %v2956_v32  ;;  %v102_v10 = vlaneseq }
 0x473   :  { %v485_v49 = vadd.f32 %v3208_v0, %v2937_v15  ;;  %v488_v25 = vadd.f32 %v3208_v0, %v2904_v5  ;;  %v3256_v5 = vld [vmem:[%s4516_s6 + $0x78] sm:$0xff] }
 0x474   :  { %v492_v33 = vmax.f32 %v484_v2, 0.0  ;;  %v495_v38 = vmax.f32 %v487_v36, 0.0  ;;  %v498_v42 = vmax.f32 %v490_v40, 0.0  ;;  %v3233_v46 = vand.u32 127, %v102_v10  ;;  %v3261_v36 = vld [vmem:[%s4516_s6 + $0x70] sm:$0xff]  ;;  %427 = vmatpush.msra.mxu3 %v3256_v5  ;;  %753 = vmatpush.msra.mxu1 %v3256_v5  ;;  %v3300_v10 = vld [vmem:[%s4516_s6 + $0x48] sm:$0xff] }
 0x475   :  { %v493_v19 = vmax.f32 %v485_v49, 0.0  ;;  %v496_v28 = vmax.f32 %v488_v25, 0.0  ;;  %v3310_v49 = vld [vmem:[%s4516_s6 + $0x40] sm:$0xff] }
 0x476   :  { %v500_v35 = vmul.f32 %v2930_v12, %v492_v33  ;;  %v503_v7 = vmul.f32 %v2930_v12, %v495_v38  ;;  %v506_v43 = vmul.f32 %v2930_v12, %v498_v42  ;;  %4546 = vst [vmem:[#allocation8_spill] sm:$0xff] %v3233_v46  ;;  %428 = vmatpush.msra.mxu3 %v3261_v36  ;;  %v3286_v42 = vld [vmem:[%s4516_s6 + $0x58] sm:$0xff]  ;;  %v3340_v25 = vld [vmem:[%s4516_s6 + $0x20] sm:$0xff] }
 0x477   :  { %v504_v2 = vmul.f32 %v2930_v12, %v496_v28  ;;  %754 = vmatpush.msra.mxu1 %v3261_v36  ;;  %v486_v38 = vadd.f32 %v3208_v0, %v2909_v6  ;;  %v3358_v28 = vld [vmem:[%s4516_s6 + $0x10] sm:$0xff] }
 0x478   :  { %v389_v29 = vpop.f32.mrf.mxu2  ;;  %v508_v37 = vsel %vm166_vm1, %v500_v35, 0.0  ;;  %v517_v41 = vsel %vm166_vm1, %v503_v7, 0.0  ;;  %v526_v45 = vsel %vm166_vm1, %v506_v43, 0.0  ;;  %v3277_v7 = vld [vmem:[%s4516_s6 + $0x60] sm:$0xff] }
 0x479   :  { %v3218_v3 = vadd.f32 %v3213_v1, %v389_v29  ;;  %v491_v29 = vadd.f32 %v3208_v0, %v2951_v31  ;;  %v520_v15 = vsel %vm166_vm1, %v504_v2, 0.0  ;;  %v494_v43 = vmax.f32 %v486_v38, 0.0  ;;  %v3363_v2 = vld [vmem:[%s4516_s6 + $0x8] sm:$0xff] }
 0x47b   :  { %4545 = vst [vmem:[#allocation7_spill] sm:$0xff] %v3218_v3  ;;  %v392_v30 = vsel %vm191_vm2, %v3218_v3, -inf }
 0x47c   :  { %393 = vmax.xlane.f32.xlu2 %v392_v30  ;;  %v499_v30 = vmax.f32 %v491_v29, 0.0  ;;  %v3370_v29 = vld [vmem:[%s4516_s6] sm:$0xff] }
 0x47e   :  { %v507_v33 = vmul.f32 %v2930_v12, %v499_v30 }
 0x480   :  { %v529_v35 = vsel %vm166_vm1, %v507_v33, 0.0 }
 0x484   :  { %509 = vadd.xlane.f32.xlu2 %v508_v37  ;;  %v3268_v37 = vld [vmem:[%s4516_s6 + $0x68] sm:$0xff] }
 0x485   :  { %429 = vmatpush.msra.mxu3 %v3268_v37  ;;  %755 = vmatpush.msra.mxu1 %v3268_v37 }
 0x487   :  { %430 = vmatpush.msra.mxu3 %v3277_v7  ;;  %756 = vmatpush.msra.mxu1 %v3277_v7 }
 0x489   :  { %431 = vmatpush.msra.mxu3 %v3286_v42  ;;  %757 = vmatpush.msra.mxu1 %v3286_v42 }
 0x48c   :  { %518 = vadd.xlane.f32.xlu2 %v517_v41 }
 0x494   :  { %527 = vadd.xlane.f32.xlu2 %v526_v45  ;;  %v3294_v45 = vld [vmem:[%s4516_s6 + $0x50] sm:$0xff] }
 0x495   :  { %432 = vmatpush.msra.mxu3 %v3294_v45  ;;  %758 = vmatpush.msra.mxu1 %v3294_v45 }
 0x497   :  { %433 = vmatpush.msra.mxu3 %v3300_v10  ;;  %759 = vmatpush.msra.mxu1 %v3300_v10 }
 0x499   :  { %434 = vmatpush.msra.mxu3 %v3310_v49  ;;  %760 = vmatpush.msra.mxu1 %v3310_v49 }
 0x4ac   :  { %622 = vrot.lane.b32.xlu2 %v356_v21, %s2794_s28  ;;  %v501_v21 = vmul.f32 %v2930_v12, %v493_v19  ;;  %v3332_v19 = vld [vmem:[%s4516_s6 + $0x28] sm:$0xff] }
 0x4ae   :  { %v511_v26 = vsel %vm166_vm1, %v501_v21, 0.0 }
 0x4ef   :  { %v3235_v47 = vpop.xlane.xlu2 %393 }
 0x4f0   :  { %4547 = vst [vmem:[#allocation9_spill] sm:$0xff] %v3235_v47  ;;  %vm407_vm11 = vcmp.eq.f32.partialorder %v3218_v3, %v3235_v47 }
 0x4f1   :  { %v408_v32 = vsel %vm407_vm11, %v3233_v46, 128 }
 0x4f2   :  { %v409_v48 = vsel %vm191_vm2, %v408_v32, 2147483647  ;;  %v502_v32 = vmul.f32 %v2930_v12, %v494_v43 }
 0x4f3   :  { %v411_v50 = vshra.s32 %v409_v48, 16  ;;  %v410_v31 = vand.u32 65535, %v409_v48  ;;  %v489_v48 = vadd.f32 %v3208_v0, %v2919_v8 }
 0x4f4   :  { %v514_v8 = vsel %vm166_vm1, %v502_v32, 0.0 }
 0x4f5   :  { %v413_v52 = vcvt.s32.f32 %v411_v50  ;;  %v412_v41 = vcvt.s32.f32 %v410_v31  ;;  %v3317_v50 = vld [vmem:[%s4516_s6 + $0x38] sm:$0xff]  ;;  %v497_v0 = vmax.f32 %v489_v48, 0.0 }
 0x4f6   :  { %435 = vmatpush.msra.mxu3 %v3317_v50  ;;  %761 = vmatpush.msra.mxu1 %v3317_v50 }
 0x4f7   :  { %414 = vmin.xlane.f32.xlu1 %v413_v52  ;;  %v505_v21 = vmul.f32 %v2930_v12, %v497_v0 }
 0x4f9   :  { %v523_v12 = vsel %vm166_vm1, %v505_v21, 0.0 }
 0x4ff   :  { %512 = vadd.xlane.f32.xlu1 %v511_v26  ;;  %v3347_v26 = vld [vmem:[%s4516_s6 + $0x18] sm:$0xff] }
 0x507   :  { %521 = vadd.xlane.f32.xlu1 %v520_v15 }
 0x50f   :  { %530 = vadd.xlane.f32.xlu1 %v529_v35 }
 0x56a   :  { %v3281_v40 = vpop.xlane.xlu1 %414 }
 0x56b   :  { %vm416_vm12 = vcmp.eq.f32.partialorder %v413_v52, %v3281_v40  ;;  %v3325_v52 = vld [vmem:[%s4516_s6 + $0x30] sm:$0xff] }
 0x56c   :  { %v417_v6 = vsel %vm416_vm12, %v412_v41, inf  ;;  %436 = vmatpush.msra.mxu3 %v3325_v52  ;;  %762 = vmatpush.msra.mxu1 %v3325_v52 }
 0x56d   :  { %418 = vmin.xlane.f32.xlu0 %v417_v6 }
 0x56e   :  { %437 = vmatpush.msra.mxu3 %v3332_v19  ;;  %763 = vmatpush.msra.mxu1 %v3332_v19 }
 0x570   :  { %438 = vmatpush.msra.mxu3 %v3340_v25  ;;  %764 = vmatpush.msra.mxu1 %v3340_v25 }
 0x572   :  { %439 = vmatpush.msra.mxu3 %v3347_v26  ;;  %765 = vmatpush.msra.mxu1 %v3347_v26 }
 0x574   :  { %440 = vmatpush.msra.mxu3 %v3358_v28  ;;  %766 = vmatpush.msra.mxu1 %v3358_v28 }
 0x575   :  { %515 = vadd.xlane.f32.xlu0 %v514_v8 }
 0x576   :  { %441 = vmatpush.msra.mxu3 %v3363_v2  ;;  %767 = vmatpush.msra.mxu1 %v3363_v2 }
 0x578   :  { %442 = vmatpush.msra.mxu3 %v3370_v29  ;;  %768 = vmatpush.msra.mxu1 %v3370_v29 }
 0x57a   :  { %962 = vmatpush.msrb.mxu3 %v2987_v54  ;;  %1288 = vmatpush.msrb.mxu1 %v2987_v54  ;;  %v510_v54 = vpop.xlane.xlu2 %509 }
 0x57b   :  { %v532_v43 = vsel %vm191_vm2, %v510_v54, -inf }
 0x57c   :  { %963 = vmatpush.msrb.mxu3 %v2992_v55  ;;  %1289 = vmatpush.msrb.mxu1 %v2992_v55  ;;  %v513_v55 = vpop.xlane.xlu1 %512 }
 0x57d   :  { %524 = vadd.xlane.f32.xlu0 %v523_v12  ;;  %v533_v48 = vsel %vm191_vm2, %v513_v55, -inf }
 0x57e   :  { %964 = vmatpush.msrb.mxu3 %v3000_v58  ;;  %1290 = vmatpush.msrb.mxu1 %v3000_v58  ;;  %v421_v58 = vcvt.f32.s32 %v3281_v40 }
 0x580   :  { %965 = vmatpush.msrb.mxu3 %v3008_v61  ;;  %1291 = vmatpush.msrb.mxu1 %v3008_v61 }
 0x582   :  { %966 = vmatpush.msrb.mxu3 %v3015_v62  ;;  %1292 = vmatpush.msrb.mxu1 %v3015_v62  ;;  %v422_v62 = vshll.u32 %v421_v58, 16 }
 0x584   :  { %967 = vmatpush.msrb.mxu3 %v3022_v63  ;;  %1293 = vmatpush.msrb.mxu1 %v3022_v63  ;;  %v522_v15 = vpop.xlane.xlu1 %521 }
 0x585   :  { %v536_v38 = vsel %vm191_vm2, %v522_v15, -inf }
 0x586   :  { %968 = vmatpush.msrb.mxu3 %v3029_v4  ;;  %1294 = vmatpush.msrb.mxu1 %v3029_v4  ;;  %v519_v4 = vpop.xlane.xlu2 %518  ;;  %v537_v0 = vmax.f32 %v532_v43, %v536_v38 }
 0x587   :  { %v535_v32 = vsel %vm191_vm2, %v519_v4, -inf }
 0x588   :  { %969 = vmatpush.msrb.mxu3 %v3051_v16  ;;  %1295 = vmatpush.msrb.mxu1 %v3051_v16  ;;  %v4524_v16 = vmov 1.0  }
 0x58a   :  { %970 = vmatpush.msrb.mxu3 %v3062_v22  ;;  %1296 = vmatpush.msrb.mxu1 %v3062_v22 }
 0x58c   :  { %971 = vmatpush.msrb.mxu3 %v3109_v59  ;;  %1297 = vmatpush.msrb.mxu1 %v3109_v59  ;;  %v531_v33 = vpop.xlane.xlu1 %530 }
 0x58d   :  { %v542_v40 = vsel %vm191_vm2, %v531_v33, -inf }
 0x58e   :  { %v528_v59 = vpop.xlane.xlu2 %527  ;;  %v543_v21 = vmax.f32 %v535_v32, %v542_v40 }
 0x58f   :  { %v540_v31 = vsel %vm191_vm2, %v528_v59, -inf }
 0x5e0   :  { %v419_v61 = vpop.xlane.xlu0 %418 }
 0x5e1   :  { %v420_v63 = vcvt.f32.s32 %v419_v61 }
 0x5e3   :  { %v423_v30 = vadd.s32 %v422_v62, %v420_v63 }
 0x5e5   :  { %vm424_vm13 = vcmp.eq.s32.totalorder %v3233_v46, %v423_v30 }
 0x5e6   :  { %2386 = vmatmul.msk.f32.vlgmr.msra.gmra.mxu3 %vm424_vm13, %v4524_v16 }
 0x5e7   :  { %1358 = vmatpush.msra.mxu3 %v3139_v53 }
 0x5e8   :  { %v516_v22 = vpop.xlane.xlu0 %515 }
 0x5e9   :  { %1359 = vmatpush.msra.mxu3 %v3144_v56  ;;  %v534_v35 = vsel %vm191_vm2, %v516_v22, -inf }
 0x5ea   :  { %v541_v41 = vmax.f32 %v534_v35, %v540_v31 }
 0x5eb   :  { %1360 = vmatpush.msra.mxu3 %v3150_v57 }
 0x5ec   :  { %v545_v58 = vmax.f32 %v541_v41, %v543_v21 }
 0x5ed   :  { %1361 = vmatpush.msra.mxu3 %v3156_v60 }
 0x5ef   :  { %1362 = vmatpush.msra.mxu3 %v3162_v11 }
 0x5f0   :  { %v525_v6 = vpop.xlane.xlu0 %524 }
 0x5f1   :  { %v538_v8 = vsel %vm191_vm2, %v525_v6, -inf  ;;  %1363 = vmatpush.msra.mxu3 %v3168_v17 }
 0x5f2   :  { %v539_v12 = vmax.f32 %v533_v48, %v538_v8 }
 0x5f3   :  { %1364 = vmatpush.msra.mxu3 %v3174_v18 }
 0x5f4   :  { %v544_v61 = vmax.f32 %v537_v0, %v539_v12 }
 0x5f5   :  { %1365 = vmatpush.msra.mxu3 %v3182_v24 }
 0x5f6   :  { %v546_v62 = vmax.f32 %v544_v61, %v545_v58  ;;  %v447_v61 = vld [vmem:[%s4510_s0 + $0x1] sm:$0x1] }
 0x5f7   :  { %2427 = vpush %v447_v61 }
 0x5f8   :  { %v547_v63 = vsub.f32 %v510_v54, %v546_v62  ;;  %v548_v30 = vsub.f32 %v513_v55, %v546_v62  ;;  %v549_v35 = vsub.f32 %v516_v22, %v546_v62  ;;  %v550_v31 = vsub.f32 %v519_v4, %v546_v62 }
 0x5f9   :  { %v551_v16 = vsub.f32 %v522_v15, %v546_v62  ;;  %v552_v1 = vsub.f32 %v525_v6, %v546_v62  ;;  %v553_v38 = vsub.f32 %v528_v59, %v546_v62  ;;  %v554_v41 = vsub.f32 %v531_v33, %v546_v62 }
 0x5fa   :  { %v555_v3 = vmul.f32 1.442695, %v547_v63  ;;  %v557_v47 = vmul.f32 1.442695, %v548_v30  ;;  %v559_v46 = vmul.f32 1.442695, %v549_v35 }
 0x5fb   :  { %v561_v17 = vmul.f32 1.442695, %v550_v31  ;;  %v563_v40 = vmul.f32 1.442695, %v551_v16  ;;  %v565_v43 = vmul.f32 1.442695, %v552_v1 }
 0x5fc   :  { %2489 = vpow2.f32 %v555_v3  ;;  %v567_v32 = vmul.f32 1.442695, %v553_v38  ;;  %v569_v4 = vmul.f32 1.442695, %v554_v41  ;;  %v455_v63 = vsub.f32 1.0, %v447_v61 }
 0x5fd   :  { %2491 = vpow2.f32 %v557_v47 }
 0x5fe   :  { %2493 = vpow2.f32 %v559_v46  ;;  %2429 = vpush %v455_v63 }
 0x5ff   :  { %2495 = vpow2.f32 %v561_v17 }
 0x600   :  { %2497 = vpow2.f32 %v563_v40 }
 0x601   :  { %2499 = vpow2.f32 %v565_v43 }
 0x602   :  { %v2490_v54 = vpop.eup %2489  ;;  %2501 = vpow2.f32 %v567_v32 }
 0x603   :  { %v2492_v55 = vpop.eup %2491  ;;  %v571_v15 = vsel %vm191_vm2, %v2490_v54, 0.0  ;;  %2503 = vpow2.f32 %v569_v4 }
 0x604   :  { %v2494_v22 = vpop.eup %2493  ;;  %v572_v6 = vsel %vm191_vm2, %v2492_v55, 0.0 }
 0x605   :  { %v2496_v48 = vpop.eup %2495  ;;  %v573_v3 = vadd.f32 %v572_v6, %v571_v15  ;;  %v574_v47 = vsel %vm191_vm2, %v2494_v22, 0.0 }
 0x606   :  { %v2498_v46 = vpop.eup %2497  ;;  %v576_v1 = vsel %vm191_vm2, %v2496_v48, 0.0 }
 0x607   :  { %v575_v17 = vadd.f32 %v574_v47, %v573_v3  ;;  %v2500_v16 = vpop.eup %2499  ;;  %v578_v33 = vsel %vm191_vm2, %v2498_v46, 0.0 }
 0x608   :  { %v2502_v8 = vpop.eup %2501  ;;  %v580_v21 = vsel %vm191_vm2, %v2500_v16, 0.0 }
 0x609   :  { %v577_v59 = vadd.f32 %v576_v1, %v575_v17  ;;  %v2504_v12 = vpop.eup %2503  ;;  %v582_v62 = vsel %vm191_vm2, %v2502_v8, 0.0 }
 0x60a   :  { %v584_v35 = vsel %vm191_vm2, %v2504_v12, 0.0 }
 0x60b   :  { %v579_v0 = vadd.f32 %v578_v33, %v577_v59 }
 0x60d   :  { %v581_v58 = vadd.f32 %v580_v21, %v579_v0 }
 0x60f   :  { %v583_v30 = vadd.f32 %v582_v62, %v581_v58 }
 0x611   :  { %v585_v31 = vadd.f32 %v584_v35, %v583_v30 }
 0x613   :  { %2505 = vrcp.f32 %v585_v31 }
 0x619   :  { %v2506_v38 = vpop.eup %2505 }
 0x61a   :  { %v587_v40 = vmul.f32 %v2506_v38, %v2490_v54  ;;  %v588_v41 = vmul.f32 %v2506_v38, %v2492_v55  ;;  %v589_v43 = vmul.f32 %v2506_v38, %v2494_v22  ;;  %v590_v32 = vmul.f32 %v2506_v38, %v2496_v48 }
 0x61b   :  { %v591_v4 = vmul.f32 %v2506_v38, %v2498_v46  ;;  %v592_v47 = vmul.f32 %v2506_v38, %v2500_v16  ;;  %v593_v0 = vmul.f32 %v2506_v38, %v2502_v8  ;;  %v594_v48 = vmul.f32 %v2506_v38, %v2504_v12 }
 0x61c   :  { %v595_v15 = vmul.f32 %v587_v40, %v3034_v9  ;;  %v596_v6 = vmul.f32 %v588_v41, %v3041_v13  ;;  %v597_v3 = vmul.f32 %v589_v43, %v3046_v14  ;;  %v598_v17 = vmul.f32 %v590_v32, %v3057_v20  ;;  %v623_v40 = vpop.permute.xlu2 %622  ;;  %v3452_v32 = vld [vmem:[%s4517_s7 + $0x18] sm:$0xff] }
 0x61d   :  { %v599_v54 = vmul.f32 %v591_v4, %v3072_v27  ;;  %v600_v9 = vmul.f32 %v592_v47, %v3082_v34  ;;  %v601_v46 = vmul.f32 %v593_v0, %v3090_v39  ;;  %v602_v21 = vmul.f32 %v594_v48, %v3097_v44  ;;  %v2387_v34 = vld [vmem:[%s4511_s1 + $0x2] sm:$0x3]  ;;  %v3458_v4 = vld [vmem:[%s4517_s7 + $0x10] sm:$0xff] }
 0x61e   :  { %v603_v1 = vsel %vm166_vm1, %v595_v15, 0.0  ;;  %v604_v59 = vsel %vm166_vm1, %v596_v6, 0.0  ;;  %v606_v55 = vsel %vm166_vm1, %v597_v3, 0.0  ;;  %v608_v13 = vsel %vm166_vm1, %v598_v17, 0.0  ;;  %v3464_v15 = vld [vmem:[%s4517_s7 + $0x8] sm:$0xff]  ;;  %v3470_v6 = vld [vmem:[%s4517_s7] sm:$0xff] }
 0x61f   :  { %v605_v33 = vadd.f32 %v604_v59, %v603_v1  ;;  %v610_v20 = vsel %vm166_vm1, %v599_v54, 0.0  ;;  %v612_v8 = vsel %vm166_vm1, %v600_v9, 0.0  ;;  %v614_v27 = vsel %vm166_vm1, %v601_v46, 0.0 }
 0x620   :  { %v616_v12 = vsel %vm166_vm1, %v602_v21, 0.0 }
 0x621   :  { %v607_v22 = vadd.f32 %v606_v55, %v605_v33 }
 0x623   :  { %v609_v14 = vadd.f32 %v608_v13, %v607_v22 }
 0x625   :  { %v611_v16 = vadd.f32 %v610_v20, %v609_v14 }
 0x627   :  { %v613_v58 = vadd.f32 %v612_v8, %v611_v16 }
 0x628   :  { %s2428_s16 = spop %2427 }
 0x629   :  { %v615_v61 = vadd.f32 %v614_v27, %v613_v58  ;;  %v452_v39 = vstv %s2428_s16 }
 0x62a   :  { %v454_v30 = vmul.f32 %v2387_v34, %v452_v39 }
 0x62b   :  { %v617_v62 = vadd.f32 %v616_v12, %v615_v61 }
 0x62d   :  { %619 = vrot.lane.b32.xlu0 %v617_v62, %s2791_s17 }
 0x62f   :  { %s2430_s18 = spop %2429 }
 0x630   :  { %v458_v63 = vstv %s2430_s18 }
 0x669   :  { %v444_v44 = vpop.f32.mrf.mxu3 }
 0x66a   :  { %v460_v35 = vmul.f32 %v458_v63, %v444_v44 }
 0x66c   :  { %v461_v31 = vadd.f32 %v460_v35, %v454_v30 }
 0x69f   :  { %v620_v38 = vpop.permute.xlu0 %619 }
 0x6a0   :  { %v625_v41 = vsel %vm285_vm3, %v461_v31, %v620_v38 }
 0x6a1   :  { %v626_v43 = vsel %vm287_vm4, %v625_v41, %v623_v40  ;;  %v4552_v40 = vld [vmem:[#allocation8_spill] sm:$0xff] }
 0x6a2   :  { %2389 = vmatmul.msk.f32.vlgmr.msrb.gmra.mxu0 %vm292_vm5, %v626_v43 }
 0x6a3   :  { %1128 = vmatpush.msrb.mxu0 %v3452_v32 }
 0x6a5   :  { %1129 = vmatpush.msrb.mxu0 %v3458_v4 }
 0x6a7   :  { %1130 = vmatpush.msrb.mxu0 %v3464_v15 }
 0x6a9   :  { %1131 = vmatpush.msrb.mxu0 %v3470_v6 }
 0x71f   :  { %v647_v3 = vpop.f32.mrf.mxu0 }
 0x720   :  { %v648_v47 = vadd.f32 %v3126_v23, %v647_v3  ;;  %v3554_v3 = vld [vmem:[%s4513_s3 + $0x2] sm:$0x3] }
 0x722   :  { %2507 = vtanh.f32 %v648_v47  ;;  %v2390_v1 = vmul.f32 -1.442695, %v648_v47 }
 0x724   :  { %2509 = vpow2.f32 %v2390_v1 }
 0x728   :  { %v2508_v17 = vpop.eup %2507 }
 0x729   :  { %672 = vrot.lane.b32.xlu1 %v2508_v17, %s2793_s25 }
 0x72a   :  { %v2510_v59 = vpop.eup %2509 }
 0x72b   :  { %v653_v33 = vadd.f32 1.0, %v2510_v59 }
 0x72d   :  { %2511 = vrcp.f32 %v653_v33  ;;  %v665_v9 = vand.u32 2147483648, %v653_v33  ;;  %vm659_vm15 = vweird.f32 %v653_v33  ;;  %v663_v23 = vand.u32 2147483647, %v653_v33 }
 0x72f   :  { %v666_v14 = vor.u32 1.1754944e-38, %v665_v9  ;;  %vm664_vm7 = vcmp.eq.f32.partialorder %v663_v23, 8.507059e+37  ;;  %v3569_v9 = vld [vmem:[%s4513_s3 + $0xe] sm:$0x3] }
 0x731   :  { %691 = vrot.lane.b32.xlu1 %v617_v62, %s2792_s4 }
 0x733   :  { %v2512_v0 = vpop.eup %2511 }
 0x734   :  { %v655_v54 = vmul.f32 %v2512_v0, %v653_v33  ;;  %vm660_vm14 = vweird.f32 %v2512_v0 }
 0x735   :  { %vm661_vm6 = vmor %vm659_vm15, %vm660_vm14 }
 0x736   :  { %v656_v55 = vsub.f32 1.0, %v655_v54 }
 0x738   :  { %v657_v22 = vmul.f32 %v2512_v0, %v656_v55 }
 0x73a   :  { %v658_v48 = vadd.f32 %v2512_v0, %v657_v22 }
 0x73c   :  { %v662_v13 = vsel %vm661_vm6, %v2512_v0, %v658_v48  ;;  %v3561_v0 = vld [vmem:[%s4513_s3 + $0x8] sm:$0x3] }
 0x73d   :  { %v667_v20 = vsel %vm664_vm7, %v666_v14, %v662_v13 }
 0x73e   :  { %v670_v21 = vmul.f32 %v667_v20, %v3132_v51  ;;  %v4548_v51 = vld [vmem:[#allocation5_spill] sm:$0xff] }
 0x79b   :  { %v673_v46 = vpop.permute.xlu1 %672 }
 0x79c   :  { %v675_v16 = vmul.f32 %v673_v46, %v667_v20 }
 0x79e   :  { %677 = vrot.lane.b32.xlu0 %v675_v16, %s2792_s4 }
 0x7a3   :  { %v692_v62 = vpop.permute.xlu1 %691 }
 0x810   :  { %v678_v8 = vpop.permute.xlu0 %677 }
 0x811   :  { %v3478_v58 = vadd.f32 %v678_v8, %v670_v21  ;;  %v3578_v21 = vld [vmem:[%s4513_s3 + $0x4] sm:$0x3] }
 0x813   :  { %2513 = vtanh.f32 %v3478_v58 }
 0x819   :  { %v2514_v27 = vpop.eup %2513 }
 0x81a   :  { %683 = vrot.lane.b32.xlu2 %v2514_v27, %s2793_s25 }
 0x874   :  { %v684_v61 = vpop.permute.xlu2 %683 }
 0x875   :  { %v686_v12 = vmul.f32 %v684_v61, %v667_v20 }
 0x877   :  { %688 = vrot.lane.b32.xlu0 %v686_v12, %s2792_s4 }
 0x8e9   :  { %v689_v34 = vpop.permute.xlu0 %688 }
 0x8ea   :  { %v694_v39 = vsel %vm115_vm0, %v689_v34, %v692_v62 }
 0x8eb   :  { %2391 = vmatmul.msk.f32.vlgmr.msrb.gmra.mxu2 %vm368_vm10, %v694_v39  ;;  %v3585_v39 = vld [vmem:[%s4513_s3 + $0xa] sm:$0x3] }
 0x8ec   :  { %1079 = vmatpush.msrb.mxu2 %v3256_v5 }
 0x8ee   :  { %1080 = vmatpush.msrb.mxu2 %v3261_v36  ;;  %v4549_v36 = vld [vmem:[#allocation6_spill] sm:$0xff] }
 0x8f0   :  { %1081 = vmatpush.msrb.mxu2 %v3268_v37 }
 0x8f2   :  { %1082 = vmatpush.msrb.mxu2 %v3277_v7  ;;  %v3530_v7 = vld [vmem:[%s4518_s8] ss:$0 sm:$0xff] }
 0x8f3   :  { %2395 = vmatmul.msk.f32.vlgmr.msra.gmra.mxu2 %vm115_vm0, %v689_v34 }
 0x8f4   :  { %1083 = vmatpush.msrb.mxu2 %v3286_v42 }
 0x8f6   :  { %1084 = vmatpush.msrb.mxu2 %v3294_v45 }
 0x8f8   :  { %1085 = vmatpush.msrb.mxu2 %v3300_v10 }
 0x8fa   :  { %1086 = vmatpush.msrb.mxu2 %v3310_v49 }
 0x8fc   :  { %1087 = vmatpush.msrb.mxu2 %v3317_v50  ;;  %v3538_v50 = vld [vmem:[%s4513_s3 + $0xc] sm:$0x3] }
 0x8fe   :  { %1088 = vmatpush.msrb.mxu2 %v3325_v52 }
 0x900   :  { %1089 = vmatpush.msrb.mxu2 %v3332_v19 }
 0x902   :  { %1090 = vmatpush.msrb.mxu2 %v3340_v25 }
 0x904   :  { %1091 = vmatpush.msrb.mxu2 %v3347_v26 }
 0x906   :  { %1092 = vmatpush.msrb.mxu2 %v3358_v28 }
 0x908   :  { %1093 = vmatpush.msrb.mxu2 %v3363_v2 }
 0x90a   :  { %1094 = vmatpush.msrb.mxu2 %v3370_v29 }
 0x90c   :  { %1684 = vmatpush.msra.mxu2 %v3139_v53 }
 0x90e   :  { %1685 = vmatpush.msra.mxu2 %v3144_v56 }
 0x910   :  { %1686 = vmatpush.msra.mxu2 %v3150_v57  ;;  %v3518_v57 = vld [vmem:[%s4513_s3] sm:$0x3] }
 0x912   :  { %1687 = vmatpush.msra.mxu2 %v3156_v60 }
 0x914   :  { %1688 = vmatpush.msra.mxu2 %v3162_v11 }
 0x916   :  { %1689 = vmatpush.msra.mxu2 %v4548_v51 }
 0x918   :  { %1690 = vmatpush.msra.mxu2 %v3174_v18  ;;  %v3524_v18 = vld [vmem:[%s4513_s3 + $0x6] sm:$0x3] }
 0x91a   :  { %1691 = vmatpush.msra.mxu2 %v3182_v24 }
 0x96e   :  { %v715_v5 = vpop.f32.mrf.mxu2 }
 0x96f   :  { %v3511_v37 = vadd.f32 %v4549_v36, %v715_v5 }
 0x971   :  { %4550 = vst [vmem:[#allocation5_spill] sm:$0xff] %v3511_v37  ;;  %v718_v53 = vsel %vm191_vm2, %v3511_v37, -inf }
 0x972   :  { %719 = vmax.xlane.f32.xlu2 %v718_v53 }
 0x976   :  { %v807_v56 = vpop.f32.mrf.mxu2 }
 0x977   :  { %v810_v60 = vadd.f32 %v3518_v57, %v807_v56  ;;  %v813_v24 = vadd.f32 %v3524_v18, %v807_v56  ;;  %v816_v63 = vadd.f32 %v3538_v50, %v807_v56  ;;  %v811_v47 = vadd.f32 %v3554_v3, %v807_v56 }
 0x978   :  { %v814_v54 = vadd.f32 %v3561_v0, %v807_v56  ;;  %v817_v23 = vadd.f32 %v3569_v9, %v807_v56  ;;  %v812_v8 = vadd.f32 %v3578_v21, %v807_v56  ;;  %v815_v51 = vadd.f32 %v3585_v39, %v807_v56 }
 0x979   :  { %v818_v11 = vmax.f32 %v810_v60, 0.0  ;;  %v821_v10 = vmax.f32 %v813_v24, 0.0  ;;  %v824_v30 = vmax.f32 %v816_v63, 0.0  ;;  %v819_v59 = vmax.f32 %v811_v47, 0.0 }
 0x97a   :  { %v822_v22 = vmax.f32 %v814_v54, 0.0  ;;  %v825_v14 = vmax.f32 %v817_v23, 0.0  ;;  %v820_v62 = vmax.f32 %v812_v8, 0.0  ;;  %v823_v36 = vmax.f32 %v815_v51, 0.0  ;;  %v3646_v51 = vld [vmem:[%s4519_s9 + $0x10] sm:$0xff] }
 0x97b   :  { %v826_v42 = vmul.f32 %v3530_v7, %v818_v11  ;;  %v829_v49 = vmul.f32 %v3530_v7, %v821_v10  ;;  %v832_v35 = vmul.f32 %v3530_v7, %v824_v30  ;;  %v827_v33 = vmul.f32 %v3530_v7, %v819_v59  ;;  %v3615_v59 = vld [vmem:[%s4519_s9 + $0x30] sm:$0xff] }
 0x97c   :  { %v830_v48 = vmul.f32 %v3530_v7, %v822_v22  ;;  %v833_v46 = vmul.f32 %v3530_v7, %v825_v14  ;;  %v828_v34 = vmul.f32 %v3530_v7, %v820_v62  ;;  %v831_v53 = vmul.f32 %v3530_v7, %v823_v36  ;;  %v3624_v22 = vld [vmem:[%s4519_s9 + $0x28] sm:$0xff] }
 0x97d   :  { %v834_v45 = vsel %vm166_vm1, %v826_v42, 0.0  ;;  %v843_v44 = vsel %vm166_vm1, %v829_v49, 0.0  ;;  %v852_v31 = vsel %vm166_vm1, %v832_v35, 0.0  ;;  %v837_v55 = vsel %vm166_vm1, %v827_v33, 0.0  ;;  %v3596_v35 = vld [vmem:[%s4519_s9 + $0x48] sm:$0xff] }
 0x97e   :  { %835 = vadd.xlane.f32.xlu2 %v834_v45  ;;  %v846_v13 = vsel %vm166_vm1, %v830_v48, 0.0  ;;  %v855_v20 = vsel %vm166_vm1, %v833_v46, 0.0  ;;  %v840_v5 = vsel %vm166_vm1, %v828_v34, 0.0  ;;  %v849_v60 = vsel %vm166_vm1, %v831_v53, 0.0  ;;  %v3652_v36 = vld [vmem:[%s4519_s9 + $0x8] sm:$0xff] }
 0x97f   :  { %v4553_v56 = vmov 1.0  }
 0x986   :  { %844 = vadd.xlane.f32.xlu2 %v843_v44 }
 0x98e   :  { %853 = vadd.xlane.f32.xlu2 %v852_v31 }
 0x9a6   :  { %948 = vrot.lane.b32.xlu2 %v686_v12, %s2794_s28 }
 0x9e5   :  { %v3545_v38 = vpop.xlane.xlu2 %719 }
 0x9e6   :  { %4551 = vst [vmem:[#allocation6_spill] sm:$0xff] %v3545_v38  ;;  %vm733_vm8 = vcmp.eq.f32.partialorder %v3511_v37, %v3545_v38 }
 0x9e7   :  { %v734_v41 = vsel %vm733_vm8, %v4552_v40, 128 }
 0x9e8   :  { %v735_v43 = vsel %vm191_vm2, %v734_v41, 2147483647  ;;  %v3602_v41 = vld [vmem:[%s4519_s9 + $0x40] sm:$0xff] }
 0x9e9   :  { %v737_v17 = vshra.s32 %v735_v43, 16  ;;  %v736_v16 = vand.u32 65535, %v735_v43  ;;  %v3608_v43 = vld [vmem:[%s4519_s9 + $0x38] sm:$0xff] }
 0x9eb   :  { %v739_v1 = vcvt.s32.f32 %v737_v17  ;;  %v738_v61 = vcvt.s32.f32 %v736_v16  ;;  %v3634_v16 = vld [vmem:[%s4519_s9 + $0x20] sm:$0xff] }
 0x9ed   :  { %740 = vmin.xlane.f32.xlu0 %v739_v1 }
 0x9f1   :  { %v836_v11 = vpop.xlane.xlu2 %835 }
 0x9f5   :  { %838 = vadd.xlane.f32.xlu0 %v837_v55 }
 0x9f9   :  { %v845_v63 = vpop.xlane.xlu2 %844 }
 0x9fa   :  { %v861_v14 = vsel %vm191_vm2, %v845_v63, -inf }
 0x9fd   :  { %847 = vadd.xlane.f32.xlu0 %v846_v13  ;;  %v858_v13 = vsel %vm191_vm2, %v836_v11, -inf }
 0xa01   :  { %v854_v47 = vpop.xlane.xlu2 %853 }
 0xa02   :  { %v866_v33 = vsel %vm191_vm2, %v854_v47, -inf }
 0xa05   :  { %856 = vadd.xlane.f32.xlu0 %v855_v20 }
 0xa60   :  { %v741_v27 = vpop.xlane.xlu0 %740 }
 0xa61   :  { %vm742_vm9 = vcmp.eq.f32.partialorder %v739_v1, %v741_v27  ;;  %v747_v42 = vcvt.f32.s32 %v741_v27 }
 0xa62   :  { %v743_v12 = vsel %vm742_vm9, %v738_v61, inf }
 0xa63   :  { %744 = vmin.xlane.f32.xlu1 %v743_v12  ;;  %v748_v10 = vshll.u32 %v747_v42, 16  ;;  %v3640_v12 = vld [vmem:[%s4519_s9 + $0x18] sm:$0xff] }
 0xa68   :  { %v839_v24 = vpop.xlane.xlu0 %838 }
 0xa69   :  { %v859_v46 = vsel %vm191_vm2, %v839_v24, -inf }
 0xa6b   :  { %841 = vadd.xlane.f32.xlu1 %v840_v5 }
 0xa70   :  { %v848_v44 = vpop.xlane.xlu0 %847 }
 0xa71   :  { %v862_v54 = vsel %vm191_vm2, %v848_v44, -inf }
 0xa72   :  { %v863_v8 = vmax.f32 %v858_v13, %v862_v54 }
 0xa73   :  { %850 = vadd.xlane.f32.xlu1 %v849_v60 }
 0xa78   :  { %v857_v17 = vpop.xlane.xlu0 %856 }
 0xa79   :  { %v868_v55 = vsel %vm191_vm2, %v857_v17, -inf }
 0xa7a   :  { %v869_v27 = vmax.f32 %v861_v14, %v868_v55 }
 0xad6   :  { %v745_v45 = vpop.xlane.xlu1 %744 }
 0xad7   :  { %v746_v49 = vcvt.f32.s32 %v745_v45 }
 0xad9   :  { %v749_v30 = vadd.s32 %v748_v10, %v746_v49  ;;  %v3658_v49 = vld [vmem:[%s4519_s9] sm:$0xff] }
 0xadb   :  { %vm750_vm11 = vcmp.eq.s32.totalorder %v4552_v40, %v749_v30 }
 0xadc   :  { %2393 = vmatmul.msk.f32.vlgmr.msra.gmra.mxu1 %vm750_vm11, %v4553_v56 }
 0xadd   :  { %1614 = vmatpush.msra.mxu1 %v3596_v35 }
 0xade   :  { %v842_v31 = vpop.xlane.xlu1 %841 }
 0xadf   :  { %1615 = vmatpush.msra.mxu1 %v3602_v41  ;;  %v860_v1 = vsel %vm191_vm2, %v842_v31, -inf }
 0xae0   :  { %v867_v48 = vmax.f32 %v860_v1, %v866_v33 }
 0xae1   :  { %1616 = vmatpush.msra.mxu1 %v3608_v43 }
 0xae2   :  { %v871_v62 = vmax.f32 %v867_v48, %v869_v27 }
 0xae3   :  { %1617 = vmatpush.msra.mxu1 %v3615_v59 }
 0xae5   :  { %1618 = vmatpush.msra.mxu1 %v3624_v22 }
 0xae6   :  { %v851_v23 = vpop.xlane.xlu1 %850 }
 0xae7   :  { %v864_v20 = vsel %vm191_vm2, %v851_v23, -inf  ;;  %1619 = vmatpush.msra.mxu1 %v3634_v16 }
 0xae8   :  { %v865_v61 = vmax.f32 %v859_v46, %v864_v20 }
 0xae9   :  { %1620 = vmatpush.msra.mxu1 %v3640_v12 }
 0xaea   :  { %v870_v34 = vmax.f32 %v863_v8, %v865_v61 }
 0xaeb   :  { %1621 = vmatpush.msra.mxu1 %v3646_v51 }
 0xaec   :  { %v872_v5 = vmax.f32 %v870_v34, %v871_v62 }
 0xaed   :  { %1622 = vmatpush.msra.mxu1 %v3652_v36 }
 0xaee   :  { %v873_v53 = vsub.f32 %v836_v11, %v872_v5  ;;  %v874_v60 = vsub.f32 %v839_v24, %v872_v5  ;;  %v875_v42 = vsub.f32 %v842_v31, %v872_v5  ;;  %v876_v45 = vsub.f32 %v845_v63, %v872_v5 }
 0xaef   :  { %v877_v10 = vsub.f32 %v848_v44, %v872_v5  ;;  %1623 = vmatpush.msra.mxu1 %v3658_v49  ;;  %v878_v54 = vsub.f32 %v851_v23, %v872_v5  ;;  %v879_v48 = vsub.f32 %v854_v47, %v872_v5  ;;  %v880_v24 = vsub.f32 %v857_v17, %v872_v5 }
 0xaf0   :  { %v881_v30 = vmul.f32 1.442695, %v873_v53  ;;  %v883_v1 = vmul.f32 1.442695, %v874_v60  ;;  %v885_v33 = vmul.f32 1.442695, %v875_v42 }
 0xaf1   :  { %v887_v55 = vmul.f32 1.442695, %v876_v45  ;;  %v889_v11 = vmul.f32 1.442695, %v877_v10  ;;  %v891_v63 = vmul.f32 1.442695, %v878_v54 }
 0xaf2   :  { %2515 = vpow2.f32 %v881_v30  ;;  %v893_v44 = vmul.f32 1.442695, %v879_v48  ;;  %v895_v14 = vmul.f32 1.442695, %v880_v24 }
 0xaf3   :  { %2517 = vpow2.f32 %v883_v1  ;;  %v773_v1 = vld [vmem:[%s4510_s0 + $0x2] sm:$0x1] }
 0xaf4   :  { %2519 = vpow2.f32 %v885_v33  ;;  %2431 = vpush %v773_v1  ;;  %v781_v54 = vsub.f32 1.0, %v773_v1 }
 0xaf5   :  { %2521 = vpow2.f32 %v887_v55 }
 0xaf6   :  { %2523 = vpow2.f32 %v889_v11  ;;  %2433 = vpush %v781_v54 }
 0xaf7   :  { %2525 = vpow2.f32 %v891_v63 }
 0xaf8   :  { %v2516_v31 = vpop.eup %2515  ;;  %2527 = vpow2.f32 %v893_v44 }
 0xaf9   :  { %v2518_v13 = vpop.eup %2517  ;;  %v897_v46 = vsel %vm191_vm2, %v2516_v31, 0.0  ;;  %2529 = vpow2.f32 %v895_v14 }
 0xafa   :  { %v2520_v20 = vpop.eup %2519  ;;  %v898_v23 = vsel %vm191_vm2, %v2518_v13, 0.0 }
 0xafb   :  { %v2522_v8 = vpop.eup %2521  ;;  %v899_v47 = vadd.f32 %v898_v23, %v897_v46  ;;  %v900_v27 = vsel %vm191_vm2, %v2520_v20, 0.0 }
 0xafc   :  { %v2524_v61 = vpop.eup %2523  ;;  %v902_v62 = vsel %vm191_vm2, %v2522_v8, 0.0 }
 0xafd   :  { %v901_v17 = vadd.f32 %v900_v27, %v899_v47  ;;  %v2526_v34 = vpop.eup %2525  ;;  %v904_v53 = vsel %vm191_vm2, %v2524_v61, 0.0  ;;  %v3675_v47 = vld [vmem:[%s4512_s2] sm:$0x3] }
 0xafe   :  { %v2528_v60 = vpop.eup %2527  ;;  %v906_v45 = vsel %vm191_vm2, %v2526_v34, 0.0 }
 0xaff   :  { %v903_v5 = vadd.f32 %v902_v62, %v901_v17  ;;  %v2530_v10 = vpop.eup %2529  ;;  %v908_v33 = vsel %vm191_vm2, %v2528_v60, 0.0  ;;  %v3681_v17 = vld [vmem:[%s4512_s2 + $0x2] sm:$0x3] }
 0xb00   :  { %v910_v48 = vsel %vm191_vm2, %v2530_v10, 0.0 }
 0xb01   :  { %v905_v42 = vadd.f32 %v904_v53, %v903_v5 }
 0xb03   :  { %v907_v30 = vadd.f32 %v906_v45, %v905_v42 }
 0xb05   :  { %v909_v55 = vadd.f32 %v908_v33, %v907_v30  ;;  %v3701_v30 = vld [vmem:[%s4512_s2 + $0x8] sm:$0x3] }
 0xb07   :  { %v911_v11 = vadd.f32 %v910_v48, %v909_v55  ;;  %v3708_v55 = vld [vmem:[%s4512_s2 + $0xa] sm:$0x3] }
 0xb09   :  { %2531 = vrcp.f32 %v911_v11 }
 0xb0f   :  { %v2532_v24 = vpop.eup %2531 }
 0xb10   :  { %v913_v63 = vmul.f32 %v2532_v24, %v2516_v31  ;;  %v914_v44 = vmul.f32 %v2532_v24, %v2518_v13  ;;  %v915_v14 = vmul.f32 %v2532_v24, %v2520_v20  ;;  %v916_v46 = vmul.f32 %v2532_v24, %v2522_v8  ;;  %v3687_v31 = vld [vmem:[%s4512_s2 + $0x4] sm:$0x3]  ;;  %v3693_v8 = vld [vmem:[%s4512_s2 + $0x6] sm:$0x3] }
 0xb11   :  { %v917_v23 = vmul.f32 %v2532_v24, %v2524_v61  ;;  %v918_v20 = vmul.f32 %v2532_v24, %v2526_v34  ;;  %v919_v45 = vmul.f32 %v2532_v24, %v2528_v60  ;;  %v920_v54 = vmul.f32 %v2532_v24, %v2530_v10  ;;  %v3722_v24 = vld [vmem:[%s4512_s2 + $0xe] sm:$0x3] }
 0xb12   :  { %v921_v27 = vmul.f32 %v3675_v47, %v913_v63  ;;  %v922_v62 = vmul.f32 %v3681_v17, %v914_v44  ;;  %v923_v13 = vmul.f32 %v3687_v31, %v915_v14  ;;  %v924_v61 = vmul.f32 %v3693_v8, %v916_v46  ;;  %v3715_v63 = vld [vmem:[%s4512_s2 + $0xc] sm:$0x3] }
 0xb13   :  { %v925_v34 = vmul.f32 %v3701_v30, %v917_v23  ;;  %v926_v48 = vmul.f32 %v3708_v55, %v918_v20  ;;  %v927_v44 = vmul.f32 %v3715_v63, %v919_v45  ;;  %v928_v46 = vmul.f32 %v3722_v24, %v920_v54 }
 0xb14   :  { %v929_v5 = vsel %vm166_vm1, %v921_v27, 0.0  ;;  %v930_v53 = vsel %vm166_vm1, %v922_v62, 0.0  ;;  %v932_v1 = vsel %vm166_vm1, %v923_v13, 0.0  ;;  %v934_v60 = vsel %vm166_vm1, %v924_v61, 0.0 }
 0xb15   :  { %v931_v42 = vadd.f32 %v930_v53, %v929_v5  ;;  %v936_v14 = vsel %vm166_vm1, %v925_v34, 0.0  ;;  %v938_v23 = vsel %vm166_vm1, %v926_v48, 0.0  ;;  %v940_v62 = vsel %vm166_vm1, %v927_v44, 0.0  ;;  %v2394_v5 = vld [vmem:[%s4511_s1 + $0x4] sm:$0x3]  ;;  %v949_v48 = vpop.permute.xlu2 %948 }
 0xb16   :  { %v942_v20 = vsel %vm166_vm1, %v928_v46, 0.0 }
 0xb17   :  { %v933_v33 = vadd.f32 %v932_v1, %v931_v42 }
 0xb19   :  { %v935_v11 = vadd.f32 %v934_v60, %v933_v33 }
 0xb1b   :  { %v937_v10 = vadd.f32 %v936_v14, %v935_v11  ;;  %v3742_v14 = vld [vmem:[%s4520_s10] ss:$0 sm:$0xff] }
 0xb1d   :  { %v939_v27 = vadd.f32 %v938_v23, %v937_v10 }
 0xb1f   :  { %v941_v13 = vadd.f32 %v940_v62, %v939_v27 }
 0xb21   :  { %v943_v61 = vadd.f32 %v942_v20, %v941_v13 }
 0xb23   :  { %945 = vrot.lane.b32.xlu1 %v943_v61, %s2791_s17 }
 0xb25   :  { %s2432_s23 = spop %2431 }
 0xb26   :  { %v778_v53 = vstv %s2432_s23  ;;  %s2798_s23 = smov 2  }
 0xb27   :  { %s2434_s5 = spop %2433  ;;  %v780_v34 = vmul.f32 %v2394_v5, %v778_v53 }
 0xb28   :  { %v784_v42 = vstv %s2434_s5 }
 0xb59   :  { %v770_v45 = vpop.f32.mrf.mxu1 }
 0xb5a   :  { %v786_v1 = vmul.f32 %v784_v42, %v770_v45 }
 0xb5c   :  { %v787_v33 = vadd.f32 %v786_v1, %v780_v34 }
 0xb95   :  { %v946_v54 = vpop.permute.xlu1 %945 }
 0xb96   :  { %v951_v60 = vsel %vm285_vm3, %v787_v33, %v946_v54 }
 0xb97   :  { %v952_v11 = vsel %vm287_vm4, %v951_v60, %v949_v48 }
 0xb98   :  { %2396 = vmatmul.msk.f32.vlgmr.msrb.gmra.mxu3 %vm292_vm5, %v952_v11 }
 0xb99   :  { %1454 = vmatpush.msrb.mxu3 %v3452_v32 }
 0xb9b   :  { %1455 = vmatpush.msrb.mxu3 %v3458_v4 }
 0xb9d   :  { %1456 = vmatpush.msrb.mxu3 %v3464_v15 }
 0xb9f   :  { %1457 = vmatpush.msrb.mxu3 %v3470_v6 }
 0xc1b   :  { %v973_v44 = vpop.f32.mrf.mxu3 }
 0xc1c   :  { %v974_v10 = vadd.f32 %v3742_v14, %v973_v44 }
 0xc1e   :  { %2533 = vtanh.f32 %v974_v10  ;;  %v2397_v23 = vmul.f32 -1.442695, %v974_v10 }
 0xc20   :  { %2535 = vpow2.f32 %v2397_v23 }
 0xc24   :  { %v2534_v46 = vpop.eup %2533 }
 0xc25   :  { %998 = vrot.lane.b32.xlu0 %v2534_v46, %s2793_s25 }
 0xc26   :  { %v2536_v27 = vpop.eup %2535 }
 0xc27   :  { %v979_v62 = vadd.f32 1.0, %v2536_v27 }
 0xc29   :  { %2537 = vrcp.f32 %v979_v62  ;;  %v991_v45 = vand.u32 2147483648, %v979_v62  ;;  %vm985_vm13 = vweird.f32 %v979_v62  ;;  %v989_v34 = vand.u32 2147483647, %v979_v62 }
 0xc2b   :  { %v992_v33 = vor.u32 1.1754944e-38, %v991_v45  ;;  %vm990_vm15 = vcmp.eq.f32.partialorder %v989_v34, 8.507059e+37  ;;  %v3790_v45 = vld [vmem:[%s4516_s6 + $0x50] sm:$0xff]  ;;  %v3796_v34 = vld [vmem:[%s4516_s6 + $0x48] sm:$0xff] }
 0xc2f   :  { %v2538_v13 = vpop.eup %2537 }
 0xc30   :  { %v981_v20 = vmul.f32 %v2538_v13, %v979_v62  ;;  %vm986_vm12 = vweird.f32 %v2538_v13 }
 0xc31   :  { %vm987_vm14 = vmor %vm985_vm13, %vm986_vm12 }
 0xc32   :  { %v982_v5 = vsub.f32 1.0, %v981_v20 }
 0xc34   :  { %v983_v53 = vmul.f32 %v2538_v13, %v982_v5  ;;  %v3771_v5 = vld [vmem:[%s4516_s6 + $0x68] sm:$0xff] }
 0xc36   :  { %v984_v42 = vadd.f32 %v2538_v13, %v983_v53  ;;  %v3777_v53 = vld [vmem:[%s4516_s6 + $0x60] sm:$0xff] }
 0xc38   :  { %v988_v1 = vsel %vm987_vm14, %v2538_v13, %v984_v42  ;;  %v3784_v42 = vld [vmem:[%s4516_s6 + $0x58] sm:$0xff] }
 0xc39   :  { %v993_v48 = vsel %vm990_vm15, %v992_v33, %v988_v1  ;;  %v3802_v1 = vld [vmem:[%s4516_s6 + $0x40] sm:$0xff]  ;;  %v3808_v33 = vld [vmem:[%s4516_s6 + $0x38] sm:$0xff] }
 0xc3a   :  { %v996_v11 = vmul.f32 %v993_v48, %v3478_v58  ;;  %v3759_v58 = vld [vmem:[%s4516_s6 + $0x78] sm:$0xff] }
 0xc97   :  { %v999_v54 = vpop.permute.xlu0 %998 }
 0xc98   :  { %v1001_v60 = vmul.f32 %v999_v54, %v993_v48 }
 0xc9a   :  { %1003 = vrot.lane.b32.xlu1 %v1001_v60, %s2792_s4 }
 0xca2   :  { %1017 = vrot.lane.b32.xlu1 %v943_v61, %s2792_s4  ;;  %v3765_v61 = vld [vmem:[%s4516_s6 + $0x70] sm:$0xff] }
 0xd0c   :  { %v1004_v44 = vpop.permute.xlu1 %1003 }
 0xd0d   :  { %v3749_v10 = vadd.f32 %v1004_v44, %v996_v11 }
 0xd0f   :  { %2539 = vtanh.f32 %v3749_v10 }
 0xd14   :  { %v1018_v62 = vpop.permute.xlu1 %1017 }
 0xd15   :  { %v2540_v46 = vpop.eup %2539 }
 0xd16   :  { %1009 = vrot.lane.b32.xlu0 %v2540_v46, %s2793_s25 }
 0xd88   :  { %v1010_v23 = vpop.permute.xlu0 %1009 }
 0xd89   :  { %v1012_v27 = vmul.f32 %v1010_v23, %v993_v48 }
 0xd8b   :  { %1014 = vrot.lane.b32.xlu2 %v1012_v27, %s2792_s4 }
 0xde5   :  { %v1015_v13 = vpop.permute.xlu2 %1014 }
 0xde6   :  { %v1020_v20 = vsel %vm115_vm0, %v1015_v13, %v1018_v62 }
 0xde7   :  { %2398 = vmatmul.msk.f32.vlgmr.msra.gmra.mxu0 %vm368_vm10, %v1020_v20 }
 0xde8   :  { %1405 = vmatpush.msra.mxu0 %v3759_v58 }
 0xdea   :  { %1406 = vmatpush.msra.mxu0 %v3765_v61 }
 0xdec   :  { %1407 = vmatpush.msra.mxu0 %v3771_v5 }
 0xdee   :  { %1408 = vmatpush.msra.mxu0 %v3777_v53 }
 0xdef   :  { %2402 = vmatmul.msk.f32.vlgmr.msrb.gmra.mxu0 %vm115_vm0, %v1015_v13 }
 0xdf0   :  { %1409 = vmatpush.msra.mxu0 %v3784_v42 }
 0xdf2   :  { %1410 = vmatpush.msra.mxu0 %v3790_v45 }
 0xdf4   :  { %1411 = vmatpush.msra.mxu0 %v3796_v34 }
 0xdf6   :  { %1412 = vmatpush.msra.mxu0 %v3802_v1 }
 0xdf8   :  { %1413 = vmatpush.msra.mxu0 %v3808_v33 }
 0xdfa   :  { %1414 = vmatpush.msra.mxu0 %v3325_v52 }
 0xdfc   :  { %1415 = vmatpush.msra.mxu0 %v3332_v19  ;;  %v3831_v19 = vld [vmem:[%s4522_s12] ss:$0 sm:$0xff] }
 0xdfe   :  { %1416 = vmatpush.msra.mxu0 %v3340_v25 }
 0xe00   :  { %1417 = vmatpush.msra.mxu0 %v3347_v26 }
 0xe02   :  { %1418 = vmatpush.msra.mxu0 %v3358_v28 }
 0xe04   :  { %1419 = vmatpush.msra.mxu0 %v3363_v2 }
 0xe06   :  { %1420 = vmatpush.msra.mxu0 %v3370_v29 }
 0xe08   :  { %1940 = vmatpush.msrb.mxu0 %v3596_v35 }
 0xe0a   :  { %1941 = vmatpush.msrb.mxu0 %v3602_v41 }
 0xe0c   :  { %1942 = vmatpush.msrb.mxu0 %v3608_v43 }
 0xe0e   :  { %1943 = vmatpush.msrb.mxu0 %v3615_v59 }
 0xe10   :  { %1944 = vmatpush.msrb.mxu0 %v3624_v22 }
 0xe12   :  { %1945 = vmatpush.msrb.mxu0 %v3634_v16 }
 0xe14   :  { %1946 = vmatpush.msrb.mxu0 %v3640_v12 }
 0xe16   :  { %1947 = vmatpush.msrb.mxu0 %v3646_v51 }
 0xe18   :  { %1948 = vmatpush.msrb.mxu0 %v3652_v36 }
 0xe1a   :  { %1949 = vmatpush.msrb.mxu0 %v3658_v49 }
 0xe64   :  { %v1041_v52 = vpop.f32.mrf.mxu0 }
 0xe65   :  { %v3834_v25 = vadd.f32 %v3831_v19, %v1041_v52 }
 0xe67   :  { %4554 = vst [vmem:[#allocation8_spill] sm:$0xff] %v3834_v25  ;;  %v1044_v26 = vsel %vm191_vm2, %v3834_v25, -inf }
 0xe68   :  { %1045 = vmax.xlane.f32.xlu0 %v1044_v26 }
 0xe6c   :  { %v1133_v28 = vpop.f32.mrf.mxu0 }
 0xe6d   :  { %v1136_v2 = vadd.f32 %v3518_v57, %v1133_v28  ;;  %v1139_v54 = vadd.f32 %v3524_v18, %v1133_v28  ;;  %v1142_v46 = vadd.f32 %v3538_v50, %v1133_v28  ;;  %v1137_v52 = vadd.f32 %v3554_v3, %v1133_v28 }
 0xe6f   :  { %v1144_v29 = vmax.f32 %v1136_v2, 0.0  ;;  %v1147_v11 = vmax.f32 %v1139_v54, 0.0  ;;  %v1150_v62 = vmax.f32 %v1142_v46, 0.0 }
 0xe71   :  { %v1152_v48 = vmul.f32 %v3530_v7, %v1144_v29  ;;  %v1155_v44 = vmul.f32 %v3530_v7, %v1147_v11  ;;  %v1158_v13 = vmul.f32 %v3530_v7, %v1150_v62  ;;  %v1145_v29 = vmax.f32 %v1137_v52, 0.0 }
 0xe73   :  { %v1160_v60 = vsel %vm166_vm1, %v1152_v48, 0.0  ;;  %v1169_v23 = vsel %vm166_vm1, %v1155_v44, 0.0  ;;  %v1178_v57 = vsel %vm166_vm1, %v1158_v13, 0.0  ;;  %v1153_v54 = vmul.f32 %v3530_v7, %v1145_v29 }
 0xe74   :  { %1161 = vadd.xlane.f32.xlu0 %v1160_v60  ;;  %v1140_v48 = vadd.f32 %v3561_v0, %v1133_v28  ;;  %v1143_v44 = vadd.f32 %v3569_v9, %v1133_v28  ;;  %v1138_v0 = vadd.f32 %v3578_v21, %v1133_v28  ;;  %v1141_v29 = vadd.f32 %v3585_v39, %v1133_v28 }
 0xe76   :  { %v1148_v60 = vmax.f32 %v1140_v48, 0.0  ;;  %v1149_v48 = vmax.f32 %v1141_v29, 0.0 }
 0xe78   :  { %v1156_v11 = vmul.f32 %v3530_v7, %v1148_v60 }
 0xe7a   :  { %v1172_v46 = vsel %vm166_vm1, %v1156_v11, 0.0 }
 0xe7c   :  { %1170 = vadd.xlane.f32.xlu0 %v1169_v23  ;;  %v1151_v23 = vmax.f32 %v1143_v44, 0.0 }
 0xe7e   :  { %v1159_v3 = vmul.f32 %v3530_v7, %v1151_v23 }
 0xe80   :  { %v1181_v62 = vsel %vm166_vm1, %v1159_v3, 0.0 }
 0xe84   :  { %1179 = vadd.xlane.f32.xlu0 %v1178_v57 }
 0xe98   :  { %1274 = vrot.lane.b32.xlu0 %v1012_v27, %s2794_s28  ;;  %v1163_v27 = vsel %vm166_vm1, %v1153_v54, 0.0 }
 0xedb   :  { %v3848_v18 = vpop.xlane.xlu0 %1045 }
 0xedc   :  { %4555 = vst [vmem:[#allocation10_spill] sm:$0xff] %v3848_v18  ;;  %vm1059_vm6 = vcmp.eq.f32.partialorder %v3834_v25, %v3848_v18 }
 0xedd   :  { %v1060_v20 = vsel %vm1059_vm6, %v4552_v40, 128 }
 0xede   :  { %v1061_v50 = vsel %vm191_vm2, %v1060_v20, 2147483647 }
 0xedf   :  { %v1063_v26 = vshra.s32 %v1061_v50, 16  ;;  %v1062_v13 = vand.u32 65535, %v1061_v50 }
 0xee1   :  { %v1065_v2 = vcvt.s32.f32 %v1063_v26  ;;  %v1064_v20 = vcvt.s32.f32 %v1062_v13  ;;  %v1146_v26 = vmax.f32 %v1138_v0, 0.0 }
 0xee3   :  { %1066 = vmin.xlane.f32.xlu2 %v1065_v2  ;;  %v1154_v9 = vmul.f32 %v3530_v7, %v1146_v26 }
 0xee5   :  { %v1166_v54 = vsel %vm166_vm1, %v1154_v9, 0.0 }
 0xee7   :  { %v1162_v21 = vpop.xlane.xlu0 %1161 }
 0xeeb   :  { %1164 = vadd.xlane.f32.xlu2 %v1163_v27  ;;  %v1157_v27 = vmul.f32 %v3530_v7, %v1149_v48 }
 0xeed   :  { %v1175_v50 = vsel %vm166_vm1, %v1157_v27, 0.0 }
 0xeef   :  { %v1171_v23 = vpop.xlane.xlu0 %1170 }
 0xef3   :  { %1173 = vadd.xlane.f32.xlu2 %v1172_v46 }
 0xef7   :  { %v1180_v7 = vpop.xlane.xlu0 %1179 }
 0xef8   :  { %v1192_v0 = vsel %vm191_vm2, %v1180_v7, -inf }
 0xefb   :  { %1182 = vadd.xlane.f32.xlu2 %v1181_v62 }
 0xf56   :  { %v1067_v57 = vpop.xlane.xlu2 %1066 }
 0xf57   :  { %vm1068_vm7 = vcmp.eq.f32.partialorder %v1065_v2, %v1067_v57  ;;  %v1073_v11 = vcvt.f32.s32 %v1067_v57 }
 0xf58   :  { %v1069_v52 = vsel %vm1068_vm7, %v1064_v20, inf }
 0xf59   :  { %1070 = vmin.xlane.f32.xlu1 %v1069_v52  ;;  %v1074_v44 = vshll.u32 %v1073_v11, 16 }
 0xf5e   :  { %v1165_v60 = vpop.xlane.xlu2 %1164 }
 0xf61   :  { %1167 = vadd.xlane.f32.xlu1 %v1166_v54 }
 0xf66   :  { %v1174_v3 = vpop.xlane.xlu2 %1173 }
 0xf67   :  { %v1188_v57 = vsel %vm191_vm2, %v1174_v3, -inf }
 0xf69   :  { %1176 = vadd.xlane.f32.xlu1 %v1175_v50 }
 0xf6e   :  { %v1183_v28 = vpop.xlane.xlu2 %1182 }
 0xf6f   :  { %v1194_v20 = vsel %vm191_vm2, %v1183_v28, -inf }
 0xfcc   :  { %v1071_v2 = vpop.xlane.xlu1 %1070 }
 0xfcd   :  { %v1072_v46 = vcvt.f32.s32 %v1071_v2 }
 0xfcf   :  { %v1075_v62 = vadd.s32 %v1074_v44, %v1072_v46 }
 0xfd1   :  { %vm1076_vm8 = vcmp.eq.s32.totalorder %v4552_v40, %v1075_v62 }
 0xfd2   :  { %2400 = vmatmul.msk.f32.vlgmr.msrb.gmra.mxu2 %vm1076_vm8, %v4553_v56 }
 0xfd3   :  { %1780 = vmatpush.msrb.mxu2 %v3452_v32  ;;  %v1184_v32 = vsel %vm191_vm2, %v1162_v21, -inf }
 0xfd4   :  { %v1168_v39 = vpop.xlane.xlu1 %1167  ;;  %v1189_v29 = vmax.f32 %v1184_v32, %v1188_v57 }
 0xfd5   :  { %1781 = vmatpush.msrb.mxu2 %v3458_v4  ;;  %v1186_v13 = vsel %vm191_vm2, %v1168_v39, -inf  ;;  %v1187_v4 = vsel %vm191_vm2, %v1171_v23, -inf }
 0xfd6   :  { %v1193_v52 = vmax.f32 %v1186_v13, %v1192_v0  ;;  %v1195_v54 = vmax.f32 %v1187_v4, %v1194_v20 }
 0xfd7   :  { %1782 = vmatpush.msrb.mxu2 %v3464_v15  ;;  %v1185_v15 = vsel %vm191_vm2, %v1165_v60, -inf }
 0xfd9   :  { %1783 = vmatpush.msrb.mxu2 %v3470_v6  ;;  %v1197_v6 = vmax.f32 %v1193_v52, %v1195_v54 }
 0xfdc   :  { %v1177_v26 = vpop.xlane.xlu1 %1176 }
 0xfdd   :  { %v1190_v9 = vsel %vm191_vm2, %v1177_v26, -inf }
 0xfde   :  { %v1191_v48 = vmax.f32 %v1185_v15, %v1190_v9 }
 0xfe0   :  { %v1196_v27 = vmax.f32 %v1189_v29, %v1191_v48 }
 0xfe2   :  { %v1198_v50 = vmax.f32 %v1196_v27, %v1197_v6  ;;  %v1099_v6 = vld [vmem:[%s4510_s0 + $0x3] sm:$0x1] }
 0xfe3   :  { %2435 = vpush %v1099_v6 }
 0xfe4   :  { %v1199_v11 = vsub.f32 %v1162_v21, %v1198_v50  ;;  %v1200_v2 = vsub.f32 %v1165_v60, %v1198_v50  ;;  %v1201_v44 = vsub.f32 %v1168_v39, %v1198_v50  ;;  %v1202_v46 = vsub.f32 %v1171_v23, %v1198_v50 }
 0xfe5   :  { %v1203_v62 = vsub.f32 %v1174_v3, %v1198_v50  ;;  %v1204_v18 = vsub.f32 %v1177_v26, %v1198_v50  ;;  %v1205_v38 = vsub.f32 %v1180_v7, %v1198_v50  ;;  %v1206_v57 = vsub.f32 %v1183_v28, %v1198_v50 }
 0xfe6   :  { %v1207_v13 = vmul.f32 1.442695, %v1199_v11  ;;  %v1209_v0 = vmul.f32 1.442695, %v1200_v2  ;;  %v1211_v25 = vmul.f32 1.442695, %v1201_v44 }
 0xfe7   :  { %v1213_v37 = vmul.f32 1.442695, %v1202_v46  ;;  %v1215_v56 = vmul.f32 1.442695, %v1203_v62  ;;  %v1217_v20 = vmul.f32 1.442695, %v1204_v18 }
 0xfe8   :  { %2541 = vpow2.f32 %v1207_v13  ;;  %v1219_v52 = vmul.f32 1.442695, %v1205_v38  ;;  %v1221_v23 = vmul.f32 1.442695, %v1206_v57  ;;  %v1107_v50 = vsub.f32 1.0, %v1099_v6 }
 0xfe9   :  { %2543 = vpow2.f32 %v1209_v0 }
 0xfea   :  { %2545 = vpow2.f32 %v1211_v25  ;;  %2437 = vpush %v1107_v50 }
 0xfeb   :  { %2547 = vpow2.f32 %v1213_v37 }
 0xfec   :  { %2549 = vpow2.f32 %v1215_v56 }
 0xfed   :  { %2551 = vpow2.f32 %v1217_v20 }
 0xfee   :  { %v2542_v21 = vpop.eup %2541  ;;  %2553 = vpow2.f32 %v1219_v52 }
 0xfef   :  { %v2544_v60 = vpop.eup %2543  ;;  %v1223_v3 = vsel %vm191_vm2, %v2542_v21, 0.0  ;;  %2555 = vpow2.f32 %v1221_v23 }
 0xff0   :  { %v2546_v39 = vpop.eup %2545  ;;  %v1224_v26 = vsel %vm191_vm2, %v2544_v60, 0.0 }
 0xff1   :  { %v2548_v32 = vpop.eup %2547  ;;  %v1225_v7 = vadd.f32 %v1224_v26, %v1223_v3  ;;  %v1226_v4 = vsel %vm191_vm2, %v2546_v39, 0.0 }
 0xff2   :  { %v2550_v25 = vpop.eup %2549  ;;  %v1228_v56 = vsel %vm191_vm2, %v2548_v32, 0.0 }
 0xff3   :  { %v1227_v37 = vadd.f32 %v1226_v4, %v1225_v7  ;;  %v2552_v38 = vpop.eup %2551  ;;  %v1230_v28 = vsel %vm191_vm2, %v2550_v25, 0.0 }
 0xff4   :  { %v2554_v15 = vpop.eup %2553  ;;  %v1232_v29 = vsel %vm191_vm2, %v2552_v38, 0.0 }
 0xff5   :  { %v1229_v18 = vadd.f32 %v1228_v56, %v1227_v37  ;;  %v2556_v54 = vpop.eup %2555  ;;  %v1234_v27 = vsel %vm191_vm2, %v2554_v15, 0.0 }
 0xff6   :  { %v1236_v2 = vsel %vm191_vm2, %v2556_v54, 0.0 }
 0xff7   :  { %v1231_v9 = vadd.f32 %v1230_v28, %v1229_v18 }
 0xff9   :  { %v1233_v48 = vadd.f32 %v1232_v29, %v1231_v9 }
 0xffb   :  { %v1235_v11 = vadd.f32 %v1234_v27, %v1233_v48 }
 0xffd   :  { %v1237_v44 = vadd.f32 %v1236_v2, %v1235_v11 }
 0xfff   :  { %2557 = vrcp.f32 %v1237_v44  ;;  %v1275_v44 = vpop.permute.xlu0 %1274 }
0x1005   :  { %v2558_v46 = vpop.eup %2557 }
0x1006   :  { %v1239_v62 = vmul.f32 %v2558_v46, %v2542_v21  ;;  %v1240_v13 = vmul.f32 %v2558_v46, %v2544_v60  ;;  %v1241_v0 = vmul.f32 %v2558_v46, %v2546_v39  ;;  %v1242_v57 = vmul.f32 %v2558_v46, %v2548_v32 }
0x1007   :  { %v1243_v20 = vmul.f32 %v2558_v46, %v2550_v25  ;;  %v1244_v26 = vmul.f32 %v2558_v46, %v2552_v38  ;;  %v1245_v18 = vmul.f32 %v2558_v46, %v2554_v15  ;;  %v1246_v32 = vmul.f32 %v2558_v46, %v2556_v54 }
0x1008   :  { %v1247_v52 = vmul.f32 %v3675_v47, %v1239_v62  ;;  %v1248_v23 = vmul.f32 %v3681_v17, %v1240_v13  ;;  %v1249_v3 = vmul.f32 %v3687_v31, %v1241_v0  ;;  %v1250_v7 = vmul.f32 %v3693_v8, %v1242_v57  ;;  %v3920_v13 = vld [vmem:[%s4521_s11 + $0x38] sm:$0xff]  ;;  %v3926_v0 = vld [vmem:[%s4521_s11 + $0x30] sm:$0xff]  ;;  %v3932_v57 = vld [vmem:[%s4521_s11 + $0x28] sm:$0xff] }
0x1009   :  { %v1251_v21 = vmul.f32 %v3701_v30, %v1243_v20  ;;  %v1252_v47 = vmul.f32 %v3708_v55, %v1244_v26  ;;  %v1253_v25 = vmul.f32 %v3715_v63, %v1245_v18  ;;  %v1254_v28 = vmul.f32 %v3722_v24, %v1246_v32  ;;  %v2401_v55 = vld [vmem:[%s4511_s1 + $0x6] sm:$0x3] }
0x100a   :  { %v1255_v4 = vsel %vm166_vm1, %v1247_v52, 0.0  ;;  %v1256_v37 = vsel %vm166_vm1, %v1248_v23, 0.0  ;;  %v1258_v60 = vsel %vm166_vm1, %v1249_v3, 0.0  ;;  %v1260_v17 = vsel %vm166_vm1, %v1250_v7, 0.0  ;;  %v3938_v20 = vld [vmem:[%s4521_s11 + $0x20] sm:$0xff]  ;;  %v3944_v52 = vld [vmem:[%s4521_s11 + $0x18] sm:$0xff] }
0x100b   :  { %v1257_v56 = vadd.f32 %v1256_v37, %v1255_v4  ;;  %v1262_v8 = vsel %vm166_vm1, %v1251_v21, 0.0  ;;  %v1264_v15 = vsel %vm166_vm1, %v1252_v47, 0.0  ;;  %v1266_v30 = vsel %vm166_vm1, %v1253_v25, 0.0  ;;  %v3950_v23 = vld [vmem:[%s4521_s11 + $0x10] sm:$0xff]  ;;  %v3956_v3 = vld [vmem:[%s4521_s11 + $0x8] sm:$0xff]  ;;  %v3962_v26 = vld [vmem:[%s4521_s11] sm:$0xff] }
0x100c   :  { %v1268_v54 = vsel %vm166_vm1, %v1254_v28, 0.0 }
0x100d   :  { %v1259_v39 = vadd.f32 %v1258_v60, %v1257_v56 }
0x100f   :  { %v1261_v31 = vadd.f32 %v1260_v17, %v1259_v39 }
0x1011   :  { %v1263_v38 = vadd.f32 %v1262_v8, %v1261_v31 }
0x1013   :  { %v1265_v9 = vadd.f32 %v1264_v15, %v1263_v38 }
0x1014   :  { %s2436_s20 = spop %2435 }
0x1015   :  { %v1267_v29 = vadd.f32 %v1266_v30, %v1265_v9  ;;  %v1104_v63 = vstv %s2436_s20 }
0x1016   :  { %v1106_v27 = vmul.f32 %v2401_v55, %v1104_v63 }
0x1017   :  { %v1269_v48 = vadd.f32 %v1268_v54, %v1267_v29 }
0x1019   :  { %1271 = vrot.lane.b32.xlu1 %v1269_v48, %s2791_s17 }
0x101b   :  { %s2438_s21 = spop %2437 }
0x101c   :  { %v1110_v6 = vstv %s2438_s21 }
0x1055   :  { %v1096_v24 = vpop.f32.mrf.mxu2 }
0x1056   :  { %v1112_v50 = vmul.f32 %v1110_v6, %v1096_v24 }
0x1058   :  { %v1113_v11 = vadd.f32 %v1112_v50, %v1106_v27  ;;  %v4070_v27 = vld [vmem:[%s4513_s3 + $0xc] sm:$0x3] }
0x108b   :  { %v1272_v2 = vpop.permute.xlu1 %1271 }
0x108c   :  { %v1277_v46 = vsel %vm285_vm3, %v1113_v11, %v1272_v2 }
0x108d   :  { %v1278_v62 = vsel %vm287_vm4, %v1277_v46, %v1275_v44 }
0x108e   :  { %2403 = vmatmul.msk.f32.vlgmr.msrb.gmra.mxu1 %vm292_vm5, %v1278_v62 }
0x108f   :  { %2010 = vmatpush.msrb.mxu1 %v3920_v13 }
0x1091   :  { %2011 = vmatpush.msrb.mxu1 %v3926_v0 }
0x1093   :  { %2012 = vmatpush.msrb.mxu1 %v3932_v57 }
0x1095   :  { %2013 = vmatpush.msrb.mxu1 %v3938_v20 }
0x1097   :  { %2014 = vmatpush.msrb.mxu1 %v3944_v52 }
0x1099   :  { %2015 = vmatpush.msrb.mxu1 %v3950_v23 }
0x109b   :  { %2016 = vmatpush.msrb.mxu1 %v3956_v3 }
0x109d   :  { %2017 = vmatpush.msrb.mxu1 %v3962_v26 }
0x110b   :  { %v1299_v7 = vpop.f32.mrf.mxu1 }
0x110c   :  { %v1300_v4 = vadd.f32 %v3742_v14, %v1299_v7 }
0x110e   :  { %2559 = vtanh.f32 %v1300_v4  ;;  %v2404_v56 = vmul.f32 -1.442695, %v1300_v4 }
0x1110   :  { %2561 = vpow2.f32 %v2404_v56 }
0x1114   :  { %v2560_v37 = vpop.eup %2559 }
0x1115   :  { %1324 = vrot.lane.b32.xlu2 %v2560_v37, %s2793_s25  ;;  %v4087_v37 = vld [vmem:[%s4513_s3 + $0x2] sm:$0x3] }
0x1116   :  { %v2562_v18 = vpop.eup %2561 }
0x1117   :  { %v1305_v21 = vadd.f32 1.0, %v2562_v18 }
0x1119   :  { %2563 = vrcp.f32 %v1305_v21  ;;  %v1317_v31 = vand.u32 2147483648, %v1305_v21  ;;  %vm1311_vm11 = vweird.f32 %v1305_v21  ;;  %v1315_v25 = vand.u32 2147483647, %v1305_v21 }
0x111b   :  { %v1318_v8 = vor.u32 1.1754944e-38, %v1317_v31  ;;  %vm1316_vm13 = vcmp.eq.f32.partialorder %v1315_v25, 8.507059e+37 }
0x111f   :  { %v2564_v60 = vpop.eup %2563 }
0x1120   :  { %v1307_v39 = vmul.f32 %v2564_v60, %v1305_v21  ;;  %vm1312_vm9 = vweird.f32 %v2564_v60 }
0x1121   :  { %vm1313_vm12 = vmor %vm1311_vm11, %vm1312_vm9 }
0x1122   :  { %v1308_v32 = vsub.f32 1.0, %v1307_v39 }
0x1124   :  { %v1309_v47 = vmul.f32 %v2564_v60, %v1308_v32  ;;  %v4094_v32 = vld [vmem:[%s4513_s3 + $0x8] sm:$0x3] }
0x1126   :  { %v1310_v17 = vadd.f32 %v2564_v60, %v1309_v47 }
0x1128   :  { %v1314_v14 = vsel %vm1313_vm12, %v2564_v60, %v1310_v17 }
0x1129   :  { %v1319_v28 = vsel %vm1316_vm13, %v1318_v8, %v1314_v14  ;;  %v4102_v14 = vld [vmem:[%s4513_s3 + $0xe] sm:$0x3] }
0x112a   :  { %v1322_v9 = vmul.f32 %v1319_v28, %v3749_v10  ;;  %v3993_v10 = vld [vmem:[%s4516_s6 + $0x30] sm:$0xff] }
0x116f   :  { %v1325_v38 = vpop.permute.xlu2 %1324 }
0x1170   :  { %v1327_v15 = vmul.f32 %v1325_v38, %v1319_v28 }
0x1172   :  { %1329 = vrot.lane.b32.xlu0 %v1327_v15, %s2792_s4 }
0x117a   :  { %1343 = vrot.lane.b32.xlu0 %v1269_v48, %s2792_s4 }
0x11e4   :  { %v1330_v30 = vpop.permute.xlu0 %1329 }
0x11e5   :  { %v3970_v29 = vadd.f32 %v1330_v30, %v1322_v9 }
0x11e7   :  { %2565 = vtanh.f32 %v3970_v29 }
0x11ec   :  { %v1344_v6 = vpop.permute.xlu0 %1343 }
0x11ed   :  { %v2566_v54 = vpop.eup %2565 }
0x11ee   :  { %1335 = vrot.lane.b32.xlu1 %v2566_v54, %s2793_s25  ;;  %v4111_v54 = vld [vmem:[%s4513_s3 + $0x4] sm:$0x3] }
0x1260   :  { %v1336_v55 = vpop.permute.xlu1 %1335 }
0x1261   :  { %v3974_v63 = vmul.f32 %v1336_v55, %v1319_v28 }
0x1263   :  { %1340 = vrot.lane.b32.xlu2 %v3974_v63, %s2792_s4 }
0x12bd   :  { %v1341_v24 = vpop.permute.xlu2 %1340 }
0x12be   :  { %v1346_v48 = vsel %vm115_vm0, %v1341_v24, %v1344_v6 }
0x12bf   :  { %2405 = vmatmul.msk.f32.vlgmr.msra.gmra.mxu3 %vm368_vm10, %v1346_v48 }
0x12c0   :  { %1731 = vmatpush.msra.mxu3 %v3759_v58  ;;  %v3999_v58 = vld [vmem:[%s4516_s6 + $0x28] sm:$0xff] }
0x12c2   :  { %1732 = vmatpush.msra.mxu3 %v3765_v61  ;;  %v4005_v61 = vld [vmem:[%s4516_s6 + $0x20] sm:$0xff] }
0x12c4   :  { %1733 = vmatpush.msra.mxu3 %v3771_v5  ;;  %v4011_v5 = vld [vmem:[%s4516_s6 + $0x18] sm:$0xff] }
0x12c6   :  { %1734 = vmatpush.msra.mxu3 %v3777_v53  ;;  %v4017_v53 = vld [vmem:[%s4516_s6 + $0x10] sm:$0xff] }
0x12c7   :  { %2409 = vmatmul.msk.f32.vlgmr.msrb.gmra.mxu3 %vm115_vm0, %v1341_v24 }
0x12c8   :  { %1735 = vmatpush.msra.mxu3 %v3784_v42  ;;  %v4023_v42 = vld [vmem:[%s4516_s6 + $0x8] sm:$0xff] }
0x12ca   :  { %1736 = vmatpush.msra.mxu3 %v3790_v45  ;;  %v4029_v45 = vld [vmem:[%s4516_s6] sm:$0xff] }
0x12cc   :  { %1737 = vmatpush.msra.mxu3 %v3796_v34 }
0x12ce   :  { %1738 = vmatpush.msra.mxu3 %v3802_v1 }
0x12d0   :  { %1739 = vmatpush.msra.mxu3 %v3808_v33 }
0x12d2   :  { %1740 = vmatpush.msra.mxu3 %v3993_v10 }
0x12d4   :  { %1741 = vmatpush.msra.mxu3 %v3999_v58 }
0x12d6   :  { %1742 = vmatpush.msra.mxu3 %v4005_v61 }
0x12d8   :  { %1743 = vmatpush.msra.mxu3 %v4011_v5 }
0x12da   :  { %1744 = vmatpush.msra.mxu3 %v4017_v53 }
0x12dc   :  { %1745 = vmatpush.msra.mxu3 %v4023_v42 }
0x12de   :  { %1746 = vmatpush.msra.mxu3 %v4029_v45 }
0x12e0   :  { %2266 = vmatpush.msrb.mxu3 %v3596_v35 }
0x12e2   :  { %2267 = vmatpush.msrb.mxu3 %v3602_v41 }
0x12e4   :  { %2268 = vmatpush.msrb.mxu3 %v3608_v43 }
0x12e6   :  { %2269 = vmatpush.msrb.mxu3 %v3615_v59  ;;  %v4050_v59 = vld [vmem:[%s4513_s3] sm:$0x3] }
0x12e8   :  { %2270 = vmatpush.msrb.mxu3 %v3624_v22 }
0x12ea   :  { %2271 = vmatpush.msrb.mxu3 %v3634_v16 }
0x12ec   :  { %2272 = vmatpush.msrb.mxu3 %v3640_v12  ;;  %v4056_v12 = vld [vmem:[%s4513_s3 + $0x6] sm:$0x3] }
0x12ee   :  { %2273 = vmatpush.msrb.mxu3 %v3646_v51 }
0x12f0   :  { %2274 = vmatpush.msrb.mxu3 %v3652_v36  ;;  %v4062_v36 = vld [vmem:[%s4518_s8] ss:$0 sm:$0xff] }
0x12f2   :  { %2275 = vmatpush.msrb.mxu3 %v3658_v49 }
0x1342   :  { %v1367_v34 = vpop.f32.mrf.mxu3 }
0x1343   :  { %v4043_v35 = vadd.f32 %v3831_v19, %v1367_v34 }
0x1345   :  { %v1370_v41 = vsel %vm191_vm2, %v4043_v35, -inf }
0x1346   :  { %1371 = vmax.xlane.f32.xlu1 %v1370_v41  ;;  %v4118_v41 = vld [vmem:[%s4513_s3 + $0xa] sm:$0x3] }
0x134a   :  { %v1459_v43 = vpop.f32.mrf.mxu3 }
0x134b   :  { %v1462_v22 = vadd.f32 %v4050_v59, %v1459_v43  ;;  %v1465_v51 = vadd.f32 %v4056_v12, %v1459_v43  ;;  %v1468_v50 = vadd.f32 %v4070_v27, %v1459_v43  ;;  %v1463_v56 = vadd.f32 %v4087_v37, %v1459_v43 }
0x134c   :  { %v1466_v47 = vadd.f32 %v4094_v32, %v1459_v43  ;;  %v1469_v8 = vadd.f32 %v4102_v14, %v1459_v43  ;;  %v1464_v55 = vadd.f32 %v4111_v54, %v1459_v43 }
0x134d   :  { %v1470_v16 = vmax.f32 %v1462_v22, 0.0  ;;  %v1473_v33 = vmax.f32 %v1465_v51, 0.0  ;;  %v1476_v2 = vmax.f32 %v1468_v50, 0.0  ;;  %v1471_v60 = vmax.f32 %v1463_v56, 0.0 }
0x134e   :  { %v1474_v31 = vmax.f32 %v1466_v47, 0.0  ;;  %v1477_v28 = vmax.f32 %v1469_v8, 0.0  ;;  %v1472_v48 = vmax.f32 %v1464_v55, 0.0  ;;  %v1467_v22 = vadd.f32 %v4118_v41, %v1459_v43 }
0x134f   :  { %v1478_v49 = vmul.f32 %v4062_v36, %v1470_v16  ;;  %v1481_v19 = vmul.f32 %v4062_v36, %v1473_v33  ;;  %v1484_v44 = vmul.f32 %v4062_v36, %v1476_v2  ;;  %v1479_v39 = vmul.f32 %v4062_v36, %v1471_v60 }
0x1350   :  { %v1482_v25 = vmul.f32 %v4062_v36, %v1474_v31  ;;  %v1485_v15 = vmul.f32 %v4062_v36, %v1477_v28  ;;  %v1480_v34 = vmul.f32 %v4062_v36, %v1472_v48  ;;  %v1475_v51 = vmax.f32 %v1467_v22, 0.0 }
0x1351   :  { %v1486_v1 = vsel %vm166_vm1, %v1478_v49, 0.0  ;;  %v1495_v11 = vsel %vm166_vm1, %v1481_v19, 0.0  ;;  %v1504_v46 = vsel %vm166_vm1, %v1484_v44, 0.0  ;;  %v1489_v17 = vsel %vm166_vm1, %v1479_v39, 0.0 }
0x1352   :  { %1487 = vadd.xlane.f32.xlu1 %v1486_v1  ;;  %v1498_v38 = vsel %vm166_vm1, %v1482_v25, 0.0  ;;  %v1507_v9 = vsel %vm166_vm1, %v1485_v15, 0.0  ;;  %v1492_v16 = vsel %vm166_vm1, %v1480_v34, 0.0  ;;  %v1483_v49 = vmul.f32 %v4062_v36, %v1475_v51 }
0x1353   :  { %v4556_v43 = vmov 1.0  }
0x1354   :  { %v1501_v1 = vsel %vm166_vm1, %v1483_v49, 0.0 }
0x135a   :  { %1496 = vadd.xlane.f32.xlu1 %v1495_v11 }
0x1362   :  { %1505 = vadd.xlane.f32.xlu1 %v1504_v46 }
0x137b   :  { %1600 = vrot.lane.b32.xlu1 %v3974_v63, %s2794_s28 }
0x13b9   :  { %v4078_v62 = vpop.xlane.xlu1 %1371 }
0x13ba   :  { %vm1385_vm14 = vcmp.eq.f32.partialorder %v4043_v35, %v4078_v62 }
0x13bb   :  { %v1386_v7 = vsel %vm1385_vm14, %v4552_v40, 128 }
0x13bc   :  { %v1387_v4 = vsel %vm191_vm2, %v1386_v7, 2147483647 }
0x13bd   :  { %v1389_v18 = vshra.s32 %v1387_v4, 16  ;;  %v1388_v30 = vand.u32 65535, %v1387_v4 }
0x13bf   :  { %v1391_v21 = vcvt.s32.f32 %v1389_v18  ;;  %v1390_v6 = vcvt.s32.f32 %v1388_v30 }
0x13c1   :  { %1392 = vmin.xlane.f32.xlu2 %v1391_v21 }
0x13c5   :  { %v1488_v33 = vpop.xlane.xlu1 %1487 }
0x13c9   :  { %1490 = vadd.xlane.f32.xlu2 %v1489_v17 }
0x13cd   :  { %v1497_v46 = vpop.xlane.xlu1 %1496 }
0x13d1   :  { %1499 = vadd.xlane.f32.xlu2 %v1498_v38 }
0x13d5   :  { %v1506_v18 = vpop.xlane.xlu1 %1505 }
0x13d6   :  { %v1518_v39 = vsel %vm191_vm2, %v1506_v18, -inf }
0x13d9   :  { %1508 = vadd.xlane.f32.xlu2 %v1507_v9 }
0x1434   :  { %v1393_v63 = vpop.xlane.xlu2 %1392 }
0x1435   :  { %vm1394_vm15 = vcmp.eq.f32.partialorder %v1391_v21, %v1393_v63  ;;  %v1399_v50 = vcvt.f32.s32 %v1393_v63 }
0x1436   :  { %v1395_v24 = vsel %vm1394_vm15, %v1390_v6, inf }
0x1437   :  { %1396 = vmin.xlane.f32.xlu0 %v1395_v24  ;;  %v1400_v2 = vshll.u32 %v1399_v50, 16 }
0x143c   :  { %v1491_v19 = vpop.xlane.xlu2 %1490 }
0x143d   :  { %v1511_v25 = vsel %vm191_vm2, %v1491_v19, -inf }
0x143f   :  { %1493 = vadd.xlane.f32.xlu0 %v1492_v16 }
0x1444   :  { %v1500_v7 = vpop.xlane.xlu2 %1499 }
0x1445   :  { %v1514_v47 = vsel %vm191_vm2, %v1500_v7, -inf }
0x1447   :  { %1502 = vadd.xlane.f32.xlu0 %v1501_v1 }
0x144c   :  { %v1509_v21 = vpop.xlane.xlu2 %1508 }
0x144d   :  { %v1520_v17 = vsel %vm191_vm2, %v1509_v21, -inf }
0x14aa   :  { %v1397_v11 = vpop.xlane.xlu0 %1396 }
0x14ab   :  { %v1398_v44 = vcvt.f32.s32 %v1397_v11 }
0x14ad   :  { %v1401_v4 = vadd.s32 %v1400_v2, %v1398_v44 }
0x14af   :  { %vm1402_vm6 = vcmp.eq.s32.totalorder %v4552_v40, %v1401_v4 }
0x14b0   :  { %2407 = vmatmul.msk.f32.vlgmr.msra.gmra.mxu0 %vm1402_vm6, %v4556_v43 }
0x14b1   :  { %2336 = vmatpush.msra.mxu0 %v3920_v13 }
0x14b2   :  { %v1494_v56 = vpop.xlane.xlu0 %1493 }
0x14b3   :  { %2337 = vmatpush.msra.mxu0 %v3926_v0  ;;  %v1512_v60 = vsel %vm191_vm2, %v1494_v56, -inf  ;;  %v1510_v0 = vsel %vm191_vm2, %v1488_v33, -inf }
0x14b4   :  { %v1519_v13 = vmax.f32 %v1512_v60, %v1518_v39 }
0x14b5   :  { %2338 = vmatpush.msra.mxu0 %v3932_v57  ;;  %v1513_v57 = vsel %vm191_vm2, %v1497_v46, -inf }
0x14b6   :  { %v1521_v38 = vmax.f32 %v1513_v57, %v1520_v17 }
0x14b7   :  { %2339 = vmatpush.msra.mxu0 %v3938_v20  ;;  %v1515_v20 = vmax.f32 %v1510_v0, %v1514_v47 }
0x14b8   :  { %v1523_v15 = vmax.f32 %v1519_v13, %v1521_v38 }
0x14b9   :  { %2340 = vmatpush.msra.mxu0 %v3944_v52 }
0x14ba   :  { %v1503_v31 = vpop.xlane.xlu0 %1502 }
0x14bb   :  { %v1516_v8 = vsel %vm191_vm2, %v1503_v31, -inf  ;;  %2341 = vmatpush.msra.mxu0 %v3950_v23 }
0x14bc   :  { %v1517_v28 = vmax.f32 %v1511_v25, %v1516_v8  ;;  %v1425_v25 = vld [vmem:[%s4510_s0 + $0x4] sm:$0x1] }
0x14bd   :  { %2342 = vmatpush.msra.mxu0 %v3956_v3  ;;  %2439 = vpush %v1425_v25 }
0x14be   :  { %v1522_v9 = vmax.f32 %v1515_v20, %v1517_v28  ;;  %v1433_v20 = vsub.f32 1.0, %v1425_v25 }
0x14bf   :  { %2343 = vmatpush.msra.mxu0 %v3962_v26 }
0x14c0   :  { %v1524_v52 = vmax.f32 %v1522_v9, %v1523_v15  ;;  %2441 = vpush %v1433_v20 }
0x14c2   :  { %v1525_v30 = vsub.f32 %v1488_v33, %v1524_v52  ;;  %v1526_v55 = vsub.f32 %v1491_v19, %v1524_v52  ;;  %v1527_v63 = vsub.f32 %v1494_v56, %v1524_v52  ;;  %v1528_v6 = vsub.f32 %v1497_v46, %v1524_v52 }
0x14c3   :  { %v1529_v24 = vsub.f32 %v1500_v7, %v1524_v52  ;;  %v1530_v16 = vsub.f32 %v1503_v31, %v1524_v52  ;;  %v1531_v51 = vsub.f32 %v1506_v18, %v1524_v52  ;;  %v1532_v3 = vsub.f32 %v1509_v21, %v1524_v52 }
0x14c4   :  { %v1533_v48 = vmul.f32 1.442695, %v1525_v30  ;;  %v1535_v34 = vmul.f32 1.442695, %v1526_v55  ;;  %v1537_v22 = vmul.f32 1.442695, %v1527_v63 }
0x14c5   :  { %v1539_v23 = vmul.f32 1.442695, %v1528_v6  ;;  %v1541_v49 = vmul.f32 1.442695, %v1529_v24  ;;  %v1543_v1 = vmul.f32 1.442695, %v1530_v16 }
0x14c6   :  { %2567 = vpow2.f32 %v1533_v48  ;;  %v1545_v26 = vmul.f32 1.442695, %v1531_v51  ;;  %v1547_v50 = vmul.f32 1.442695, %v1532_v3  ;;  %v4156_v24 = vld [vmem:[%s4512_s2] sm:$0x3] }
0x14c7   :  { %2569 = vpow2.f32 %v1535_v34  ;;  %v4162_v34 = vld [vmem:[%s4512_s2 + $0x2] sm:$0x3]  ;;  %v4168_v16 = vld [vmem:[%s4512_s2 + $0x4] sm:$0x3] }
0x14c8   :  { %2571 = vpow2.f32 %v1537_v22 }
0x14c9   :  { %2573 = vpow2.f32 %v1539_v23 }
0x14ca   :  { %2575 = vpow2.f32 %v1541_v49  ;;  %v4174_v49 = vld [vmem:[%s4512_s2 + $0x6] sm:$0x3] }
0x14cb   :  { %2577 = vpow2.f32 %v1543_v1 }
0x14cc   :  { %v2568_v33 = vpop.eup %2567  ;;  %2579 = vpow2.f32 %v1545_v26 }
0x14cd   :  { %v2570_v19 = vpop.eup %2569  ;;  %v1549_v11 = vsel %vm191_vm2, %v2568_v33, 0.0  ;;  %2581 = vpow2.f32 %v1547_v50  ;;  %v4182_v50 = vld [vmem:[%s4512_s2 + $0x8] sm:$0x3] }
0x14ce   :  { %v2572_v2 = vpop.eup %2571  ;;  %v1550_v44 = vsel %vm191_vm2, %v2570_v19, 0.0 }
0x14cf   :  { %v2574_v46 = vpop.eup %2573  ;;  %v1551_v7 = vadd.f32 %v1550_v44, %v1549_v11  ;;  %v1552_v4 = vsel %vm191_vm2, %v2572_v2, 0.0 }
0x14d0   :  { %v2576_v56 = vpop.eup %2575  ;;  %v1554_v21 = vsel %vm191_vm2, %v2574_v46, 0.0 }
0x14d1   :  { %v1553_v18 = vadd.f32 %v1552_v4, %v1551_v7  ;;  %v2578_v60 = vpop.eup %2577  ;;  %v1556_v47 = vsel %vm191_vm2, %v2576_v56, 0.0  ;;  %v4189_v7 = vld [vmem:[%s4512_s2 + $0xa] sm:$0x3] }
0x14d2   :  { %v2580_v17 = vpop.eup %2579  ;;  %v1558_v31 = vsel %vm191_vm2, %v2578_v60, 0.0 }
0x14d3   :  { %v1555_v39 = vadd.f32 %v1554_v21, %v1553_v18  ;;  %v2582_v0 = vpop.eup %2581  ;;  %v1560_v8 = vsel %vm191_vm2, %v2580_v17, 0.0  ;;  %v4196_v21 = vld [vmem:[%s4512_s2 + $0xc] sm:$0x3] }
0x14d4   :  { %v1562_v28 = vsel %vm191_vm2, %v2582_v0, 0.0 }
0x14d5   :  { %v1557_v13 = vadd.f32 %v1556_v47, %v1555_v39 }
0x14d7   :  { %v1559_v57 = vadd.f32 %v1558_v31, %v1557_v13 }
0x14d9   :  { %v1561_v38 = vadd.f32 %v1560_v8, %v1559_v57 }
0x14db   :  { %v1563_v15 = vadd.f32 %v1562_v28, %v1561_v38  ;;  %v2408_v38 = vld [vmem:[%s4511_s1 + $0x8] sm:$0x3] }
0x14dd   :  { %2583 = vrcp.f32 %v1563_v15 }
0x14e3   :  { %v2584_v9 = vpop.eup %2583 }
0x14e4   :  { %v1565_v52 = vmul.f32 %v2584_v9, %v2568_v33  ;;  %v1566_v30 = vmul.f32 %v2584_v9, %v2570_v19  ;;  %v1567_v55 = vmul.f32 %v2584_v9, %v2572_v2  ;;  %v1568_v63 = vmul.f32 %v2584_v9, %v2574_v46 }
0x14e5   :  { %v1569_v6 = vmul.f32 %v2584_v9, %v2576_v56  ;;  %v1570_v51 = vmul.f32 %v2584_v9, %v2578_v60  ;;  %v1571_v19 = vmul.f32 %v2584_v9, %v2580_v17  ;;  %v1572_v46 = vmul.f32 %v2584_v9, %v2582_v0  ;;  %v4203_v17 = vld [vmem:[%s4512_s2 + $0xe] sm:$0x3]  ;;  %s2797_s2 = smov [#allocation2]  }
0x14e6   :  { %v1573_v48 = vmul.f32 %v4156_v24, %v1565_v52  ;;  %v1574_v22 = vmul.f32 %v4162_v34, %v1566_v30  ;;  %v1575_v23 = vmul.f32 %v4168_v16, %v1567_v55  ;;  %v1576_v3 = vmul.f32 %v4174_v49, %v1568_v63  ;;  %s2367_s11 = sshll.u32 %s2797_s2, 4  ;;  %s2368_s11 = int_to_ptr.vmem [resolvable:$true] %s2367_s11 }
0x14e7   :  { %v1577_v11 = vmul.f32 %v4182_v50, %v1569_v6  ;;  %v1578_v4 = vmul.f32 %v4189_v7, %v1570_v51  ;;  %v1579_v60 = vmul.f32 %v4196_v21, %v1571_v19  ;;  %v1580_v13 = vmul.f32 %v4203_v17, %v1572_v46  ;;  %v1601_v6 = vpop.permute.xlu1 %1600  ;;  %v2748_v51 = vld [vmem:[%s4517_s7 + $0x10] sm:$0xff] }
0x14e8   :  { %v1581_v1 = vsel %vm166_vm1, %v1573_v48, 0.0  ;;  %v1582_v26 = vsel %vm166_vm1, %v1574_v22, 0.0  ;;  %v1584_v2 = vsel %vm166_vm1, %v1575_v23, 0.0  ;;  %v1586_v56 = vsel %vm166_vm1, %v1576_v3, 0.0  ;;  %v2747_v23 = vld [vmem:[%s4517_s7 + $0x18] sm:$0xff]  ;;  %v2749_v3 = vld [vmem:[%s4517_s7 + $0x8] sm:$0xff] }
0x14e9   :  { %v1583_v33 = vadd.f32 %v1582_v26, %v1581_v1  ;;  %v1588_v39 = vsel %vm166_vm1, %v1577_v11, 0.0  ;;  %v1590_v31 = vsel %vm166_vm1, %v1578_v4, 0.0  ;;  %v1592_v57 = vsel %vm166_vm1, %v1579_v60, 0.0  ;;  %v2750_v1 = vld [vmem:[%s4517_s7] sm:$0xff] }
0x14ea   :  { %v1594_v8 = vsel %vm166_vm1, %v1580_v13, 0.0 }
0x14eb   :  { %v1585_v44 = vadd.f32 %v1584_v2, %v1583_v33  ;;  %v4232_v33 = vld [vmem:[%s4520_s10] ss:$0 sm:$0xff] }
0x14ed   :  { %v1587_v18 = vadd.f32 %v1586_v56, %v1585_v44 }
0x14ee   :  { %s2440_s3 = spop %2439 }
0x14ef   :  { %v1589_v47 = vadd.f32 %v1588_v39, %v1587_v18  ;;  %v1430_v28 = vstv %s2440_s3 }
0x14f0   :  { %v1432_v52 = vmul.f32 %v2408_v38, %v1430_v28 }
0x14f1   :  { %v1591_v0 = vadd.f32 %v1590_v31, %v1589_v47  ;;  %s2442_s9 = spop %2441 }
0x14f2   :  { %v1436_v15 = vstv %s2442_s9 }
0x14f3   :  { %v1593_v25 = vadd.f32 %v1592_v57, %v1591_v0 }
0x14f5   :  { %v1595_v20 = vadd.f32 %v1594_v8, %v1593_v25 }
0x14f7   :  { %1669 = vrot.lane.b32.xlu1 %v1595_v20, %s2792_s4  ;;  %1597 = vrot.lane.b32.xlu0 %v1595_v20, %s2791_s17 }
0x152d   :  { %v1422_v9 = vpop.f32.mrf.mxu0 }
0x152e   :  { %v1438_v30 = vmul.f32 %v1436_v15, %v1422_v9 }
0x1530   :  { %v1439_v55 = vadd.f32 %v1438_v30, %v1432_v52 }
0x1569   :  { %v1598_v63 = vpop.permute.xlu0 %1597  ;;  %v1670_v30 = vpop.permute.xlu1 %1669 }
0x156a   :  { %v1603_v48 = vsel %vm285_vm3, %v1439_v55, %v1598_v63 }
0x156b   :  { %v1604_v22 = vsel %vm287_vm4, %v1603_v48, %v1601_v6  ;;  %v2753_v6 = vld [vmem:[%s4516_s6 + $0x70] sm:$0xff]  ;;  %v2754_v48 = vld [vmem:[%s4516_s6 + $0x68] sm:$0xff] }
0x156c   :  { %2410 = vmatmul.msk.f32.vlgmr.msra.gmra.mxu1 %vm292_vm5, %v1604_v22  ;;  %v2755_v22 = vld [vmem:[%s4516_s6 + $0x60] sm:$0xff] }
0x156d   :  { %2106 = vmatpush.msra.mxu1 %v2747_v23  ;;  %v2756_v23 = vld [vmem:[%s4516_s6 + $0x58] sm:$0xff] }
0x156f   :  { %2107 = vmatpush.msra.mxu1 %v2748_v51  ;;  %v2757_v51 = vld [vmem:[%s4516_s6 + $0x50] sm:$0xff] }
0x1571   :  { %2108 = vmatpush.msra.mxu1 %v2749_v3  ;;  %v2758_v3 = vld [vmem:[%s4516_s6 + $0x48] sm:$0xff] }
0x1573   :  { %2109 = vmatpush.msra.mxu1 %v2750_v1  ;;  %v2759_v1 = vld [vmem:[%s4516_s6 + $0x40] sm:$0xff] }
0x15e9   :  { %v1625_v26 = vpop.f32.mrf.mxu1 }
0x15ea   :  { %v1626_v19 = vadd.f32 %v4232_v33, %v1625_v26  ;;  %v2760_v26 = vld [vmem:[%s4516_s6 + $0x38] sm:$0xff] }
0x15ec   :  { %2585 = vtanh.f32 %v1626_v19  ;;  %v2411_v2 = vmul.f32 -1.442695, %v1626_v19 }
0x15ee   :  { %2587 = vpow2.f32 %v2411_v2 }
0x15f2   :  { %v2586_v11 = vpop.eup %2585 }
0x15f3   :  { %1650 = vrot.lane.b32.xlu2 %v2586_v11, %s2793_s25  ;;  %v4286_v11 = vld [vmem:[%s4522_s12] ss:$0 sm:$0xff] }
0x15f4   :  { %v2588_v44 = vpop.eup %2587 }
0x15f5   :  { %v1631_v46 = vadd.f32 1.0, %v2588_v44 }
0x15f7   :  { %2589 = vrcp.f32 %v1631_v46  ;;  %v1643_v47 = vand.u32 2147483648, %v1631_v46  ;;  %vm1637_vm8 = vweird.f32 %v1631_v46  ;;  %v1641_v13 = vand.u32 2147483647, %v1631_v46 }
0x15f9   :  { %v1644_v0 = vor.u32 1.1754944e-38, %v1643_v47  ;;  %vm1642_vm11 = vcmp.eq.f32.partialorder %v1641_v13, 8.507059e+37 }
0x15fd   :  { %v2590_v4 = vpop.eup %2589 }
0x15fe   :  { %v1633_v56 = vmul.f32 %v2590_v4, %v1631_v46  ;;  %vm1638_vm7 = vweird.f32 %v2590_v4 }
0x15ff   :  { %vm1639_vm9 = vmor %vm1637_vm8, %vm1638_vm7 }
0x1600   :  { %v1634_v18 = vsub.f32 1.0, %v1633_v56 }
0x1602   :  { %v1635_v60 = vmul.f32 %v2590_v4, %v1634_v18 }
0x1604   :  { %v1636_v39 = vadd.f32 %v2590_v4, %v1635_v60 }
0x1606   :  { %v1640_v31 = vsel %vm1639_vm9, %v2590_v4, %v1636_v39 }
0x1607   :  { %v1645_v25 = vsel %vm1642_vm11, %v1644_v0, %v1640_v31 }
0x1608   :  { %v1648_v20 = vmul.f32 %v1645_v25, %v3970_v29  ;;  %v2752_v29 = vld [vmem:[%s4516_s6 + $0x78] sm:$0xff] }
0x164d   :  { %v1651_v57 = vpop.permute.xlu2 %1650 }
0x164e   :  { %v1653_v8 = vmul.f32 %v1651_v57, %v1645_v25 }
0x1650   :  { %1655 = vrot.lane.b32.xlu0 %v1653_v8, %s2792_s4 }
0x16c2   :  { %v1656_v38 = vpop.permute.xlu0 %1655 }
0x16c3   :  { %v4238_v28 = vadd.f32 %v1656_v38, %v1648_v20 }
0x16c5   :  { %2591 = vtanh.f32 %v4238_v28 }
0x16cb   :  { %v2592_v15 = vpop.eup %2591 }
0x16cc   :  { %1661 = vrot.lane.b32.xlu0 %v2592_v15, %s2793_s25 }
0x173e   :  { %v1662_v9 = vpop.permute.xlu0 %1661 }
0x173f   :  { %v4242_v52 = vmul.f32 %v1662_v9, %v1645_v25 }
0x1741   :  { %1666 = vrot.lane.b32.xlu2 %v4242_v52, %s2792_s4 }
0x179b   :  { %v1667_v55 = vpop.permute.xlu2 %1666 }
0x179c   :  { %v1672_v63 = vsel %vm115_vm0, %v1667_v55, %v1670_v30 }
0x179d   :  { %2412 = vmatmul.msk.f32.vlgmr.msra.gmra.mxu2 %vm368_vm10, %v1672_v63 }
0x179e   :  { %2057 = vmatpush.msra.mxu2 %v2752_v29 }
0x17a0   :  { %2058 = vmatpush.msra.mxu2 %v2753_v6 }
0x17a2   :  { %2059 = vmatpush.msra.mxu2 %v2754_v48 }
0x17a4   :  { %2060 = vmatpush.msra.mxu2 %v2755_v22 }
0x17a5   :  { %2416 = vmatmul.msk.f32.vlgmr.msrb.gmra.mxu2 %vm115_vm0, %v1667_v55 }
0x17a6   :  { %2061 = vmatpush.msra.mxu2 %v2756_v23 }
0x17a8   :  { %2062 = vmatpush.msra.mxu2 %v2757_v51 }
0x17aa   :  { %2063 = vmatpush.msra.mxu2 %v2758_v3 }
0x17ac   :  { %2064 = vmatpush.msra.mxu2 %v2759_v1 }
0x17ae   :  { %2065 = vmatpush.msra.mxu2 %v2760_v26 }
0x17b0   :  { %2066 = vmatpush.msra.mxu2 %v3993_v10 }
0x17b2   :  { %2067 = vmatpush.msra.mxu2 %v3999_v58 }
0x17b4   :  { %2068 = vmatpush.msra.mxu2 %v4005_v61 }
0x17b6   :  { %2069 = vmatpush.msra.mxu2 %v4011_v5 }
0x17b8   :  { %2070 = vmatpush.msra.mxu2 %v4017_v53 }
0x17ba   :  { %2071 = vmatpush.msra.mxu2 %v4023_v42 }
0x17bc   :  { %2072 = vmatpush.msra.mxu2 %v4029_v45 }
0x1820   :  { %v1693_v19 = vpop.f32.mrf.mxu2 }
0x1821   :  { %v4289_v10 = vadd.f32 %v4286_v11, %v1693_v19 }
0x1823   :  { %v1696_v58 = vsel %vm191_vm2, %v4289_v10, -inf }
0x1824   :  { %1697 = vmax.xlane.f32.xlu0 %v1696_v58 }
0x1828   :  { %v1785_v61 = vpop.f32.mrf.mxu2 }
0x1829   :  { %v1789_v5 = vadd.f32 %v4087_v37, %v1785_v61  ;;  %v1792_v42 = vadd.f32 %v4094_v32, %v1785_v61  ;;  %v1795_v4 = vadd.f32 %v4102_v14, %v1785_v61  ;;  %v1788_v0 = vadd.f32 %v4050_v59, %v1785_v61 }
0x182a   :  { %v1791_v38 = vadd.f32 %v4056_v12, %v1785_v61  ;;  %v1794_v55 = vadd.f32 %v4070_v27, %v1785_v61  ;;  %v1790_v23 = vadd.f32 %v4111_v54, %v1785_v61  ;;  %v1793_v58 = vadd.f32 %v4118_v41, %v1785_v61 }
0x182b   :  { %v1797_v53 = vmax.f32 %v1789_v5, 0.0  ;;  %v1800_v44 = vmax.f32 %v1792_v42, 0.0  ;;  %v1803_v18 = vmax.f32 %v1795_v4, 0.0  ;;  %v1796_v8 = vmax.f32 %v1788_v0, 0.0 }
0x182c   :  { %v1799_v9 = vmax.f32 %v1791_v38, 0.0  ;;  %v1802_v29 = vmax.f32 %v1794_v55, 0.0  ;;  %v1798_v26 = vmax.f32 %v1790_v23, 0.0 }
0x182d   :  { %v1805_v45 = vmul.f32 %v4062_v36, %v1797_v53  ;;  %v1808_v46 = vmul.f32 %v4062_v36, %v1800_v44  ;;  %v1811_v60 = vmul.f32 %v4062_v36, %v1803_v18  ;;  %v1804_v20 = vmul.f32 %v4062_v36, %v1796_v8 }
0x182e   :  { %v1807_v30 = vmul.f32 %v4062_v36, %v1799_v9  ;;  %v1810_v6 = vmul.f32 %v4062_v36, %v1802_v29  ;;  %v1806_v19 = vmul.f32 %v4062_v36, %v1798_v26  ;;  %v1801_v53 = vmax.f32 %v1793_v58, 0.0 }
0x182f   :  { %v1815_v2 = vsel %vm166_vm1, %v1805_v45, 0.0  ;;  %v1824_v56 = vsel %vm166_vm1, %v1808_v46, 0.0  ;;  %v1833_v39 = vsel %vm166_vm1, %v1811_v60, 0.0  ;;  %v1812_v15 = vsel %vm166_vm1, %v1804_v20, 0.0 }
0x1830   :  { %1816 = vadd.xlane.f32.xlu0 %v1815_v2  ;;  %v1821_v63 = vsel %vm166_vm1, %v1807_v30, 0.0  ;;  %v1830_v48 = vsel %vm166_vm1, %v1810_v6, 0.0  ;;  %v1818_v5 = vsel %vm166_vm1, %v1806_v19, 0.0  ;;  %v1809_v42 = vmul.f32 %v4062_v36, %v1801_v53 }
0x1838   :  { %1825 = vadd.xlane.f32.xlu0 %v1824_v56 }
0x1840   :  { %1834 = vadd.xlane.f32.xlu0 %v1833_v39 }
0x1897   :  { %v4302_v47 = vpop.xlane.xlu0 %1697 }
0x1898   :  { %vm1711_vm12 = vcmp.eq.f32.partialorder %v4289_v10, %v4302_v47 }
0x1899   :  { %v1712_v13 = vsel %vm1711_vm12, %v4552_v40, 128 }
0x189a   :  { %v1713_v31 = vsel %vm191_vm2, %v1712_v13, 2147483647 }
0x189b   :  { %v1715_v57 = vshra.s32 %v1713_v31, 16  ;;  %v1714_v22 = vand.u32 65535, %v1713_v31 }
0x189d   :  { %v1717_v25 = vcvt.s32.f32 %v1715_v57  ;;  %v1716_v3 = vcvt.s32.f32 %v1714_v22 }
0x189f   :  { %1718 = vmin.xlane.f32.xlu2 %v1717_v25 }
0x18a3   :  { %v1817_v2 = vpop.xlane.xlu0 %1816 }
0x18a7   :  { %1813 = vadd.xlane.f32.xlu2 %v1812_v15  ;;  %v1837_v15 = vsel %vm191_vm2, %v1817_v2, -inf }
0x18ab   :  { %v1826_v39 = vpop.xlane.xlu0 %1825 }
0x18ac   :  { %v1840_v9 = vsel %vm191_vm2, %v1826_v39, -inf }
0x18af   :  { %1822 = vadd.xlane.f32.xlu2 %v1821_v63 }
0x18b3   :  { %v1835_v0 = vpop.xlane.xlu0 %1834 }
0x18b4   :  { %v1846_v30 = vsel %vm191_vm2, %v1835_v0, -inf }
0x18b7   :  { %1831 = vadd.xlane.f32.xlu2 %v1830_v48 }
0x18cf   :  { %1926 = vrot.lane.b32.xlu2 %v4242_v52, %s2794_s28  ;;  %v1827_v52 = vsel %vm166_vm1, %v1809_v42, 0.0 }
0x1912   :  { %v1719_v51 = vpop.xlane.xlu2 %1718 }
0x1913   :  { %vm1720_vm13 = vcmp.eq.f32.partialorder %v1717_v25, %v1719_v51  ;;  %v1725_v44 = vcvt.f32.s32 %v1719_v51 }
0x1914   :  { %v1721_v1 = vsel %vm1720_vm13, %v1716_v3, inf }
0x1915   :  { %1722 = vmin.xlane.f32.xlu1 %v1721_v1  ;;  %v1726_v4 = vshll.u32 %v1725_v44, 16 }
0x191a   :  { %v1814_v45 = vpop.xlane.xlu2 %1813 }
0x191b   :  { %v1836_v57 = vsel %vm191_vm2, %v1814_v45, -inf }
0x191c   :  { %v1841_v63 = vmax.f32 %v1836_v57, %v1840_v9 }
0x191d   :  { %1819 = vadd.xlane.f32.xlu1 %v1818_v5 }
0x1922   :  { %v1823_v18 = vpop.xlane.xlu2 %1822 }
0x1923   :  { %v1839_v25 = vsel %vm191_vm2, %v1823_v18, -inf }
0x1924   :  { %v1847_v29 = vmax.f32 %v1839_v25, %v1846_v30 }
0x1925   :  { %1828 = vadd.xlane.f32.xlu1 %v1827_v52 }
0x192a   :  { %v1832_v13 = vpop.xlane.xlu2 %1831 }
0x192b   :  { %v1844_v8 = vsel %vm191_vm2, %v1832_v13, -inf }
0x1988   :  { %v1723_v46 = vpop.xlane.xlu1 %1722 }
0x1989   :  { %v1724_v56 = vcvt.f32.s32 %v1723_v46 }
0x198b   :  { %v1727_v60 = vadd.s32 %v1726_v4, %v1724_v56 }
0x198d   :  { %vm1728_vm14 = vcmp.eq.s32.totalorder %v4552_v40, %v1727_v60 }
0x198e   :  { %2414 = vmatmul.msk.f32.vlgmr.msra.gmra.mxu3 %vm1728_vm14, %v4556_v43 }
0x1990   :  { %v1820_v61 = vpop.xlane.xlu1 %1819 }
0x1991   :  { %v1838_v31 = vsel %vm191_vm2, %v1820_v61, -inf }
0x1992   :  { %v1845_v20 = vmax.f32 %v1838_v31, %v1844_v8 }
0x1994   :  { %v1849_v48 = vmax.f32 %v1845_v20, %v1847_v29 }
0x1998   :  { %v1829_v38 = vpop.xlane.xlu1 %1828 }
0x1999   :  { %v1842_v55 = vsel %vm191_vm2, %v1829_v38, -inf }
0x199a   :  { %v1843_v6 = vmax.f32 %v1837_v15, %v1842_v55 }
0x199c   :  { %v1848_v22 = vmax.f32 %v1841_v63, %v1843_v6 }
0x199e   :  { %v1850_v23 = vmax.f32 %v1848_v22, %v1849_v48  ;;  %v1751_v48 = vld [vmem:[%s4510_s0 + $0x5] sm:$0x1] }
0x199f   :  { %2443 = vpush %v1751_v48 }
0x19a0   :  { %v1851_v51 = vsub.f32 %v1814_v45, %v1850_v23  ;;  %v1852_v3 = vsub.f32 %v1817_v2, %v1850_v23  ;;  %v1853_v1 = vsub.f32 %v1820_v61, %v1850_v23  ;;  %v1854_v26 = vsub.f32 %v1823_v18, %v1850_v23 }
0x19a1   :  { %v1855_v19 = vsub.f32 %v1826_v39, %v1850_v23  ;;  %v1856_v42 = vsub.f32 %v1829_v38, %v1850_v23  ;;  %v1857_v44 = vsub.f32 %v1832_v13, %v1850_v23  ;;  %v1858_v4 = vsub.f32 %v1835_v0, %v1850_v23 }
0x19a2   :  { %v1859_v58 = vmul.f32 1.442695, %v1851_v51  ;;  %v1861_v5 = vmul.f32 1.442695, %v1852_v3  ;;  %v1863_v53 = vmul.f32 1.442695, %v1853_v1 }
0x19a3   :  { %v1865_v52 = vmul.f32 1.442695, %v1854_v26  ;;  %v1867_v46 = vmul.f32 1.442695, %v1855_v19  ;;  %v1869_v56 = vmul.f32 1.442695, %v1856_v42 }
0x19a4   :  { %2593 = vpow2.f32 %v1859_v58  ;;  %v1871_v60 = vmul.f32 1.442695, %v1857_v44  ;;  %v1873_v18 = vmul.f32 1.442695, %v1858_v4  ;;  %v1759_v23 = vsub.f32 1.0, %v1751_v48 }
0x19a5   :  { %2595 = vpow2.f32 %v1861_v5  ;;  %v2415_v48 = vld [vmem:[%s4511_s1 + $0xa] sm:$0x3] }
0x19a6   :  { %2597 = vpow2.f32 %v1863_v53  ;;  %2445 = vpush %v1759_v23 }
0x19a7   :  { %2599 = vpow2.f32 %v1865_v52 }
0x19a8   :  { %2601 = vpow2.f32 %v1867_v46 }
0x19a9   :  { %2603 = vpow2.f32 %v1869_v56 }
0x19aa   :  { %v2594_v45 = vpop.eup %2593  ;;  %2605 = vpow2.f32 %v1871_v60 }
0x19ab   :  { %v2596_v2 = vpop.eup %2595  ;;  %v1875_v39 = vsel %vm191_vm2, %v2594_v45, 0.0  ;;  %2607 = vpow2.f32 %v1873_v18 }
0x19ac   :  { %v2598_v61 = vpop.eup %2597  ;;  %v1876_v31 = vsel %vm191_vm2, %v2596_v2, 0.0 }
0x19ad   :  { %v2600_v57 = vpop.eup %2599  ;;  %v1877_v13 = vadd.f32 %v1876_v31, %v1875_v39  ;;  %v1878_v25 = vsel %vm191_vm2, %v2598_v61, 0.0 }
0x19ae   :  { %v2602_v8 = vpop.eup %2601  ;;  %v1880_v20 = vsel %vm191_vm2, %v2600_v57, 0.0 }
0x19af   :  { %v1879_v0 = vadd.f32 %v1878_v25, %v1877_v13  ;;  %v2604_v38 = vpop.eup %2603  ;;  %v1882_v9 = vsel %vm191_vm2, %v2602_v8, 0.0 }
0x19b0   :  { %v2606_v30 = vpop.eup %2605  ;;  %v1884_v63 = vsel %vm191_vm2, %v2604_v38, 0.0 }
0x19b1   :  { %v1881_v15 = vadd.f32 %v1880_v20, %v1879_v0  ;;  %v2608_v29 = vpop.eup %2607  ;;  %v1886_v22 = vsel %vm191_vm2, %v2606_v30, 0.0 }
0x19b2   :  { %v1888_v3 = vsel %vm191_vm2, %v2608_v29, 0.0 }
0x19b3   :  { %v1883_v55 = vadd.f32 %v1882_v9, %v1881_v15 }
0x19b5   :  { %v1885_v6 = vadd.f32 %v1884_v63, %v1883_v55 }
0x19b7   :  { %v1887_v51 = vadd.f32 %v1886_v22, %v1885_v6 }
0x19b9   :  { %v1889_v1 = vadd.f32 %v1888_v3, %v1887_v51 }
0x19bb   :  { %2609 = vrcp.f32 %v1889_v1 }
0x19c1   :  { %v2610_v26 = vpop.eup %2609 }
0x19c2   :  { %v1891_v19 = vmul.f32 %v2610_v26, %v2594_v45  ;;  %v1892_v58 = vmul.f32 %v2610_v26, %v2596_v2  ;;  %v1893_v5 = vmul.f32 %v2610_v26, %v2598_v61  ;;  %v1894_v53 = vmul.f32 %v2610_v26, %v2600_v57 }
0x19c3   :  { %v1895_v42 = vmul.f32 %v2610_v26, %v2602_v8  ;;  %v1896_v4 = vmul.f32 %v2610_v26, %v2604_v38  ;;  %v1897_v31 = vmul.f32 %v2610_v26, %v2606_v30  ;;  %v1898_v57 = vmul.f32 %v2610_v26, %v2608_v29 }
0x19c4   :  { %v1899_v52 = vmul.f32 %v4156_v24, %v1891_v19  ;;  %v1900_v44 = vmul.f32 %v4162_v34, %v1892_v58  ;;  %v1901_v46 = vmul.f32 %v4168_v16, %v1893_v5  ;;  %v1902_v56 = vmul.f32 %v4174_v49, %v1894_v53  ;;  %v1927_v58 = vpop.permute.xlu2 %1926 }
0x19c5   :  { %v1903_v45 = vmul.f32 %v4182_v50, %v1895_v42  ;;  %v1904_v13 = vmul.f32 %v4189_v7, %v1896_v4  ;;  %v1905_v0 = vmul.f32 %v4196_v21, %v1897_v31  ;;  %v1906_v15 = vmul.f32 %v4203_v17, %v1898_v57 }
0x19c6   :  { %v1907_v60 = vsel %vm166_vm1, %v1899_v52, 0.0  ;;  %v1908_v18 = vsel %vm166_vm1, %v1900_v44, 0.0  ;;  %v1910_v2 = vsel %vm166_vm1, %v1901_v46, 0.0  ;;  %v1912_v25 = vsel %vm166_vm1, %v1902_v56, 0.0 }
0x19c7   :  { %v1909_v39 = vadd.f32 %v1908_v18, %v1907_v60  ;;  %v1914_v20 = vsel %vm166_vm1, %v1903_v45, 0.0  ;;  %v1916_v9 = vsel %vm166_vm1, %v1904_v13, 0.0  ;;  %v1918_v55 = vsel %vm166_vm1, %v1905_v0, 0.0 }
0x19c8   :  { %v1920_v29 = vsel %vm166_vm1, %v1906_v15, 0.0 }
0x19c9   :  { %v1911_v61 = vadd.f32 %v1910_v2, %v1909_v39 }
0x19cb   :  { %v1913_v8 = vadd.f32 %v1912_v25, %v1911_v61 }
0x19cd   :  { %v1915_v38 = vadd.f32 %v1914_v20, %v1913_v8 }
0x19cf   :  { %v1917_v30 = vadd.f32 %v1916_v9, %v1915_v38 }
0x19d0   :  { %s2444_s7 = spop %2443 }
0x19d1   :  { %v1919_v63 = vadd.f32 %v1918_v55, %v1917_v30  ;;  %v1756_v22 = vstv %s2444_s7 }
0x19d2   :  { %v1758_v3 = vmul.f32 %v2415_v48, %v1756_v22 }
0x19d3   :  { %v1921_v6 = vadd.f32 %v1920_v29, %v1919_v63 }
0x19d5   :  { %1923 = vrot.lane.b32.xlu1 %v1921_v6, %s2791_s17 }
0x19d7   :  { %s2446_s10 = spop %2445 }
0x19d8   :  { %v1762_v23 = vstv %s2446_s10 }
0x1a11   :  { %v1748_v51 = vpop.f32.mrf.mxu3 }
0x1a12   :  { %v1764_v1 = vmul.f32 %v1762_v23, %v1748_v51 }
0x1a14   :  { %v1765_v26 = vadd.f32 %v1764_v1, %v1758_v3 }
0x1a47   :  { %v1924_v19 = vpop.permute.xlu1 %1923 }
0x1a48   :  { %v1929_v5 = vsel %vm285_vm3, %v1765_v26, %v1924_v19 }
0x1a49   :  { %v1930_v53 = vsel %vm287_vm4, %v1929_v5, %v1927_v58 }
0x1a4a   :  { %2417 = vmatmul.msk.f32.vlgmr.msrb.gmra.mxu0 %vm292_vm5, %v1930_v53 }
0x1ac7   :  { %v1951_v42 = vpop.f32.mrf.mxu0 }
0x1ac8   :  { %v1952_v52 = vadd.f32 %v4232_v33, %v1951_v42 }
0x1aca   :  { %2611 = vtanh.f32 %v1952_v52  ;;  %v2418_v46 = vmul.f32 -1.442695, %v1952_v52 }
0x1acc   :  { %2613 = vpow2.f32 %v2418_v46 }
0x1ad0   :  { %v2612_v44 = vpop.eup %2611 }
0x1ad1   :  { %1976 = vrot.lane.b32.xlu0 %v2612_v44, %s2793_s25 }
0x1ad2   :  { %v2614_v4 = vpop.eup %2613 }
0x1ad3   :  { %v1957_v56 = vadd.f32 1.0, %v2614_v4 }
0x1ad5   :  { %2615 = vrcp.f32 %v1957_v56  ;;  %v1969_v2 = vand.u32 2147483648, %v1957_v56  ;;  %vm1963_vm6 = vweird.f32 %v1957_v56  ;;  %v1967_v61 = vand.u32 2147483647, %v1957_v56 }
0x1ad7   :  { %v1970_v13 = vor.u32 1.1754944e-38, %v1969_v2  ;;  %vm1968_vm8 = vcmp.eq.f32.partialorder %v1967_v61, 8.507059e+37  ;;  %v2762_v2 = vld [vmem:[%s4518_s8] ss:$0 sm:$0xff] }
0x1adb   :  { %v2616_v60 = vpop.eup %2615 }
0x1adc   :  { %v1959_v18 = vmul.f32 %v2616_v60, %v1957_v56  ;;  %vm1964_vm15 = vweird.f32 %v2616_v60 }
0x1add   :  { %vm1965_vm7 = vmor %vm1963_vm6, %vm1964_vm15 }
0x1ade   :  { %v1960_v39 = vsub.f32 1.0, %v1959_v18 }
0x1ae0   :  { %v1961_v31 = vmul.f32 %v2616_v60, %v1960_v39 }
0x1ae2   :  { %v1962_v45 = vadd.f32 %v2616_v60, %v1961_v31 }
0x1ae4   :  { %v1966_v57 = vsel %vm1965_vm7, %v2616_v60, %v1962_v45 }
0x1ae5   :  { %v1971_v8 = vsel %vm1968_vm8, %v1970_v13, %v1966_v57 }
0x1ae6   :  { %v1974_v20 = vmul.f32 %v1971_v8, %v4238_v28 }
0x1b43   :  { %v1977_v25 = vpop.permute.xlu0 %1976 }
0x1b44   :  { %v1979_v0 = vmul.f32 %v1977_v25, %v1971_v8 }
0x1b46   :  { %1981 = vrot.lane.b32.xlu1 %v1979_v0, %s2792_s4 }
0x1b4e   :  { %1995 = vrot.lane.b32.xlu1 %v1921_v6, %s2792_s4 }
0x1bb8   :  { %v1982_v38 = vpop.permute.xlu1 %1981 }
0x1bb9   :  { %v4374_v15 = vadd.f32 %v1982_v38, %v1974_v20 }
0x1bbb   :  { %2617 = vtanh.f32 %v4374_v15 }
0x1bc0   :  { %v1996_v63 = vpop.permute.xlu1 %1995 }
0x1bc1   :  { %v2618_v9 = vpop.eup %2617 }
0x1bc2   :  { %1987 = vrot.lane.b32.xlu0 %v2618_v9, %s2793_s25 }
0x1c34   :  { %v1988_v30 = vpop.permute.xlu0 %1987 }
0x1c35   :  { %v1990_v55 = vmul.f32 %v1988_v30, %v1971_v8 }
0x1c37   :  { %1992 = vrot.lane.b32.xlu2 %v1990_v55, %s2792_s4 }
0x1c91   :  { %v1993_v29 = vpop.permute.xlu2 %1992 }
0x1c92   :  { %v1998_v48 = vsel %vm115_vm0, %v1993_v29, %v1996_v63 }
0x1c93   :  { %2419 = vmatmul.msk.f32.vlgmr.msrb.gmra.mxu1 %vm368_vm10, %v1998_v48 }
0x1c9b   :  { %2423 = vmatmul.msk.f32.vlgmr.msra.gmra.mxu1 %vm115_vm0, %v1993_v29 }
0x1d10   :  { %v2019_v28 = vpop.f32.mrf.mxu1 }
0x1d11   :  { %v4383_v6 = vadd.f32 %v4286_v11, %v2019_v28 }
0x1d13   :  { %v2022_v22 = vsel %vm191_vm2, %v4383_v6, -inf }
0x1d14   :  { %2023 = vmax.xlane.f32.xlu0 %v2022_v22 }
0x1d18   :  { %v2111_v23 = vpop.f32.mrf.mxu1 }
0x1d19   :  { %v2114_v51 = vadd.f32 %v4050_v59, %v2111_v23  ;;  %v2117_v1 = vadd.f32 %v4056_v12, %v2111_v23  ;;  %v2120_v11 = vadd.f32 %v4070_v27, %v2111_v23  ;;  %v2115_v46 = vadd.f32 %v4087_v37, %v2111_v23 }
0x1d1a   :  { %v2118_v39 = vadd.f32 %v4094_v32, %v2111_v23  ;;  %v2121_v57 = vadd.f32 %v4102_v14, %v2111_v23  ;;  %v2116_v8 = vadd.f32 %v4111_v54, %v2111_v23  ;;  %v2119_v14 = vadd.f32 %v4118_v41, %v2111_v23 }
0x1d1b   :  { %v2122_v3 = vmax.f32 %v2114_v51, 0.0  ;;  %v2125_v58 = vmax.f32 %v2117_v1, 0.0  ;;  %v2128_v42 = vmax.f32 %v2120_v11, 0.0  ;;  %v2123_v60 = vmax.f32 %v2115_v46, 0.0 }
0x1d1c   :  { %v2126_v45 = vmax.f32 %v2118_v39, 0.0  ;;  %v2129_v13 = vmax.f32 %v2121_v57, 0.0  ;;  %v2124_v9 = vmax.f32 %v2116_v8, 0.0  ;;  %v2127_v63 = vmax.f32 %v2119_v14, 0.0 }
0x1d1d   :  { %v2130_v26 = vmul.f32 %v4062_v36, %v2122_v3  ;;  %v2133_v5 = vmul.f32 %v4062_v36, %v2125_v58  ;;  %v2136_v52 = vmul.f32 %v4062_v36, %v2128_v42  ;;  %v2131_v18 = vmul.f32 %v4062_v36, %v2123_v60 }
0x1d1e   :  { %v2134_v61 = vmul.f32 %v2762_v2, %v2126_v45  ;;  %v2137_v25 = vmul.f32 %v2762_v2, %v2129_v13  ;;  %v2132_v30 = vmul.f32 %v2762_v2, %v2124_v9  ;;  %v2135_v29 = vmul.f32 %v2762_v2, %v2127_v63 }
0x1d1f   :  { %v2138_v19 = vsel %vm166_vm1, %v2130_v26, 0.0  ;;  %v2147_v53 = vsel %vm166_vm1, %v2133_v5, 0.0  ;;  %v2156_v59 = vsel %vm166_vm1, %v2136_v52, 0.0  ;;  %v2141_v31 = vsel %vm166_vm1, %v2131_v18, 0.0 }
0x1d20   :  { %2139 = vadd.xlane.f32.xlu0 %v2138_v19  ;;  %v2150_v37 = vsel %vm166_vm1, %v2134_v61, 0.0  ;;  %v2159_v36 = vsel %vm166_vm1, %v2137_v25, 0.0  ;;  %v2153_v48 = vsel %vm166_vm1, %v2135_v29, 0.0 }
0x1d28   :  { %2148 = vadd.xlane.f32.xlu0 %v2147_v53 }
0x1d30   :  { %2157 = vadd.xlane.f32.xlu0 %v2156_v59 }
0x1d44   :  { %2252 = vrot.lane.b32.xlu0 %v1990_v55, %s2794_s28  ;;  %v2144_v55 = vsel %vm166_vm1, %v2132_v30, 0.0 }
0x1d87   :  { %v4397_v12 = vpop.xlane.xlu0 %2023 }
0x1d88   :  { %vm2037_vm9 = vcmp.eq.f32.partialorder %v4383_v6, %v4397_v12 }
0x1d89   :  { %v2038_v44 = vsel %vm2037_vm9, %v4552_v40, 128 }
0x1d8a   :  { %v2039_v27 = vsel %vm191_vm2, %v2038_v44, 2147483647 }
0x1d8b   :  { %v2041_v4 = vshra.s32 %v2039_v27, 16  ;;  %v2040_v32 = vand.u32 65535, %v2039_v27 }
0x1d8d   :  { %v2043_v56 = vcvt.s32.f32 %v2041_v4  ;;  %v2042_v20 = vcvt.s32.f32 %v2040_v32 }
0x1d8f   :  { %2044 = vmin.xlane.f32.xlu2 %v2043_v56 }
0x1d93   :  { %v2140_v28 = vpop.xlane.xlu0 %2139 }
0x1d94   :  { %v2162_v27 = vsel %vm191_vm2, %v2140_v28, -inf }
0x1d97   :  { %2142 = vadd.xlane.f32.xlu2 %v2141_v31 }
0x1d9b   :  { %v2149_v26 = vpop.xlane.xlu0 %2148 }
0x1d9c   :  { %v2165_v46 = vsel %vm191_vm2, %v2149_v26, -inf }
0x1d9f   :  { %2151 = vadd.xlane.f32.xlu2 %v2150_v37 }
0x1da3   :  { %v2158_v23 = vpop.xlane.xlu0 %2157 }
0x1da4   :  { %v2170_v53 = vsel %vm191_vm2, %v2158_v23, -inf }
0x1da7   :  { %2160 = vadd.xlane.f32.xlu2 %v2159_v36 }
0x1e02   :  { %v2045_v0 = vpop.xlane.xlu2 %2044 }
0x1e03   :  { %vm2046_vm11 = vcmp.eq.f32.partialorder %v2043_v56, %v2045_v0  ;;  %v2051_v54 = vcvt.f32.s32 %v2045_v0 }
0x1e04   :  { %v2047_v38 = vsel %vm2046_vm11, %v2042_v20, inf }
0x1e05   :  { %2048 = vmin.xlane.f32.xlu1 %v2047_v38  ;;  %v2052_v3 = vshll.u32 %v2051_v54, 16 }
0x1e0a   :  { %v2143_v22 = vpop.xlane.xlu2 %2142 }
0x1e0d   :  { %2145 = vadd.xlane.f32.xlu1 %v2144_v55 }
0x1e12   :  { %v2152_v19 = vpop.xlane.xlu2 %2151 }
0x1e13   :  { %v2166_v42 = vsel %vm191_vm2, %v2152_v19, -inf }
0x1e14   :  { %v2167_v4 = vmax.f32 %v2162_v27, %v2166_v42 }
0x1e15   :  { %2154 = vadd.xlane.f32.xlu1 %v2153_v48 }
0x1e1a   :  { %v2161_v5 = vpop.xlane.xlu2 %2160 }
0x1e1b   :  { %v2172_v52 = vsel %vm191_vm2, %v2161_v5, -inf }
0x1e1c   :  { %v2173_v56 = vmax.f32 %v2165_v46, %v2172_v52  ;;  %v2077_v52 = vld [vmem:[%s4510_s0 + $0x6] sm:$0x1] }
0x1e1d   :  { %2447 = vpush %v2077_v52 }
0x1e4e   :  { %s2448_s0 = spop %2447 }
0x1e78   :  { %v2049_v51 = vpop.xlane.xlu1 %2048 }
0x1e79   :  { %v2050_v1 = vcvt.f32.s32 %v2049_v51 }
0x1e7b   :  { %v2053_v58 = vadd.s32 %v2052_v3, %v2050_v1 }
0x1e7d   :  { %vm2054_vm12 = vcmp.eq.s32.totalorder %v4552_v40, %v2053_v58  ;;  %v2163_v40 = vsel %vm191_vm2, %v2143_v22, -inf }
0x1e7e   :  { %2421 = vmatmul.msk.f32.vlgmr.msra.gmra.mxu2 %vm2054_vm12, %v4556_v43 }
0x1e80   :  { %v2146_v41 = vpop.xlane.xlu1 %2145 }
0x1e81   :  { %v2164_v11 = vsel %vm191_vm2, %v2146_v41, -inf }
0x1e82   :  { %v2171_v59 = vmax.f32 %v2164_v11, %v2170_v53 }
0x1e84   :  { %v2175_v18 = vmax.f32 %v2171_v59, %v2173_v56 }
0x1e88   :  { %v2155_v44 = vpop.xlane.xlu1 %2154 }
0x1e89   :  { %v2168_v43 = vsel %vm191_vm2, %v2155_v44, -inf }
0x1e8a   :  { %v2169_v60 = vmax.f32 %v2163_v40, %v2168_v43 }
0x1e8c   :  { %v2174_v39 = vmax.f32 %v2167_v4, %v2169_v60 }
0x1e8e   :  { %v2176_v31 = vmax.f32 %v2174_v39, %v2175_v18 }
0x1e90   :  { %v2177_v45 = vsub.f32 %v2140_v28, %v2176_v31  ;;  %v2178_v2 = vsub.f32 %v2143_v22, %v2176_v31  ;;  %v2179_v61 = vsub.f32 %v2146_v41, %v2176_v31  ;;  %v2180_v57 = vsub.f32 %v2149_v26, %v2176_v31 }
0x1e91   :  { %v2181_v37 = vsub.f32 %v2152_v19, %v2176_v31  ;;  %v2182_v32 = vsub.f32 %v2155_v44, %v2176_v31  ;;  %v2183_v0 = vsub.f32 %v2158_v23, %v2176_v31  ;;  %v2184_v38 = vsub.f32 %v2161_v5, %v2176_v31 }
0x1e92   :  { %v2185_v13 = vmul.f32 1.442695, %v2177_v45  ;;  %v2187_v25 = vmul.f32 1.442695, %v2178_v2  ;;  %v2189_v36 = vmul.f32 1.442695, %v2179_v61 }
0x1e93   :  { %v2191_v8 = vmul.f32 1.442695, %v2180_v57  ;;  %v2193_v20 = vmul.f32 1.442695, %v2181_v37  ;;  %v2195_v9 = vmul.f32 1.442695, %v2182_v32 }
0x1e94   :  { %2619 = vpow2.f32 %v2185_v13  ;;  %v2197_v30 = vmul.f32 1.442695, %v2183_v0  ;;  %v2199_v63 = vmul.f32 1.442695, %v2184_v38  ;;  %v2085_v44 = vsub.f32 1.0, %v2077_v52 }
0x1e95   :  { %2621 = vpow2.f32 %v2187_v25 }
0x1e96   :  { %2623 = vpow2.f32 %v2189_v36  ;;  %2449 = vpush %v2085_v44 }
0x1e97   :  { %2625 = vpow2.f32 %v2191_v8 }
0x1e98   :  { %2627 = vpow2.f32 %v2193_v20 }
0x1e99   :  { %2629 = vpow2.f32 %v2195_v9 }
0x1e9a   :  { %v2620_v14 = vpop.eup %2619  ;;  %2631 = vpow2.f32 %v2197_v30 }
0x1e9b   :  { %v2622_v55 = vpop.eup %2621  ;;  %v2201_v29 = vsel %vm191_vm2, %v2620_v14, 0.0  ;;  %2633 = vpow2.f32 %v2199_v63 }
0x1e9c   :  { %v2624_v48 = vpop.eup %2623  ;;  %v2202_v28 = vsel %vm191_vm2, %v2622_v55, 0.0 }
0x1e9d   :  { %v2626_v22 = vpop.eup %2625  ;;  %v2203_v54 = vadd.f32 %v2202_v28, %v2201_v29  ;;  %v2204_v51 = vsel %vm191_vm2, %v2624_v48, 0.0 }
0x1e9e   :  { %v2628_v3 = vpop.eup %2627  ;;  %v2206_v26 = vsel %vm191_vm2, %v2626_v22, 0.0 }
0x1e9f   :  { %v2205_v1 = vadd.f32 %v2204_v51, %v2203_v54  ;;  %v2630_v19 = vpop.eup %2629  ;;  %v2208_v41 = vsel %vm191_vm2, %v2628_v3, 0.0 }
0x1ea0   :  { %v2632_v23 = vpop.eup %2631  ;;  %v2210_v11 = vsel %vm191_vm2, %v2630_v19, 0.0 }
0x1ea1   :  { %v2207_v58 = vadd.f32 %v2206_v26, %v2205_v1  ;;  %v2634_v53 = vpop.eup %2633  ;;  %v2212_v59 = vsel %vm191_vm2, %v2632_v23, 0.0  ;;  %v2253_v1 = vpop.permute.xlu0 %2252 }
0x1ea2   :  { %v2214_v46 = vsel %vm191_vm2, %v2634_v53, 0.0 }
0x1ea3   :  { %v2209_v5 = vadd.f32 %v2208_v41, %v2207_v58 }
0x1ea5   :  { %v2211_v42 = vadd.f32 %v2210_v11, %v2209_v5 }
0x1ea7   :  { %v2213_v27 = vadd.f32 %v2212_v59, %v2211_v42 }
0x1ea9   :  { %v2215_v40 = vadd.f32 %v2214_v46, %v2213_v27 }
0x1eab   :  { %2635 = vrcp.f32 %v2215_v40 }
0x1eb1   :  { %v2636_v43 = vpop.eup %2635 }
0x1eb2   :  { %v2217_v4 = vmul.f32 %v2636_v43, %v2620_v14  ;;  %v2218_v56 = vmul.f32 %v2636_v43, %v2622_v55  ;;  %v2219_v60 = vmul.f32 %v2636_v43, %v2624_v48  ;;  %v2220_v18 = vmul.f32 %v2636_v43, %v2626_v22 }
0x1eb3   :  { %v2221_v39 = vmul.f32 %v2636_v43, %v2628_v3  ;;  %v2222_v61 = vmul.f32 %v2636_v43, %v2630_v19  ;;  %v2223_v36 = vmul.f32 %v2636_v43, %v2632_v23  ;;  %v2224_v20 = vmul.f32 %v2636_v43, %v2634_v53 }
0x1eb4   :  { %v2225_v31 = vmul.f32 %v4156_v24, %v2217_v4  ;;  %v2226_v45 = vmul.f32 %v4162_v34, %v2218_v56  ;;  %v2227_v2 = vmul.f32 %v4168_v16, %v2219_v60  ;;  %v2228_v57 = vmul.f32 %v4174_v49, %v2220_v18  ;;  %v4557_v18 = vld [vmem:[#allocation6_spill] sm:$0xff] }
0x1eb5   :  { %v2229_v32 = vmul.f32 %v4182_v50, %v2221_v39  ;;  %v2230_v24 = vmul.f32 %v4189_v7, %v2222_v61  ;;  %v2231_v38 = vmul.f32 %v4196_v21, %v2223_v36  ;;  %v2232_v30 = vmul.f32 %v4203_v17, %v2224_v20  ;;  %v2422_v7 = vld [vmem:[%s4511_s1 + $0xc] sm:$0x3]  ;;  %v4558_v39 = vld [vmem:[#allocation5_spill] sm:$0xff] }
0x1eb6   :  { %v2233_v37 = vsel %vm166_vm1, %v2225_v31, 0.0  ;;  %v2234_v13 = vsel %vm166_vm1, %v2226_v45, 0.0  ;;  %v2236_v8 = vsel %vm166_vm1, %v2227_v2, 0.0  ;;  %v2238_v34 = vsel %vm166_vm1, %v2228_v57, 0.0 }
0x1eb7   :  { %v2235_v25 = vadd.f32 %v2234_v13, %v2233_v37  ;;  %v2240_v49 = vsel %vm166_vm1, %v2229_v32, 0.0  ;;  %v2242_v14 = vsel %vm166_vm1, %v2230_v24, 0.0  ;;  %v2244_v50 = vsel %vm166_vm1, %v2231_v38, 0.0 }
0x1eb8   :  { %v2246_v29 = vsel %vm166_vm1, %v2232_v30, 0.0  ;;  %v2082_v21 = vstv %s2448_s0  ;;  %v721_v31 = vsub.f32 %v4558_v39, %v4557_v18  ;;  %v1699_v2 = vsub.f32 %v4289_v10, %v4302_v47 }
0x1eb9   :  { %v2237_v0 = vadd.f32 %v2236_v8, %v2235_v25  ;;  %v2084_v22 = vmul.f32 %v2422_v7, %v2082_v21  ;;  %v2796_v36 = vmov 0.0   ;;  %v4560_v7 = vld [vmem:[#allocation7_spill] sm:$0xff] }
0x1eba   :  { %v722_v45 = vmul.f32 1.442695, %v721_v31  ;;  %v1700_v61 = vmul.f32 1.442695, %v1699_v2  ;;  %104 = vst [vmem:[#allocation2] sm:$0x3] %v2796_v36 }
0x1ebb   :  { %v2239_v16 = vadd.f32 %v2238_v34, %v2237_v0  ;;  %106 = vst [vmem:[#allocation2 + $0x4] sm:$0x3] %v2796_v36 }
0x1ebc   :  { %105 = vst [vmem:[#allocation2 + $0x2] sm:$0x3] %v2796_v36 }
0x1ebd   :  { %v2241_v9 = vadd.f32 %v2240_v49, %v2239_v16  ;;  %107 = vst [vmem:[#allocation2 + $0x6] sm:$0x3] %v2796_v36 }
0x1ebe   :  { %108 = vst [vmem:[#allocation2 + $0x8] sm:$0x3] %v2796_v36 }
0x1ebf   :  { %v2243_v55 = vadd.f32 %v2242_v14, %v2241_v9  ;;  %109 = vst [vmem:[#allocation2 + $0xa] sm:$0x3] %v2796_v36 }
0x1ec0   :  { %110 = vst [vmem:[#allocation2 + $0xc] sm:$0x3] %v2796_v36 }
0x1ec1   :  { %v2245_v63 = vadd.f32 %v2244_v50, %v2243_v55  ;;  %111 = vst [vmem:[#allocation2 + $0xe] sm:$0x3] %v2796_v36 }
0x1ec3   :  { %v2247_v48 = vadd.f32 %v2246_v29, %v2245_v63 }
0x1ec5   :  { %2249 = vrot.lane.b32.xlu1 %v2247_v48, %s2791_s17 }
0x1ec7   :  { %s2450_s21 = spop %2449 }
0x1ec8   :  { %v2088_v28 = vstv %s2450_s21 }
0x1f01   :  { %v2074_v17 = vpop.f32.mrf.mxu2 }
0x1f02   :  { %v2090_v54 = vmul.f32 %v2088_v28, %v2074_v17  ;;  %v1373_v17 = vsub.f32 %v4043_v35, %v4078_v62 }
0x1f04   :  { %v2091_v51 = vadd.f32 %v2090_v54, %v2084_v22  ;;  %v1374_v22 = vmul.f32 1.442695, %v1373_v17 }
0x1f37   :  { %v2250_v3 = vpop.permute.xlu1 %2249 }
0x1f38   :  { %v2255_v26 = vsel %vm285_vm3, %v2091_v51, %v2250_v3 }
0x1f39   :  { %v2256_v19 = vsel %vm287_vm4, %v2255_v26, %v2253_v1 }
0x1f3a   :  { %2424 = vmatmul.msk.f32.vlgmr.msrb.gmra.mxu3 %vm292_vm5, %v2256_v19 }
0x1fbd   :  { %v2277_v58 = vpop.f32.mrf.mxu3 }
0x1fbe   :  { %v2278_v41 = vadd.f32 %v4232_v33, %v2277_v58 }
0x1fc0   :  { %2637 = vtanh.f32 %v2278_v41  ;;  %v2425_v5 = vmul.f32 -1.442695, %v2278_v41 }
0x1fc2   :  { %2639 = vpow2.f32 %v2425_v5 }
0x1fc6   :  { %v2638_v23 = vpop.eup %2637 }
0x1fc7   :  { %2302 = vrot.lane.b32.xlu2 %v2638_v23, %s2793_s25 }
0x1fc8   :  { %v2640_v11 = vpop.eup %2639 }
0x1fc9   :  { %v2283_v53 = vadd.f32 1.0, %v2640_v11 }
0x1fcb   :  { %2641 = vrcp.f32 %v2283_v53  ;;  %v2295_v46 = vand.u32 2147483648, %v2283_v53  ;;  %vm2289_vm3 = vweird.f32 %v2283_v53  ;;  %v2293_v40 = vand.u32 2147483647, %v2283_v53 }
0x1fcc   :  { %2643 = vpow2.f32 %v722_v45 }
0x1fcd   :  { %v2296_v43 = vor.u32 1.1754944e-38, %v2295_v46  ;;  %vm2294_vm5 = vcmp.eq.f32.partialorder %v2293_v40, 8.507059e+37  ;;  %2645 = vpow2.f32 %v1700_v61 }
0x1fd1   :  { %v2642_v42 = vpop.eup %2641 }
0x1fd2   :  { %v2285_v52 = vmul.f32 %v2642_v42, %v2283_v53  ;;  %vm2290_vm1 = vweird.f32 %v2642_v42  ;;  %v2644_v57 = vpop.eup %2643 }
0x1fd3   :  { %vm2291_vm4 = vmor %vm2289_vm3, %vm2290_vm1  ;;  %v724_v37 = vsel %vm191_vm2, %v2644_v57, 0.0  ;;  %v2646_v13 = vpop.eup %2645 }
0x1fd4   :  { %v2286_v59 = vsub.f32 1.0, %v2285_v52  ;;  %v1702_v25 = vsel %vm191_vm2, %v2646_v13, 0.0 }
0x1fd6   :  { %v2287_v44 = vmul.f32 %v2642_v42, %v2286_v59  ;;  %v4561_v59 = vld [vmem:[#allocation10_spill] sm:$0xff] }
0x1fd8   :  { %v2288_v27 = vadd.f32 %v2642_v42, %v2287_v44  ;;  %v4562_v44 = vld [vmem:[#allocation8_spill] sm:$0xff] }
0x1fda   :  { %v2292_v33 = vsel %vm2291_vm4, %v2642_v42, %v2288_v27  ;;  %v1047_v27 = vsub.f32 %v4562_v44, %v4561_v59 }
0x1fdb   :  { %v2297_v56 = vsel %vm2294_vm5, %v2296_v43, %v2292_v33  ;;  %v2763_v33 = vld [vmem:[%s4522_s12] ss:$0 sm:$0xff] }
0x1fdc   :  { %v2300_v32 = vmul.f32 %v2297_v56, %v4374_v15  ;;  %v1048_v46 = vmul.f32 1.442695, %v1047_v27 }
0x2021   :  { %v2303_v4 = vpop.permute.xlu2 %2302 }
0x2022   :  { %v2305_v60 = vmul.f32 %v2303_v4, %v2297_v56  ;;  %v2025_v4 = vsub.f32 %v4383_v6, %v4397_v12 }
0x2024   :  { %2307 = vrot.lane.b32.xlu0 %v2305_v60, %s2792_s4 }
0x202c   :  { %2321 = vrot.lane.b32.xlu0 %v2247_v48, %s2792_s4  ;;  %v4559_v48 = vld [vmem:[#allocation9_spill] sm:$0xff] }
0x202d   :  { %v395_v21 = vsub.f32 %v4560_v7, %v4559_v48 }
0x202f   :  { %v396_v28 = vmul.f32 1.442695, %v395_v21 }
0x2056   :  { %725 = vadd.xlane.f32.xlu0 %v724_v37 }
0x205e   :  { %1703 = vadd.xlane.f32.xlu0 %v1702_v25 }
0x2096   :  { %v2308_v8 = vpop.permute.xlu0 %2307 }
0x2097   :  { %v2310_v0 = vadd.f32 %v2308_v8, %v2300_v32 }
0x2099   :  { %2647 = vtanh.f32 %v2310_v0 }
0x209e   :  { %v2322_v24 = vpop.permute.xlu0 %2321 }
0x209f   :  { %v2648_v20 = vpop.eup %2647 }
0x20a0   :  { %2313 = vrot.lane.b32.xlu1 %v2648_v20, %s2793_s25 }
0x20c9   :  { %v726_v34 = vpop.xlane.xlu0 %725 }
0x20ca   :  { %2649 = vlog2.f32 %v726_v34 }
0x20d0   :  { %v2650_v16 = vpop.eup %2649 }
0x20d1   :  { %v728_v38 = vmul.f32 0.6931472, %v2650_v16  ;;  %v1704_v49 = vpop.xlane.xlu0 %1703 }
0x20d2   :  { %2651 = vlog2.f32 %v1704_v49 }
0x20d3   :  { %v729_v9 = vadd.f32 %v728_v38, %v4557_v18  ;;  %2653 = vpow2.f32 %v396_v28 }
0x20d4   :  { %2655 = vpow2.f32 %v1374_v22 }
0x20d5   :  { %v730_v30 = vsub.f32 %v4558_v39, %v729_v9 }
0x20d7   :  { %732 = vst [vmem:[#allocation2 + $0x4] sm:$0x3] %v730_v30 }
0x20d8   :  { %v2652_v14 = vpop.eup %2651 }
0x20d9   :  { %v1706_v15 = vmul.f32 0.6931472, %v2652_v14  ;;  %v2654_v54 = vpop.eup %2653 }
0x20db   :  { %v1707_v55 = vadd.f32 %v1706_v15, %v4302_v47  ;;  %v398_v47 = vsel %vm191_vm2, %v2654_v54, 0.0 }
0x20dd   :  { %v1708_v50 = vsub.f32 %v4289_v10, %v1707_v55  ;;  %v2656_v10 = vpop.eup %2655 }
0x20de   :  { %v1376_v51 = vsel %vm191_vm2, %v2656_v10, 0.0 }
0x20df   :  { %1710 = vst [vmem:[#allocation2 + $0xa] sm:$0x3] %v1708_v50 }
0x2112   :  { %v2314_v63 = vpop.permute.xlu1 %2313 }
0x2113   :  { %v2316_v29 = vmul.f32 %v2314_v63, %v2297_v56 }
0x2115   :  { %2318 = vrot.lane.b32.xlu2 %v2316_v29, %s2792_s4 }
0x213e   :  { %399 = vadd.xlane.f32.xlu2 %v398_v47 }
0x2146   :  { %1377 = vadd.xlane.f32.xlu2 %v1376_v51 }
0x216f   :  { %v2319_v3 = vpop.permute.xlu2 %2318 }
0x2170   :  { %v2324_v1 = vsel %vm115_vm0, %v2319_v3, %v2322_v24 }
0x2171   :  { %2426 = vmatmul.msk.f32.vlgmr.msra.gmra.mxu0 %vm368_vm10, %v2324_v1 }
0x21b1   :  { %v400_v26 = vpop.xlane.xlu2 %399 }
0x21b2   :  { %2657 = vlog2.f32 %v400_v26 }
0x21b8   :  { %v2658_v19 = vpop.eup %2657 }
0x21b9   :  { %v402_v58 = vmul.f32 0.6931472, %v2658_v19  ;;  %v1378_v41 = vpop.xlane.xlu2 %1377 }
0x21ba   :  { %2659 = vlog2.f32 %v1378_v41 }
0x21bb   :  { %v403_v23 = vadd.f32 %v402_v58, %v4559_v48  ;;  %2661 = vpow2.f32 %v1048_v46 }
0x21bd   :  { %v404_v5 = vsub.f32 %v4560_v7, %v403_v23 }
0x21bf   :  { %406 = vst [vmem:[#allocation2 + $0x2] sm:$0x3] %v404_v5 }
0x21c0   :  { %v2660_v11 = vpop.eup %2659 }
0x21c1   :  { %v1380_v53 = vmul.f32 0.6931472, %v2660_v11 }
0x21c3   :  { %v1381_v42 = vadd.f32 %v1380_v53, %v4078_v62  ;;  %v2026_v62 = vmul.f32 1.442695, %v2025_v4 }
0x21c5   :  { %v1382_v52 = vsub.f32 %v4043_v35, %v1381_v42  ;;  %v2662_v35 = vpop.eup %2661  ;;  %2663 = vpow2.f32 %v2026_v62 }
0x21c6   :  { %v1050_v60 = vsel %vm191_vm2, %v2662_v35, 0.0 }
0x21c7   :  { %1384 = vst [vmem:[#allocation2 + $0x8] sm:$0x3] %v1382_v52 }
0x21cb   :  { %v2664_v18 = vpop.eup %2663 }
0x21cc   :  { %v2028_v39 = vsel %vm191_vm2, %v2664_v18, 0.0 }
0x21ee   :  { %v2345_v40 = vpop.f32.mrf.mxu0 }
0x21ef   :  { %v2346_v43 = vadd.f32 %v2763_v33, %v2345_v40 }
0x21f1   :  { %v2348_v56 = vsel %vm191_vm2, %v2346_v43, -inf }
0x21f2   :  { %2349 = vmax.xlane.f32.xlu1 %v2348_v56 }
0x21fa   :  { %1051 = vadd.xlane.f32.xlu1 %v1050_v60 }
0x2202   :  { %2029 = vadd.xlane.f32.xlu1 %v2028_v39 }
0x2265   :  { %v2350_v31 = vpop.xlane.xlu1 %2349 }
0x2266   :  { %v2351_v45 = vsub.f32 %v2346_v43, %v2350_v31 }
0x2268   :  { %v2352_v2 = vmul.f32 1.442695, %v2351_v45 }
0x226a   :  { %2665 = vpow2.f32 %v2352_v2 }
0x226d   :  { %v1052_v61 = vpop.xlane.xlu1 %1051 }
0x226e   :  { %2667 = vlog2.f32 %v1052_v61 }
0x2270   :  { %v2666_v57 = vpop.eup %2665 }
0x2271   :  { %v2354_v37 = vsel %vm191_vm2, %v2666_v57, 0.0 }
0x2272   :  { %2355 = vadd.xlane.f32.xlu2 %v2354_v37 }
0x2274   :  { %v2668_v13 = vpop.eup %2667 }
0x2275   :  { %v1054_v25 = vmul.f32 0.6931472, %v2668_v13  ;;  %v2030_v36 = vpop.xlane.xlu1 %2029 }
0x2276   :  { %2669 = vlog2.f32 %v2030_v36 }
0x2277   :  { %v1055_v32 = vadd.f32 %v1054_v25, %v4561_v59 }
0x2279   :  { %v1056_v8 = vsub.f32 %v4562_v44, %v1055_v32 }
0x227b   :  { %1058 = vst [vmem:[#allocation2 + $0x6] sm:$0x3] %v1056_v8 }
0x227c   :  { %v2670_v0 = vpop.eup %2669 }
0x227d   :  { %v2032_v20 = vmul.f32 0.6931472, %v2670_v0 }
0x227f   :  { %v2033_v24 = vadd.f32 %v2032_v20, %v4397_v12 }
0x2281   :  { %v2034_v34 = vsub.f32 %v4383_v6, %v2033_v24 }
0x2283   :  { %2036 = vst [vmem:[#allocation2 + $0xc] sm:$0x3] %v2034_v34 }
0x22e5   :  { %v2356_v16 = vpop.xlane.xlu2 %2355 }
0x22e6   :  { %2671 = vlog2.f32 %v2356_v16 }
0x22ec   :  { %v2672_v38 = vpop.eup %2671 }
0x22ed   :  { %v2358_v49 = vmul.f32 0.6931472, %v2672_v38 }
0x22ef   :  { %v2359_v9 = vadd.f32 %v2358_v49, %v2350_v31 }
0x22f1   :  { %v2360_v30 = vsub.f32 %v2346_v43, %v2359_v9 }
0x22f3   :  { %2362 = vst [vmem:[#allocation2 + $0xe] sm:$0x3] %v2360_v30 }
0x22f4   :  { %2375 = dma.vmem_to_hbm [thread:$0]  %s2368_s11, 256, %s2370_s22, [#allocation3], %s2792_s4, %s2792_s4, %s2798_s23  }
0x22f5   :  { %2788 = dma.done.wait [#allocation3], 256  }
0x22f6   :  { %2789 = vsyncadd [#allocation3], 4294967040 }
0x22f7   :  { %2380 = vsyncpa [#allocation3], 1 }

</bundles_post_ra>
